<compile_context>
chip_gen: v5e
topology: v5e:2x2
jax: 0.10.0
libtpu: 0.0.40
codegen_flags: <defaults>
</compile_context>

<pallas_src>
import functools

import numpy as np

import jax
import jax.numpy as jnp
from jax.experimental import pallas as pl
from jax.experimental.pallas import tpu as pltpu


def bn_relu_conv_kernel(x_ref, gamma_ref, beta_ref, mask_ref, w_ref, o_ref, *, eps):
    # x_ref:     [Cin, HW]      f32 input (N=1; channels on sublanes, spatial on lanes)
    # gamma_ref: [Cin, 1]       BN scale
    # beta_ref:  [Cin, 1]       BN shift
    # mask_ref:  [2, HW]        bf16 {0,1}: row 0 = "has left neighbour in same image
    #                           row", row 1 = "has right neighbour in same image row"
    # w_ref:     [Cout, 3*Cin]  bf16 conv weights, K ordered as (kw, cin)
    # o_ref:     [Cout, HW]     f32 output
    x = x_ref[...]
    cin, hw = x.shape

    # --- BatchNorm2d, training mode: batch stats over N*H*W (N=1), biased variance ---
    inv_hw = 1.0 / hw
    mean = jnp.sum(x, axis=1, keepdims=True) * inv_hw            # [Cin, 1]
    xc = x - mean
    var = jnp.sum(xc * xc, axis=1, keepdims=True) * inv_hw       # [Cin, 1]
    inv_std = jax.lax.rsqrt(var + eps)
    scale = gamma_ref[...] * inv_std                             # fused affine
    shift = beta_ref[...] - mean * scale

    # --- ReLU, then drop to bf16 for the shift/concat/matmul (MXU-native) ---
    y = jnp.maximum(x * scale + shift, 0.0).astype(jnp.bfloat16) # [Cin, HW]

    # --- width shifts for the (1,3) taps; all within one 128-lane group ---
    masks = mask_ref[...]                                        # [2, HW] bf16
    zero_col = jnp.zeros((cin, 1), dtype=y.dtype)
    y_prev = jnp.concatenate([zero_col, y[:, : hw - 1]], axis=1) * masks[0:1, :]
    y_next = jnp.concatenate([y[:, 1:], zero_col], axis=1) * masks[1:2, :]
    y_cat = jnp.concatenate([y_prev, y, y_next], axis=0)         # [3*Cin, HW]

    # --- single MXU matmul: [Cout, 3*Cin] @ [3*Cin, HW] -> [Cout, HW], f32 accumulate.
    # The small activation block is the stationary MXU operand (5 weight passes), the
    # 384 output rows stream as LHS rows, so the MXU is not weight-load bound at M=25.
    o_ref[...] = jnp.dot(w_ref[...], y_cat, preferred_element_type=jnp.float32)


def prepare_params(gamma, beta, conv_w, *, height, width):
    """One-time repacking of module parameters (hoisted out of the per-call path)."""
    cout, cin, kh, kw = conv_w.shape
    assert kh == 1 and kw == 3
    hw = height * width

    # [Cout, 3*Cin] with K ordered (kw, cin): W2[co, kw*Cin + ci] = conv_w[co, ci, 0, kw]
    w2 = jnp.transpose(conv_w[:, :, 0, :], (0, 2, 1)).reshape(cout, kw * cin)
    w2 = w2.astype(jnp.bfloat16)

    gamma2 = gamma.reshape(cin, 1).astype(jnp.float32)
    beta2 = beta.reshape(cin, 1).astype(jnp.float32)

    # Boundary masks over the flattened spatial index p = h*W + w (static constants):
    #   row 0: position has a left neighbour within the same image row  (w > 0)
    #   row 1: position has a right neighbour within the same image row (w < W-1)
    col = np.arange(hw) % width
    masks_np = np.stack([(col > 0), (col < width - 1)]).astype(np.float32)
    masks = jnp.asarray(masks_np, dtype=jnp.bfloat16)            # [2, HW]

    return w2, gamma2, beta2, masks


def bn_relu_conv(x, w2, gamma2, beta2, masks, *, eps=1e-3):
    """x: [1, Cin, H, W] (NCHW, N must be 1). Returns [1, Cout, H, W] f32."""
    n, cin, h, w = x.shape
    assert n == 1, "kernel implemented for batch size 1 (as in the reference module)"
    cout = w2.shape[0]
    hw = h * w

    # Contiguous NCHW with N=1 is already [Cin, H*W]; this reshape is free.
    x2 = x.reshape(cin, hw).astype(jnp.float32)

    kernel = functools.partial(bn_relu_conv_kernel, eps=eps)
    bytes_accessed = (x2.size * 4 + w2.size * 2 + gamma2.size * 4 + beta2.size * 4
                      + masks.size * 2 + cout * hw * 4)
    out2 = pl.pallas_call(
        kernel,
        out_shape=jax.ShapeDtypeStruct((cout, hw), jnp.float32),
        in_specs=[pl.BlockSpec(memory_space=pltpu.MemorySpace.VMEM)] * 5,
        out_specs=pl.BlockSpec(memory_space=pltpu.MemorySpace.VMEM),
        cost_estimate=pl.CostEstimate(
            flops=2 * cout * 3 * cin * hw,
            transcendentals=cin,
            bytes_accessed=int(bytes_accessed),
        ),
    )(x2, gamma2, beta2, masks, w2)

    # Free reshape back to NCHW.
    return out2.reshape(n, cout, h, w)


def reference(x, gamma, beta, conv_w, *, eps=1e-3):
    """Pure-JAX f32 reference (training-mode BN + ReLU + conv)."""
    mean = jnp.mean(x, axis=(0, 2, 3), keepdims=True)
    var = jnp.mean((x - mean) ** 2, axis=(0, 2, 3), keepdims=True)
    y = (x - mean) * jax.lax.rsqrt(var + eps)
    y = y * gamma.reshape(1, -1, 1, 1) + beta.reshape(1, -1, 1, 1)
    y = jnp.maximum(y, 0.0)
    return jax.lax.conv_general_dilated(
        y, conv_w, window_strides=(1, 1), padding=((0, 0), (1, 1)),
        dimension_numbers=("NCHW", "OIHW", "NCHW"),
    )


if __name__ == "__main__":
    key = jax.random.PRNGKey(0)
    k_x, k_g, k_b, k_w = jax.random.split(key, 4)

    N, C, H, W = 1, 384, 5, 5           # shapes implied by the module
    COUT, KW = 384, 3

    x = jax.random.normal(k_x, (N, C, H, W), dtype=jnp.float32)
    gamma = 1.0 + 0.1 * jax.random.normal(k_g, (C,), dtype=jnp.float32)
    beta = 0.1 * jax.random.normal(k_b, (C,), dtype=jnp.float32)
    conv_w = 0.05 * jax.random.normal(k_w, (COUT, C, 1, KW), dtype=jnp.float32)

    # One-time parameter repacking (hoisted out of the per-call path).
    params = jax.block_until_ready(
        prepare_params(gamma, beta, conv_w, height=H, width=W))

    fwd = jax.jit(functools.partial(bn_relu_conv, eps=1e-3))
    out = jax.block_until_ready(fwd(x, *params))
    ref = jax.block_until_ready(reference(x, gamma, beta, conv_w, eps=1e-3))

    assert out.shape == (N, COUT, H, W), out.shape
    max_err = float(jnp.max(jnp.abs(out - ref)))
    # bf16 matmul operands with f32 accumulation over K=1152 -> ~1e-3..1e-2 max abs err.
    assert max_err < 2e-2, f"max abs error too large: {max_err}"

    print("KERNEL_OK")
</pallas_src>

<mosaic_0001>
module attributes {stable_mosaic.version = 11 : i64} {
  func.func @bn_relu_conv_kernel(%arg0: memref<384x25xf32, #tpu.memory_space<vmem>>, %arg1: memref<384x1xf32, #tpu.memory_space<vmem>>, %arg2: memref<384x1xf32, #tpu.memory_space<vmem>>, %arg3: memref<2x25xbf16, #tpu.memory_space<vmem>>, %arg4: memref<384x1152xbf16, #tpu.memory_space<vmem>>, %arg5: memref<384x25xf32, #tpu.memory_space<vmem>>) attributes {dimension_semantics = [], scalar_prefetch = 0 : i64, scratch_operands = 0 : i64, tpu.core_type = #tpu.core_type<tc>} {
    %c0 = arith.constant 0 : index
    %c0_0 = arith.constant 0 : index
    %0 = vector.load %arg0[%c0, %c0_0] : memref<384x25xf32, #tpu.memory_space<vmem>>, vector<384x25xf32>
    %cst = arith.constant dense<0.000000e+00> : vector<384xf32>
    %1 = vector.multi_reduction <add>, %0, %cst [1] : vector<384x25xf32> to vector<384xf32>
    %2 = vector.shape_cast %1 : vector<384xf32> to vector<384x1xf32>
    %cst_1 = arith.constant 4.000000e-02 : f32
    %3 = vector.broadcast %cst_1 : f32 to vector<384x1xf32>
    %4 = arith.mulf %2, %3 : vector<384x1xf32>
    %5 = vector.broadcast %4 : vector<384x1xf32> to vector<384x25xf32>
    %6 = arith.subf %0, %5 : vector<384x25xf32>
    %7 = arith.mulf %6, %6 : vector<384x25xf32>
    %cst_2 = arith.constant dense<0.000000e+00> : vector<384xf32>
    %8 = vector.multi_reduction <add>, %7, %cst_2 [1] : vector<384x25xf32> to vector<384xf32>
    %9 = vector.shape_cast %8 : vector<384xf32> to vector<384x1xf32>
    %cst_3 = arith.constant 4.000000e-02 : f32
    %10 = vector.broadcast %cst_3 : f32 to vector<384x1xf32>
    %11 = arith.mulf %9, %10 : vector<384x1xf32>
    %cst_4 = arith.constant 1.000000e-03 : f32
    %12 = vector.broadcast %cst_4 : f32 to vector<384x1xf32>
    %13 = arith.addf %11, %12 : vector<384x1xf32>
    %14 = math.rsqrt %13 : vector<384x1xf32>
    %c0_5 = arith.constant 0 : index
    %c0_6 = arith.constant 0 : index
    %15 = vector.load %arg1[%c0_5, %c0_6] : memref<384x1xf32, #tpu.memory_space<vmem>>, vector<384x1xf32>
    %16 = arith.mulf %15, %14 : vector<384x1xf32>
    %c0_7 = arith.constant 0 : index
    %c0_8 = arith.constant 0 : index
    %17 = vector.load %arg2[%c0_7, %c0_8] : memref<384x1xf32, #tpu.memory_space<vmem>>, vector<384x1xf32>
    %18 = arith.mulf %4, %16 : vector<384x1xf32>
    %19 = arith.subf %17, %18 : vector<384x1xf32>
    %20 = vector.broadcast %16 : vector<384x1xf32> to vector<384x25xf32>
    %21 = arith.mulf %0, %20 : vector<384x25xf32>
    %22 = vector.broadcast %19 : vector<384x1xf32> to vector<384x25xf32>
    %23 = arith.addf %21, %22 : vector<384x25xf32>
    %cst_9 = arith.constant 0.000000e+00 : f32
    %24 = vector.broadcast %cst_9 : f32 to vector<384x25xf32>
    %25 = arith.maximumf %23, %24 : vector<384x25xf32>
    %26 = arith.truncf %25 : vector<384x25xf32> to vector<384x25xbf16>
    %c0_10 = arith.constant 0 : index
    %c0_11 = arith.constant 0 : index
    %27 = vector.load %arg3[%c0_10, %c0_11] : memref<2x25xbf16, #tpu.memory_space<vmem>>, vector<2x25xbf16>
    %cst_12 = arith.constant 0.000000e+00 : bf16
    %28 = vector.broadcast %cst_12 : bf16 to vector<384x1xbf16>
    %29 = vector.extract_strided_slice %26 {offsets = [0, 0], sizes = [384, 24], strides = [1, 1]} : vector<384x25xbf16> to vector<384x24xbf16>
    %30 = tpu.concatenate %28, %29 in 1 : vector<384x1xbf16>, vector<384x24xbf16> -> vector<384x25xbf16>
    %31 = vector.extract_strided_slice %27 {offsets = [0, 0], sizes = [1, 25], strides = [1, 1]} : vector<2x25xbf16> to vector<1x25xbf16>
    %32 = vector.broadcast %31 : vector<1x25xbf16> to vector<384x25xbf16>
    %33 = arith.mulf %30, %32 : vector<384x25xbf16>
    %34 = vector.extract_strided_slice %26 {offsets = [0, 1], sizes = [384, 24], strides = [1, 1]} : vector<384x25xbf16> to vector<384x24xbf16>
    %35 = tpu.concatenate %34, %28 in 1 : vector<384x24xbf16>, vector<384x1xbf16> -> vector<384x25xbf16>
    %36 = vector.extract_strided_slice %27 {offsets = [1, 0], sizes = [1, 25], strides = [1, 1]} : vector<2x25xbf16> to vector<1x25xbf16>
    %37 = vector.broadcast %36 : vector<1x25xbf16> to vector<384x25xbf16>
    %38 = arith.mulf %35, %37 : vector<384x25xbf16>
    %39 = tpu.concatenate %33, %26, %38 in 0 : vector<384x25xbf16>, vector<384x25xbf16>, vector<384x25xbf16> -> vector<1152x25xbf16>
    %c0_13 = arith.constant 0 : index
    %c0_14 = arith.constant 0 : index
    %40 = vector.load %arg4[%c0_13, %c0_14] : memref<384x1152xbf16, #tpu.memory_space<vmem>>, vector<384x1152xbf16>
    %cst_15 = arith.constant dense<0.000000e+00> : vector<384x25xf32>
    %41 = tpu.matmul %40, %39, %cst_15 {dimension_numbers = #tpu.dot_dimension_numbers<[1], [0], [0], [1], [0, 0, 1, 1], [], []>} : vector<384x1152xbf16>, vector<1152x25xbf16>, vector<384x25xf32> -> vector<384x25xf32>
    %c0_16 = arith.constant 0 : index
    %c0_17 = arith.constant 0 : index
    %42 = vector.load %arg5[%c0_16, %c0_17] : memref<384x25xf32, #tpu.memory_space<vmem>>, vector<384x25xf32>
    tpu.vector_store %arg5[%c0_16, %c0_17], %41 {strides = array<i32>} : memref<384x25xf32, #tpu.memory_space<vmem>>, vector<384x25xf32>,
    return
  }
}

</mosaic_0001>

<bundles_post_ra>
// kernel: bn_relu_conv.1
= control target key start
LH: loop header
LB: loop body
LE: loop exit
PB: predicated region body
PF: predicated region fallthrough
CT: control target
= control target key end

     0   :  { %10 = vsyncpa [#allocation3], 0  ;;  %s6823_s21 = smov [#allocation2]   ;;  %s6824_s23 = smov 576   ;;  %s9608_s0 = inlined_call_operand.vmem [shape: f32[384,25], index: 0, kind: input, shape index: {}]   ;;  %s9609_s1 = inlined_call_operand.vmem [shape: f32[384,1], index: 1, kind: input, shape index: {}]   ;;  %s9610_s2 = inlined_call_operand.vmem [shape: f32[384,1], index: 2, kind: input, shape index: {}]   ;;  %s9611_s3 = inlined_call_operand.vmem [shape: bf16[2,25], index: 3, kind: input, shape index: {}]   ;;  %s9612_s4 = inlined_call_operand.hbm [shape: bf16[384,1152], index: 4, kind: input, shape index: {}]   ;;  %s9613_s5 = inlined_call_operand.vmem [shape: f32[384,25], index: 5, kind: output, shape index: {}]  }
   0x1   :  { %s23_s20 = sshll.u32 %s9612_s4, 4  ;;  %s25_s22 = sshll.u32 %s6823_s21, 4  ;;  %s24_s20 = int_to_ptr.hbm [resolvable:$true] %s23_s20  ;;  %s26_s22 = int_to_ptr.vmem [resolvable:$true] %s25_s22 }
   0x2   :  { %s6825_s24 = smov 36  }
   0x3   :  { %31 = dma.hbm_to_vmem [thread:$0]  %s24_s20, 27648, %s26_s22, [#allocation3], %s6824_s23, %s6824_s23, %s6825_s24  }
   0x4   :  { %6821 = dma.done.wait [#allocation3], 27648  }
   0x5   :  { %6822 = vsyncadd [#allocation3], 4294939648  ;;  %vm85_vm0 = vcmask 203776   ;;  %v6865_v0 = vld [vmem:[%s9608_s0 + $0x70] sm:$0xff]  ;;  %v6870_v1 = vld [vmem:[%s9608_s0 + $0x60] sm:$0xff]  ;;  %s6827_s15 = smov 1  }
   0x6   :  { %v6875_v2 = vld [vmem:[%s9608_s0 + $0x50] sm:$0xff]  ;;  %v128_v3 = vsel %vm85_vm0, %v6865_v0, 0.0  ;;  %v122_v4 = vsel %vm85_vm0, %v6870_v1, 0.0  ;;  %v6886_v6 = vld [vmem:[%s9608_s0 + $0x78] sm:$0xff]  ;;  %v6891_v7 = vld [vmem:[%s9608_s0 + $0x68] sm:$0xff]  ;;  %s6828_s27 = smov 127  }
   0x7   :  { %v116_v5 = vsel %vm85_vm0, %v6875_v2, 0.0  ;;  %129 = vadd.xlane.f32.xlu0 %v128_v3  ;;  %123 = vadd.xlane.f32.xlu1 %v122_v4  ;;  %v6896_v8 = vld [vmem:[%s9608_s0 + $0x58] sm:$0xff]  ;;  %v131_v9 = vsel %vm85_vm0, %v6886_v6, 0.0  ;;  %v125_v10 = vsel %vm85_vm0, %v6891_v7, 0.0  ;;  %v6907_v12 = vld [vmem:[%s9608_s0 + $0x40] sm:$0xff]  ;;  %v6912_v13 = vld [vmem:[%s9608_s0 + $0x48] sm:$0xff] }
   0x8   :  { %117 = vadd.xlane.f32.xlu2 %v116_v5  ;;  %v119_v11 = vsel %vm85_vm0, %v6896_v8, 0.0  ;;  %v6917_v14 = vld [vmem:[%s9608_s0 + $0x30] sm:$0xff]  ;;  %v110_v15 = vsel %vm85_vm0, %v6907_v12, 0.0  ;;  %v113_v16 = vsel %vm85_vm0, %v6912_v13, 0.0  ;;  %v6928_v18 = vld [vmem:[%s9608_s0 + $0x38] sm:$0xff]  ;;  %v6933_v19 = vld [vmem:[%s9608_s0 + $0x20] sm:$0xff] }
   0x9   :  { %v104_v17 = vsel %vm85_vm0, %v6917_v14, 0.0  ;;  %v6938_v20 = vld [vmem:[%s9608_s0 + $0x28] sm:$0xff]  ;;  %v107_v21 = vsel %vm85_vm0, %v6928_v18, 0.0  ;;  %v98_v22 = vsel %vm85_vm0, %v6933_v19, 0.0  ;;  %v6949_v24 = vld [vmem:[%s9608_s0 + $0x10] sm:$0xff]  ;;  %v6954_v25 = vld [vmem:[%s9608_s0 + $0x18] sm:$0xff] }
   0xa   :  { %v101_v23 = vsel %vm85_vm0, %v6938_v20, 0.0  ;;  %v6959_v26 = vld [vmem:[%s9608_s0] sm:$0xff]  ;;  %v92_v27 = vsel %vm85_vm0, %v6949_v24, 0.0  ;;  %v95_v28 = vsel %vm85_vm0, %v6954_v25, 0.0  ;;  %v6970_v30 = vld [vmem:[%s9608_s0 + $0x8] sm:$0xff]  ;;  %v6975_v31 = vld [vmem:[%s9608_s0 + $0xf0] sm:$0xff] }
   0xb   :  { %v86_v29 = vsel %vm85_vm0, %v6959_v26, 0.0  ;;  %v6980_v32 = vld [vmem:[%s9608_s0 + $0x170] sm:$0xff]  ;;  %v89_v33 = vsel %vm85_vm0, %v6970_v30, 0.0  ;;  %v176_v34 = vsel %vm85_vm0, %v6975_v31, 0.0  ;;  %v6991_v36 = vld [vmem:[%s9608_s0 + $0x178] sm:$0xff]  ;;  %v6996_v37 = vld [vmem:[%s9608_s0 + $0x168] sm:$0xff] }
   0xc   :  { %v224_v35 = vsel %vm85_vm0, %v6980_v32, 0.0  ;;  %v7001_v38 = vld [vmem:[%s9608_s0 + $0xf8] sm:$0xff]  ;;  %v227_v39 = vsel %vm85_vm0, %v6991_v36, 0.0  ;;  %v221_v40 = vsel %vm85_vm0, %v6996_v37, 0.0  ;;  %v7012_v42 = vld [vmem:[%s9608_s0 + $0x160] sm:$0xff]  ;;  %v7017_v43 = vld [vmem:[%s9608_s0 + $0x150] sm:$0xff] }
   0xd   :  { %v179_v41 = vsel %vm85_vm0, %v7001_v38, 0.0  ;;  %v7022_v44 = vld [vmem:[%s9608_s0 + $0xe0] sm:$0xff]  ;;  %v218_v45 = vsel %vm85_vm0, %v7012_v42, 0.0  ;;  %v212_v46 = vsel %vm85_vm0, %v7017_v43, 0.0  ;;  %v7033_v48 = vld [vmem:[%s9608_s0 + $0xe8] sm:$0xff]  ;;  %v7038_v49 = vld [vmem:[%s9608_s0 + $0xd8] sm:$0xff] }
   0xe   :  { %v170_v47 = vsel %vm85_vm0, %v7022_v44, 0.0  ;;  %v7043_v50 = vld [vmem:[%s9608_s0 + $0x158] sm:$0xff]  ;;  %v173_v51 = vsel %vm85_vm0, %v7033_v48, 0.0  ;;  %v167_v52 = vsel %vm85_vm0, %v7038_v49, 0.0  ;;  %v7054_v54 = vld [vmem:[%s9608_s0 + $0xd0] sm:$0xff]  ;;  %v7059_v55 = vld [vmem:[%s9608_s0 + $0xc0] sm:$0xff] }
   0xf   :  { %132 = vadd.xlane.f32.xlu0 %v131_v9  ;;  %126 = vadd.xlane.f32.xlu1 %v125_v10  ;;  %v215_v53 = vsel %vm85_vm0, %v7043_v50, 0.0  ;;  %v164_v56 = vsel %vm85_vm0, %v7054_v54, 0.0  ;;  %v158_v57 = vsel %vm85_vm0, %v7059_v55, 0.0  ;;  %v7068_v58 = vld [vmem:[%s9608_s0 + $0x148] sm:$0xff]  ;;  %v7075_v60 = vld [vmem:[%s9608_s0 + $0x138] sm:$0xff]  ;;  %v7080_v61 = vld [vmem:[%s9608_s0 + $0x130] sm:$0xff] }
  0x10   :  { %120 = vadd.xlane.f32.xlu2 %v119_v11  ;;  %v209_v59 = vsel %vm85_vm0, %v7068_v58, 0.0  ;;  %v7085_v62 = vld [vmem:[%s9608_s0 + $0x140] sm:$0xff]  ;;  %v203_v63 = vsel %vm85_vm0, %v7075_v60, 0.0  ;;  %v200_v4 = vsel %vm85_vm0, %v7080_v61, 0.0  ;;  %v7096_v5 = vld [vmem:[%s9608_s0 + $0xc8] sm:$0xff] }
  0x11   :  { %v206_v3 = vsel %vm85_vm0, %v7085_v62, 0.0  ;;  %v161_v9 = vsel %vm85_vm0, %v7096_v5, 0.0 }
  0x17   :  { %111 = vadd.xlane.f32.xlu0 %v110_v15  ;;  %114 = vadd.xlane.f32.xlu1 %v113_v16 }
  0x18   :  { %105 = vadd.xlane.f32.xlu2 %v104_v17 }
  0x1f   :  { %108 = vadd.xlane.f32.xlu0 %v107_v21  ;;  %99 = vadd.xlane.f32.xlu1 %v98_v22 }
  0x20   :  { %102 = vadd.xlane.f32.xlu2 %v101_v23 }
  0x27   :  { %93 = vadd.xlane.f32.xlu0 %v92_v27  ;;  %96 = vadd.xlane.f32.xlu1 %v95_v28 }
  0x28   :  { %87 = vadd.xlane.f32.xlu2 %v86_v29 }
  0x2f   :  { %90 = vadd.xlane.f32.xlu0 %v89_v33  ;;  %177 = vadd.xlane.f32.xlu1 %v176_v34 }
  0x30   :  { %225 = vadd.xlane.f32.xlu2 %v224_v35 }
  0x37   :  { %228 = vadd.xlane.f32.xlu0 %v227_v39  ;;  %222 = vadd.xlane.f32.xlu1 %v221_v40 }
  0x38   :  { %180 = vadd.xlane.f32.xlu2 %v179_v41 }
  0x3f   :  { %219 = vadd.xlane.f32.xlu0 %v218_v45  ;;  %213 = vadd.xlane.f32.xlu1 %v212_v46 }
  0x40   :  { %171 = vadd.xlane.f32.xlu2 %v170_v47 }
  0x47   :  { %174 = vadd.xlane.f32.xlu0 %v173_v51  ;;  %168 = vadd.xlane.f32.xlu1 %v167_v52 }
  0x48   :  { %216 = vadd.xlane.f32.xlu2 %v215_v53 }
  0x4f   :  { %165 = vadd.xlane.f32.xlu0 %v164_v56  ;;  %159 = vadd.xlane.f32.xlu1 %v158_v57 }
  0x50   :  { %207 = vadd.xlane.f32.xlu2 %v206_v3 }
  0x57   :  { %210 = vadd.xlane.f32.xlu0 %v209_v59  ;;  %204 = vadd.xlane.f32.xlu1 %v203_v63 }
  0x58   :  { %162 = vadd.xlane.f32.xlu2 %v161_v9 }
  0x5f   :  { %201 = vadd.xlane.f32.xlu0 %v200_v4 }
  0x7a   :  { %v130_v10 = vpop.xlane.xlu0 %129  ;;  %v124_v11 = vpop.xlane.xlu1 %123 }
  0x7b   :  { %v7100_v15 = vmul.f32 0.04, %v130_v10  ;;  %v7102_v16 = vmul.f32 0.04, %v124_v11  ;;  %v118_v17 = vpop.xlane.xlu2 %117 }
  0x7c   :  { %v7110_v35 = vmul.f32 0.04, %v118_v17 }
  0x7d   :  { %v292_v21 = vsub.f32 %v6865_v0, %v7100_v15  ;;  %v290_v22 = vsub.f32 %v6870_v1, %v7102_v16 }
  0x7e   :  { %v288_v52 = vsub.f32 %v6875_v2, %v7110_v35 }
  0x7f   :  { %v340_v23 = vmul.f32 %v292_v21, %v292_v21  ;;  %v338_v27 = vmul.f32 %v290_v22, %v290_v22 }
  0x80   :  { %v336_v4 = vmul.f32 %v288_v52, %v288_v52 }
  0x81   :  { %v416_v28 = vsel %vm85_vm0, %v340_v23, 0.0  ;;  %v410_v29 = vsel %vm85_vm0, %v338_v27, 0.0 }
  0x82   :  { %v133_v33 = vpop.xlane.xlu0 %132  ;;  %v127_v34 = vpop.xlane.xlu1 %126  ;;  %417 = vadd.xlane.f32.xlu1 %v416_v28  ;;  %411 = vadd.xlane.f32.xlu0 %v410_v29  ;;  %v404_v17 = vsel %vm85_vm0, %v336_v4, 0.0 }
  0x83   :  { %v7112_v39 = vmul.f32 0.04, %v133_v33  ;;  %v7114_v40 = vmul.f32 0.04, %v127_v34  ;;  %v121_v0 = vpop.xlane.xlu2 %120 }
  0x84   :  { %v7116_v41 = vmul.f32 0.04, %v121_v0 }
  0x85   :  { %v291_v1 = vsub.f32 %v6891_v7, %v7114_v40  ;;  %v293_v45 = vsub.f32 %v6886_v6, %v7112_v39 }
  0x86   :  { %v289_v46 = vsub.f32 %v6896_v8, %v7116_v41 }
  0x87   :  { %v339_v47 = vmul.f32 %v291_v1, %v291_v1  ;;  %v341_v51 = vmul.f32 %v293_v45, %v293_v45 }
  0x88   :  { %v337_v53 = vmul.f32 %v289_v46, %v289_v46 }
  0x89   :  { %v413_v56 = vsel %vm85_vm0, %v339_v47, 0.0  ;;  %v419_v57 = vsel %vm85_vm0, %v341_v51, 0.0 }
  0x8a   :  { %v112_v59 = vpop.xlane.xlu0 %111  ;;  %414 = vadd.xlane.f32.xlu1 %v413_v56  ;;  %v407_v7 = vsel %vm85_vm0, %v337_v53, 0.0  ;;  %420 = vadd.xlane.f32.xlu2 %v419_v57  ;;  %v115_v63 = vpop.xlane.xlu1 %114 }
  0x8b   :  { %v7129_v6 = vmul.f32 0.04, %v112_v59  ;;  %v106_v3 = vpop.xlane.xlu2 %105  ;;  %408 = vadd.xlane.f32.xlu0 %v407_v7  ;;  %v7131_v8 = vmul.f32 0.04, %v115_v63 }
  0x8c   :  { %v7133_v9 = vmul.f32 0.04, %v106_v3 }
  0x8d   :  { %9654 = vst [vmem:[#allocation5_spill] sm:$0xff] %v7129_v6  ;;  %v286_v2 = vsub.f32 %v6907_v12, %v7129_v6  ;;  %v287_v21 = vsub.f32 %v6912_v13, %v7131_v8 }
  0x8e   :  { %9655 = vst [vmem:[#allocation6_spill] sm:$0xff] %v7131_v8  ;;  %v284_v10 = vsub.f32 %v6917_v14, %v7133_v9 }
  0x8f   :  { %9656 = vst [vmem:[#allocation7_spill] sm:$0xff] %v7133_v9  ;;  %v334_v11 = vmul.f32 %v286_v2, %v286_v2  ;;  %v335_v34 = vmul.f32 %v287_v21, %v287_v21 }
  0x90   :  { %v332_v22 = vmul.f32 %v284_v10, %v284_v10 }
  0x91   :  { %v398_v23 = vsel %vm85_vm0, %v334_v11, 0.0  ;;  %v401_v46 = vsel %vm85_vm0, %v335_v34, 0.0  ;;  %v7195_v34 = vld [vmem:[%s9608_s0 + $0x110] sm:$0xff] }
  0x92   :  { %v109_v27 = vpop.xlane.xlu0 %108  ;;  %399 = vadd.xlane.f32.xlu1 %v398_v23  ;;  %v392_v28 = vsel %vm85_vm0, %v332_v22, 0.0  ;;  %405 = vadd.xlane.f32.xlu2 %v404_v17  ;;  %v100_v29 = vpop.xlane.xlu1 %99 }
  0x93   :  { %v7144_v33 = vmul.f32 0.04, %v109_v27  ;;  %v103_v12 = vpop.xlane.xlu2 %102  ;;  %393 = vadd.xlane.f32.xlu0 %v392_v28  ;;  %v7146_v14 = vmul.f32 0.04, %v100_v29  ;;  %v7181_v27 = vld [vmem:[%s9608_s0 + $0x120] sm:$0xff] }
  0x94   :  { %v7148_v0 = vmul.f32 0.04, %v103_v12  ;;  %v194_v29 = vsel %vm85_vm0, %v7181_v27, 0.0 }
  0x95   :  { %9657 = vst [vmem:[#allocation8_spill] sm:$0xff] %v7144_v33  ;;  %v285_v13 = vsub.f32 %v6928_v18, %v7144_v33  ;;  %v282_v47 = vsub.f32 %v6933_v19, %v7146_v14 }
  0x96   :  { %9658 = vst [vmem:[#allocation9_spill] sm:$0xff] %v7146_v14  ;;  %v283_v1 = vsub.f32 %v6938_v20, %v7148_v0 }
  0x97   :  { %9659 = vst [vmem:[#allocation10_spill] sm:$0xff] %v7148_v0  ;;  %v333_v45 = vmul.f32 %v285_v13, %v285_v13  ;;  %v330_v7 = vmul.f32 %v282_v47, %v282_v47  ;;  %v7211_v47 = vld [vmem:[%s9608_s0 + $0x100] sm:$0xff] }
  0x98   :  { %v331_v51 = vmul.f32 %v283_v1, %v283_v1  ;;  %v188_v1 = vsel %vm85_vm0, %v7195_v34, 0.0 }
  0x99   :  { %v395_v52 = vsel %vm85_vm0, %v333_v45, 0.0  ;;  %v386_v2 = vsel %vm85_vm0, %v330_v7, 0.0  ;;  %v7204_v45 = vld [vmem:[%s9608_s0 + $0xb0] sm:$0xff] }
  0x9a   :  { %396 = vadd.xlane.f32.xlu1 %v395_v52  ;;  %v94_v53 = vpop.xlane.xlu0 %93  ;;  %v389_v56 = vsel %vm85_vm0, %v331_v51, 0.0  ;;  %402 = vadd.xlane.f32.xlu2 %v401_v46  ;;  %v97_v57 = vpop.xlane.xlu1 %96  ;;  %v152_v46 = vsel %vm85_vm0, %v7204_v45, 0.0  ;;  %v182_v52 = vsel %vm85_vm0, %v7211_v47, 0.0 }
  0x9b   :  { %v7159_v59 = vmul.f32 0.04, %v94_v53  ;;  %390 = vadd.xlane.f32.xlu0 %v389_v56  ;;  %v88_v18 = vpop.xlane.xlu2 %87  ;;  %v7161_v20 = vmul.f32 0.04, %v97_v57  ;;  %v7222_v57 = vld [vmem:[%s9608_s0 + $0x128] sm:$0xff] }
  0x9c   :  { %v7163_v63 = vmul.f32 0.04, %v88_v18  ;;  %v197_v7 = vsel %vm85_vm0, %v7222_v57, 0.0 }
  0x9d   :  { %9660 = vst [vmem:[#allocation11_spill] sm:$0xff] %v7161_v20  ;;  %v280_v19 = vsub.f32 %v6949_v24, %v7159_v59  ;;  %v281_v10 = vsub.f32 %v6954_v25, %v7161_v20  ;;  %v1204_v20 = vld [vmem:[%s9610_s2 + $0x70] sm:$0xff] }
  0x9e   :  { %v278_v3 = vsub.f32 %v6959_v26, %v7163_v63 }
  0x9f   :  { %v328_v4 = vmul.f32 %v280_v19, %v280_v19  ;;  %v329_v24 = vmul.f32 %v281_v10, %v281_v10  ;;  %v54_v19 = vld [vmem:[%s9608_s0 + $0x88] sm:$0xff] }
  0xa0   :  { %v326_v11 = vmul.f32 %v278_v3, %v278_v3  ;;  %v137_v3 = vsel %vm85_vm0, %v54_v19, 0.0 }
  0xa1   :  { %v380_v17 = vsel %vm85_vm0, %v328_v4, 0.0  ;;  %v383_v28 = vsel %vm85_vm0, %v329_v24, 0.0 }
  0xa2   :  { %381 = vadd.xlane.f32.xlu1 %v380_v17  ;;  %v91_v21 = vpop.xlane.xlu0 %90  ;;  %387 = vadd.xlane.f32.xlu2 %v386_v2  ;;  %v374_v22 = vsel %vm85_vm0, %v326_v11, 0.0  ;;  %v7215_v53 = vpop.xlane.xlu1 %177  ;;  %v7239_v17 = vld [vmem:[%s9608_s0 + $0xa0] sm:$0xff] }
  0xa3   :  { %v7174_v23 = vmul.f32 0.04, %v91_v21  ;;  %375 = vadd.xlane.f32.xlu0 %v374_v22  ;;  %v226_v51 = vpop.xlane.xlu2 %225  ;;  %v146_v24 = vsel %vm85_vm0, %v7239_v17, 0.0 }
  0xa4   :  { %v7224_v18 = vmul.f32 0.04, %v226_v51 }
  0xa5   :  { %v279_v26 = vsub.f32 %v6970_v30, %v7174_v23  ;;  %v7190_v30 = vld [vmem:[%s9608_s0 + $0xb8] sm:$0xff] }
  0xa6   :  { %v155_v13 = vsel %vm85_vm0, %v7190_v30, 0.0  ;;  %9661 = vst [vmem:[#allocation12_spill] sm:$0xff] %v7224_v18  ;;  %v324_v4 = vsub.f32 %v6980_v32, %v7224_v18 }
  0xa7   :  { %v327_v25 = vmul.f32 %v279_v26, %v279_v26 }
  0xa8   :  { %v372_v21 = vmul.f32 %v324_v4, %v324_v4 }
  0xa9   :  { %v377_v12 = vsel %vm85_vm0, %v327_v25, 0.0  ;;  %v7251_v25 = vld [vmem:[%s9608_s0 + $0x118] sm:$0xff] }
  0xaa   :  { %378 = vadd.xlane.f32.xlu1 %v377_v12  ;;  %384 = vadd.xlane.f32.xlu2 %v383_v28  ;;  %v7217_v56 = vpop.xlane.xlu0 %228  ;;  %v223_v10 = vpop.xlane.xlu1 %222  ;;  %v512_v26 = vsel %vm85_vm0, %v372_v21, 0.0 }
  0xab   :  { %195 = vadd.xlane.f32.xlu0 %v194_v29  ;;  %v181_v2 = vpop.xlane.xlu2 %180  ;;  %v191_v29 = vsel %vm85_vm0, %v7251_v25, 0.0 }
  0xac   :  { %v7241_v22 = vmul.f32 0.04, %v181_v2  ;;  %v7273_v2 = vld [vmem:[%s9608_s0 + $0xa8] sm:$0xff] }
  0xae   :  { %9662 = vst [vmem:[#allocation13_spill] sm:$0xff] %v7241_v22  ;;  %v309_v32 = vsub.f32 %v7001_v38, %v7241_v22 }
  0xb0   :  { %v357_v28 = vmul.f32 %v309_v32, %v309_v32 }
  0xb2   :  { %156 = vadd.xlane.f32.xlu1 %v155_v13  ;;  %153 = vadd.xlane.f32.xlu2 %v152_v46  ;;  %v7234_v11 = vpop.xlane.xlu0 %219  ;;  %v7255_v12 = vpop.xlane.xlu1 %213  ;;  %v467_v46 = vsel %vm85_vm0, %v357_v28, 0.0 }
  0xb3   :  { %189 = vadd.xlane.f32.xlu0 %v188_v1  ;;  %v7257_v1 = vmul.f32 0.04, %v223_v10 }
  0xb5   :  { %9663 = vst [vmem:[#allocation14_spill] sm:$0xff] %v7257_v1  ;;  %v323_v38 = vsub.f32 %v6996_v37, %v7257_v1  ;;  %v149_v37 = vsel %vm85_vm0, %v7273_v2, 0.0 }
  0xba   :  { %198 = vadd.xlane.f32.xlu2 %v197_v7  ;;  %v175_v13 = vpop.xlane.xlu0 %174  ;;  %v371_v7 = vmul.f32 %v323_v38, %v323_v38  ;;  %v7266_v19 = vpop.xlane.xlu1 %168  ;;  %150 = vadd.xlane.f32.xlu1 %v149_v37 }
  0xbb   :  { %183 = vadd.xlane.f32.xlu0 %v182_v52  ;;  %v7262_v51 = vmul.f32 0.04, %v175_v13  ;;  %v7264_v52 = vpop.xlane.xlu2 %171 }
  0xbc   :  { %v509_v10 = vsel %vm85_vm0, %v371_v7, 0.0 }
  0xbd   :  { %9664 = vst [vmem:[#allocation15_spill] sm:$0xff] %v7262_v51  ;;  %v307_v4 = vsub.f32 %v7033_v48, %v7262_v51 }
  0xc2   :  { %147 = vadd.xlane.f32.xlu2 %v146_v24  ;;  %v355_v24 = vmul.f32 %v307_v4, %v307_v4  ;;  %v7285_v28 = vpop.xlane.xlu1 %159 }
  0xc3   :  { %138 = vadd.xlane.f32.xlu0 %v137_v3  ;;  %v166_v3 = vpop.xlane.xlu0 %165 }
  0xc4   :  { %v7278_v21 = vmul.f32 0.04, %v166_v3  ;;  %v461_v32 = vsel %vm85_vm0, %v355_v24, 0.0  ;;  %v6826_v24 = vmov 0  }
  0xc5   :  { %6648 = vset.pattern.permute.xlu2 %v6826_v24  ;;  %6649 = vset.pattern.permute.xlu1 %v6826_v24 }
  0xc6   :  { %9665 = vst [vmem:[#allocation16_spill] sm:$0xff] %v7278_v21  ;;  %v304_v48 = vsub.f32 %v7054_v54, %v7278_v21  ;;  %6650 = vset.pattern.permute.xlu0 %v6826_v24 }
  0xca   :  { %192 = vadd.xlane.f32.xlu2 %v191_v29  ;;  %v7294_v4 = vpop.xlane.xlu1 %204 }
  0xcb   :  { %513 = vadd.xlane.f32.xlu0 %v512_v26  ;;  %v7280_v26 = vpop.xlane.xlu2 %216  ;;  %v211_v29 = vpop.xlane.xlu0 %210 }
  0xcc   :  { %v7287_v13 = vmul.f32 0.04, %v211_v29 }
  0xce   :  { %9666 = vst [vmem:[#allocation17_spill] sm:$0xff] %v7287_v13  ;;  %v319_v7 = vsub.f32 %v7068_v58, %v7287_v13 }
  0xd0   :  { %v367_v54 = vmul.f32 %v319_v7, %v319_v7 }
  0xd3   :  { %468 = vadd.xlane.f32.xlu0 %v467_v46  ;;  %v352_v46 = vmul.f32 %v304_v48, %v304_v48  ;;  %v7292_v3 = vpop.xlane.xlu2 %207  ;;  %v202_v37 = vpop.xlane.xlu0 %201 }
  0xd5   :  { %v452_v38 = vsel %vm85_vm0, %v352_v46, 0.0 }
  0xdb   :  { %510 = vadd.xlane.f32.xlu0 %v509_v10  ;;  %v7296_v10 = vmul.f32 0.04, %v202_v37  ;;  %v7301_v58 = vpop.xlane.xlu2 %162 }
  0xdd   :  { %9667 = vst [vmem:[#allocation18_spill] sm:$0xff] %v7296_v10  ;;  %v316_v48 = vsub.f32 %v7080_v61, %v7296_v10 }
  0xdf   :  { %v364_v29 = vmul.f32 %v316_v48, %v316_v48 }
  0xe1   :  { %v488_v37 = vsel %vm85_vm0, %v364_v29, 0.0 }
  0xe3   :  { %462 = vadd.xlane.f32.xlu0 %v461_v32  ;;  %v497_v32 = vsel %vm85_vm0, %v367_v54, 0.0 }
  0xeb   :  { %453 = vadd.xlane.f32.xlu0 %v452_v38 }
  0xf3   :  { %498 = vadd.xlane.f32.xlu0 %v497_v32 }
  0xf5   :  { %v418_v46 = vpop.xlane.xlu1 %417 }
  0xf6   :  { %v532_v38 = vmul.f32 0.04, %v418_v46 }
  0xf8   :  { %v580_v51 = vadd.f32 0.001, %v532_v38 }
  0xfa   :  { %6651 = vrsqrt.f32 %v580_v51  ;;  %vm760_vm2 = vweird.f32 %v580_v51 }
  0xfb   :  { %489 = vadd.xlane.f32.xlu0 %v488_v37 }
  0xfd   :  { %v415_v7 = vpop.xlane.xlu1 %414  ;;  %v421_v1 = vpop.xlane.xlu2 %420 }
  0xfe   :  { %v531_v13 = vmul.f32 0.04, %v415_v7  ;;  %v533_v21 = vmul.f32 0.04, %v421_v1 }
 0x100   :  { %v6652_v54 = vpop.eup %6651  ;;  %v579_v22 = vadd.f32 0.001, %v531_v13  ;;  %v581_v18 = vadd.f32 0.001, %v533_v21  ;;  %v1108_v21 = vld [vmem:[%s9609_s1 + $0x70] sm:$0xff] }
 0x101   :  { %v755_v61 = vmul.f32 %v6652_v54, %v580_v51  ;;  %vm761_vm1 = vweird.f32 %v6652_v54 }
 0x102   :  { %6653 = vrsqrt.f32 %v579_v22  ;;  %vm762_vm3 = vmor %vm760_vm2, %vm761_vm1  ;;  %vm750_vm5 = vweird.f32 %v579_v22  ;;  %vm770_vm8 = vweird.f32 %v581_v18 }
 0x103   :  { %v756_v24 = vmul.f32 %v6652_v54, %v755_v61  ;;  %6655 = vrsqrt.f32 %v581_v18  ;;  %v412_v61 = vpop.xlane.xlu0 %411 }
 0x105   :  { %v757_v32 = vmul.f32 0.5, %v756_v24  ;;  %v7304_v48 = vpop.xlane.xlu1 %399  ;;  %v406_v46 = vpop.xlane.xlu2 %405 }
 0x106   :  { %v528_v38 = vmul.f32 0.04, %v406_v46 }
 0x107   :  { %v758_v10 = vsub.f32 1.5, %v757_v32 }
 0x108   :  { %v6654_v29 = vpop.eup %6653  ;;  %v576_v14 = vadd.f32 0.001, %v528_v38 }
 0x109   :  { %v745_v37 = vmul.f32 %v6654_v29, %v579_v22  ;;  %v759_v33 = vmul.f32 %v6652_v54, %v758_v10  ;;  %v6656_v7 = vpop.eup %6655  ;;  %vm751_vm4 = vweird.f32 %v6654_v29 }
 0x10a   :  { %v765_v13 = vmul.f32 %v6656_v7, %v581_v18  ;;  %6657 = vrsqrt.f32 %v576_v14  ;;  %vm771_vm6 = vweird.f32 %v6656_v7  ;;  %vm752_vm7 = vmor %vm750_vm5, %vm751_vm4  ;;  %vm720_vm10 = vweird.f32 %v576_v14 }
 0x10b   :  { %v746_v1 = vmul.f32 %v6654_v29, %v745_v37  ;;  %v763_v32 = vsel %vm762_vm3, %v6652_v54, %v759_v33  ;;  %v1107_v33 = vld [vmem:[%s9609_s1 + $0x68] sm:$0xff]  ;;  %vm772_vm9 = vmor %vm770_vm8, %vm771_vm6 }
 0x10c   :  { %v766_v9 = vmul.f32 %v6656_v7, %v765_v13  ;;  %v1156_v38 = vmul.f32 %v1108_v21, %v763_v32  ;;  %v7325_v32 = vpop.xlane.xlu0 %408 }
 0x10d   :  { %v747_v24 = vmul.f32 0.5, %v746_v1  ;;  %v7309_v46 = vpop.xlane.xlu1 %396 }
 0x10e   :  { %v767_v10 = vmul.f32 0.5, %v766_v9  ;;  %1406 = vperm.xlu2 %6648, %v1156_v38   ;;  %v1252_v51 = vmul.f32 %v1156_v38, %v7100_v15 }
 0x10f   :  { %v748_v6 = vsub.f32 1.5, %v747_v24  ;;  %v530_v24 = vmul.f32 0.04, %v412_v61  ;;  %v1205_v61 = vld [vmem:[%s9610_s2 + $0x78] sm:$0xff] }
 0x110   :  { %v768_v37 = vsub.f32 1.5, %v767_v10  ;;  %v6658_v8 = vpop.eup %6657  ;;  %v1300_v9 = vsub.f32 %v1204_v20, %v1252_v51 }
 0x111   :  { %v749_v0 = vmul.f32 %v6654_v29, %v748_v6  ;;  %v715_v13 = vmul.f32 %v6658_v8, %v576_v14  ;;  %v1109_v6 = vld [vmem:[%s9609_s1 + $0x78] sm:$0xff]  ;;  %vm721_vm11 = vweird.f32 %v6658_v8 }
 0x112   :  { %v769_v1 = vmul.f32 %v6656_v7, %v768_v37  ;;  %1694 = vperm.xlu1 %6649, %v1300_v9   ;;  %vm722_vm12 = vmor %vm720_vm10, %vm721_vm11  ;;  %v1104_v37 = vld [vmem:[%s9609_s1 + $0x50] sm:$0xff] }
 0x113   :  { %v716_v15 = vmul.f32 %v6658_v8, %v715_v13  ;;  %v753_v21 = vsel %vm752_vm7, %v6654_v29, %v749_v0  ;;  %v578_v29 = vadd.f32 0.001, %v530_v24  ;;  %v1200_v9 = vld [vmem:[%s9610_s2 + $0x50] sm:$0xff] }
 0x114   :  { %v7323_v22 = vmul.f32 %v1107_v33, %v753_v21  ;;  %v773_v20 = vsel %vm772_vm9, %v6656_v7, %v769_v1  ;;  %v7339_v33 = vpop.xlane.xlu0 %393 }
 0x115   :  { %v7318_v54 = vpop.xlane.xlu1 %381  ;;  %v717_v38 = vmul.f32 0.5, %v716_v15  ;;  %v1157_v18 = vmul.f32 %v1109_v6, %v773_v20  ;;  %6659 = vrsqrt.f32 %v578_v29  ;;  %vm740_vm14 = vweird.f32 %v578_v29 }
 0x116   :  { %1401 = vperm.xlu2 %6648, %v7323_v22  }
 0x117   :  { %v718_v10 = vsub.f32 1.5, %v717_v38  ;;  %v1253_v0 = vmul.f32 %v1157_v18, %v7112_v39 }
 0x119   :  { %v719_v51 = vmul.f32 %v6658_v8, %v718_v10  ;;  %v1301_v1 = vsub.f32 %v1205_v61, %v1253_v0 }
 0x11b   :  { %v723_v7 = vsel %vm722_vm12, %v6658_v8, %v719_v51  ;;  %v6660_v15 = vpop.eup %6659 }
 0x11c   :  { %v7337_v13 = vmul.f32 %v1104_v37, %v723_v7  ;;  %v735_v8 = vmul.f32 %v6660_v15, %v578_v29  ;;  %v7350_v10 = vpop.xlane.xlu0 %390  ;;  %vm741_vm13 = vweird.f32 %v6660_v15  ;;  %v7372_v29 = vld [vmem:[%s9608_s0 + $0x108] sm:$0xff] }
 0x11d   :  { %v7335_v14 = vpop.xlane.xlu1 %378  ;;  %vm742_vm15 = vmor %vm740_vm14, %vm741_vm13 }
 0x11e   :  { %1699 = vperm.xlu2 %6648, %v1301_v1   ;;  %v1248_v39 = vmul.f32 %v7337_v13, %v7110_v35  ;;  %v736_v0 = vmul.f32 %v6660_v15, %v735_v8  ;;  %v7358_v1 = vld [vmem:[%s9608_s0 + $0x90] sm:$0xff] }
 0x120   :  { %v1296_v24 = vsub.f32 %v1200_v9, %v1248_v39  ;;  %v737_v51 = vmul.f32 0.5, %v736_v0  ;;  %v1106_v39 = vld [vmem:[%s9609_s1 + $0x60] sm:$0xff]  ;;  %v140_v9 = vsel %vm85_vm0, %v7358_v1, 0.0 }
 0x122   :  { %v738_v61 = vsub.f32 1.5, %v737_v51 }
 0x124   :  { %v7353_v37 = vpop.xlane.xlu0 %375  ;;  %v739_v7 = vmul.f32 %v6660_v15, %v738_v61 }
 0x125   :  { %v157_v21 = vpop.xlane.xlu1 %156 }
 0x126   :  { %v7346_v6 = vmul.f32 0.04, %v157_v21  ;;  %1674 = vperm.xlu2 %6648, %v1296_v24  }
 0x128   :  { %9668 = vst [vmem:[#allocation19_spill] sm:$0xff] %v7346_v6  ;;  %v301_v38 = vsub.f32 %v7190_v30, %v7346_v6  ;;  %v743_v30 = vsel %vm742_vm15, %v6660_v15, %v739_v7  ;;  %v7375_v15 = vmul.f32 0.04, %v7217_v56  ;;  %v7389_v56 = vmul.f32 0.04, %v7234_v11 }
 0x129   :  { %v7367_v24 = vmul.f32 %v1106_v39, %v743_v30  ;;  %v7401_v30 = vpop.xlane.xlu2 %402  ;;  %v7404_v11 = vmul.f32 0.04, %v7264_v52 }
 0x12a   :  { %v349_v20 = vmul.f32 %v301_v38, %v301_v38  ;;  %v1202_v38 = vld [vmem:[%s9610_s2 + $0x60] sm:$0xff] }
 0x12b   :  { %v1250_v8 = vmul.f32 %v7367_v24, %v7102_v16  ;;  %v7394_v16 = vld [vmem:[%s9608_s0 + $0x98] sm:$0xff]  ;;  %v306_v52 = vsub.f32 %v7022_v44, %v7404_v11 }
 0x12c   :  { %v443_v35 = vsel %vm85_vm0, %v349_v20, 0.0  ;;  %v7365_v21 = vpop.xlane.xlu0 %195  ;;  %v185_v20 = vsel %vm85_vm0, %v7372_v29, 0.0  ;;  %v143_v61 = vsel %vm85_vm0, %v7394_v16, 0.0 }
 0x12d   :  { %444 = vadd.xlane.f32.xlu0 %v443_v35  ;;  %v1298_v0 = vsub.f32 %v1202_v38, %v1250_v8  ;;  %v7411_v8 = vld [vmem:[%s9608_s0 + $0x80] sm:$0xff]  ;;  %v7414_v38 = vmul.f32 0.04, %v7215_v53  ;;  %v354_v53 = vmul.f32 %v306_v52, %v306_v52 }
 0x134   :  { %v7386_v35 = vpop.xlane.xlu0 %189 }
 0x13c   :  { %141 = vadd.xlane.f32.xlu1 %v140_v9  ;;  %v7406_v39 = vpop.xlane.xlu0 %183 }
 0x141   :  { %1411 = vperm.xlu0 %6650, %v1157_v18   ;;  %v325_v18 = vsub.f32 %v6991_v36, %v7375_v15  ;;  %v322_v36 = vsub.f32 %v7012_v42, %v7389_v56  ;;  %v134_v42 = vsel %vm85_vm0, %v7411_v8, 0.0 }
 0x143   :  { %v373_v51 = vmul.f32 %v325_v18, %v325_v18  ;;  %v370_v9 = vmul.f32 %v322_v36, %v322_v36  ;;  %v7424_v18 = vmul.f32 0.04, %v7255_v12 }
 0x144   :  { %186 = vadd.xlane.f32.xlu1 %v185_v20  ;;  %v7431_v36 = vpop.xlane.xlu0 %138 }
 0x145   :  { %v515_v7 = vsel %vm85_vm0, %v373_v51, 0.0  ;;  %v506_v20 = vsel %vm85_vm0, %v370_v9, 0.0  ;;  %v7426_v51 = vpop.xlane.xlu2 %387  ;;  %v458_v9 = vsel %vm85_vm0, %v354_v53, 0.0  ;;  %v320_v44 = vsub.f32 %v7017_v43, %v7424_v18 }
 0x149   :  { %1684 = vperm.xlu0 %6650, %v1298_v0   ;;  %v308_v0 = vsub.f32 %v6975_v31, %v7414_v38 }
 0x14c   :  { %516 = vadd.xlane.f32.xlu1 %v515_v7  ;;  %v356_v7 = vmul.f32 %v308_v0, %v308_v0  ;;  %v7447_v53 = vpop.xlane.xlu0 %513 }
 0x14d   :  { %v7445_v0 = vpop.xlane.xlu2 %384 }
 0x14e   :  { %v464_v31 = vsel %vm85_vm0, %v356_v7, 0.0 }
 0x14f   :  { %144 = vadd.xlane.f32.xlu2 %v143_v61  ;;  %v7429_v61 = vmul.f32 0.04, %v7280_v26  ;;  %v368_v26 = vmul.f32 %v320_v44, %v320_v44  ;;  %v7459_v44 = vmul.f32 0.04, %v7301_v58 }
 0x151   :  { %v321_v12 = vsub.f32 %v7043_v50, %v7429_v61  ;;  %v500_v43 = vsel %vm85_vm0, %v368_v26, 0.0 }
 0x153   :  { %v369_v52 = vmul.f32 %v321_v12, %v321_v12 }
 0x154   :  { %507 = vadd.xlane.f32.xlu1 %v506_v20  ;;  %v7443_v20 = vmul.f32 0.04, %v7292_v3  ;;  %v7456_v3 = vmul.f32 0.04, %v7285_v28  ;;  %v7470_v28 = vmul.f32 0.04, %v7294_v4 }
 0x155   :  { %v503_v50 = vsel %vm85_vm0, %v369_v52, 0.0  ;;  %v154_v12 = vpop.xlane.xlu2 %153  ;;  %v7481_v4 = vmul.f32 0.04, %v7365_v21  ;;  %v151_v21 = vpop.xlane.xlu1 %150 }
 0x156   :  { %9669 = vst [vmem:[#allocation20_spill] sm:$0xff] %v7456_v3 }
 0x157   :  { %135 = vadd.xlane.f32.xlu2 %v134_v42  ;;  %v7440_v42 = vmul.f32 0.04, %v7266_v19  ;;  %v318_v19 = vsub.f32 %v7085_v62, %v7443_v20  ;;  %v303_v62 = vsub.f32 %v7096_v5, %v7459_v44  ;;  %9670 = vst [vmem:[#allocation21_spill] sm:$0xff] %v7470_v28 }
 0x159   :  { %v305_v7 = vsub.f32 %v7038_v49, %v7440_v42  ;;  %v302_v49 = vsub.f32 %v7059_v55, %v7456_v3  ;;  %v317_v55 = vsub.f32 %v7075_v60, %v7470_v28  ;;  %v314_v60 = vsub.f32 %v7181_v27, %v7481_v4 }
 0x15b   :  { %v350_v58 = vmul.f32 %v302_v49, %v302_v49 }
 0x15c   :  { %459 = vadd.xlane.f32.xlu1 %v458_v9  ;;  %v353_v9 = vmul.f32 %v305_v7, %v305_v7  ;;  %v7472_v7 = vmul.f32 0.04, %v154_v12  ;;  %v365_v12 = vmul.f32 %v317_v55, %v317_v55 }
 0x15e   :  { %v455_v26 = vsel %vm85_vm0, %v353_v9, 0.0  ;;  %9671 = vst [vmem:[#allocation22_spill] sm:$0xff] %v7472_v7  ;;  %v446_v9 = vsel %vm85_vm0, %v350_v58, 0.0  ;;  %v300_v5 = vsub.f32 %v7204_v45, %v7472_v7 }
 0x15f   :  { %465 = vadd.xlane.f32.xlu2 %v464_v31  ;;  %v366_v31 = vmul.f32 %v318_v19, %v318_v19  ;;  %v199_v19 = vpop.xlane.xlu2 %198 }
 0x160   :  { %v7485_v49 = vmul.f32 0.04, %v199_v19  ;;  %v362_v19 = vmul.f32 %v314_v60, %v314_v60 }
 0x161   :  { %v494_v52 = vsel %vm85_vm0, %v366_v31, 0.0 }
 0x162   :  { %9672 = vst [vmem:[#allocation23_spill] sm:$0xff] %v7485_v49  ;;  %v315_v45 = vsub.f32 %v7222_v57, %v7485_v49 }
 0x164   :  { %501 = vadd.xlane.f32.xlu1 %v500_v43  ;;  %v7467_v43 = vpop.xlane.xlu0 %468 }
 0x167   :  { %504 = vadd.xlane.f32.xlu2 %v503_v50  ;;  %v351_v50 = vmul.f32 %v303_v62, %v303_v62  ;;  %v491_v62 = vsel %vm85_vm0, %v365_v12, 0.0  ;;  %v482_v12 = vsel %vm85_vm0, %v362_v19, 0.0 }
 0x169   :  { %v449_v31 = vsel %vm85_vm0, %v351_v50, 0.0  ;;  %v148_v50 = vpop.xlane.xlu2 %147 }
 0x16a   :  { %v7495_v55 = vmul.f32 0.04, %v148_v50 }
 0x16c   :  { %456 = vadd.xlane.f32.xlu1 %v455_v26  ;;  %v7483_v26 = vpop.xlane.xlu0 %510 }
 0x16f   :  { %495 = vadd.xlane.f32.xlu2 %v494_v52  ;;  %v348_v52 = vmul.f32 %v300_v5, %v300_v5 }
 0x171   :  { %v440_v58 = vsel %vm85_vm0, %v348_v52, 0.0  ;;  %v298_v52 = vsub.f32 %v7239_v17, %v7495_v55  ;;  %v193_v60 = vpop.xlane.xlu2 %192 }
 0x172   :  { %v7508_v50 = vmul.f32 0.04, %v193_v60 }
 0x174   :  { %447 = vadd.xlane.f32.xlu1 %v446_v9  ;;  %v7493_v9 = vmul.f32 0.04, %v151_v21  ;;  %v7497_v5 = vpop.xlane.xlu0 %462 }
 0x176   :  { %9673 = vst [vmem:[#allocation24_spill] sm:$0xff] %v7493_v9  ;;  %v299_v27 = vsub.f32 %v7273_v2, %v7493_v9  ;;  %v6748_v9 = vld [vmem:[%s9608_s0 + $0x78] sm:$0xff] }
 0x177   :  { %450 = vadd.xlane.f32.xlu2 %v449_v31  ;;  %v363_v31 = vmul.f32 %v315_v45, %v315_v45  ;;  %v346_v45 = vmul.f32 %v298_v52, %v298_v52 }
 0x179   :  { %v485_v57 = vsel %vm85_vm0, %v363_v31, 0.0  ;;  %v434_v19 = vsel %vm85_vm0, %v346_v45, 0.0  ;;  %v313_v31 = vsub.f32 %v7251_v25, %v7508_v50  ;;  %v6747_v25 = vld [vmem:[%s9608_s0 + $0x70] sm:$0xff] }
 0x17c   :  { %492 = vadd.xlane.f32.xlu1 %v491_v62  ;;  %v347_v62 = vmul.f32 %v299_v27, %v299_v27  ;;  %v7511_v2 = vpop.xlane.xlu0 %453  ;;  %v361_v27 = vmul.f32 %v313_v31, %v313_v31 }
 0x17e   :  { %v437_v21 = vsel %vm85_vm0, %v347_v62, 0.0  ;;  %v479_v52 = vsel %vm85_vm0, %v361_v27, 0.0  ;;  %v1407_v62 = vpop.permute.xlu2 %1406 }
 0x17f   :  { %441 = vadd.xlane.f32.xlu2 %v440_v58  ;;  %v7506_v58 = vmul.f32 0.04, %v7386_v35 }
 0x181   :  { %9674 = vst [vmem:[#allocation25_spill] sm:$0xff] %v7506_v58  ;;  %v312_v17 = vsub.f32 %v7195_v34, %v7506_v58 }
 0x183   :  { %v360_v35 = vmul.f32 %v312_v17, %v312_v17 }
 0x184   :  { %483 = vadd.xlane.f32.xlu1 %v482_v12  ;;  %v1695_v34 = vpop.permute.xlu1 %1694 }
 0x185   :  { %v476_v12 = vsel %vm85_vm0, %v360_v35, 0.0 }
 0x186   :  { %v7524_v45 = vpop.permute.xlu2 %1401 }
 0x187   :  { %486 = vadd.xlane.f32.xlu2 %v485_v57  ;;  %v7520_v57 = vpop.xlane.xlu0 %498 }
 0x18c   :  { %435 = vadd.xlane.f32.xlu1 %v434_v19 }
 0x18e   :  { %v1700_v31 = vpop.permute.xlu2 %1699 }
 0x18f   :  { %438 = vadd.xlane.f32.xlu2 %v437_v21  ;;  %v7522_v60 = vpop.xlane.xlu0 %489  ;;  %v1588_v21 = vmul.f32 %v6747_v25, %v1407_v62  ;;  %v1203_v62 = vld [vmem:[%s9610_s2 + $0x68] sm:$0xff] }
 0x191   :  { %v1876_v17 = vadd.f32 %v1695_v34, %v1588_v21 }
 0x194   :  { %477 = vadd.xlane.f32.xlu1 %v476_v12  ;;  %v1251_v12 = vmul.f32 %v7323_v22, %v7114_v40 }
 0x196   :  { %v1299_v40 = vsub.f32 %v1203_v62, %v1251_v12  ;;  %v7550_v7 = vpop.permute.xlu2 %1674 }
 0x197   :  { %480 = vadd.xlane.f32.xlu2 %v479_v52  ;;  %v1924_v52 = vmax.f32 %v1876_v17, 0.0 }
 0x199   :  { %v1972_v22 = vpack.c.bf16 %v1924_v52, %v1924_v52 }
 0x1a0   :  { %v7526_v19 = vpop.xlane.xlu0 %444 }
 0x1ad   :  { %1396 = vperm.xlu1 %6649, %v7367_v24   ;;  %v7543_v24 = vmul.f32 0.04, %v7406_v39  ;;  %v2069_v39 = vunpack.c.l.b16 %v1972_v22 }
 0x1af   :  { %v142_v35 = vpop.xlane.xlu1 %141  ;;  %9676 = vst [vmem:[#allocation27_spill] sm:$0xff] %v7543_v24 }
 0x1b0   :  { %v7534_v58 = vmul.f32 0.04, %v142_v35 }
 0x1b2   :  { %9675 = vst [vmem:[#allocation26_spill] sm:$0xff] %v7534_v58  ;;  %v296_v25 = vsub.f32 %v7358_v1, %v7534_v58 }
 0x1b3   :  { %v1412_v27 = vpop.permute.xlu0 %1411 }
 0x1b4   :  { %v1589_v49 = vmul.f32 %v6748_v9, %v1412_v27  ;;  %v344_v17 = vmul.f32 %v296_v25, %v296_v25  ;;  %v310_v9 = vsub.f32 %v7211_v47, %v7543_v24  ;;  %v526_v47 = vmul.f32 0.04, %v7304_v48 }
 0x1b5   :  { %1689 = vperm.xlu1 %6649, %v1299_v40  }
 0x1b6   :  { %v1877_v34 = vadd.f32 %v1700_v31, %v1589_v49  ;;  %v428_v6 = vsel %vm85_vm0, %v344_v17, 0.0  ;;  %v358_v1 = vmul.f32 %v310_v9, %v310_v9  ;;  %v574_v40 = vadd.f32 0.001, %v526_v47 }
 0x1b7   :  { %v187_v27 = vpop.xlane.xlu1 %186  ;;  %429 = vadd.xlane.f32.xlu2 %v428_v6  ;;  %v520_v17 = vmul.f32 0.04, %v7318_v54 }
 0x1b8   :  { %v1925_v21 = vmax.f32 %v1877_v34, 0.0  ;;  %v7552_v31 = vmul.f32 0.04, %v187_v27  ;;  %v470_v6 = vsel %vm85_vm0, %v358_v1, 0.0  ;;  %6661 = vrsqrt.f32 %v574_v40 }
 0x1b9   :  { %v7574_v9 = vadd.f32 0.001, %v520_v17  ;;  %v529_v1 = vmul.f32 0.04, %v7325_v32  ;;  %v519_v17 = vmul.f32 0.04, %v7335_v14  ;;  %vm700_vm2 = vweird.f32 %v574_v40 }
 0x1ba   :  { %v1973_v35 = vpack.c.bf16 %v1925_v21, %v1925_v21  ;;  %9677 = vst [vmem:[#allocation28_spill] sm:$0xff] %v7552_v31  ;;  %v311_v52 = vsub.f32 %v7372_v29, %v7552_v31  ;;  %v523_v21 = vmul.f32 0.04, %v7350_v10 }
 0x1bb   :  { %vm640_vm8 = vweird.f32 %v7574_v9 }
 0x1bc   :  { %v2070_v49 = vunpack.c.l.b16 %v1973_v35  ;;  %v359_v25 = vmul.f32 %v311_v52, %v311_v52  ;;  %v7570_v48 = vadd.f32 0.001, %v523_v21 }
 0x1bd   :  { %1386 = vperm.xlu1 %6649, %v7337_v13  }
 0x1be   :  { %v7554_v12 = vpack.c.b16 %v2070_v49, %v2069_v39  ;;  %v473_v22 = vsel %vm85_vm0, %v359_v25, 0.0  ;;  %v6662_v39 = vpop.eup %6661  ;;  %6663 = vrsqrt.f32 %v7570_v48  ;;  %vm670_vm4 = vweird.f32 %v7570_v48 }
 0x1bf   :  { %v7563_v62 = vpop.xlane.xlu1 %516  ;;  %471 = vadd.xlane.f32.xlu2 %v470_v6  ;;  %6665 = vrsqrt.f32 %v7574_v9  ;;  %v695_v54 = vmul.f32 %v6662_v39, %v574_v40  ;;  %vm701_vm1 = vweird.f32 %v6662_v39 }
 0x1c0   :  { %9678 = vst [vmem:[#allocation29_spill] sm:$0xff] %v7554_v12  ;;  %2141 = vrot.lane.b32.xlu0 %v7554_v12, %s6827_s15  ;;  %vm702_vm3 = vmor %vm700_vm2, %vm701_vm1 }
 0x1c1   :  { %v696_v6 = vmul.f32 %v6662_v39, %v695_v54 }
 0x1c2   :  { %v145_v34 = vpop.xlane.xlu2 %144 }
 0x1c4   :  { %v7584_v47 = vpop.eup %6663 }
 0x1c5   :  { %v7586_v25 = vpop.eup %6665  ;;  %v665_v21 = vmul.f32 %v7584_v47, %v7570_v48  ;;  %vm671_vm5 = vweird.f32 %v7584_v47 }
 0x1c6   :  { %v635_v32 = vmul.f32 %v7586_v25, %v7574_v9  ;;  %vm641_vm6 = vweird.f32 %v7586_v25  ;;  %vm672_vm7 = vmor %vm670_vm4, %vm671_vm5 }
 0x1c7   :  { %v7568_v29 = vpop.xlane.xlu1 %507  ;;  %474 = vadd.xlane.f32.xlu2 %v473_v22  ;;  %v518_v22 = vmul.f32 0.04, %v7353_v37  ;;  %v666_v54 = vmul.f32 %v7584_v47, %v665_v21  ;;  %vm642_vm9 = vmor %vm640_vm8, %vm641_vm6 }
 0x1ca   :  { %v136_v13 = vpop.xlane.xlu2 %135 }
 0x1cb   :  { %v7572_v35 = vmul.f32 0.04, %v136_v13  ;;  %v697_v13 = vmul.f32 0.5, %v696_v6  ;;  %v667_v6 = vmul.f32 0.5, %v666_v54 }
 0x1cd   :  { %9679 = vst [vmem:[#allocation30_spill] sm:$0xff] %v7572_v35  ;;  %v294_v27 = vsub.f32 %v7411_v8, %v7572_v35  ;;  %v7588_v8 = vadd.f32 0.001, %v529_v1  ;;  %v698_v37 = vsub.f32 1.5, %v697_v13  ;;  %v636_v1 = vmul.f32 %v7586_v25, %v635_v32 }
 0x1cf   :  { %v342_v10 = vmul.f32 %v294_v27, %v294_v27  ;;  %v7582_v52 = vpop.xlane.xlu1 %459  ;;  %v7596_v27 = vmul.f32 0.04, %v145_v34  ;;  %6667 = vrsqrt.f32 %v7588_v8  ;;  %v699_v21 = vmul.f32 %v6662_v39, %v698_v37 }
 0x1d0   :  { %vm730_vm10 = vweird.f32 %v7588_v8 }
 0x1d1   :  { %v422_v49 = vsel %vm85_vm0, %v342_v10, 0.0  ;;  %v7599_v10 = vadd.f32 0.001, %v518_v22  ;;  %v297_v14 = vsub.f32 %v7394_v16, %v7596_v27  ;;  %v637_v22 = vmul.f32 0.5, %v636_v1  ;;  %v1102_v1 = vld [vmem:[%s9609_s1 + $0x40] sm:$0xff] }
 0x1d2   :  { %423 = vadd.xlane.f32.xlu2 %v422_v49  ;;  %v7602_v49 = vadd.f32 0.001, %v519_v17  ;;  %v527_v17 = vmul.f32 0.04, %v7401_v30  ;;  %v668_v16 = vsub.f32 1.5, %v667_v6  ;;  %v703_v54 = vsel %vm702_vm3, %v6662_v39, %v699_v21 }
 0x1d3   :  { %6669 = vrsqrt.f32 %v7599_v10  ;;  %v345_v31 = vmul.f32 %v297_v14, %v297_v14  ;;  %v638_v58 = vsub.f32 1.5, %v637_v22  ;;  %vm620_vm13 = vweird.f32 %v7599_v10 }
 0x1d4   :  { %6671 = vrsqrt.f32 %v7602_v49  ;;  %v7624_v14 = vadd.f32 0.001, %v527_v17  ;;  %v669_v21 = vmul.f32 %v7584_v47, %v668_v16  ;;  %vm630_vm2 = vweird.f32 %v7602_v49 }
 0x1d5   :  { %v7610_v34 = vpop.eup %6667  ;;  %v431_v24 = vsel %vm85_vm0, %v345_v31, 0.0  ;;  %v7632_v31 = vmul.f32 %v1102_v1, %v703_v54  ;;  %v639_v39 = vmul.f32 %v7586_v25, %v638_v58  ;;  %v1096_v54 = vld [vmem:[%s9609_s1 + $0x10] sm:$0xff] }
 0x1d6   :  { %v725_v13 = vmul.f32 %v7610_v34, %v7588_v8  ;;  %6673 = vrsqrt.f32 %v7624_v14  ;;  %v673_v17 = vsel %vm672_vm7, %v7584_v47, %v669_v21  ;;  %vm731_vm11 = vweird.f32 %v7610_v34 }
 0x1d7   :  { %v7605_v35 = vpop.xlane.xlu1 %501  ;;  %v643_v16 = vsel %vm642_vm9, %v7586_v25, %v639_v39  ;;  %v521_v25 = vmul.f32 0.04, %v7445_v0  ;;  %vm7670_vm12 = vmor %vm730_vm10, %vm731_vm11  ;;  %v1192_v0 = vld [vmem:[%s9610_s2 + $0x10] sm:$0xff]  ;;  %vm710_vm4 = vweird.f32 %v7624_v14  ;;  %vm2175_vm10 = vcmask 7168  }
 0x1d8   :  { %v726_v30 = vmul.f32 %v7610_v34, %v725_v13  ;;  %v1099_v13 = vld [vmem:[%s9609_s1 + $0x28] sm:$0xff] }
 0x1d9   :  { %v7616_v32 = vpop.eup %6669  ;;  %v7655_v9 = vmul.f32 %v1099_v13, %v673_v17  ;;  %v569_v13 = vadd.f32 0.001, %v521_v25 }
 0x1da   :  { %v7622_v37 = vpop.eup %6671  ;;  %v615_v6 = vmul.f32 %v7616_v32, %v7599_v10  ;;  %v727_v48 = vmul.f32 0.5, %v726_v30  ;;  %vm621_vm14 = vweird.f32 %v7616_v32 }
 0x1db   :  { %v625_v22 = vmul.f32 %v7622_v37, %v7602_v49  ;;  %vm631_vm15 = vweird.f32 %v7622_v37  ;;  %vm7689_vm1 = vmor %vm620_vm13, %vm621_vm14  ;;  %6675 = vrsqrt.f32 %v569_v13  ;;  %vm650_vm7 = vweird.f32 %v569_v13 }
 0x1dc   :  { %v728_v1 = vsub.f32 1.5, %v727_v48  ;;  %v7653_v30 = vpop.eup %6673  ;;  %vm632_vm3 = vmor %vm630_vm2, %vm631_vm15 }
 0x1dd   :  { %v626_v58 = vmul.f32 %v7622_v37, %v625_v22  ;;  %v705_v39 = vmul.f32 %v7653_v30, %v7624_v14  ;;  %vm711_vm5 = vweird.f32 %v7653_v30 }
 0x1de   :  { %v729_v48 = vmul.f32 %v7610_v34, %v728_v1  ;;  %vm712_vm6 = vmor %vm710_vm4, %vm711_vm5 }
 0x1df   :  { %v7628_v40 = vpop.xlane.xlu1 %456  ;;  %v627_v22 = vmul.f32 0.5, %v626_v58 }
 0x1e1   :  { %v628_v58 = vsub.f32 1.5, %v627_v22 }
 0x1e3   :  { %v629_v22 = vmul.f32 %v7622_v37, %v628_v58 }
 0x1e7   :  { %v7660_v21 = vpop.xlane.xlu1 %447 }
 0x1ea   :  { %432 = vadd.xlane.f32.xlu0 %v431_v24  ;;  %1376 = vperm.xlu2 %6648, %v7632_v31   ;;  %v616_v24 = vmul.f32 %v7616_v32, %v615_v6  ;;  %v7657_v6 = vmul.f32 %v1096_v54, %v643_v16  ;;  %v706_v16 = vmul.f32 %v7653_v30, %v705_v39  ;;  %v1105_v54 = vld [vmem:[%s9609_s1 + $0x58] sm:$0xff] }
 0x1ec   :  { %v617_v47 = vmul.f32 0.5, %v616_v24  ;;  %v1240_v17 = vmul.f32 %v7657_v6, %v7159_v59  ;;  %v733_v59 = vsel %vm7670_vm12, %v7610_v34, %v729_v48  ;;  %v707_v39 = vmul.f32 0.5, %v706_v16 }
 0x1ed   :  { %v1153_v10 = vmul.f32 %v1105_v54, %v733_v59  ;;  %v633_v48 = vsel %vm632_vm3, %v7622_v37, %v629_v22  ;;  %v6676_v37 = vpop.eup %6675  ;;  %v1190_v22 = vld [vmem:[%s9610_s2] sm:$0xff] }
 0x1ee   :  { %v618_v24 = vsub.f32 1.5, %v617_v47  ;;  %v1288_v1 = vsub.f32 %v1192_v0, %v1240_v17  ;;  %v1095_v17 = vld [vmem:[%s9609_s1 + $0x8] sm:$0xff]  ;;  %v708_v58 = vsub.f32 1.5, %v707_v39  ;;  %v1201_v0 = vld [vmem:[%s9610_s2 + $0x58] sm:$0xff]  ;;  %v645_v54 = vmul.f32 %v6676_v37, %v569_v13 }
 0x1ef   :  { %v7694_v34 = vpop.xlane.xlu1 %492  ;;  %v1249_v49 = vmul.f32 %v1153_v10, %v7116_v41  ;;  %v1143_v16 = vmul.f32 %v1095_v17, %v633_v48  ;;  %vm651_vm8 = vweird.f32 %v6676_v37 }
 0x1f0   :  { %v619_v47 = vmul.f32 %v7616_v32, %v618_v24  ;;  %v1094_v24 = vld [vmem:[%s9609_s1] sm:$0xff]  ;;  %v646_v25 = vmul.f32 %v6676_v37, %v645_v54  ;;  %vm652_vm9 = vmor %vm650_vm7, %vm651_vm8 }
 0x1f2   :  { %1361 = vperm.xlu2 %6648, %v7655_v9   ;;  %v623_v8 = vsel %vm7689_vm1, %v7616_v32, %v619_v47  ;;  %v1297_v32 = vsub.f32 %v1201_v0, %v1249_v49  ;;  %v647_v17 = vmul.f32 0.5, %v646_v25  ;;  %v1097_v25 = vld [vmem:[%s9609_s1 + $0x18] sm:$0xff] }
 0x1f3   :  { %v7710_v59 = vmul.f32 %v1094_v24, %v623_v8  ;;  %v1191_v8 = vld [vmem:[%s9610_s2 + $0x8] sm:$0xff] }
 0x1f4   :  { %v9684_v24 = vld [vmem:[#allocation6_spill] sm:$0xff] }
 0x1f5   :  { %v1238_v41 = vmul.f32 %v7710_v59, %v7163_v63  ;;  %v1239_v63 = vmul.f32 %v1143_v16, %v7174_v23  ;;  %v9685_v23 = vld [vmem:[#allocation10_spill] sm:$0xff] }
 0x1f7   :  { %v7717_v47 = vpop.xlane.xlu1 %483  ;;  %v1286_v39 = vsub.f32 %v1190_v22, %v1238_v41  ;;  %v1195_v41 = vld [vmem:[%s9610_s2 + $0x28] sm:$0xff] }
 0x1fa   :  { %1634 = vperm.xlu2 %6648, %v1288_v1   ;;  %v709_v1 = vmul.f32 %v7653_v30, %v708_v58  ;;  %v648_v58 = vsub.f32 1.5, %v647_v17 }
 0x1fc   :  { %v713_v14 = vsel %vm712_vm6, %v7653_v30, %v709_v1  ;;  %v1199_v30 = vld [vmem:[%s9610_s2 + $0x48] sm:$0xff]  ;;  %v649_v1 = vmul.f32 %v6676_v37, %v648_v58  ;;  %v2006_v58 = vld [vmem:[%s9611_s3] sm:$0x1] }
 0x1fe   :  { %1391 = vperm.xlu0 %6650, %v1153_v10   ;;  %v1103_v10 = vld [vmem:[%s9609_s1 + $0x48] sm:$0xff]  ;;  %v653_v22 = vsel %vm652_vm9, %v6676_v37, %v649_v1  ;;  %v6749_v37 = vld [vmem:[%s9608_s0 + $0x60] sm:$0xff]  ;;  %v2250_v1 = vpack.i.b16 %v2006_v58, %v2006_v58 }
 0x1ff   :  { %v1151_v48 = vmul.f32 %v1103_v10, %v713_v14  ;;  %v7731_v0 = vpop.xlane.xlu1 %435  ;;  %v7746_v10 = vmul.f32 %v1097_v25, %v653_v22 }
 0x200   :  { %v2252_v25 = vperm.slane %v2250_v1, 0 }
 0x201   :  { %v1247_v49 = vmul.f32 %v1151_v48, %v9684_v24  ;;  %v1685_v24 = vpop.permute.xlu0 %1684 }
 0x202   :  { %1341 = vperm.xlu2 %6648, %v1143_v16   ;;  %v1243_v16 = vmul.f32 %v7655_v9, %v9685_v23  ;;  %v1193_v9 = vld [vmem:[%s9610_s2 + $0x18] sm:$0xff] }
 0x203   :  { %v1295_v54 = vsub.f32 %v1199_v30, %v1247_v49  ;;  %v6750_v30 = vld [vmem:[%s9608_s0 + $0x68] sm:$0xff] }
 0x204   :  { %v1291_v13 = vsub.f32 %v1195_v41, %v1243_v16 }
 0x206   :  { %1679 = vperm.xlu0 %6650, %v1297_v32   ;;  %v1287_v32 = vsub.f32 %v1191_v8, %v1239_v63 }
 0x207   :  { %v7744_v14 = vpop.xlane.xlu1 %477 }
 0x208   :  { %9686 = vst [vmem:[#allocation6_spill] sm:$0xff] %v7744_v14 }
 0x20a   :  { %1624 = vperm.xlu2 %6648, %v1286_v39   ;;  %v9687_v39 = vld [vmem:[#allocation11_spill] sm:$0xff] }
 0x20e   :  { %1381 = vperm.xlu0 %6650, %v1151_v48   ;;  %v1241_v48 = vmul.f32 %v7746_v10, %v9687_v39 }
 0x210   :  { %v1289_v8 = vsub.f32 %v1193_v9, %v1241_v48  ;;  %v7763_v9 = vunpack.c.l.bf16 %v2252_v25 }
 0x212   :  { %1629 = vperm.xlu2 %6648, %v1287_v32   ;;  %v1587_v32 = vmul.f32 %v6750_v30, %v7524_v45 }
 0x216   :  { %1669 = vperm.xlu0 %6650, %v1295_v54  }
 0x21e   :  { %1649 = vperm.xlu0 %6650, %v1291_v13  }
 0x21f   :  { %v1397_v17 = vpop.permute.xlu1 %1396 }
 0x220   :  { %v1586_v63 = vmul.f32 %v6749_v37, %v1397_v17 }
 0x222   :  { %v1874_v49 = vadd.f32 %v1685_v24, %v1586_v63 }
 0x224   :  { %v1922_v54 = vmax.f32 %v1874_v49, 0.0 }
 0x226   :  { %1639 = vperm.xlu0 %6650, %v1289_v8   ;;  %v1970_v41 = vpack.c.bf16 %v1922_v54, %v1922_v54 }
 0x227   :  { %v1690_v23 = vpop.permute.xlu1 %1689 }
 0x228   :  { %v1875_v16 = vadd.f32 %v1690_v23, %v1587_v32  ;;  %v2067_v39 = vunpack.c.l.b16 %v1970_v41  ;;  %v6751_v41 = vld [vmem:[%s9608_s0 + $0x50] sm:$0xff] }
 0x22a   :  { %v1923_v22 = vmax.f32 %v1875_v16, 0.0 }
 0x22c   :  { %v1971_v13 = vpack.c.bf16 %v1923_v22, %v1923_v22 }
 0x22e   :  { %v2068_v48 = vunpack.c.l.b16 %v1971_v13 }
 0x22f   :  { %v1387_v16 = vpop.permute.xlu1 %1386 }
 0x230   :  { %v7766_v63 = vpack.c.b16 %v2068_v48, %v2067_v39  ;;  %v1584_v22 = vmul.f32 %v6751_v41, %v1387_v16  ;;  %v6752_v48 = vld [vmem:[%s9608_s0 + $0x58] sm:$0xff] }
 0x232   :  { %v2142_v17 = vpop.permute.xlu0 %2141  ;;  %9688 = vst [vmem:[#allocation10_spill] sm:$0xff] %v7766_v63  ;;  %2139 = vrot.lane.b32.xlu1 %v7766_v63, %s6827_s15  ;;  %v1872_v13 = vadd.f32 %v7550_v7, %v1584_v22  ;;  %v7786_v7 = vmul.f32 0.04, %v7431_v36 }
 0x233   :  { %v2199_v37 = vsel %vm2175_vm10, 0, %v2142_v17 }
 0x234   :  { %v2267_v8 = vunpack.c.l.bf16 %v2199_v37  ;;  %v2268_v45 = vunpack.c.h.bf16 %v2199_v37  ;;  %v1920_v39 = vmax.f32 %v1872_v13, 0.0 }
 0x236   :  { %v2316_v24 = vmul.f32 %v7763_v9, %v2267_v8  ;;  %v2317_v49 = vmul.f32 %v7763_v9, %v2268_v45  ;;  %v1968_v45 = vpack.c.bf16 %v1920_v39, %v1920_v39 }
 0x238   :  { %v2364_v58 = vpack.c.bf16 %v2316_v24, %v2316_v24  ;;  %v2365_v30 = vpack.c.bf16 %v2317_v49, %v2317_v49 }
 0x23a   :  { %v2730_v32 = vunpack.c.l.b16 %v2364_v58  ;;  %v2731_v54 = vunpack.c.l.b16 %v2365_v30  ;;  %v2065_v58 = vunpack.c.l.b16 %v1968_v45 }
 0x23c   :  { %v2771_v1 = vpack.c.b16 %v2731_v54, %v2730_v32  ;;  %v524_v54 = vmul.f32 0.04, %v7339_v33 }
 0x23e   :  { %4324 = vmatpush.bf16.msra.mxu0 %v2771_v1  ;;  %6618 = vmatpush.bf16.msra.mxu1 %v2771_v1  ;;  %v572_v41 = vadd.f32 0.001, %v524_v54 }
 0x23f   :  { %6619 = vmatpush.bf16.msra.mxu2 %v2771_v1  ;;  %6620 = vmatpush.bf16.msra.mxu3 %v2771_v1  ;;  %v6753_v1 = vld [vmem:[%s9608_s0 + $0x88] sm:$0xff] }
 0x240   :  { %v295_v16 = vsub.f32 %v6753_v1, %v7786_v7  ;;  %6677 = vrsqrt.f32 %v572_v41  ;;  %vm680_vm11 = vweird.f32 %v572_v41 }
 0x25d   :  { %v7772_v23 = vpop.xlane.xlu0 %432 }
 0x270   :  { %v1392_v25 = vpop.permute.xlu0 %1391 }
 0x271   :  { %v1585_v17 = vmul.f32 %v6752_v48, %v1392_v25  ;;  %v343_v25 = vmul.f32 %v295_v16, %v295_v16 }
 0x278   :  { %v1680_v37 = vpop.permute.xlu0 %1679 }
 0x279   :  { %v1873_v8 = vadd.f32 %v1680_v37, %v1585_v17  ;;  %v525_v17 = vmul.f32 0.04, %v7309_v46  ;;  %v425_v37 = vsel %vm85_vm0, %v343_v25, 0.0  ;;  %v9690_v25 = vld [vmem:[#allocation5_spill] sm:$0xff] }
 0x27b   :  { %v1921_v24 = vmax.f32 %v1873_v8, 0.0 }
 0x27d   :  { %v1969_v49 = vpack.c.bf16 %v1921_v24, %v1921_v24  ;;  %v573_v24 = vadd.f32 0.001, %v525_v17 }
 0x27f   :  { %v2066_v30 = vunpack.c.l.b16 %v1969_v49  ;;  %6679 = vrsqrt.f32 %v573_v24  ;;  %vm690_vm15 = vweird.f32 %v573_v24 }
 0x281   :  { %v7781_v32 = vpack.c.b16 %v2066_v30, %v2065_v58  ;;  %v6678_v30 = vpop.eup %6677 }
 0x282   :  { %v675_v1 = vmul.f32 %v6678_v30, %v572_v41  ;;  %vm681_vm12 = vweird.f32 %v6678_v30 }
 0x283   :  { %9689 = vst [vmem:[#allocation11_spill] sm:$0xff] %v7781_v32  ;;  %2137 = vrot.lane.b32.xlu1 %v7781_v32, %s6827_s15  ;;  %vm682_vm13 = vmor %vm680_vm11, %vm681_vm12 }
 0x284   :  { %v676_v46 = vmul.f32 %v6678_v30, %v675_v1 }
 0x285   :  { %v6680_v16 = vpop.eup %6679 }
 0x286   :  { %vm691_vm14 = vweird.f32 %v6680_v16 }
 0x287   :  { %vm692_vm1 = vmor %vm690_vm15, %vm691_vm14 }
 0x2a4   :  { %v2140_v22 = vpop.permute.xlu1 %2139 }
 0x2a5   :  { %v2196_v13 = vsel %vm2175_vm10, 0, %v2140_v22  ;;  %v677_v22 = vmul.f32 0.5, %v676_v46 }
 0x2a6   :  { %v2265_v39 = vunpack.c.l.bf16 %v2196_v13  ;;  %v2266_v48 = vunpack.c.h.bf16 %v2196_v13  ;;  %v685_v13 = vmul.f32 %v6680_v16, %v573_v24 }
 0x2a7   :  { %v678_v17 = vsub.f32 1.5, %v677_v22 }
 0x2a8   :  { %v2314_v36 = vmul.f32 %v7763_v9, %v2265_v39  ;;  %v2315_v33 = vmul.f32 %v7763_v9, %v2266_v48  ;;  %v7798_v39 = vpop.xlane.xlu2 %465  ;;  %v1246_v48 = vmul.f32 %v7632_v31, %v9690_v25  ;;  %v1100_v31 = vld [vmem:[%s9609_s1 + $0x30] sm:$0xff] }
 0x2aa   :  { %v2362_v8 = vpack.c.bf16 %v2314_v36, %v2314_v36  ;;  %v2363_v45 = vpack.c.bf16 %v2315_v33, %v2315_v33  ;;  %v686_v36 = vmul.f32 %v6680_v16, %v685_v13  ;;  %v1198_v33 = vld [vmem:[%s9610_s2 + $0x40] sm:$0xff]  ;;  %v1101_v13 = vld [vmem:[%s9609_s1 + $0x38] sm:$0xff] }
 0x2ac   :  { %v2728_v49 = vunpack.c.l.b16 %v2362_v8  ;;  %v2729_v58 = vunpack.c.l.b16 %v2363_v45  ;;  %v1294_v8 = vsub.f32 %v1198_v33, %v1246_v48  ;;  %v687_v45 = vmul.f32 0.5, %v686_v36  ;;  %v9691_v36 = vld [vmem:[#allocation7_spill] sm:$0xff] }
 0x2ad   :  { %426 = vadd.xlane.f32.xlu1 %v425_v37  ;;  %v522_v37 = vmul.f32 0.04, %v7426_v51 }
 0x2ae   :  { %v2770_v54 = vpack.c.b16 %v2729_v58, %v2728_v49  ;;  %v679_v49 = vmul.f32 %v6678_v30, %v678_v17 }
 0x2af   :  { %v570_v58 = vadd.f32 0.001, %v522_v37 }
 0x2b0   :  { %4325 = vmatpush.bf16.msra.mxu0 %v2770_v54  ;;  %6621 = vmatpush.bf16.msra.mxu1 %v2770_v54  ;;  %v683_v1 = vsel %vm682_vm13, %v6678_v30, %v679_v49  ;;  %v7809_v46 = vpop.xlane.xlu2 %504  ;;  %v9692_v49 = vld [vmem:[#allocation8_spill] sm:$0xff] }
 0x2b1   :  { %6622 = vmatpush.bf16.msra.mxu2 %v2770_v54  ;;  %6623 = vmatpush.bf16.msra.mxu3 %v2770_v54  ;;  %v688_v54 = vsub.f32 1.5, %v687_v45  ;;  %6681 = vrsqrt.f32 %v570_v58  ;;  %v1148_v22 = vmul.f32 %v1100_v31, %v683_v1  ;;  %v1197_v31 = vld [vmem:[%s9610_s2 + $0x38] sm:$0xff]  ;;  %vm660_vm2 = vweird.f32 %v570_v58 }
 0x2b3   :  { %v689_v41 = vmul.f32 %v6680_v16, %v688_v54  ;;  %v1244_v33 = vmul.f32 %v1148_v22, %v9691_v36 }
 0x2b5   :  { %v693_v51 = vsel %vm692_vm1, %v6680_v16, %v689_v41 }
 0x2b6   :  { %v1149_v48 = vmul.f32 %v1101_v13, %v693_v51 }
 0x2b7   :  { %v6682_v25 = vpop.eup %6681 }
 0x2b8   :  { %v7814_v30 = vpop.xlane.xlu2 %495  ;;  %v655_v17 = vmul.f32 %v6682_v25, %v570_v58  ;;  %v1245_v54 = vmul.f32 %v1149_v48, %v9692_v49  ;;  %vm661_vm3 = vweird.f32 %v6682_v25 }
 0x2b9   :  { %vm662_vm4 = vmor %vm660_vm2, %vm661_vm3 }
 0x2ba   :  { %v656_v37 = vmul.f32 %v6682_v25, %v655_v17  ;;  %v1293_v41 = vsub.f32 %v1197_v31, %v1245_v54 }
 0x2bc   :  { %v657_v45 = vmul.f32 0.5, %v656_v37 }
 0x2be   :  { %v658_v1 = vsub.f32 1.5, %v657_v45 }
 0x2c0   :  { %v7820_v16 = vpop.xlane.xlu2 %450  ;;  %v659_v51 = vmul.f32 %v6682_v25, %v658_v1 }
 0x2c2   :  { %v663_v36 = vsel %vm662_vm4, %v6682_v25, %v659_v51 }
 0x2c6   :  { %1664 = vperm.xlu1 %6649, %v1294_v8   ;;  %v1196_v8 = vld [vmem:[%s9610_s2 + $0x30] sm:$0xff] }
 0x2c7   :  { %v1292_v24 = vsub.f32 %v1196_v8, %v1244_v33  ;;  %v549_v33 = vmul.f32 0.04, %v7467_v43  ;;  %v9693_v8 = vld [vmem:[#allocation9_spill] sm:$0xff] }
 0x2c8   :  { %v7827_v17 = vpop.xlane.xlu2 %441 }
 0x2c9   :  { %v597_v58 = vadd.f32 0.001, %v549_v33 }
 0x2cb   :  { %vm930_vm8 = vweird.f32 %v597_v58 }
 0x2ce   :  { %1366 = vperm.xlu1 %6649, %v1148_v22   ;;  %v564_v22 = vmul.f32 0.04, %v7447_v53 }
 0x2d0   :  { %v612_v13 = vadd.f32 0.001, %v564_v22  ;;  %v7837_v49 = vpop.xlane.xlu2 %486 }
 0x2d2   :  { %6683 = vrsqrt.f32 %v612_v13  ;;  %vm1080_vm5 = vweird.f32 %v612_v13 }
 0x2d3   :  { %6685 = vrsqrt.f32 %v597_v58 }
 0x2d6   :  { %1371 = vperm.xlu1 %6649, %v1149_v48   ;;  %v1098_v48 = vld [vmem:[%s9609_s1 + $0x20] sm:$0xff] }
 0x2d7   :  { %v1146_v37 = vmul.f32 %v1098_v48, %v663_v36 }
 0x2d8   :  { %v6684_v45 = vpop.eup %6683  ;;  %v7843_v32 = vpop.xlane.xlu2 %438 }
 0x2d9   :  { %v1242_v53 = vmul.f32 %v1146_v37, %v9693_v8  ;;  %v1075_v54 = vmul.f32 %v6684_v45, %v612_v13  ;;  %v6686_v48 = vpop.eup %6685  ;;  %v546_v8 = vmul.f32 0.04, %v7582_v52  ;;  %vm1081_vm6 = vweird.f32 %v6684_v45 }
 0x2da   :  { %v560_v52 = vmul.f32 0.04, %v7605_v35  ;;  %vm1082_vm7 = vmor %vm1080_vm5, %vm1081_vm6  ;;  %v1140_v35 = vld [vmem:[%s9609_s1 + $0x170] sm:$0xff]  ;;  %vm931_vm9 = vweird.f32 %v6686_v48 }
 0x2db   :  { %vm932_vm11 = vmor %vm930_vm8, %vm931_vm9 }
 0x2de   :  { %1654 = vperm.xlu1 %6649, %v1292_v24   ;;  %v1194_v24 = vld [vmem:[%s9610_s2 + $0x20] sm:$0xff] }
 0x2df   :  { %v1290_v25 = vsub.f32 %v1194_v24, %v1242_v53  ;;  %v925_v24 = vmul.f32 %v6686_v48, %v597_v58  ;;  %v1125_v58 = vld [vmem:[%s9609_s1 + $0xf8] sm:$0xff] }
 0x2e6   :  { %1659 = vperm.xlu1 %6649, %v1293_v41   ;;  %v1076_v41 = vmul.f32 %v6684_v45, %v1075_v54 }
 0x2e8   :  { %v1077_v53 = vmul.f32 0.5, %v1076_v41 }
 0x2ea   :  { %v1078_v54 = vsub.f32 1.5, %v1077_v53 }
 0x2ee   :  { %1356 = vperm.xlu1 %6649, %v1146_v37  }
 0x2f5   :  { %v2138_v1 = vpop.permute.xlu1 %2137 }
 0x2f6   :  { %v2193_v31 = vsel %vm2175_vm10, 0, %v2138_v1  ;;  %1644 = vperm.xlu1 %6649, %v1290_v25   ;;  %v7846_v1 = vadd.f32 0.001, %v546_v8 }
 0x2f7   :  { %v2263_v43 = vunpack.c.l.bf16 %v2193_v31  ;;  %v2264_v22 = vunpack.c.h.bf16 %v2193_v31  ;;  %v926_v31 = vmul.f32 %v6686_v48, %v925_v24 }
 0x2f8   :  { %6687 = vrsqrt.f32 %v7846_v1  ;;  %vm900_vm13 = vweird.f32 %v7846_v1 }
 0x2f9   :  { %v2312_v51 = vmul.f32 %v7763_v9, %v2263_v43  ;;  %v2313_v36 = vmul.f32 %v7763_v9, %v2264_v22  ;;  %v561_v43 = vmul.f32 0.04, %v7809_v46  ;;  %v1079_v22 = vmul.f32 %v6684_v45, %v1078_v54  ;;  %v1236_v54 = vld [vmem:[%s9610_s2 + $0x170] sm:$0xff] }
 0x2fa   :  { %v927_v41 = vmul.f32 0.5, %v926_v31 }
 0x2fb   :  { %v2360_v33 = vpack.c.bf16 %v2312_v51, %v2312_v51  ;;  %v2361_v37 = vpack.c.bf16 %v2313_v36, %v2313_v36  ;;  %v1083_v13 = vsel %vm1082_vm7, %v6684_v45, %v1079_v22  ;;  %v9695_v45 = vld [vmem:[#allocation12_spill] sm:$0xff] }
 0x2fc   :  { %v928_v51 = vsub.f32 1.5, %v927_v41  ;;  %v7863_v46 = vmul.f32 %v1140_v35, %v1083_v13 }
 0x2fd   :  { %v2726_v63 = vunpack.c.l.b16 %v2360_v33  ;;  %v2727_v12 = vunpack.c.l.b16 %v2361_v37 }
 0x2fe   :  { %1346 = vperm.xlu1 %6649, %v7657_v6   ;;  %v7854_v6 = vadd.f32 0.001, %v560_v52  ;;  %v6688_v36 = vpop.eup %6687  ;;  %v1284_v8 = vmul.f32 %v7863_v46, %v9695_v45  ;;  %v544_v52 = vmul.f32 0.04, %v7511_v2 }
 0x2ff   :  { %v2769_v25 = vpack.c.b16 %v2727_v12, %v2726_v63  ;;  %v7851_v12 = vpop.xlane.xlu2 %480  ;;  %v7856_v63 = vadd.f32 0.001, %v561_v43  ;;  %v895_v33 = vmul.f32 %v6688_v36, %v7846_v1  ;;  %vm901_vm12 = vweird.f32 %v6688_v36 }
 0x300   :  { %6689 = vrsqrt.f32 %v7854_v6  ;;  %v1332_v22 = vsub.f32 %v1236_v54, %v1284_v8  ;;  %vm902_vm14 = vmor %vm900_vm13, %vm901_vm12  ;;  %vm1040_vm2 = vweird.f32 %v7854_v6 }
 0x301   :  { %4326 = vmatpush.bf16.msra.mxu0 %v2769_v25  ;;  %6624 = vmatpush.bf16.msra.mxu1 %v2769_v25  ;;  %6691 = vrsqrt.f32 %v7856_v63  ;;  %vm1050_vm4 = vweird.f32 %v7856_v63 }
 0x302   :  { %6625 = vmatpush.bf16.msra.mxu2 %v2769_v25  ;;  %6626 = vmatpush.bf16.msra.mxu3 %v2769_v25  ;;  %v896_v25 = vmul.f32 %v6688_v36, %v895_v33  ;;  %v9696_v33 = vld [vmem:[#allocation13_spill] sm:$0xff] }
 0x304   :  { %v897_v41 = vmul.f32 0.5, %v896_v25 }
 0x306   :  { %1351 = vperm.xlu1 %6649, %v7746_v10   ;;  %v929_v10 = vmul.f32 %v6686_v48, %v928_v51  ;;  %v7871_v53 = vpop.eup %6689  ;;  %v898_v45 = vsub.f32 1.5, %v897_v41 }
 0x307   :  { %v7866_v37 = vpop.xlane.xlu2 %429  ;;  %v6692_v31 = vpop.eup %6691  ;;  %v1035_v51 = vmul.f32 %v7871_v53, %v7854_v6  ;;  %vm1041_vm15 = vweird.f32 %v7871_v53  ;;  %v1137_v6 = vld [vmem:[%s9609_s1 + $0x158] sm:$0xff] }
 0x308   :  { %9694 = vst [vmem:[#allocation5_spill] sm:$0xff] %v7866_v37  ;;  %v933_v24 = vsel %vm932_vm11, %v6686_v48, %v929_v10  ;;  %v1045_v13 = vmul.f32 %v6692_v31, %v7856_v63  ;;  %v7886_v48 = vadd.f32 0.001, %v544_v52  ;;  %v899_v54 = vmul.f32 %v6688_v36, %v898_v45  ;;  %vm1042_vm3 = vmor %vm1040_vm2, %vm1041_vm15 }
 0x309   :  { %v7880_v43 = vmul.f32 %v1125_v58, %v933_v24  ;;  %v1221_v58 = vld [vmem:[%s9610_s2 + $0xf8] sm:$0xff]  ;;  %v559_v24 = vmul.f32 0.04, %v7520_v57  ;;  %v1122_v57 = vld [vmem:[%s9609_s1 + $0xe0] sm:$0xff]  ;;  %vm1051_vm1 = vweird.f32 %v6692_v31  ;;  %v556_v63 = vmul.f32 0.04, %v7522_v60 }
 0x30a   :  { %v1046_v8 = vmul.f32 %v6692_v31, %v1045_v13  ;;  %6693 = vrsqrt.f32 %v7886_v48  ;;  %vm1052_vm5 = vmor %vm1050_vm4, %vm1051_vm1  ;;  %vm880_vm6 = vweird.f32 %v7886_v48 }
 0x30b   :  { %v1269_v2 = vmul.f32 %v7880_v43, %v9696_v33  ;;  %v903_v33 = vsel %vm902_vm14, %v6688_v36, %v899_v54  ;;  %v1136_v54 = vld [vmem:[%s9609_s1 + $0x150] sm:$0xff] }
 0x30c   :  { %v7917_v1 = vmul.f32 %v1122_v57, %v903_v33 }
 0x30d   :  { %v1317_v25 = vsub.f32 %v1221_v58, %v1269_v2 }
 0x30e   :  { %1336 = vperm.xlu1 %6649, %v7710_v59   ;;  %v545_v59 = vmul.f32 0.04, %v7628_v40  ;;  %v1036_v40 = vmul.f32 %v7871_v53, %v1035_v51 }
 0x30f   :  { %v7890_v10 = vpop.xlane.xlu2 %471 }
 0x310   :  { %v7888_v35 = vadd.f32 0.001, %v545_v59  ;;  %v1037_v52 = vmul.f32 0.5, %v1036_v40  ;;  %v1047_v59 = vmul.f32 0.5, %v1046_v8  ;;  %v7904_v41 = vpop.eup %6693 }
 0x311   :  { %v875_v40 = vmul.f32 %v7904_v41, %v7886_v48  ;;  %vm881_vm7 = vweird.f32 %v7904_v41 }
 0x312   :  { %6695 = vrsqrt.f32 %v7888_v35  ;;  %v1038_v51 = vsub.f32 1.5, %v1037_v52  ;;  %v1048_v13 = vsub.f32 1.5, %v1047_v59  ;;  %vm7969_vm9 = vmor %vm880_vm6, %vm881_vm7  ;;  %vm890_vm11 = vweird.f32 %v7888_v35 }
 0x314   :  { %v1039_v8 = vmul.f32 %v7871_v53, %v1038_v51  ;;  %v1049_v36 = vmul.f32 %v6692_v31, %v1048_v13 }
 0x316   :  { %1854 = vperm.xlu1 %6649, %v1332_v22   ;;  %v7902_v22 = vadd.f32 0.001, %v559_v24  ;;  %v1382_v24 = vpop.permute.xlu0 %1381  ;;  %v1043_v52 = vsel %vm1042_vm3, %v7871_v53, %v1039_v8  ;;  %v1053_v51 = vsel %vm1052_vm5, %v6692_v31, %v1049_v36  ;;  %v7947_v36 = vadd.f32 0.001, %v556_v63 }
 0x317   :  { %v7911_v45 = vpop.xlane.xlu2 %474  ;;  %v7939_v57 = vmul.f32 %v1136_v54, %v1043_v52  ;;  %v6754_v52 = vld [vmem:[%s9608_s0 + $0x48] sm:$0xff] }
 0x318   :  { %v7909_v2 = vpop.eup %6695  ;;  %9697 = vst [vmem:[#allocation7_spill] sm:$0xff] %v7911_v45  ;;  %6697 = vrsqrt.f32 %v7902_v22  ;;  %v7942_v45 = vmul.f32 %v1137_v6, %v1053_v51  ;;  %v1232_v51 = vld [vmem:[%s9610_s2 + $0x150] sm:$0xff]  ;;  %vm1030_vm13 = vweird.f32 %v7902_v22  ;;  %vm1000_vm1 = vweird.f32 %v7947_v36 }
 0x319   :  { %v885_v58 = vmul.f32 %v7909_v2, %v7888_v35  ;;  %v1280_v60 = vmul.f32 %v7939_v57, %v7424_v18  ;;  %6699 = vrsqrt.f32 %v7947_v36  ;;  %vm891_vm8 = vweird.f32 %v7909_v2 }
 0x31a   :  { %vm7977_vm12 = vmor %vm890_vm11, %vm891_vm8 }
 0x31b   :  { %v886_v59 = vmul.f32 %v7909_v2, %v885_v58  ;;  %v1328_v63 = vsub.f32 %v1232_v51, %v1280_v60 }
 0x31d   :  { %v887_v8 = vmul.f32 0.5, %v886_v59  ;;  %v1583_v59 = vmul.f32 %v6754_v52, %v1382_v24 }
 0x31e   :  { %1779 = vperm.xlu1 %6649, %v1317_v25   ;;  %v876_v25 = vmul.f32 %v7904_v41, %v875_v40  ;;  %v7934_v13 = vpop.eup %6697  ;;  %v543_v40 = vmul.f32 0.04, %v7820_v16  ;;  %v1670_v37 = vpop.permute.xlu0 %1669 }
 0x31f   :  { %v7936_v33 = vpop.xlane.xlu2 %423  ;;  %v1025_v31 = vmul.f32 %v7934_v13, %v7902_v22  ;;  %v1871_v18 = vadd.f32 %v1670_v37, %v1583_v59  ;;  %v6755_v37 = vld [vmem:[%s9608_s0 + $0x40] sm:$0xff]  ;;  %vm1031_vm14 = vweird.f32 %v7934_v13 }
 0x320   :  { %v877_v53 = vmul.f32 0.5, %v876_v25  ;;  %v7949_v58 = vadd.f32 0.001, %v543_v40  ;;  %v7951_v28 = vpop.xlane.xlu1 %426  ;;  %v888_v25 = vsub.f32 1.5, %v887_v8  ;;  %vm8009_vm15 = vmor %vm1030_vm13, %vm1031_vm14 }
 0x321   :  { %v1026_v54 = vmul.f32 %v7934_v13, %v1025_v31  ;;  %v1919_v8 = vmax.f32 %v1871_v18, 0.0  ;;  %v1121_v18 = vld [vmem:[%s9609_s1 + $0xd8] sm:$0xff] }
 0x322   :  { %v878_v16 = vsub.f32 1.5, %v877_v53  ;;  %6701 = vrsqrt.f32 %v7949_v58  ;;  %v889_v24 = vmul.f32 %v7909_v2, %v888_v25  ;;  %v1120_v25 = vld [vmem:[%s9609_s1 + $0xd0] sm:$0xff]  ;;  %vm870_vm5 = vweird.f32 %v7949_v58 }
 0x323   :  { %v1027_v53 = vmul.f32 0.5, %v1026_v54  ;;  %v7981_v54 = vpop.eup %6699  ;;  %v1967_v31 = vpack.c.bf16 %v1919_v8, %v1919_v8 }
 0x324   :  { %v879_v40 = vmul.f32 %v7904_v41, %v878_v16  ;;  %v893_v51 = vsel %vm7977_vm12, %v7909_v2, %v889_v24  ;;  %v995_v24 = vmul.f32 %v7981_v54, %v7947_v36  ;;  %vm1001_vm2 = vweird.f32 %v7981_v54 }
 0x325   :  { %v1028_v52 = vsub.f32 1.5, %v1027_v53  ;;  %v8002_v53 = vmul.f32 %v1121_v18, %v893_v51  ;;  %v2064_v8 = vunpack.c.l.b16 %v1967_v31  ;;  %v1216_v31 = vld [vmem:[%s9610_s2 + $0xd0] sm:$0xff]  ;;  %vm8058_vm4 = vmor %vm1000_vm1, %vm1001_vm2 }
 0x326   :  { %1476 = vperm.xlu1 %6649, %v7917_v1   ;;  %v883_v35 = vsel %vm7969_vm9, %v7904_v41, %v879_v40  ;;  %v996_v51 = vmul.f32 %v7981_v54, %v995_v24 }
 0x327   :  { %v1377_v6 = vpop.permute.xlu2 %1376  ;;  %v8000_v40 = vmul.f32 %v1120_v25, %v883_v35  ;;  %v1029_v2 = vmul.f32 %v7934_v13, %v1028_v52  ;;  %v9704_v25 = vld [vmem:[#allocation16_spill] sm:$0xff]  ;;  %v1135_v52 = vld [vmem:[%s9609_s1 + $0x148] sm:$0xff] }
 0x328   :  { %v1582_v48 = vmul.f32 %v6755_v37, %v1377_v6  ;;  %v7995_v6 = vpop.eup %6701  ;;  %v997_v24 = vmul.f32 0.5, %v996_v51 }
 0x329   :  { %v865_v37 = vmul.f32 %v7995_v6, %v7949_v58  ;;  %v1264_v35 = vmul.f32 %v8000_v40, %v9704_v25  ;;  %v9706_v25 = vld [vmem:[#allocation17_spill] sm:$0xff]  ;;  %vm871_vm3 = vweird.f32 %v7995_v6 }
 0x32a   :  { %v998_v14 = vsub.f32 1.5, %v997_v24  ;;  %vm872_vm6 = vmor %vm870_vm5, %vm871_vm3 }
 0x32b   :  { %v866_v18 = vmul.f32 %v7995_v6, %v865_v37 }
 0x32d   :  { %v867_v37 = vmul.f32 0.5, %v866_v18 }
 0x32e   :  { %1551 = vperm.xlu1 %6649, %v7942_v45  }
 0x336   :  { %1834 = vperm.xlu1 %6649, %v1328_v63   ;;  %v540_v63 = vmul.f32 0.04, %v7827_v17 }
 0x338   :  { %v1665_v16 = vpop.permute.xlu1 %1664  ;;  %v8014_v17 = vadd.f32 0.001, %v540_v63 }
 0x339   :  { %v1870_v59 = vadd.f32 %v1665_v16, %v1582_v48 }
 0x33a   :  { %6703 = vrsqrt.f32 %v8014_v17  ;;  %vm840_vm8 = vweird.f32 %v8014_v17 }
 0x33b   :  { %v1918_v41 = vmax.f32 %v1870_v59, 0.0  ;;  %v1033_v59 = vsel %vm8009_vm15, %v7934_v13, %v1029_v2  ;;  %v555_v13 = vmul.f32 0.04, %v7837_v49  ;;  %v1312_v2 = vsub.f32 %v1216_v31, %v1264_v35  ;;  %v1231_v49 = vld [vmem:[%s9610_s2 + $0x148] sm:$0xff] }
 0x33d   :  { %v1966_v48 = vpack.c.bf16 %v1918_v41, %v1918_v41  ;;  %v554_v41 = vmul.f32 0.04, %v7717_v47 }
 0x33e   :  { %1471 = vperm.xlu1 %6649, %v8002_v53  }
 0x33f   :  { %v2063_v60 = vunpack.c.l.b16 %v1966_v48  ;;  %v8035_v48 = vmul.f32 %v1135_v52, %v1033_v59  ;;  %v8038_v22 = vadd.f32 0.001, %v554_v41  ;;  %v999_v59 = vmul.f32 %v7981_v54, %v998_v14 }
 0x340   :  { %v1367_v16 = vpop.permute.xlu1 %1366  ;;  %v8044_v47 = vpop.eup %6703 }
 0x341   :  { %v8026_v63 = vpack.c.b16 %v2064_v8, %v2063_v60  ;;  %v8040_v8 = vadd.f32 0.001, %v555_v13  ;;  %v1279_v3 = vmul.f32 %v8035_v48, %v9706_v25  ;;  %6705 = vrsqrt.f32 %v8038_v22  ;;  %v1362_v25 = vpop.permute.xlu2 %1361 }
 0x342   :  { %v835_v35 = vmul.f32 %v8044_v47, %v8014_v17  ;;  %v1003_v58 = vsel %vm8058_vm4, %v7981_v54, %v999_v59  ;;  %vm841_vm7 = vweird.f32 %v8044_v47  ;;  %vm980_vm13 = vweird.f32 %v8038_v22 }
 0x343   :  { %9705 = vst [vmem:[#allocation8_spill] sm:$0xff] %v8026_v63  ;;  %2135 = vrot.lane.b32.xlu2 %v8026_v63, %s6827_s15  ;;  %v868_v63 = vsub.f32 1.5, %v867_v37  ;;  %6707 = vrsqrt.f32 %v8040_v8  ;;  %v1327_v52 = vsub.f32 %v1231_v49, %v1279_v3  ;;  %v1119_v3 = vld [vmem:[%s9609_s1 + $0xc8] sm:$0xff]  ;;  %v538_v37 = vmul.f32 0.04, %v7731_v0  ;;  %vm8114_vm9 = vmor %vm840_vm8, %vm841_vm7 }
 0x344   :  { %v836_v36 = vmul.f32 %v8044_v47, %v835_v35  ;;  %vm990_vm15 = vweird.f32 %v8040_v8 }
 0x345   :  { %v869_v51 = vmul.f32 %v7995_v6, %v868_v63  ;;  %v6756_v63 = vld [vmem:[%s9608_s0 + $0x30] sm:$0xff] }
 0x346   :  { %1754 = vperm.xlu1 %6649, %v1312_v2   ;;  %v1580_v13 = vmul.f32 %v6756_v63, %v1367_v16  ;;  %v1132_v2 = vld [vmem:[%s9609_s1 + $0x130] sm:$0xff] }
 0x347   :  { %v8064_v41 = vpop.eup %6705  ;;  %v873_v14 = vsel %vm872_vm6, %v7995_v6, %v869_v51  ;;  %v539_v6 = vmul.f32 0.04, %v7843_v32  ;;  %v8085_v16 = vmul.f32 %v1132_v2, %v1003_v58  ;;  %v8091_v51 = vadd.f32 0.001, %v538_v37  ;;  %v6757_v32 = vld [vmem:[%s9608_s0 + $0x38] sm:$0xff]  ;;  %v1215_v2 = vld [vmem:[%s9610_s2 + $0xc8] sm:$0xff] }
 0x348   :  { %v1372_v60 = vpop.permute.xlu1 %1371  ;;  %v8083_v35 = vmul.f32 %v1119_v3, %v873_v14  ;;  %v975_v54 = vmul.f32 %v8064_v41, %v8038_v22  ;;  %vm981_vm11 = vweird.f32 %v8064_v41 }
 0x349   :  { %v8079_v24 = vpop.eup %6707  ;;  %9710 = vst [vmem:[#allocation12_spill] sm:$0xff] %v8085_v16  ;;  %v8094_v0 = vadd.f32 0.001, %v539_v6  ;;  %v1581_v18 = vmul.f32 %v6757_v32, %v1372_v60  ;;  %6709 = vrsqrt.f32 %v8091_v51  ;;  %v553_v60 = vmul.f32 0.04, %v7851_v12  ;;  %vm8155_vm14 = vmor %vm980_vm13, %vm981_vm11 }
 0x34a   :  { %9709 = vst [vmem:[#allocation9_spill] sm:$0xff] %v8083_v35  ;;  %v985_v59 = vmul.f32 %v8079_v24, %v8040_v8  ;;  %v1263_v14 = vmul.f32 %v8083_v35, %v7459_v44  ;;  %v976_v63 = vmul.f32 %v8064_v41, %v975_v54  ;;  %v8111_v44 = vpop.permute.xlu2 %1634  ;;  %vm991_vm12 = vweird.f32 %v8079_v24  ;;  %v1130_v8 = vld [vmem:[%s9609_s1 + $0x120] sm:$0xff] }
 0x34b   :  { %6711 = vrsqrt.f32 %v8094_v0  ;;  %v8118_v12 = vadd.f32 0.001, %v553_v60  ;;  %v6758_v60 = vld [vmem:[%s9608_s0 + $0x28] sm:$0xff]  ;;  %vm8165_vm1 = vmor %vm990_vm15, %vm991_vm12  ;;  %vm830_vm2 = vweird.f32 %v8094_v0  ;;  %vm820_vm5 = vweird.f32 %v8091_v51 }
 0x34c   :  { %v977_v54 = vmul.f32 0.5, %v976_v63 }
 0x34d   :  { %6713 = vrsqrt.f32 %v8118_v12 }
 0x34e   :  { %1829 = vperm.xlu1 %6649, %v1327_v52   ;;  %v837_v52 = vmul.f32 0.5, %v836_v36 }
 0x350   :  { %v1655_v31 = vpop.permute.xlu1 %1654 }
 0x351   :  { %v1868_v49 = vadd.f32 %v1655_v31, %v1580_v13  ;;  %v838_v31 = vsub.f32 1.5, %v837_v52  ;;  %v986_v13 = vmul.f32 %v8079_v24, %v985_v59  ;;  %v1311_v52 = vsub.f32 %v1215_v2, %v1263_v14 }
 0x353   :  { %v1916_v36 = vmax.f32 %v1868_v49, 0.0  ;;  %v839_v49 = vmul.f32 %v8044_v47, %v838_v31  ;;  %v987_v59 = vmul.f32 0.5, %v986_v13  ;;  %v8120_v31 = vpop.eup %6709  ;;  %v978_v13 = vsub.f32 1.5, %v977_v54 }
 0x354   :  { %v8126_v17 = vpop.eup %6711  ;;  %vm821_vm4 = vweird.f32 %v8120_v31 }
 0x355   :  { %v1964_v37 = vpack.c.bf16 %v1916_v36, %v1916_v36  ;;  %v843_v63 = vsel %vm8114_vm9, %v8044_v47, %v839_v49  ;;  %v988_v2 = vsub.f32 1.5, %v987_v59  ;;  %v979_v59 = vmul.f32 %v8064_v41, %v978_v13  ;;  %vm8234_vm7 = vmor %vm820_vm5, %vm821_vm4 }
 0x356   :  { %1526 = vperm.xlu1 %6649, %v8085_v16   ;;  %v1650_v16 = vpop.permute.xlu0 %1649  ;;  %vm831_vm3 = vweird.f32 %v8126_v17  ;;  %vm970_vm9 = vweird.f32 %v8118_v12 }
 0x357   :  { %v2061_v36 = vunpack.c.l.b16 %v1964_v37  ;;  %v1579_v37 = vmul.f32 %v6758_v60, %v1362_v25  ;;  %v825_v25 = vmul.f32 %v8126_v17, %v8094_v0  ;;  %v8170_v60 = vpop.eup %6713  ;;  %vm8226_vm6 = vmor %vm830_vm2, %vm831_vm3 }
 0x358   :  { %v1660_v3 = vpop.permute.xlu1 %1659  ;;  %vm971_vm8 = vweird.f32 %v8170_v60 }
 0x359   :  { %v1869_v58 = vadd.f32 %v1660_v3, %v1581_v18  ;;  %v1867_v47 = vadd.f32 %v1650_v16, %v1579_v37  ;;  %v8152_v16 = vpop.permute.xlu2 %1341  ;;  %v826_v13 = vmul.f32 %v8126_v17, %v825_v25  ;;  %v983_v37 = vsel %vm8155_vm14, %v8064_v41, %v979_v59  ;;  %vm8284_vm11 = vmor %vm970_vm9, %vm971_vm8 }
 0x35a   :  { %v8186_v35 = vmul.f32 %v1130_v8, %v983_v37  ;;  %v965_v41 = vmul.f32 %v8170_v60, %v8118_v12 }
 0x35b   :  { %v1917_v6 = vmax.f32 %v1869_v58, 0.0  ;;  %v565_v58 = vmul.f32 0.04, %v7563_v62  ;;  %v1116_v62 = vld [vmem:[%s9609_s1 + $0xb0] sm:$0xff]  ;;  %v827_v18 = vmul.f32 0.5, %v826_v13 }
 0x35c   :  { %v8146_v54 = vmul.f32 %v1116_v62, %v843_v63  ;;  %v966_v13 = vmul.f32 %v8170_v60, %v965_v41 }
 0x35d   :  { %v1965_v32 = vpack.c.bf16 %v1917_v6, %v1917_v6  ;;  %v8141_v49 = vadd.f32 0.001, %v565_v58  ;;  %v6759_v58 = vld [vmem:[%s9608_s0 + $0x20] sm:$0xff]  ;;  %v828_v22 = vsub.f32 1.5, %v827_v18 }
 0x35e   :  { %1749 = vperm.xlu1 %6649, %v1311_v52   ;;  %v815_v52 = vmul.f32 %v8120_v31, %v8091_v51  ;;  %9714 = vst [vmem:[#allocation16_spill] sm:$0xff] %v8146_v54 }
 0x35f   :  { %v2062_v3 = vunpack.c.l.b16 %v1965_v32  ;;  %v989_v32 = vmul.f32 %v8079_v24, %v988_v2  ;;  %6715 = vrsqrt.f32 %v8141_v49  ;;  %vm1090_vm13 = vweird.f32 %v8141_v49 }
 0x360   :  { %v1357_v14 = vpop.permute.xlu1 %1356 }
 0x361   :  { %v8131_v6 = vpack.c.b16 %v2062_v3, %v2061_v36  ;;  %v816_v36 = vmul.f32 %v8120_v31, %v815_v52  ;;  %v1915_v3 = vmax.f32 %v1867_v47, 0.0  ;;  %v1578_v63 = vmul.f32 %v6759_v58, %v1357_v14  ;;  %v1131_v52 = vld [vmem:[%s9609_s1 + $0x128] sm:$0xff] }
 0x362   :  { %v993_v62 = vsel %vm8165_vm1, %v8079_v24, %v989_v32  ;;  %v550_v47 = vmul.f32 0.04, %v7890_v10  ;;  %v537_v58 = vmul.f32 0.04, %v7772_v23 }
 0x363   :  { %9713 = vst [vmem:[#allocation13_spill] sm:$0xff] %v8131_v6  ;;  %2133 = vrot.lane.b32.xlu0 %v8131_v6, %s6827_s15  ;;  %v817_v25 = vmul.f32 0.5, %v816_v36  ;;  %v1963_v6 = vpack.c.bf16 %v1915_v3, %v1915_v3  ;;  %v8190_v59 = vmul.f32 %v1131_v52, %v993_v62 }
 0x364   :  { %v8197_v36 = vadd.f32 0.001, %v537_v58  ;;  %v967_v58 = vmul.f32 0.5, %v966_v13 }
 0x365   :  { %v8192_v32 = vpop.eup %6715  ;;  %v818_v10 = vsub.f32 1.5, %v817_v25  ;;  %v2060_v23 = vunpack.c.l.b16 %v1963_v6  ;;  %v1226_v6 = vld [vmem:[%s9610_s2 + $0x120] sm:$0xff]  ;;  %v829_v25 = vmul.f32 %v8126_v17, %v828_v22 }
 0x366   :  { %1446 = vperm.xlu1 %6649, %v8146_v54   ;;  %v1085_v37 = vmul.f32 %v8192_v32, %v8141_v49  ;;  %vm1091_vm12 = vweird.f32 %v8192_v32  ;;  %vm810_vm4 = vweird.f32 %v8197_v36 }
 0x367   :  { %v833_v13 = vsel %vm8226_vm6, %v8126_v17, %v829_v25  ;;  %v1640_v25 = vpop.permute.xlu0 %1639  ;;  %vm8329_vm14 = vmor %vm1090_vm13, %vm1091_vm12 }
 0x368   :  { %v1645_v2 = vpop.permute.xlu1 %1644 }
 0x369   :  { %v1866_v14 = vadd.f32 %v1645_v2, %v1578_v63  ;;  %v8194_v63 = vadd.f32 0.001, %v550_v47  ;;  %v8200_v2 = vpop.permute.xlu2 %1624  ;;  %v548_v47 = vmul.f32 0.04, %v7798_v39  ;;  %v563_v39 = vmul.f32 0.04, %v7483_v26 }
 0x36a   :  { %v1114_v26 = vld [vmem:[%s9609_s1 + $0xa0] sm:$0xff] }
 0x36b   :  { %v1914_v54 = vmax.f32 %v1866_v14, 0.0  ;;  %v6760_v14 = vld [vmem:[%s9608_s0 + $0x10] sm:$0xff]  ;;  %6717 = vrsqrt.f32 %v8194_v63  ;;  %vm940_vm2 = vweird.f32 %v8194_v63 }
 0x36c   :  { %6719 = vrsqrt.f32 %v8197_v36 }
 0x36d   :  { %v1962_v24 = vpack.c.bf16 %v1914_v54, %v1914_v54  ;;  %v1274_v54 = vmul.f32 %v8186_v35, %v7481_v4  ;;  %v819_v4 = vmul.f32 %v8120_v31, %v818_v10  ;;  %v8232_v10 = vadd.f32 0.001, %v548_v47 }
 0x36e   :  { %1521 = vperm.xlu1 %6649, %v8190_v59  }
 0x36f   :  { %v2059_v3 = vunpack.c.l.b16 %v1962_v24  ;;  %v1322_v18 = vsub.f32 %v1226_v6, %v1274_v54  ;;  %v1086_v24 = vmul.f32 %v8192_v32, %v1085_v37  ;;  %v823_v51 = vsel %vm8234_vm7, %v8120_v31, %v819_v4  ;;  %v6761_v31 = vld [vmem:[%s9608_s0 + $0x18] sm:$0xff] }
 0x370   :  { %v1347_v8 = vpop.permute.xlu1 %1346  ;;  %v8254_v37 = vadd.f32 0.001, %v563_v39  ;;  %6721 = vrsqrt.f32 %v8232_v10  ;;  %v8261_v17 = vmul.f32 %v1114_v26, %v823_v51  ;;  %v535_v26 = vmul.f32 0.04, %v7951_v28 }
 0x371   :  { %v1576_v62 = vmul.f32 %v6760_v14, %v1347_v8  ;;  %v8209_v52 = vpack.c.b16 %v2060_v23, %v2059_v3  ;;  %v8244_v3 = vpop.eup %6717  ;;  %v1115_v8 = vld [vmem:[%s9609_s1 + $0xa8] sm:$0xff]  ;;  %v562_v14 = vmul.f32 0.04, %v7568_v29  ;;  %v1087_v47 = vmul.f32 0.5, %v1086_v24  ;;  %v1630_v4 = vpop.permute.xlu2 %1629 }
 0x372   :  { %v8252_v54 = vpop.eup %6719  ;;  %v6762_v29 = vld [vmem:[%s9608_s0 + $0x8] sm:$0xff]  ;;  %v8269_v0 = vmul.f32 %v1115_v8, %v833_v13  ;;  %v935_v24 = vmul.f32 %v8244_v3, %v8194_v63  ;;  %6723 = vrsqrt.f32 %v8254_v37  ;;  %v1258_v13 = vmul.f32 %v8261_v17, %v7495_v55 }
 0x373   :  { %9719 = vst [vmem:[#allocation17_spill] sm:$0xff] %v8209_v52  ;;  %2131 = vrot.lane.b32.xlu2 %v8209_v52, %s6827_s15  ;;  %v1864_v41 = vadd.f32 %v8111_v44, %v1576_v62  ;;  %v968_v44 = vsub.f32 1.5, %v967_v58  ;;  %v534_v58 = vmul.f32 0.04, %v7936_v33  ;;  %v805_v23 = vmul.f32 %v8252_v54, %v8197_v36  ;;  %v1126_v36 = vld [vmem:[%s9609_s1 + $0x100] sm:$0xff] }
 0x374   :  { %v8277_v52 = vadd.f32 0.001, %v562_v14  ;;  %v936_v14 = vmul.f32 %v8244_v3, %v935_v24  ;;  %vm941_vm15 = vweird.f32 %v8244_v3  ;;  %vm811_vm1 = vweird.f32 %v8252_v54 }
 0x375   :  { %v1912_v62 = vmax.f32 %v1864_v41, 0.0  ;;  %v969_v41 = vmul.f32 %v8170_v60, %v968_v44  ;;  %v8288_v44 = vadd.f32 0.001, %v534_v58  ;;  %vm8374_vm3 = vmor %vm940_vm2, %vm941_vm15  ;;  %vm920_vm7 = vweird.f32 %v8232_v10 }
 0x376   :  { %1804 = vperm.xlu1 %6649, %v1322_v18   ;;  %v1575_v18 = vmul.f32 %v6762_v29, %v8152_v16  ;;  %v8292_v8 = vpop.eup %6721  ;;  %v6763_v29 = vld [vmem:[%s9608_s0] sm:$0xff]  ;;  %6725 = vrsqrt.f32 %v8277_v52  ;;  %vm812_vm5 = vmor %vm810_vm4, %vm811_vm1  ;;  %vm1070_vm9 = vweird.f32 %v8254_v37  ;;  %vm1060_vm2 = vweird.f32 %v8277_v52 }
 0x377   :  { %v1960_v51 = vpack.c.bf16 %v1912_v62, %v1912_v62  ;;  %v973_v12 = vsel %vm8284_vm11, %v8170_v60, %v969_v41  ;;  %v806_v62 = vmul.f32 %v8252_v54, %v805_v23  ;;  %v1210_v60 = vld [vmem:[%s9610_s2 + $0xa0] sm:$0xff]  ;;  %v915_v41 = vmul.f32 %v8292_v8, %v8232_v10  ;;  %v1209_v10 = vld [vmem:[%s9610_s2 + $0x98] sm:$0xff] }
 0x378   :  { %v1352_v22 = vpop.permute.xlu1 %1351  ;;  %v1863_v33 = vadd.f32 %v1630_v4, %v1575_v18  ;;  %v1129_v4 = vld [vmem:[%s9609_s1 + $0x118] sm:$0xff]  ;;  %6727 = vrsqrt.f32 %v8288_v44  ;;  %vm921_vm6 = vweird.f32 %v8292_v8  ;;  %vm780_vm12 = vweird.f32 %v8288_v44 }
 0x379   :  { %v1577_v6 = vmul.f32 %v6761_v31, %v1352_v22  ;;  %v1088_v31 = vsub.f32 1.5, %v1087_v47  ;;  %v2057_v58 = vunpack.c.l.b16 %v1960_v51  ;;  %v1306_v51 = vsub.f32 %v1210_v60, %v1258_v13  ;;  %vm922_vm8 = vmor %vm920_vm7, %vm921_vm6 }
 0x37a   :  { %v916_v13 = vmul.f32 %v8292_v8, %v915_v41 }
 0x37b   :  { %v1865_v39 = vadd.f32 %v1640_v25, %v1577_v6  ;;  %v8299_v6 = vadd.f32 0.001, %v535_v26  ;;  %v1911_v25 = vmax.f32 %v1863_v33, 0.0  ;;  %v8319_v26 = vmul.f32 %v1129_v4, %v973_v12  ;;  %v1141_v4 = vld [vmem:[%s9609_s1 + $0x178] sm:$0xff] }
 0x37c   :  { %v937_v33 = vmul.f32 0.5, %v936_v14 }
 0x37d   :  { %v1913_v22 = vmax.f32 %v1865_v39, 0.0  ;;  %v1089_v39 = vmul.f32 %v8192_v32, %v1088_v31  ;;  %6729 = vrsqrt.f32 %v8299_v6  ;;  %v807_v31 = vmul.f32 0.5, %v806_v62 }
 0x37e   :  { %1441 = vperm.xlu1 %6649, %v8269_v0   ;;  %v1959_v16 = vpack.c.bf16 %v1911_v25, %v1911_v25  ;;  %v938_v62 = vsub.f32 1.5, %v937_v33  ;;  %v917_v33 = vmul.f32 0.5, %v916_v13 }
 0x37f   :  { %v1961_v28 = vpack.c.bf16 %v1913_v22, %v1913_v22  ;;  %v8322_v22 = vpop.eup %6723  ;;  %v1093_v49 = vsel %vm8329_vm14, %v8192_v32, %v1089_v39 }
 0x380   :  { %v1337_v47 = vpop.permute.xlu1 %1336  ;;  %v8333_v14 = vpop.eup %6725  ;;  %v1065_v32 = vmul.f32 %v8322_v22, %v8254_v37  ;;  %vm1071_vm11 = vweird.f32 %v8322_v22 }
 0x381   :  { %v2058_v55 = vunpack.c.l.b16 %v1961_v28  ;;  %v1574_v18 = vmul.f32 %v6763_v29, %v1337_v47  ;;  %v1273_v47 = vmul.f32 %v8319_v26, %v7508_v50  ;;  %v8344_v25 = vpop.eup %6727  ;;  %v547_v50 = vmul.f32 0.04, %v7497_v5  ;;  %vm8432_vm1 = vmor %vm1070_vm9, %vm1071_vm11 }
 0x382   :  { %v1055_v39 = vmul.f32 %v8333_v14, %v8277_v52  ;;  %vm781_vm13 = vweird.f32 %v8344_v25  ;;  %vm1061_vm14 = vweird.f32 %v8333_v14 }
 0x383   :  { %v1862_v24 = vadd.f32 %v8200_v2, %v1574_v18  ;;  %v8317_v23 = vpack.c.b16 %v2058_v55, %v2057_v58  ;;  %v808_v58 = vsub.f32 1.5, %v807_v31  ;;  %v2056_v55 = vunpack.c.l.b16 %v1959_v16  ;;  %v1225_v18 = vld [vmem:[%s9610_s2 + $0x118] sm:$0xff]  ;;  %v8349_v60 = vpop.eup %6729  ;;  %vm8446_vm4 = vmor %vm1060_vm2, %vm1061_vm14 }
 0x384   :  { %v1321_v31 = vsub.f32 %v1225_v18, %v1273_v47  ;;  %v775_v16 = vmul.f32 %v8344_v25, %v8288_v44  ;;  %v8369_v2 = vadd.f32 0.001, %v547_v50  ;;  %v1056_v13 = vmul.f32 %v8333_v14, %v1055_v39  ;;  %v1139_v44 = vld [vmem:[%s9609_s1 + $0x168] sm:$0xff] }
 0x385   :  { %v1910_v28 = vmax.f32 %v1862_v24, 0.0  ;;  %2129 = vrot.lane.b32.xlu0 %v8317_v23, %s6827_s15  ;;  %v1189_v24 = vmul.f32 %v1141_v4, %v1093_v49  ;;  %v809_v5 = vmul.f32 %v8252_v54, %v808_v58  ;;  %v918_v47 = vsub.f32 1.5, %v917_v33  ;;  %v1237_v49 = vld [vmem:[%s9610_s2 + $0x178] sm:$0xff] }
 0x386   :  { %1724 = vperm.xlu1 %6649, %v1306_v51   ;;  %v939_v51 = vmul.f32 %v8244_v3, %v938_v62  ;;  %v776_v63 = vmul.f32 %v8344_v25, %v775_v16  ;;  %v1113_v4 = vld [vmem:[%s9609_s1 + $0x98] sm:$0xff]  ;;  %6731 = vrsqrt.f32 %v8369_v2  ;;  %v1057_v18 = vmul.f32 0.5, %v1056_v13 }
 0x387   :  { %v1958_v12 = vpack.c.bf16 %v1910_v28, %v1910_v28  ;;  %v785_v28 = vmul.f32 %v8349_v60, %v8299_v6  ;;  %v813_v58 = vsel %vm812_vm5, %v8252_v54, %v809_v5  ;;  %v919_v54 = vmul.f32 %v8292_v8, %v918_v47  ;;  %v1124_v5 = vld [vmem:[%s9609_s1 + $0xf0] sm:$0xff] }
 0x388   :  { %v777_v33 = vmul.f32 0.5, %v776_v63  ;;  %vm791_vm15 = vweird.f32 %v8349_v60  ;;  %vm790_vm5 = vweird.f32 %v8299_v6  ;;  %v1138_v6 = vld [vmem:[%s9609_s1 + $0x160] sm:$0xff]  ;;  %vm910_vm7 = vweird.f32 %v8369_v2 }
 0x389   :  { %v2055_v29 = vunpack.c.l.b16 %v1958_v12  ;;  %v1066_v12 = vmul.f32 %v8322_v22, %v1065_v32  ;;  %v8396_v32 = vmul.f32 %v1113_v4, %v813_v58  ;;  %v923_v16 = vsel %vm922_vm8, %v8292_v8, %v919_v54  ;;  %vm792_vm6 = vmor %vm790_vm5, %vm791_vm15 }
 0x38a   :  { %v778_v13 = vsub.f32 1.5, %v777_v33  ;;  %v1172_v8 = vmul.f32 %v1124_v5, %v923_v16 }
 0x38b   :  { %v8356_v41 = vpack.c.b16 %v2056_v55, %v2055_v29  ;;  %v786_v55 = vmul.f32 %v8349_v60, %v785_v28  ;;  %v1067_v29 = vmul.f32 0.5, %v1066_v12  ;;  %v1257_v28 = vmul.f32 %v8396_v32, %v7596_v27 }
 0x38c   :  { %v8410_v12 = vpop.eup %6731 }
 0x38d   :  { %1566 = vperm.xlu0 %6650, %v7863_v46   ;;  %2127 = vrot.lane.b32.xlu2 %v8356_v41, %s6827_s15  ;;  %v1285_v46 = vmul.f32 %v1189_v24, %v7375_v15  ;;  %v943_v15 = vsel %vm8374_vm3, %v8244_v3, %v939_v51  ;;  %v1068_v3 = vsub.f32 1.5, %v1067_v29  ;;  %v1058_v51 = vsub.f32 1.5, %v1057_v18  ;;  %vm8441_vm3 = vmor %vm780_vm12, %vm781_vm13 }
 0x38e   :  { %1799 = vperm.xlu1 %6649, %v1321_v31   ;;  %v8398_v39 = vmul.f32 %v1126_v36, %v943_v15  ;;  %v787_v31 = vmul.f32 0.5, %v786_v55  ;;  %v905_v27 = vmul.f32 %v8410_v12, %v8369_v2  ;;  %v1305_v47 = vsub.f32 %v1209_v10, %v1257_v28  ;;  %v1123_v2 = vld [vmem:[%s9609_s1 + $0xe8] sm:$0xff] }
 0x38f   :  { %v1333_v50 = vsub.f32 %v1237_v49, %v1285_v46  ;;  %v1069_v62 = vmul.f32 %v8322_v22, %v1068_v3  ;;  %v1059_v46 = vmul.f32 %v8333_v14, %v1058_v51  ;;  %v779_v49 = vmul.f32 %v8344_v25, %v778_v13 }
 0x390   :  { %v906_v29 = vmul.f32 %v8410_v12, %v905_v27  ;;  %v558_v51 = vmul.f32 0.04, %v7814_v30  ;;  %v1268_v27 = vmul.f32 %v1172_v8, %v7414_v38  ;;  %v1207_v38 = vld [vmem:[%s9610_s2 + $0x88] sm:$0xff]  ;;  %vm911_vm8 = vweird.f32 %v8410_v12 }
 0x391   :  { %v1073_v52 = vsel %vm8432_vm1, %v8322_v22, %v1069_v62  ;;  %v1063_v18 = vsel %vm8446_vm4, %v8333_v14, %v1059_v46  ;;  %v1111_v22 = vld [vmem:[%s9609_s1 + $0x88] sm:$0xff]  ;;  %v1110_v14 = vld [vmem:[%s9609_s1 + $0x80] sm:$0xff]  ;;  %vm912_vm9 = vmor %vm910_vm7, %vm911_vm8 }
 0x392   :  { %v1187_v3 = vmul.f32 %v1139_v44, %v1073_v52  ;;  %v1186_v28 = vmul.f32 %v1138_v6, %v1063_v18  ;;  %v907_v13 = vmul.f32 0.5, %v906_v29  ;;  %v542_v52 = vmul.f32 0.04, %v7660_v21 }
 0x394   :  { %v1282_v30 = vmul.f32 %v1186_v28, %v7389_v56  ;;  %v590_v6 = vadd.f32 0.001, %v542_v52 }
 0x395   :  { %1859 = vperm.xlu0 %6650, %v1333_v50   ;;  %1571 = vperm.xlu2 %6648, %v1189_v24   ;;  %v788_v24 = vsub.f32 1.5, %v787_v31  ;;  %v783_v31 = vsel %vm8441_vm3, %v8344_v25, %v779_v49  ;;  %v606_v25 = vadd.f32 0.001, %v558_v51  ;;  %v1234_v49 = vld [vmem:[%s9610_s2 + $0x160] sm:$0xff]  ;;  %v1233_v51 = vld [vmem:[%s9610_s2 + $0x158] sm:$0xff] }
 0x396   :  { %1496 = vperm.xlu1 %6649, %v8398_v39   ;;  %v1330_v56 = vsub.f32 %v1234_v49, %v1282_v30  ;;  %vm860_vm15 = vweird.f32 %v590_v6 }
 0x397   :  { %v789_v63 = vmul.f32 %v8349_v60, %v788_v24  ;;  %v8481_v24 = vmul.f32 %v1110_v14, %v783_v31  ;;  %6733 = vrsqrt.f32 %v606_v25  ;;  %v9737_v14 = vld [vmem:[#allocation15_spill] sm:$0xff]  ;;  %vm1020_vm12 = vweird.f32 %v606_v25 }
 0x398   :  { %6735 = vrsqrt.f32 %v590_v6 }
 0x399   :  { %v793_v50 = vsel %vm792_vm6, %v8349_v60, %v789_v63  ;;  %v1220_v63 = vld [vmem:[%s9610_s2 + $0xf0] sm:$0xff] }
 0x39a   :  { %v8479_v60 = vmul.f32 %v1111_v22, %v793_v50  ;;  %v1218_v50 = vld [vmem:[%s9610_s2 + $0xe0] sm:$0xff] }
 0x39d   :  { %1491 = vperm.xlu0 %6650, %v7880_v43   ;;  %1486 = vperm.xlu2 %6648, %v1172_v8   ;;  %v2136_v4 = vpop.permute.xlu2 %2135  ;;  %v1316_v8 = vsub.f32 %v1220_v63, %v1268_v27  ;;  %v541_v27 = vmul.f32 0.04, %v7526_v19  ;;  %v1265_v63 = vmul.f32 %v8002_v53, %v7440_v42  ;;  %v1217_v19 = vld [vmem:[%s9610_s2 + $0xd8] sm:$0xff] }
 0x39e   :  { %v2190_v43 = vsel %vm2175_vm10, 0, %v2136_v4  ;;  %1719 = vperm.xlu1 %6649, %v1305_v47   ;;  %v908_v47 = vsub.f32 1.5, %v907_v13  ;;  %v1255_v4 = vmul.f32 %v8479_v60, %v7786_v7  ;;  %v9736_v7 = vld [vmem:[#allocation14_spill] sm:$0xff] }
 0x39f   :  { %v2261_v37 = vunpack.c.l.bf16 %v2190_v43  ;;  %v2262_v36 = vunpack.c.h.bf16 %v2190_v43  ;;  %v1283_v43 = vmul.f32 %v1187_v3, %v9736_v7  ;;  %v8536_v49 = vadd.f32 0.001, %v541_v27 }
 0x3a0   :  { %v1303_v58 = vsub.f32 %v1207_v38, %v1255_v4  ;;  %v909_v55 = vmul.f32 %v8410_v12, %v908_v47 }
 0x3a1   :  { %v2310_v54 = vmul.f32 %v7763_v9, %v2261_v37  ;;  %v2311_v33 = vmul.f32 %v7763_v9, %v2262_v36  ;;  %v1235_v37 = vld [vmem:[%s9610_s2 + $0x168] sm:$0xff]  ;;  %v6734_v36 = vpop.eup %6733  ;;  %vm850_vm6 = vweird.f32 %v8536_v49 }
 0x3a2   :  { %v913_v15 = vsel %vm912_vm9, %v8410_v12, %v909_v55  ;;  %v1331_v29 = vsub.f32 %v1235_v37, %v1283_v43  ;;  %v1015_v18 = vmul.f32 %v6734_v36, %v606_v25  ;;  %v1266_v12 = vmul.f32 %v7917_v1, %v7404_v11 }
 0x3a3   :  { %v2358_v16 = vpack.c.bf16 %v2310_v54, %v2310_v54  ;;  %v2359_v5 = vpack.c.bf16 %v2311_v33, %v2311_v33  ;;  %v1171_v44 = vmul.f32 %v1123_v2, %v913_v15  ;;  %v557_v54 = vmul.f32 0.04, %v7694_v34  ;;  %v1219_v34 = vld [vmem:[%s9610_s2 + $0xe8] sm:$0xff] }
 0x3a4   :  { %v1016_v22 = vmul.f32 %v6734_v36, %v1015_v18  ;;  %v1314_v33 = vsub.f32 %v1218_v50, %v1266_v12  ;;  %v1281_v11 = vmul.f32 %v7942_v45, %v7429_v61  ;;  %vm1021_vm11 = vweird.f32 %v6734_v36  ;;  %v1230_v18 = vld [vmem:[%s9610_s2 + $0x140] sm:$0xff] }
 0x3a5   :  { %v2724_v10 = vunpack.c.l.b16 %v2358_v16  ;;  %v2725_v62 = vunpack.c.l.b16 %v2359_v5  ;;  %1561 = vperm.xlu0 %6650, %v1187_v3   ;;  %1556 = vperm.xlu2 %6648, %v1186_v28   ;;  %v8516_v21 = vadd.f32 0.001, %v557_v54  ;;  %v1267_v3 = vmul.f32 %v1171_v44, %v9737_v14  ;;  %v6736_v16 = vpop.eup %6735  ;;  %vm1022_vm13 = vmor %vm1020_vm12, %vm1021_vm11 }
 0x3a6   :  { %1416 = vperm.xlu1 %6649, %v8481_v24   ;;  %v1017_v31 = vmul.f32 0.5, %v1016_v22  ;;  %v855_v13 = vmul.f32 %v6736_v16, %v590_v6  ;;  %vm861_vm14 = vweird.f32 %v6736_v16 }
 0x3a7   :  { %v2768_v46 = vpack.c.b16 %v2725_v62, %v2724_v10  ;;  %6737 = vrsqrt.f32 %v8516_v21  ;;  %v1315_v5 = vsub.f32 %v1219_v34, %v1267_v3  ;;  %v1134_v10 = vld [vmem:[%s9609_s1 + $0x140] sm:$0xff]  ;;  %vm862_vm1 = vmor %vm860_vm15, %vm861_vm14  ;;  %vm1010_vm3 = vweird.f32 %v8516_v21 }
 0x3a8   :  { %v1018_v1 = vsub.f32 1.5, %v1017_v31  ;;  %v856_v61 = vmul.f32 %v6736_v16, %v855_v13  ;;  %6739 = vrsqrt.f32 %v8536_v49  ;;  %v1133_v13 = vld [vmem:[%s9609_s1 + $0x138] sm:$0xff] }
 0x3a9   :  { %4327 = vmatpush.bf16.msra.mxu0 %v2768_v46  ;;  %6627 = vmatpush.bf16.msra.mxu1 %v2768_v46 }
 0x3aa   :  { %6628 = vmatpush.bf16.msra.mxu2 %v2768_v46  ;;  %6629 = vmatpush.bf16.msra.mxu3 %v2768_v46  ;;  %v1019_v28 = vmul.f32 %v6734_v36, %v1018_v1  ;;  %v857_v30 = vmul.f32 0.5, %v856_v61  ;;  %v9738_v61 = vld [vmem:[#allocation6_spill] sm:$0xff] }
 0x3ac   :  { %v1023_v45 = vsel %vm1022_vm13, %v6734_v36, %v1019_v28  ;;  %v858_v4 = vsub.f32 1.5, %v857_v30 }
 0x3ad   :  { %1844 = vperm.xlu0 %6650, %v1330_v56   ;;  %1774 = vperm.xlu2 %6648, %v1316_v8   ;;  %v8531_v62 = vpop.eup %6737  ;;  %v1182_v46 = vmul.f32 %v1134_v10, %v1023_v45  ;;  %v1313_v8 = vsub.f32 %v1217_v19, %v1265_v63 }
 0x3ae   :  { %1709 = vperm.xlu1 %6649, %v1303_v58   ;;  %v1005_v47 = vmul.f32 %v8531_v62, %v8516_v21  ;;  %v859_v58 = vmul.f32 %v6736_v16, %v858_v4  ;;  %v8549_v53 = vpop.eup %6739  ;;  %vm1011_vm2 = vweird.f32 %v8531_v62  ;;  %v552_v21 = vmul.f32 0.04, %v9738_v61  ;;  %v9742_v4 = vld [vmem:[#allocation20_spill] sm:$0xff] }
 0x3af   :  { %v1278_v37 = vmul.f32 %v1182_v46, %v7443_v20  ;;  %v845_v20 = vmul.f32 %v8549_v53, %v8536_v49  ;;  %vm1012_vm4 = vmor %vm1010_vm3, %vm1011_vm2  ;;  %vm851_vm5 = vweird.f32 %v8549_v53  ;;  %v9744_v49 = vld [vmem:[#allocation5_spill] sm:$0xff]  ;;  %vm2446_vm3 = vcmask 195584  }
 0x3b0   :  { %v1006_v38 = vmul.f32 %v8531_v62, %v1005_v47  ;;  %v8576_v30 = vadd.f32 0.001, %v552_v21  ;;  %v9740_v47 = vld [vmem:[#allocation18_spill] sm:$0xff]  ;;  %vm852_vm7 = vmor %vm850_vm6, %vm851_vm5 }
 0x3b2   :  { %v1007_v55 = vmul.f32 0.5, %v1006_v38  ;;  %6741 = vrsqrt.f32 %v8576_v30  ;;  %vm960_vm9 = vweird.f32 %v8576_v30 }
 0x3b4   :  { %v1008_v36 = vsub.f32 1.5, %v1007_v55 }
 0x3b5   :  { %1481 = vperm.xlu0 %6650, %v1171_v44   ;;  %1849 = vperm.xlu2 %6648, %v1331_v29   ;;  %v863_v29 = vsel %vm862_vm1, %v6736_v16, %v859_v58  ;;  %v846_v16 = vmul.f32 %v8549_v53, %v845_v20  ;;  %v1214_v58 = vld [vmem:[%s9610_s2 + $0xc0] sm:$0xff] }
 0x3b6   :  { %v1009_v31 = vmul.f32 %v8531_v62, %v1008_v36  ;;  %v1229_v36 = vld [vmem:[%s9610_s2 + $0x138] sm:$0xff] }
 0x3b7   :  { %v847_v10 = vmul.f32 0.5, %v846_v16 }
 0x3b8   :  { %v1013_v28 = vsel %vm1012_vm4, %v8531_v62, %v1009_v31  ;;  %v9746_v31 = vld [vmem:[#allocation16_spill] sm:$0xff] }
 0x3b9   :  { %v1181_v45 = vmul.f32 %v1133_v13, %v1013_v28  ;;  %v848_v19 = vsub.f32 1.5, %v847_v10  ;;  %v9747_v28 = vld [vmem:[#allocation7_spill] sm:$0xff] }
 0x3ba   :  { %v551_v13 = vmul.f32 0.04, %v9747_v28 }
 0x3bd   :  { %1764 = vperm.xlu0 %6650, %v1314_v33   ;;  %1546 = vperm.xlu2 %6648, %v7939_v57   ;;  %v1329_v57 = vsub.f32 %v1233_v51, %v1281_v11  ;;  %v1326_v33 = vsub.f32 %v1230_v18, %v1278_v37  ;;  %v8567_v51 = vpop.permute.xlu1 %1854  ;;  %v1117_v37 = vld [vmem:[%s9609_s1 + $0xb8] sm:$0xff] }
 0x3c5   :  { %1839 = vperm.xlu0 %6650, %v1329_v57   ;;  %1769 = vperm.xlu2 %6648, %v1315_v5  }
 0x3cd   :  { %1536 = vperm.xlu0 %6650, %v1182_v46   ;;  %1466 = vperm.xlu2 %6648, %v8000_v40   ;;  %v2132_v25 = vpop.permute.xlu2 %2131  ;;  %v9739_v46 = vld [vmem:[#allocation9_spill] sm:$0xff] }
 0x3ce   :  { %v2184_v56 = vsel %vm2175_vm10, 0, %v2132_v25  ;;  %v9741_v25 = vld [vmem:[#allocation12_spill] sm:$0xff] }
 0x3cf   :  { %v2257_v40 = vunpack.c.l.bf16 %v2184_v56  ;;  %v2258_v7 = vunpack.c.h.bf16 %v2184_v56  ;;  %v1276_v63 = vmul.f32 %v9741_v25, %v9740_v47  ;;  %v8581_v56 = vpop.permute.xlu1 %1779 }
 0x3d1   :  { %v2306_v52 = vmul.f32 %v7763_v9, %v2257_v40  ;;  %v2307_v44 = vmul.f32 %v7763_v9, %v2258_v7  ;;  %v849_v7 = vmul.f32 %v8549_v53, %v848_v19 }
 0x3d3   :  { %v2354_v14 = vpack.c.bf16 %v2306_v52, %v2306_v52  ;;  %v2355_v3 = vpack.c.bf16 %v2307_v44, %v2307_v44  ;;  %v8603_v52 = vpop.eup %6741 }
 0x3d4   :  { %vm961_vm8 = vweird.f32 %v8603_v52 }
 0x3d5   :  { %v2134_v43 = vpop.permute.xlu0 %2133  ;;  %1759 = vperm.xlu0 %6650, %v1313_v8   ;;  %1541 = vperm.xlu2 %6648, %v8035_v48   ;;  %v1118_v48 = vld [vmem:[%s9609_s1 + $0xc0] sm:$0xff]  ;;  %v2720_v57 = vunpack.c.l.b16 %v2354_v14  ;;  %v2721_v5 = vunpack.c.l.b16 %v2355_v3  ;;  %v1228_v8 = vld [vmem:[%s9610_s2 + $0x130] sm:$0xff]  ;;  %vm962_vm11 = vmor %vm960_vm9, %vm961_vm8 }
 0x3d6   :  { %v2187_v42 = vsel %vm2175_vm10, 0, %v2134_v43  ;;  %v1166_v54 = vmul.f32 %v1118_v48, %v863_v29  ;;  %v1324_v55 = vsub.f32 %v1228_v8, %v1276_v63  ;;  %v536_v29 = vmul.f32 0.04, %v9744_v49  ;;  %v9748_v63 = vld [vmem:[#allocation19_spill] sm:$0xff] }
 0x3d7   :  { %v2259_v15 = vunpack.c.l.bf16 %v2187_v42  ;;  %v2260_v2 = vunpack.c.h.bf16 %v2187_v42  ;;  %v2766_v27 = vpack.c.b16 %v2721_v5, %v2720_v57  ;;  %v9743_v42 = vld [vmem:[#allocation21_spill] sm:$0xff]  ;;  %v8607_v48 = vpop.permute.xlu1 %1476 }
 0x3d8   :  { %v1262_v38 = vmul.f32 %v1166_v54, %v9742_v4 }
 0x3d9   :  { %v2308_v6 = vmul.f32 %v7763_v9, %v2259_v15  ;;  %v2309_v12 = vmul.f32 %v7763_v9, %v2260_v2  ;;  %v1277_v15 = vmul.f32 %v1181_v45, %v9743_v42  ;;  %v853_v2 = vsel %vm852_vm7, %v8549_v53, %v849_v7 }
 0x3da   :  { %v1310_v40 = vsub.f32 %v1214_v58, %v1262_v38  ;;  %v1165_v18 = vmul.f32 %v1117_v37, %v853_v2  ;;  %v955_v53 = vmul.f32 %v8603_v52, %v8576_v30  ;;  %v8632_v38 = vadd.f32 0.001, %v551_v13  ;;  %v1213_v2 = vld [vmem:[%s9610_s2 + $0xb8] sm:$0xff]  ;;  %v9750_v30 = vld [vmem:[#allocation29_spill] sm:$0xff] }
 0x3db   :  { %v2356_v22 = vpack.c.bf16 %v2308_v6, %v2308_v6  ;;  %v2357_v50 = vpack.c.bf16 %v2309_v12, %v2309_v12  ;;  %v1325_v6 = vsub.f32 %v1229_v36, %v1277_v15 }
 0x3dc   :  { %v956_v3 = vmul.f32 %v8603_v52, %v955_v53  ;;  %v1261_v4 = vmul.f32 %v1165_v18, %v9748_v63  ;;  %vm950_vm15 = vweird.f32 %v8632_v38 }
 0x3dd   :  { %v2722_v11 = vunpack.c.l.b16 %v2356_v22  ;;  %v2723_v1 = vunpack.c.l.b16 %v2357_v50  ;;  %1456 = vperm.xlu0 %6650, %v1166_v54   ;;  %1824 = vperm.xlu2 %6648, %v1326_v33   ;;  %v8611_v22 = vadd.f32 0.001, %v536_v29  ;;  %v9745_v33 = vld [vmem:[#allocation22_spill] sm:$0xff] }
 0x3de   :  { %v1260_v14 = vmul.f32 %v9746_v31, %v9745_v33  ;;  %v957_v10 = vmul.f32 0.5, %v956_v3  ;;  %v1309_v29 = vsub.f32 %v1213_v2, %v1261_v4  ;;  %v1128_v31 = vld [vmem:[%s9609_s1 + $0x110] sm:$0xff]  ;;  %v9757_v2 = vld [vmem:[#allocation25_spill] sm:$0xff]  ;;  %v6768_v4 = vld [vmem:[%s9608_s0 + $0xe8] sm:$0xff] }
 0x3df   :  { %v2767_v34 = vpack.c.b16 %v2723_v1, %v2722_v11  ;;  %6743 = vrsqrt.f32 %v8611_v22  ;;  %v6764_v3 = vld [vmem:[%s9608_s0 + $0xf0] sm:$0xff]  ;;  %vm800_vm12 = vweird.f32 %v8611_v22 }
 0x3e0   :  { %v958_v15 = vsub.f32 1.5, %v957_v10  ;;  %6745 = vrsqrt.f32 %v8632_v38 }
 0x3e1   :  { %4328 = vmatpush.bf16.msra.mxu0 %v2767_v34  ;;  %6630 = vmatpush.bf16.msra.mxu1 %v2767_v34 }
 0x3e2   :  { %6631 = vmatpush.bf16.msra.mxu2 %v2767_v34  ;;  %6632 = vmatpush.bf16.msra.mxu3 %v2767_v34  ;;  %v1212_v34 = vld [vmem:[%s9610_s2 + $0xb0] sm:$0xff] }
 0x3e5   :  { %1531 = vperm.xlu0 %6650, %v1181_v45   ;;  %1461 = vperm.xlu2 %6648, %v9739_v46   ;;  %v1308_v45 = vsub.f32 %v1212_v34, %v1260_v14  ;;  %v8640_v42 = vpop.eup %6743 }
 0x3e6   :  { %4329 = vmatpush.bf16.msra.mxu0 %v2766_v27  ;;  %6633 = vmatpush.bf16.msra.mxu1 %v2766_v27  ;;  %v795_v49 = vmul.f32 %v8640_v42, %v8611_v22  ;;  %v8663_v14 = vpop.eup %6745  ;;  %vm801_vm13 = vweird.f32 %v8640_v42 }
 0x3e7   :  { %6634 = vmatpush.bf16.msra.mxu2 %v2766_v27  ;;  %6635 = vmatpush.bf16.msra.mxu3 %v2766_v27  ;;  %v2128_v62 = vpop.permute.xlu2 %2127  ;;  %v8628_v27 = vpop.permute.xlu1 %1551  ;;  %vm8690_vm14 = vmor %vm800_vm12, %vm801_vm13  ;;  %vm951_vm1 = vweird.f32 %v8663_v14 }
 0x3e8   :  { %v2178_v44 = vsel %vm2175_vm10, 0, %v2128_v62  ;;  %vm952_vm2 = vmor %vm950_vm15, %vm951_vm1 }
 0x3e9   :  { %v2253_v12 = vunpack.c.l.bf16 %v2178_v44  ;;  %v2254_v20 = vunpack.c.h.bf16 %v2178_v44 }
 0x3eb   :  { %v2302_v11 = vmul.f32 %v7763_v9, %v2253_v12  ;;  %v2303_v16 = vmul.f32 %v7763_v9, %v2254_v20  ;;  %v796_v12 = vmul.f32 %v8640_v42, %v795_v49 }
 0x3ed   :  { %1814 = vperm.xlu0 %6650, %v1324_v55   ;;  %1744 = vperm.xlu2 %6648, %v1310_v40   ;;  %v2350_v46 = vpack.c.bf16 %v2302_v11, %v2302_v11  ;;  %v2351_v62 = vpack.c.bf16 %v2303_v16, %v2303_v16  ;;  %v9749_v40 = vld [vmem:[#allocation23_spill] sm:$0xff]  ;;  %v945_v16 = vmul.f32 %v8663_v14, %v8632_v38  ;;  %v6767_v38 = vld [vmem:[%s9608_s0 + $0x160] sm:$0xff] }
 0x3ee   :  { %v1275_v7 = vmul.f32 %v8190_v59, %v9749_v40 }
 0x3ef   :  { %v8593_v43 = vpop.permute.xlu2 %1571  ;;  %v2716_v37 = vunpack.c.l.b16 %v2350_v46  ;;  %v2717_v36 = vunpack.c.l.b16 %v2351_v62  ;;  %v8654_v53 = vpop.permute.xlu1 %1834  ;;  %v6765_v46 = vld [vmem:[%s9608_s0 + $0xf8] sm:$0xff] }
 0x3f5   :  { %1451 = vperm.xlu0 %6650, %v1165_v18   ;;  %1819 = vperm.xlu2 %6648, %v1325_v6   ;;  %v959_v18 = vmul.f32 %v8603_v52, %v958_v15  ;;  %v2764_v6 = vpack.c.b16 %v2717_v36, %v2716_v37 }
 0x3f7   :  { %v2130_v50 = vpop.permute.xlu0 %2129  ;;  %v8613_v54 = vpop.permute.xlu2 %1486  ;;  %v963_v33 = vsel %vm962_vm11, %v8603_v52, %v959_v18  ;;  %v9758_v18 = vld [vmem:[#allocation13_spill] sm:$0xff] }
 0x3f8   :  { %v2181_v1 = vsel %vm2175_vm10, 0, %v2130_v50  ;;  %v1604_v11 = vmul.f32 %v6764_v3, %v8613_v54  ;;  %v1176_v34 = vmul.f32 %v1128_v31, %v963_v33  ;;  %v8677_v54 = vpop.permute.xlu1 %1471 }
 0x3f9   :  { %v2255_v57 = vunpack.c.l.bf16 %v2181_v1  ;;  %v2256_v5 = vunpack.c.h.bf16 %v2181_v1  ;;  %v797_v1 = vmul.f32 0.5, %v796_v12 }
 0x3fa   :  { %v1272_v37 = vmul.f32 %v1176_v34, %v9757_v2  ;;  %v1208_v2 = vld [vmem:[%s9610_s2 + $0x90] sm:$0xff] }
 0x3fb   :  { %v2304_v61 = vmul.f32 %v7763_v9, %v2255_v57  ;;  %v2305_v21 = vmul.f32 %v7763_v9, %v2256_v5  ;;  %v9751_v57 = vld [vmem:[#allocation10_spill] sm:$0xff]  ;;  %v798_v5 = vsub.f32 1.5, %v797_v1 }
 0x3fd   :  { %v2352_v47 = vpack.c.bf16 %v2304_v61, %v2304_v61  ;;  %v2353_v25 = vpack.c.bf16 %v2305_v21, %v2305_v21  ;;  %1734 = vperm.xlu0 %6650, %v1308_v45   ;;  %1516 = vperm.xlu2 %6648, %v8186_v35   ;;  %v1227_v35 = vld [vmem:[%s9610_s2 + $0x128] sm:$0xff]  ;;  %v9752_v61 = vld [vmem:[#allocation24_spill] sm:$0xff]  ;;  %v946_v45 = vmul.f32 %v8663_v14, %v945_v16 }
 0x3fe   :  { %v1323_v59 = vsub.f32 %v1227_v35, %v1275_v7  ;;  %v1259_v21 = vmul.f32 %v8269_v0, %v9752_v61  ;;  %v9756_v7 = vld [vmem:[#allocation8_spill] sm:$0xff] }
 0x3ff   :  { %v2718_v19 = vunpack.c.l.b16 %v2352_v47  ;;  %v2719_v8 = vunpack.c.l.b16 %v2353_v25  ;;  %v8634_v58 = vpop.permute.xlu0 %1566  ;;  %v8636_v55 = vpop.permute.xlu2 %1556  ;;  %v9753_v47 = vld [vmem:[#allocation11_spill] sm:$0xff]  ;;  %v799_v25 = vmul.f32 %v8640_v42, %v798_v5 }
 0x400   :  { %v1618_v1 = vmul.f32 %v6767_v38, %v8636_v55 }
 0x401   :  { %v2765_v44 = vpack.c.b16 %v2719_v8, %v2718_v19  ;;  %v947_v19 = vmul.f32 0.5, %v946_v45 }
 0x403   :  { %4330 = vmatpush.bf16.msra.mxu0 %v2765_v44  ;;  %6636 = vmatpush.bf16.msra.mxu1 %v2765_v44  ;;  %v948_v36 = vsub.f32 1.5, %v947_v19 }
 0x404   :  { %6637 = vmatpush.bf16.msra.mxu2 %v2765_v44  ;;  %6638 = vmatpush.bf16.msra.mxu3 %v2765_v44 }
 0x405   :  { %1809 = vperm.xlu0 %6650, %v1323_v59   ;;  %1739 = vperm.xlu2 %6648, %v1309_v29   ;;  %v6766_v59 = vld [vmem:[%s9608_s0 + $0x168] sm:$0xff]  ;;  %v949_v31 = vmul.f32 %v8663_v14, %v948_v36 }
 0x407   :  { %v8657_v20 = vpop.permute.xlu0 %1859  ;;  %4331 = vmatpush.bf16.msra.mxu0 %v2764_v6  ;;  %6639 = vmatpush.bf16.msra.mxu1 %v2764_v6  ;;  %v1775_v50 = vpop.permute.xlu2 %1774 }
 0x408   :  { %6640 = vmatpush.bf16.msra.mxu2 %v2764_v6  ;;  %6641 = vmatpush.bf16.msra.mxu3 %v2764_v6  ;;  %v1892_v52 = vadd.f32 %v1775_v50, %v1604_v11  ;;  %v8714_v6 = vpop.permute.xlu1 %1754  ;;  %v9759_v11 = vld [vmem:[#allocation17_spill] sm:$0xff] }
 0x40a   :  { %v1940_v10 = vmax.f32 %v1892_v52, 0.0 }
 0x40c   :  { %4711 = vmatpush.bf16.msrb.mxu3 %v9750_v30  ;;  %v1988_v8 = vpack.c.bf16 %v1940_v10, %v1940_v10 }
 0x40d   :  { %1506 = vperm.xlu0 %6650, %v1176_v34   ;;  %1436 = vperm.xlu2 %6648, %v8261_v17   ;;  %v1211_v17 = vld [vmem:[%s9610_s2 + $0xa8] sm:$0xff] }
 0x40e   :  { %v1307_v63 = vsub.f32 %v1211_v17, %v1259_v21  ;;  %v2085_v44 = vunpack.c.l.b16 %v1988_v8  ;;  %v1222_v8 = vld [vmem:[%s9610_s2 + $0x100] sm:$0xff] }
 0x40f   :  { %v1492_v28 = vpop.permute.xlu0 %1491  ;;  %v1850_v13 = vpop.permute.xlu2 %1849 }
 0x410   :  { %4712 = vmatpush.bf16.msrb.mxu3 %v9751_v57  ;;  %v1605_v62 = vmul.f32 %v6765_v46, %v1492_v28  ;;  %v953_v28 = vsel %vm952_vm2, %v8663_v14, %v949_v31  ;;  %v8730_v10 = vpop.permute.xlu1 %1829 }
 0x412   :  { %v1893_v0 = vadd.f32 %v8581_v56, %v1605_v62  ;;  %v803_v56 = vsel %vm8690_vm14, %v8640_v42, %v799_v25  ;;  %v1224_v42 = vld [vmem:[%s9610_s2 + $0x110] sm:$0xff] }
 0x413   :  { %v1320_v3 = vsub.f32 %v1224_v42, %v1272_v37 }
 0x414   :  { %4713 = vmatpush.bf16.msrb.mxu3 %v9753_v47  ;;  %v1941_v40 = vmax.f32 %v1893_v0, 0.0  ;;  %v9760_v0 = vld [vmem:[#allocation27_spill] sm:$0xff] }
 0x415   :  { %1729 = vperm.xlu0 %6650, %v1307_v63   ;;  %1511 = vperm.xlu2 %6648, %v8319_v26   ;;  %v1112_v26 = vld [vmem:[%s9609_s1 + $0x90] sm:$0xff]  ;;  %v1270_v25 = vmul.f32 %v8398_v39, %v9760_v0  ;;  %v9763_v0 = vld [vmem:[#allocation30_spill] sm:$0xff] }
 0x416   :  { %v1989_v22 = vpack.c.bf16 %v1941_v40, %v1941_v40  ;;  %v1160_v33 = vmul.f32 %v1112_v26, %v803_v56  ;;  %v9761_v40 = vld [vmem:[#allocation26_spill] sm:$0xff]  ;;  %v6770_v39 = vld [vmem:[%s9608_s0 + $0x170] sm:$0xff] }
 0x417   :  { %v1562_v15 = vpop.permute.xlu0 %1561  ;;  %v8696_v35 = vpop.permute.xlu2 %1546  ;;  %v1620_v56 = vmul.f32 %v6770_v39, %v8634_v58 }
 0x418   :  { %4714 = vmatpush.bf16.msrb.mxu3 %v9756_v7  ;;  %v2086_v49 = vunpack.c.l.b16 %v1989_v22  ;;  %v1619_v29 = vmul.f32 %v6766_v59, %v1562_v15  ;;  %v1256_v22 = vmul.f32 %v1160_v33, %v9761_v40  ;;  %v6771_v59 = vld [vmem:[%s9608_s0 + $0xe0] sm:$0xff]  ;;  %v6774_v40 = vld [vmem:[%s9608_s0 + $0x150] sm:$0xff] }
 0x419   :  { %v1602_v58 = vmul.f32 %v6771_v59, %v8607_v48 }
 0x41a   :  { %v1907_v12 = vadd.f32 %v1850_v13, %v1619_v29  ;;  %v8716_v50 = vpack.c.b16 %v2086_v49, %v2085_v44  ;;  %v1127_v13 = vld [vmem:[%s9609_s1 + $0x108] sm:$0xff]  ;;  %v1318_v44 = vsub.f32 %v1222_v8, %v1270_v25  ;;  %v1304_v49 = vsub.f32 %v1208_v2, %v1256_v22  ;;  %v8766_v29 = vpop.permute.xlu1 %1526 }
 0x41b   :  { %v1175_v45 = vmul.f32 %v1127_v13, %v953_v28  ;;  %v1254_v25 = vmul.f32 %v8481_v24, %v9763_v0  ;;  %v1616_v22 = vmul.f32 %v6774_v40, %v8696_v35 }
 0x41c   :  { %4715 = vmatpush.bf16.msrb.mxu3 %v9758_v18  ;;  %4840 = vmatpush.bf16.msrb.mxu0 %v8716_v50  ;;  %v1955_v34 = vmax.f32 %v1907_v12, 0.0 }
 0x41d   :  { %1426 = vperm.xlu0 %6650, %v1160_v33   ;;  %1794 = vperm.xlu2 %6648, %v1320_v3  }
 0x41e   :  { %v2003_v61 = vpack.c.bf16 %v1955_v34, %v1955_v34 }
 0x41f   :  { %v1845_v16 = vpop.permute.xlu0 %1844  ;;  %v1770_v52 = vpop.permute.xlu2 %1769 }
 0x420   :  { %4716 = vmatpush.bf16.msrb.mxu3 %v9759_v11  ;;  %v1906_v5 = vadd.f32 %v1845_v16, %v1618_v1  ;;  %v2100_v55 = vunpack.c.l.b16 %v2003_v61 }
 0x422   :  { %v1954_v21 = vmax.f32 %v1906_v5, 0.0 }
 0x424   :  { %4717 = vmatpush.bf16.msrb.mxu3 %v8317_v23  ;;  %v2002_v46 = vpack.c.bf16 %v1954_v21, %v1954_v21  ;;  %v6772_v21 = vld [vmem:[%s9608_s0 + $0x148] sm:$0xff] }
 0x425   :  { %1501 = vperm.xlu0 %6650, %v1175_v45   ;;  %1431 = vperm.xlu2 %6648, %v8396_v32   ;;  %v6769_v32 = vld [vmem:[%s9608_s0 + $0x178] sm:$0xff] }
 0x426   :  { %v2099_v62 = vunpack.c.l.b16 %v2002_v46  ;;  %v1621_v15 = vmul.f32 %v6769_v32, %v8593_v43  ;;  %v1908_v43 = vadd.f32 %v8567_v51, %v1620_v56  ;;  %v1223_v51 = vld [vmem:[%s9610_s2 + $0x108] sm:$0xff]  ;;  %v1904_v56 = vadd.f32 %v8654_v53, %v1616_v22 }
 0x427   :  { %v1482_v14 = vpop.permute.xlu0 %1481  ;;  %v8734_v17 = vpop.permute.xlu2 %1466 }
 0x428   :  { %4718 = vmatpush.bf16.msrb.mxu3 %v8356_v41  ;;  %v8738_v63 = vpack.c.b16 %v2100_v55, %v2099_v62  ;;  %v1603_v19 = vmul.f32 %v6768_v4, %v1482_v14  ;;  %v1909_v36 = vadd.f32 %v8657_v20, %v1621_v15  ;;  %v9762_v20 = vld [vmem:[#allocation28_spill] sm:$0xff]  ;;  %v1956_v38 = vmax.f32 %v1908_v43, 0.0  ;;  %v1750_v62 = vpop.permute.xlu1 %1749 }
 0x429   :  { %v1271_v3 = vmul.f32 %v1175_v45, %v9762_v20  ;;  %v1952_v59 = vmax.f32 %v1904_v56, 0.0 }
 0x42a   :  { %v1891_v37 = vadd.f32 %v1770_v52, %v1603_v19  ;;  %2171 = vrot.lane.b32.xlu1 %v8738_v63, %s6827_s15  ;;  %v1957_v42 = vmax.f32 %v1909_v36, 0.0  ;;  %v2004_v5 = vpack.c.bf16 %v1956_v38, %v1956_v38  ;;  %v6773_v19 = vld [vmem:[%s9608_s0 + $0x158] sm:$0xff] }
 0x42b   :  { %v1319_v48 = vsub.f32 %v1223_v51, %v1271_v3  ;;  %v1617_v8 = vmul.f32 %v6773_v19, %v8628_v27  ;;  %v6775_v27 = vld [vmem:[%s9608_s0 + $0xd0] sm:$0xff] }
 0x42c   :  { %v1939_v26 = vmax.f32 %v1891_v37, 0.0  ;;  %v2005_v16 = vpack.c.bf16 %v1957_v42, %v1957_v42  ;;  %v2101_v4 = vunpack.c.l.b16 %v2004_v5  ;;  %v1600_v2 = vmul.f32 %v6775_v27, %v8734_v17  ;;  %v6777_v17 = vld [vmem:[%s9608_s0 + $0xd8] sm:$0xff] }
 0x42d   :  { %1784 = vperm.xlu0 %6650, %v1318_v44   ;;  %1714 = vperm.xlu2 %6648, %v1304_v49  }
 0x42e   :  { %v1987_v1 = vpack.c.bf16 %v1939_v26, %v1939_v26  ;;  %v2102_v61 = vunpack.c.l.b16 %v2005_v16  ;;  %v1888_v53 = vadd.f32 %v8714_v6, %v1600_v2  ;;  %v6778_v16 = vld [vmem:[%s9608_s0 + $0xc8] sm:$0xff] }
 0x42f   :  { %v1765_v12 = vpop.permute.xlu0 %1764  ;;  %v1542_v33 = vpop.permute.xlu2 %1541 }
 0x430   :  { %v1890_v31 = vadd.f32 %v1765_v12, %v1602_v58  ;;  %v2084_v28 = vunpack.c.l.b16 %v1987_v1  ;;  %v1615_v45 = vmul.f32 %v6772_v21, %v1542_v33  ;;  %v8792_v24 = vpack.c.b16 %v2102_v61, %v2101_v4  ;;  %v8805_v43 = vpop.permute.xlu1 %1446 }
 0x431   :  { %v1601_v33 = vmul.f32 %v6777_v17, %v8677_v54  ;;  %v1936_v20 = vmax.f32 %v1888_v53, 0.0 }
 0x432   :  { %v1938_v34 = vmax.f32 %v1890_v31, 0.0  ;;  %v1903_v32 = vadd.f32 %v8730_v10, %v1615_v45  ;;  %v6776_v10 = vld [vmem:[%s9608_s0 + $0x140] sm:$0xff]  ;;  %v2000_v31 = vpack.c.bf16 %v1952_v59, %v1952_v59 }
 0x434   :  { %v1986_v52 = vpack.c.bf16 %v1938_v34, %v1938_v34  ;;  %v1951_v35 = vmax.f32 %v1903_v32, 0.0  ;;  %v2097_v5 = vunpack.c.l.b16 %v2000_v31 }
 0x435   :  { %1421 = vperm.xlu0 %6650, %v8479_v60   ;;  %1789 = vperm.xlu2 %6648, %v1319_v48   ;;  %v1206_v60 = vld [vmem:[%s9610_s2 + $0x80] sm:$0xff] }
 0x436   :  { %v2083_v13 = vunpack.c.l.b16 %v1986_v52  ;;  %v1302_v39 = vsub.f32 %v1206_v60, %v1254_v25  ;;  %v1999_v26 = vpack.c.bf16 %v1951_v35, %v1951_v35 }
 0x437   :  { %v1840_v46 = vpop.permute.xlu0 %1839  ;;  %v1825_v55 = vpop.permute.xlu2 %1824 }
 0x438   :  { %v8776_v14 = vpack.c.b16 %v2084_v28, %v2083_v13  ;;  %v1905_v15 = vadd.f32 %v1840_v46, %v1617_v8  ;;  %v2096_v6 = vunpack.c.l.b16 %v1999_v26  ;;  %v1984_v28 = vpack.c.bf16 %v1936_v20, %v1936_v20  ;;  %v8821_v61 = vpop.permute.xlu1 %1521  ;;  %v6779_v8 = vld [vmem:[%s9608_s0 + $0xc0] sm:$0xff] }
 0x43a   :  { %4841 = vmatpush.bf16.msrb.mxu0 %v8776_v14  ;;  %v1953_v44 = vmax.f32 %v1905_v15, 0.0 }
 0x43c   :  { %v2001_v42 = vpack.c.bf16 %v1953_v44, %v1953_v44 }
 0x43d   :  { %2173 = vrot.lane.b32.xlu0 %v8792_v24, %s6827_s15  ;;  %1704 = vperm.xlu2 %6648, %v1302_v39  }
 0x43e   :  { %v2098_v1 = vunpack.c.l.b16 %v2001_v42 }
 0x43f   :  { %v1537_v37 = vpop.permute.xlu0 %1536  ;;  %v1462_v36 = vpop.permute.xlu2 %1461 }
 0x440   :  { %v1614_v49 = vmul.f32 %v6776_v10, %v1537_v37  ;;  %v1599_v52 = vmul.f32 %v6778_v16, %v1462_v36  ;;  %v8823_v21 = vpack.c.b16 %v2098_v1, %v2097_v5  ;;  %v1805_v15 = vpop.permute.xlu1 %1804  ;;  %v6780_v37 = vld [vmem:[%s9608_s0 + $0x138] sm:$0xff]  ;;  %v6784_v5 = vld [vmem:[%s9608_s0 + $0x120] sm:$0xff] }
 0x442   :  { %v1902_v58 = vadd.f32 %v1825_v55, %v1614_v49  ;;  %v1887_v45 = vadd.f32 %v1750_v62, %v1599_v52  ;;  %v2081_v55 = vunpack.c.l.b16 %v1984_v28  ;;  %v6781_v49 = vld [vmem:[%s9608_s0 + $0x130] sm:$0xff] }
 0x443   :  { %v1612_v59 = vmul.f32 %v6781_v49, %v8766_v29  ;;  %v6783_v52 = vld [vmem:[%s9608_s0 + $0xb0] sm:$0xff] }
 0x444   :  { %v1950_v12 = vmax.f32 %v1902_v58, 0.0  ;;  %v1935_v60 = vmax.f32 %v1887_v45, 0.0 }
 0x445   :  { %2155 = vrot.lane.b32.xlu0 %v8776_v14, %s6827_s15  ;;  %2157 = vrot.lane.b32.xlu2 %v8716_v50, %s6827_s15 }
 0x446   :  { %v1998_v3 = vpack.c.bf16 %v1950_v12, %v1950_v12  ;;  %v1983_v22 = vpack.c.bf16 %v1935_v60, %v1935_v60 }
 0x447   :  { %v1760_v38 = vpop.permute.xlu0 %1759  ;;  %v1745_v51 = vpop.permute.xlu2 %1744 }
 0x448   :  { %v2095_v34 = vunpack.c.l.b16 %v1998_v3  ;;  %v1889_v48 = vadd.f32 %v1760_v38, %v1601_v33  ;;  %v2080_v2 = vunpack.c.l.b16 %v1983_v22  ;;  %v1442_v42 = vpop.permute.xlu1 %1441 }
 0x44a   :  { %v8819_v54 = vpack.c.b16 %v2096_v6, %v2095_v34  ;;  %v1937_v13 = vmax.f32 %v1889_v48, 0.0  ;;  %v1596_v48 = vmul.f32 %v6783_v52, %v8805_v43 }
 0x44c   :  { %v1985_v46 = vpack.c.bf16 %v1937_v13, %v1937_v13 }
 0x44d   :  { %2167 = vrot.lane.b32.xlu0 %v8819_v54, %s6827_s15  ;;  %2169 = vrot.lane.b32.xlu2 %v8823_v21, %s6827_s15 }
 0x44e   :  { %v2082_v0 = vunpack.c.l.b16 %v1985_v46 }
 0x44f   :  { %v1457_v25 = vpop.permute.xlu0 %1456  ;;  %v1820_v4 = vpop.permute.xlu2 %1819 }
 0x450   :  { %v8829_v19 = vpack.c.b16 %v2082_v0, %v2081_v55  ;;  %v1598_v40 = vmul.f32 %v6779_v8, %v1457_v25  ;;  %v1725_v29 = vpop.permute.xlu1 %1724 }
 0x452   :  { %v1886_v62 = vadd.f32 %v1745_v51, %v1598_v40  ;;  %2153 = vrot.lane.b32.xlu1 %v8829_v19, %s6827_s15  ;;  %4842 = vmatpush.bf16.msrb.mxu0 %v8829_v19  ;;  %v6782_v51 = vld [vmem:[%s9608_s0 + $0xb8] sm:$0xff]  ;;  %v6785_v40 = vld [vmem:[%s9608_s0 + $0x128] sm:$0xff] }
 0x453   :  { %v1611_v43 = vmul.f32 %v6785_v40, %v8821_v61 }
 0x454   :  { %v1934_v32 = vmax.f32 %v1886_v62, 0.0 }
 0x456   :  { %v1982_v39 = vpack.c.bf16 %v1934_v32, %v1934_v32 }
 0x457   :  { %v1532_v56 = vpop.permute.xlu0 %1531  ;;  %v1517_v27 = vpop.permute.xlu2 %1516 }
 0x458   :  { %v2079_v35 = vunpack.c.l.b16 %v1982_v39  ;;  %v1613_v36 = vmul.f32 %v6780_v37, %v1532_v56  ;;  %v1610_v28 = vmul.f32 %v6784_v5, %v1517_v27  ;;  %v1800_v60 = vpop.permute.xlu1 %1799 }
 0x45a   :  { %v8840_v44 = vpack.c.b16 %v2080_v2, %v2079_v35  ;;  %v1901_v10 = vadd.f32 %v1820_v4, %v1613_v36  ;;  %v1898_v0 = vadd.f32 %v1805_v15, %v1610_v28  ;;  %v6786_v15 = vld [vmem:[%s9608_s0 + $0x118] sm:$0xff] }
 0x45c   :  { %2151 = vrot.lane.b32.xlu2 %v8840_v44, %s6827_s15  ;;  %4843 = vmatpush.bf16.msrb.mxu0 %v8840_v44  ;;  %v1949_v53 = vmax.f32 %v1901_v10, 0.0  ;;  %v1946_v62 = vmax.f32 %v1898_v0, 0.0 }
 0x45e   :  { %v1997_v17 = vpack.c.bf16 %v1949_v53, %v1949_v53  ;;  %v1994_v37 = vpack.c.bf16 %v1946_v62, %v1946_v62  ;;  %v6787_v53 = vld [vmem:[%s9608_s0 + $0xa0] sm:$0xff] }
 0x45f   :  { %v1815_v58 = vpop.permute.xlu0 %1814  ;;  %v1740_v26 = vpop.permute.xlu2 %1739 }
 0x460   :  { %v1900_v12 = vadd.f32 %v1815_v58, %v1612_v59  ;;  %v2094_v20 = vunpack.c.l.b16 %v1997_v17  ;;  %v1497_v49 = vpop.permute.xlu1 %1496  ;;  %v2091_v59 = vunpack.c.l.b16 %v1994_v37 }
 0x462   :  { %v1948_v33 = vmax.f32 %v1900_v12, 0.0 }
 0x464   :  { %v1996_v31 = vpack.c.bf16 %v1948_v33, %v1948_v33 }
 0x466   :  { %v2093_v3 = vunpack.c.l.b16 %v1996_v31  ;;  %v6788_v31 = vld [vmem:[%s9608_s0 + $0x110] sm:$0xff] }
 0x467   :  { %v1452_v6 = vpop.permute.xlu0 %1451  ;;  %v1437_v34 = vpop.permute.xlu2 %1436 }
 0x468   :  { %v8849_v38 = vpack.c.b16 %v2094_v20, %v2093_v3  ;;  %v1597_v1 = vmul.f32 %v6782_v51, %v1452_v6  ;;  %v1594_v58 = vmul.f32 %v6787_v53, %v1437_v34  ;;  %v6789_v34 = vld [vmem:[%s9608_s0 + $0xa8] sm:$0xff] }
 0x469   :  { %v1595_v52 = vmul.f32 %v6789_v34, %v1442_v42 }
 0x46a   :  { %v1885_v16 = vadd.f32 %v1740_v26, %v1597_v1  ;;  %2165 = vrot.lane.b32.xlu1 %v8849_v38, %s6827_s15  ;;  %v1882_v6 = vadd.f32 %v1725_v29, %v1594_v58  ;;  %v6790_v29 = vld [vmem:[%s9608_s0 + $0x98] sm:$0xff] }
 0x46c   :  { %v1933_v13 = vmax.f32 %v1885_v16, 0.0 }
 0x46e   :  { %v1981_v25 = vpack.c.bf16 %v1933_v13, %v1933_v13  ;;  %v1720_v13 = vpop.permute.xlu1 %1719 }
 0x46f   :  { %v1735_v45 = vpop.permute.xlu0 %1734  ;;  %v1512_v55 = vpop.permute.xlu2 %1511 }
 0x470   :  { %v1884_v46 = vadd.f32 %v1735_v45, %v1596_v48  ;;  %v2078_v22 = vunpack.c.l.b16 %v1981_v25  ;;  %v1609_v27 = vmul.f32 %v6786_v15, %v1512_v55  ;;  %v1930_v48 = vmax.f32 %v1882_v6, 0.0  ;;  %v6791_v15 = vld [vmem:[%s9608_s0 + $0x90] sm:$0xff]  ;;  %v6793_v6 = vld [vmem:[%s9608_s0 + $0x100] sm:$0xff] }
 0x472   :  { %v1932_v4 = vmax.f32 %v1884_v46, 0.0  ;;  %v1897_v61 = vadd.f32 %v1800_v60, %v1609_v27 }
 0x474   :  { %v1980_v8 = vpack.c.bf16 %v1932_v4, %v1932_v4  ;;  %v1945_v17 = vmax.f32 %v1897_v61, 0.0  ;;  %v1978_v4 = vpack.c.bf16 %v1930_v48, %v1930_v48  ;;  %v6794_v48 = vld [vmem:[%s9608_s0 + $0x80] sm:$0xff] }
 0x476   :  { %v2077_v32 = vunpack.c.l.b16 %v1980_v8  ;;  %v1993_v1 = vpack.c.bf16 %v1945_v17, %v1945_v17  ;;  %v2075_v42 = vunpack.c.l.b16 %v1978_v4 }
 0x477   :  { %v1810_v39 = vpop.permute.xlu0 %1809  ;;  %v1795_v35 = vpop.permute.xlu2 %1794 }
 0x478   :  { %v8867_v56 = vpack.c.b16 %v2078_v22, %v2077_v32  ;;  %v1899_v2 = vadd.f32 %v1810_v39, %v1611_v43  ;;  %v2090_v45 = vunpack.c.l.b16 %v1993_v1 }
 0x47a   :  { %v1947_v36 = vmax.f32 %v1899_v2, 0.0  ;;  %2149 = vrot.lane.b32.xlu0 %v8867_v56, %s6827_s15  ;;  %4844 = vmatpush.bf16.msrb.mxu0 %v8867_v56 }
 0x47c   :  { %v1995_v10 = vpack.c.bf16 %v1947_v36, %v1947_v36 }
 0x47e   :  { %v2092_v26 = vunpack.c.l.b16 %v1995_v10 }
 0x47f   :  { %v1507_v12 = vpop.permute.xlu0 %1506  ;;  %v1432_v3 = vpop.permute.xlu2 %1431 }
 0x480   :  { %v8878_v33 = vpack.c.b16 %v2092_v26, %v2091_v59  ;;  %v1608_v20 = vmul.f32 %v6788_v31, %v1507_v12  ;;  %v1593_v55 = vmul.f32 %v6790_v29, %v1432_v3  ;;  %v6792_v26 = vld [vmem:[%s9608_s0 + $0x108] sm:$0xff] }
 0x482   :  { %v1896_v51 = vadd.f32 %v1795_v35, %v1608_v20  ;;  %2163 = vrot.lane.b32.xlu2 %v8878_v33, %s6827_s15  ;;  %v1881_v40 = vadd.f32 %v1720_v13, %v1593_v55  ;;  %v1417_v35 = vpop.permute.xlu1 %1416 }
 0x484   :  { %v1944_v16 = vmax.f32 %v1896_v51, 0.0  ;;  %v1929_v32 = vmax.f32 %v1881_v40, 0.0  ;;  %v1606_v51 = vmul.f32 %v6793_v6, %v1497_v49 }
 0x486   :  { %v1992_v5 = vpack.c.bf16 %v1944_v16, %v1944_v16  ;;  %v1977_v36 = vpack.c.bf16 %v1929_v32, %v1929_v32 }
 0x487   :  { %v1730_v28 = vpop.permute.xlu0 %1729  ;;  %v1715_v25 = vpop.permute.xlu2 %1714 }
 0x488   :  { %v2089_v46 = vunpack.c.l.b16 %v1992_v5  ;;  %v1883_v0 = vadd.f32 %v1730_v28, %v1595_v52  ;;  %v2074_v53 = vunpack.c.l.b16 %v1977_v36  ;;  %v1590_v5 = vmul.f32 %v6794_v48, %v1417_v35 }
 0x48a   :  { %v8891_v60 = vpack.c.b16 %v2090_v45, %v2089_v46  ;;  %v1931_v8 = vmax.f32 %v1883_v0, 0.0  ;;  %v1710_v3 = vpop.permute.xlu1 %1709 }
 0x48c   :  { %v1979_v43 = vpack.c.bf16 %v1931_v8, %v1931_v8  ;;  %2161 = vrot.lane.b32.xlu0 %v8891_v60, %s6827_s15 }
 0x48e   :  { %v2076_v62 = vunpack.c.l.b16 %v1979_v43 }
 0x48f   :  { %v1427_v22 = vpop.permute.xlu0 %1426  ;;  %v1790_v2 = vpop.permute.xlu2 %1789 }
 0x490   :  { %v8895_v39 = vpack.c.b16 %v2076_v62, %v2075_v42  ;;  %v1592_v27 = vmul.f32 %v6791_v15, %v1427_v22 }
 0x492   :  { %v1880_v37 = vadd.f32 %v1715_v25, %v1592_v27  ;;  %2147 = vrot.lane.b32.xlu1 %v8895_v39, %s6827_s15  ;;  %4845 = vmatpush.bf16.msrb.mxu0 %v8895_v39  ;;  %v6795_v27 = vld [vmem:[%s9608_s0 + $0x88] sm:$0xff] }
 0x494   :  { %v1928_v61 = vmax.f32 %v1880_v37, 0.0 }
 0x496   :  { %v1976_v10 = vpack.c.bf16 %v1928_v61, %v1928_v61 }
 0x497   :  { %v1502_v59 = vpop.permute.xlu0 %1501  ;;  %v1705_v17 = vpop.permute.xlu2 %1704 }
 0x498   :  { %v2073_v58 = vunpack.c.l.b16 %v1976_v10  ;;  %v1607_v12 = vmul.f32 %v6792_v26, %v1502_v59  ;;  %v1878_v55 = vadd.f32 %v1705_v17, %v1590_v5 }
 0x49a   :  { %v8906_v31 = vpack.c.b16 %v2074_v53, %v2073_v58  ;;  %v1895_v20 = vadd.f32 %v1790_v2, %v1607_v12  ;;  %v1926_v62 = vmax.f32 %v1878_v55, 0.0 }
 0x49c   :  { %2145 = vrot.lane.b32.xlu2 %v8906_v31, %s6827_s15  ;;  %4846 = vmatpush.bf16.msrb.mxu0 %v8906_v31  ;;  %v1943_v1 = vmax.f32 %v1895_v20, 0.0  ;;  %v2172_v0 = vpop.permute.xlu1 %2171  ;;  %v1974_v10 = vpack.c.bf16 %v1926_v62, %v1926_v62 }
 0x49d   :  { %v2244_v22 = vsel %vm2175_vm10, 0, %v2172_v0 }
 0x49e   :  { %v1991_v13 = vpack.c.bf16 %v1943_v1, %v1943_v1  ;;  %v2297_v59 = vunpack.c.l.bf16 %v2244_v22  ;;  %v2298_v58 = vunpack.c.h.bf16 %v2244_v22  ;;  %v2071_v17 = vunpack.c.l.b16 %v1974_v10 }
 0x49f   :  { %v1785_v16 = vpop.permute.xlu0 %1784  ;;  %v2158_v52 = vpop.permute.xlu2 %2157 }
 0x4a0   :  { %v1894_v34 = vadd.f32 %v1785_v16, %v1606_v51  ;;  %v2223_v28 = vsel %vm2175_vm10, 0, %v2158_v52  ;;  %v2088_v8 = vunpack.c.l.b16 %v1991_v13  ;;  %v2346_v20 = vmul.f32 %v7763_v9, %v2297_v59  ;;  %v6514_v52 = vld [vmem:[#allocation2 + $0x380] sm:$0xf0] }
 0x4a1   :  { %v2283_v46 = vunpack.c.l.bf16 %v2223_v28  ;;  %v2284_v29 = vunpack.c.h.bf16 %v2223_v28  ;;  %v2347_v48 = vmul.f32 %v7763_v9, %v2298_v58  ;;  %v6406_v58 = vld [vmem:[#allocation2 + $0x20] sm:$0xf0] }
 0x4a2   :  { %v1942_v45 = vmax.f32 %v1894_v34, 0.0  ;;  %v5972_v34 = vld [vmem:[#allocation2 + $0x360] sm:$0xf] }
 0x4a3   :  { %v2332_v49 = vmul.f32 %v7763_v9, %v2283_v46  ;;  %v2333_v4 = vmul.f32 %v7763_v9, %v2284_v29  ;;  %v6568_v46 = vld [vmem:[#allocation2 + $0x530] sm:$0xf0] }
 0x4a4   :  { %v1990_v25 = vpack.c.bf16 %v1942_v45, %v1942_v45  ;;  %2412 = vrot.lane.b32.xlu2 %v9750_v30, %s6828_s27  ;;  %v6188_v45 = vld [vmem:[#allocation2 + $0x510] sm:$0xf] }
 0x4a5   :  { %v2380_v43 = vpack.c.bf16 %v2332_v49, %v2332_v49  ;;  %v2381_v42 = vpack.c.bf16 %v2333_v4, %v2333_v4  ;;  %v6189_v0 = vor.u32 %v6568_v46, %v6188_v45  ;;  %v2394_v4 = vpack.c.bf16 %v2346_v20, %v2346_v20  ;;  %v6523_v45 = vld [vmem:[#allocation2 + $0x3c8] sm:$0xf0] }
 0x4a6   :  { %v2087_v40 = vunpack.c.l.b16 %v1990_v25 }
 0x4a7   :  { %v1422_v32 = vpop.permute.xlu0 %1421  ;;  %v2746_v35 = vunpack.c.l.b16 %v2380_v43  ;;  %v2747_v37 = vunpack.c.l.b16 %v2381_v42  ;;  %v2170_v61 = vpop.permute.xlu2 %2169  ;;  %4422 = vmatmul.bf16.vlgmr.msra.gmra.mxu3 %v6189_v0  ;;  %v5756_v43 = vld [vmem:[#allocation2 + $0x1b0] sm:$0xf]  ;;  %v6460_v42 = vld [vmem:[#allocation2 + $0x1d0] sm:$0xf0] }
 0x4a8   :  { %v8923_v15 = vpack.c.b16 %v2088_v8, %v2087_v40  ;;  %v1591_v2 = vmul.f32 %v6795_v27, %v1422_v32  ;;  %v2241_v26 = vsel %vm2175_vm10, 0, %v2170_v61  ;;  %v2395_v40 = vpack.c.bf16 %v2347_v48, %v2347_v48 }
 0x4a9   :  { %v2779_v30 = vpack.c.b16 %v2747_v37, %v2746_v35  ;;  %v2295_v51 = vunpack.c.l.bf16 %v2241_v26  ;;  %v2296_v1 = vunpack.c.h.bf16 %v2241_v26  ;;  %v5757_v62 = vor.u32 %v6460_v42, %v5756_v43  ;;  %v5792_v42 = vld [vmem:[#allocation2 + $0x1f8] sm:$0xf] }
 0x4aa   :  { %v1879_v36 = vadd.f32 %v1710_v3, %v1591_v2  ;;  %2159 = vrot.lane.b32.xlu1 %v8923_v15, %s6827_s15  ;;  %v2760_v35 = vunpack.c.l.b16 %v2394_v4  ;;  %v2761_v59 = vunpack.c.l.b16 %v2395_v40 }
 0x4ab   :  { %4453 = vmatpush.bf16.msrb.mxu1 %v2779_v30  ;;  %v2344_v25 = vmul.f32 %v7763_v9, %v2295_v51  ;;  %v2345_v49 = vmul.f32 %v7763_v9, %v2296_v1 }
 0x4ac   :  { %v1927_v53 = vmax.f32 %v1879_v36, 0.0  ;;  %2426 = vrot.lane.b32.xlu2 %v8776_v14, %s6828_s27  ;;  %v5973_v14 = vor.u32 %v6514_v52, %v5972_v34  ;;  %4362 = vmatmul.bf16.vlgmr.msra.gmra.mxu1 %v5757_v62  ;;  %v2786_v51 = vpack.c.b16 %v2761_v59, %v2760_v35  ;;  %v6469_v62 = vld [vmem:[#allocation2 + $0x218] sm:$0xf0] }
 0x4ad   :  { %v2392_v37 = vpack.c.bf16 %v2344_v25, %v2344_v25  ;;  %v2393_v36 = vpack.c.bf16 %v2345_v49, %v2345_v49  ;;  %v6224_v25 = vld [vmem:[#allocation2 + $0x558] sm:$0xf]  ;;  %v6577_v49 = vld [vmem:[#allocation2 + $0x578] sm:$0xf0] }
 0x4ae   :  { %v1975_v12 = vpack.c.bf16 %v1927_v53, %v1927_v53  ;;  %4392 = vmatmul.bf16.vlgmr.msra.gmra.mxu2 %v5973_v14  ;;  %v5540_v53 = vld [vmem:[#allocation2] sm:$0xf]  ;;  %v6008_v14 = vld [vmem:[#allocation2 + $0x3a8] sm:$0xf]  ;;  %v6225_v40 = vor.u32 %v6577_v49, %v6224_v25 }
 0x4af   :  { %v2174_v3 = vpop.permute.xlu0 %2173 }
 0x4b0   :  { %v2072_v6 = vunpack.c.l.b16 %v1975_v12  ;;  %v2247_v16 = vsel %vm2175_vm10, 0, %v2174_v3  ;;  %v2758_v3 = vunpack.c.l.b16 %v2392_v37 }
 0x4b1   :  { %v2299_v5 = vunpack.c.l.bf16 %v2247_v16  ;;  %v2300_v28 = vunpack.c.h.bf16 %v2247_v16 }
 0x4b2   :  { %v8936_v13 = vpack.c.b16 %v2072_v6, %v2071_v17  ;;  %2428 = vrot.lane.b32.xlu1 %v8716_v50, %s6828_s27  ;;  %v5541_v17 = vor.u32 %v6406_v58, %v5540_v53  ;;  %v2759_v6 = vunpack.c.l.b16 %v2393_v36 }
 0x4b3   :  { %v2348_v29 = vmul.f32 %v7763_v9, %v2299_v5  ;;  %v2349_v55 = vmul.f32 %v7763_v9, %v2300_v28 }
 0x4b4   :  { %2444 = vrot.lane.b32.xlu2 %v8792_v24, %s6828_s27  ;;  %2143 = vrot.lane.b32.xlu0 %v8936_v13, %s6827_s15  ;;  %v2785_v28 = vpack.c.b16 %v2759_v6, %v2758_v3 }
 0x4b5   :  { %4847 = vmatpush.bf16.msrb.mxu0 %v8936_v13  ;;  %v2396_v50 = vpack.c.bf16 %v2348_v29, %v2348_v29  ;;  %v2397_v8 = vpack.c.bf16 %v2349_v55, %v2349_v55  ;;  %v6009_v55 = vor.u32 %v6523_v45, %v6008_v14  ;;  %v6478_v45 = vld [vmem:[#allocation2 + $0x260] sm:$0xf0] }
 0x4b6   :  { %v2152_v20 = vpop.permute.xlu2 %2151  ;;  %4332 = vmatmul.bf16.vlgmr.msra.gmra.mxu0 %v5541_v17 }
 0x4b7   :  { %v2156_v22 = vpop.permute.xlu0 %2155  ;;  %v2762_v32 = vunpack.c.l.b16 %v2396_v50  ;;  %v2763_v27 = vunpack.c.l.b16 %v2397_v8  ;;  %v2214_v16 = vsel %vm2175_vm10, 0, %v2152_v20  ;;  %4427 = vmatmul.bf16.gmra.mxu3 %v6225_v40 }
 0x4b8   :  { %v2220_v2 = vsel %vm2175_vm10, 0, %v2156_v22  ;;  %v2277_v0 = vunpack.c.l.bf16 %v2214_v16  ;;  %v2278_v4 = vunpack.c.h.bf16 %v2214_v16  ;;  %v6044_v16 = vld [vmem:[#allocation2 + $0x3f0] sm:$0xf] }
 0x4b9   :  { %v2281_v61 = vunpack.c.l.bf16 %v2220_v2  ;;  %v2282_v30 = vunpack.c.h.bf16 %v2220_v2  ;;  %v2787_v10 = vpack.c.b16 %v2763_v27, %v2762_v32  ;;  %v5793_v27 = vor.u32 %v6469_v62, %v5792_v42 }
 0x4ba   :  { %2408 = vrot.lane.b32.xlu1 %v9753_v47, %s6828_s27  ;;  %v2326_v37 = vmul.f32 %v7763_v9, %v2277_v0  ;;  %v2327_v36 = vmul.f32 %v7763_v9, %v2278_v4 }
 0x4bb   :  { %v2330_v26 = vmul.f32 %v7763_v9, %v2281_v61  ;;  %v2331_v12 = vmul.f32 %v7763_v9, %v2282_v30  ;;  %4582 = vmatpush.bf16.msrb.mxu2 %v2787_v10 }
 0x4bc   :  { %2442 = vrot.lane.b32.xlu2 %v8738_v63, %s6828_s27  ;;  %2410 = vrot.lane.b32.xlu0 %v9751_v57, %s6828_s27  ;;  %v2374_v17 = vpack.c.bf16 %v2326_v37, %v2326_v37  ;;  %v2375_v20 = vpack.c.bf16 %v2327_v36, %v2327_v36  ;;  %v6080_v36 = vld [vmem:[#allocation2 + $0x438] sm:$0xf] }
 0x4bd   :  { %v2378_v1 = vpack.c.bf16 %v2330_v26, %v2330_v26  ;;  %v2379_v47 = vpack.c.bf16 %v2331_v12, %v2331_v12  ;;  %4367 = vmatmul.bf16.gmra.mxu1 %v5793_v27  ;;  %v5576_v26 = vld [vmem:[#allocation2 + $0x48] sm:$0xf]  ;;  %v6415_v12 = vld [vmem:[#allocation2 + $0x68] sm:$0xf0] }
 0x4be   :  { %4397 = vmatmul.bf16.gmra.mxu2 %v6009_v55  ;;  %v5577_v3 = vor.u32 %v6415_v12, %v5576_v26 }
 0x4bf   :  { %4583 = vmatpush.bf16.msrb.mxu2 %v2786_v51  ;;  %v2168_v34 = vpop.permute.xlu0 %2167  ;;  %v2744_v52 = vunpack.c.l.b16 %v2378_v1  ;;  %v2745_v48 = vunpack.c.l.b16 %v2379_v47  ;;  %v2740_v47 = vunpack.c.l.b16 %v2374_v17 }
 0x4c0   :  { %v2238_v5 = vsel %vm2175_vm10, 0, %v2168_v34  ;;  %v6532_v34 = vld [vmem:[#allocation2 + $0x410] sm:$0xf0] }
 0x4c1   :  { %v2293_v46 = vunpack.c.l.bf16 %v2238_v5  ;;  %v2294_v29 = vunpack.c.h.bf16 %v2238_v5  ;;  %v2778_v57 = vpack.c.b16 %v2745_v48, %v2744_v52  ;;  %v6260_v52 = vld [vmem:[#allocation2 + $0x5a0] sm:$0xf]  ;;  %v6045_v48 = vor.u32 %v6532_v34, %v6044_v16  ;;  %v6586_v5 = vld [vmem:[#allocation2 + $0x5c0] sm:$0xf0] }
 0x4c2   :  { %2406 = vrot.lane.b32.xlu1 %v9756_v7, %s6828_s27 }
 0x4c3   :  { %v2342_v50 = vmul.f32 %v7763_v9, %v2293_v46  ;;  %v2343_v8 = vmul.f32 %v7763_v9, %v2294_v29  ;;  %4454 = vmatpush.bf16.msrb.mxu1 %v2778_v57  ;;  %4584 = vmatpush.bf16.msrb.mxu2 %v2785_v28  ;;  %v6261_v28 = vor.u32 %v6586_v5, %v6260_v52  ;;  %v5612_v29 = vld [vmem:[#allocation2 + $0x90] sm:$0xf]  ;;  %v6116_v5 = vld [vmem:[#allocation2 + $0x480] sm:$0xf] }
 0x4c4   :  { %v2154_v43 = vpop.permute.xlu1 %2153  ;;  %2440 = vrot.lane.b32.xlu2 %v8823_v21, %s6828_s27  ;;  %2424 = vrot.lane.b32.xlu0 %v8829_v19, %s6828_s27 }
 0x4c5   :  { %v2217_v7 = vsel %vm2175_vm10, 0, %v2154_v43  ;;  %v2390_v22 = vpack.c.bf16 %v2342_v50, %v2342_v50  ;;  %v2391_v32 = vpack.c.bf16 %v2343_v8, %v2343_v8 }
 0x4c6   :  { %v2279_v2 = vunpack.c.l.bf16 %v2217_v7  ;;  %v2280_v35 = vunpack.c.h.bf16 %v2217_v7  ;;  %4337 = vmatmul.bf16.gmra.mxu0 %v5577_v3  ;;  %v5648_v3 = vld [vmem:[#allocation2 + $0xd8] sm:$0xf] }
 0x4c7   :  { %v2756_v61 = vunpack.c.l.b16 %v2390_v22  ;;  %v2757_v30 = vunpack.c.l.b16 %v2391_v32  ;;  %4432 = vmatmul.bf16.gmra.mxu3 %v6261_v28  ;;  %v6550_v28 = vld [vmem:[#allocation2 + $0x4a0] sm:$0xf0] }
 0x4c8   :  { %v2328_v10 = vmul.f32 %v7763_v9, %v2279_v2  ;;  %v2329_v19 = vmul.f32 %v7763_v9, %v2280_v35 }
 0x4c9   :  { %v2784_v59 = vpack.c.b16 %v2757_v30, %v2756_v61  ;;  %v6541_v61 = vld [vmem:[#allocation2 + $0x458] sm:$0xf0]  ;;  %v6296_v30 = vld [vmem:[#allocation2 + $0x5e8] sm:$0xf] }
 0x4ca   :  { %2404 = vrot.lane.b32.xlu1 %v9758_v18, %s6828_s27  ;;  %v2376_v53 = vpack.c.bf16 %v2328_v10, %v2328_v10  ;;  %v2377_v58 = vpack.c.bf16 %v2329_v19, %v2329_v19  ;;  %v2741_v18 = vunpack.c.l.b16 %v2375_v20  ;;  %v6081_v10 = vor.u32 %v6541_v61, %v6080_v36  ;;  %v6595_v19 = vld [vmem:[#allocation2 + $0x608] sm:$0xf0] }
 0x4cb   :  { %4585 = vmatpush.bf16.msrb.mxu2 %v2784_v59  ;;  %v5864_v59 = vld [vmem:[#allocation2 + $0x288] sm:$0xf] }
 0x4cc   :  { %2438 = vrot.lane.b32.xlu2 %v8819_v54, %s6828_s27  ;;  %2422 = vrot.lane.b32.xlu0 %v8840_v44, %s6828_s27  ;;  %v2742_v6 = vunpack.c.l.b16 %v2376_v53  ;;  %v2743_v51 = vunpack.c.l.b16 %v2377_v58  ;;  %v2776_v14 = vpack.c.b16 %v2741_v18, %v2740_v47  ;;  %v5828_v44 = vld [vmem:[#allocation2 + $0x240] sm:$0xf]  ;;  %v6297_v58 = vor.u32 %v6595_v19, %v6296_v30  ;;  %v6559_v19 = vld [vmem:[#allocation2 + $0x4e8] sm:$0xf0] }
 0x4cd   :  { %v5829_v46 = vor.u32 %v6478_v45, %v5828_v44  ;;  %v6117_v44 = vor.u32 %v6550_v28, %v6116_v5  ;;  %v6604_v45 = vld [vmem:[#allocation2 + $0x650] sm:$0xf0]  ;;  %v5936_v28 = vld [vmem:[#allocation2 + $0x318] sm:$0xf] }
 0x4ce   :  { %v2777_v1 = vpack.c.b16 %v2743_v51, %v2742_v6  ;;  %4402 = vmatmul.bf16.gmra.mxu2 %v6045_v48  ;;  %v6433_v6 = vld [vmem:[#allocation2 + $0xf8] sm:$0xf0] }
 0x4cf   :  { %4372 = vmatmul.bf16.gmra.mxu1 %v5829_v46  ;;  %v5649_v47 = vor.u32 %v6433_v6, %v5648_v3  ;;  %v5900_v46 = vld [vmem:[#allocation2 + $0x2d0] sm:$0xf] }
 0x4d0   :  { %4455 = vmatpush.bf16.msrb.mxu1 %v2777_v1 }
 0x4d2   :  { %2402 = vrot.lane.b32.xlu1 %v9759_v11, %s6828_s27  ;;  %v6424_v11 = vld [vmem:[#allocation2 + $0xb0] sm:$0xf0] }
 0x4d3   :  { %v5613_v57 = vor.u32 %v6424_v11, %v5612_v29  ;;  %v6496_v29 = vld [vmem:[#allocation2 + $0x2f0] sm:$0xf0] }
 0x4d4   :  { %2436 = vrot.lane.b32.xlu2 %v8849_v38, %s6828_s27  ;;  %2420 = vrot.lane.b32.xlu0 %v8867_v56, %s6828_s27 }
 0x4d5   :  { %4456 = vmatpush.bf16.msrb.mxu1 %v2776_v14  ;;  %v6332_v14 = vld [vmem:[#allocation2 + $0x630] sm:$0xf] }
 0x4d6   :  { %4342 = vmatmul.bf16.gmra.mxu0 %v5613_v57  ;;  %v6333_v11 = vor.u32 %v6604_v45, %v6332_v14  ;;  %v5901_v57 = vor.u32 %v6496_v29, %v5900_v46  ;;  %v6505_v14 = vld [vmem:[#allocation2 + $0x338] sm:$0xf0]  ;;  %v5720_v29 = vld [vmem:[#allocation2 + $0x168] sm:$0xf] }
 0x4d7   :  { %4437 = vmatmul.bf16.gmra.mxu3 %v6297_v58  ;;  %v5937_v46 = vor.u32 %v6505_v14, %v5936_v28 }
 0x4da   :  { %2400 = vrot.lane.b32.xlu1 %v8317_v23, %s6828_s27 }
 0x4dc   :  { %v2166_v55 = vpop.permute.xlu1 %2165  ;;  %2434 = vrot.lane.b32.xlu2 %v8878_v33, %s6828_s27  ;;  %2418 = vrot.lane.b32.xlu0 %v8895_v39, %s6828_s27  ;;  %v2164_v56 = vpop.permute.xlu2 %2163 }
 0x4dd   :  { %v2235_v0 = vsel %vm2175_vm10, 0, %v2166_v55  ;;  %v2232_v25 = vsel %vm2175_vm10, 0, %v2164_v56 }
 0x4de   :  { %v2291_v49 = vunpack.c.l.bf16 %v2235_v0  ;;  %v2292_v4 = vunpack.c.h.bf16 %v2235_v0  ;;  %v2289_v50 = vunpack.c.l.bf16 %v2232_v25  ;;  %v2290_v23 = vunpack.c.h.bf16 %v2232_v25  ;;  %4407 = vmatmul.bf16.gmra.mxu2 %v6081_v10  ;;  %v5684_v0 = vld [vmem:[#allocation2 + $0x120] sm:$0xf]  ;;  %v6442_v25 = vld [vmem:[#allocation2 + $0x140] sm:$0xf0]  ;;  %v6152_v10 = vld [vmem:[#allocation2 + $0x4c8] sm:$0xf] }
 0x4e0   :  { %v2340_v8 = vmul.f32 %v7763_v9, %v2291_v49  ;;  %v2341_v40 = vmul.f32 %v7763_v9, %v2292_v4  ;;  %v2338_v43 = vmul.f32 %v7763_v9, %v2289_v50  ;;  %v2339_v42 = vmul.f32 %v7763_v9, %v2290_v23 }
 0x4e1   :  { %v5685_v50 = vor.u32 %v6442_v25, %v5684_v0 }
 0x4e2   :  { %2398 = vrot.lane.b32.xlu1 %v8356_v41, %s6828_s27  ;;  %v2388_v39 = vpack.c.bf16 %v2340_v8, %v2340_v8  ;;  %v2389_v62 = vpack.c.bf16 %v2341_v40, %v2341_v40  ;;  %v2386_v7 = vpack.c.bf16 %v2338_v43, %v2338_v43  ;;  %v2387_v22 = vpack.c.bf16 %v2339_v42, %v2339_v42  ;;  %v6487_v41 = vld [vmem:[#allocation2 + $0x2a8] sm:$0xf0] }
 0x4e3   :  { %v5865_v26 = vor.u32 %v6487_v41, %v5864_v59  ;;  %v6368_v59 = vld [vmem:[#allocation2 + $0x678] sm:$0xf] }
 0x4e4   :  { %2416 = vrot.lane.b32.xlu0 %v8906_v31, %s6828_s27  ;;  %v2754_v32 = vunpack.c.l.b16 %v2388_v39  ;;  %v2755_v27 = vunpack.c.l.b16 %v2389_v62  ;;  %v2752_v35 = vunpack.c.l.b16 %v2386_v7  ;;  %v2753_v37 = vunpack.c.l.b16 %v2387_v22  ;;  %v6796_v62 = vld [vmem:[%s9611_s3] sm:$0x1] }
 0x4e5   :  { %4377 = vmatmul.bf16.gmra.mxu1 %v5865_v26  ;;  %v2519_v7 = vshrl.u32 %v6796_v62, 16  ;;  %v6613_v26 = vld [vmem:[#allocation2 + $0x698] sm:$0xf0] }
 0x4e6   :  { %v2783_v2 = vpack.c.b16 %v2755_v27, %v2754_v32  ;;  %v2782_v53 = vpack.c.b16 %v2753_v37, %v2752_v35  ;;  %4347 = vmatmul.bf16.gmra.mxu0 %v5649_v47  ;;  %v6369_v3 = vor.u32 %v6613_v26, %v6368_v59 }
 0x4e7   :  { %4442 = vmatmul.bf16.gmra.mxu3 %v6333_v11  ;;  %v2520_v41 = vpack.i.b16 %v2519_v7, %v2519_v7  ;;  %v6451_v11 = vld [vmem:[#allocation2 + $0x188] sm:$0xf0] }
 0x4e8   :  { %4586 = vmatpush.bf16.msrb.mxu2 %v2783_v2  ;;  %v5721_v25 = vor.u32 %v6451_v11, %v5720_v29 }
 0x4ea   :  { %2432 = vrot.lane.b32.xlu1 %v8891_v60, %s6828_s27 }
 0x4ec   :  { %v2150_v31 = vpop.permute.xlu0 %2149  ;;  %2414 = vrot.lane.b32.xlu0 %v8936_v13, %s6828_s27  ;;  %4587 = vmatpush.bf16.msrb.mxu2 %v2782_v53 }
 0x4ed   :  { %v2211_v12 = vsel %vm2175_vm10, 0, %v2150_v31 }
 0x4ee   :  { %v2275_v17 = vunpack.c.l.bf16 %v2211_v12  ;;  %v2276_v20 = vunpack.c.h.bf16 %v2211_v12  ;;  %4412 = vmatmul.bf16.gmra.mxu2 %v6117_v44 }
 0x4f0   :  { %v2324_v51 = vmul.f32 %v7763_v9, %v2275_v17  ;;  %v2325_v1 = vmul.f32 %v7763_v9, %v2276_v20  ;;  %v6153_v17 = vor.u32 %v6559_v19, %v6152_v10 }
 0x4f2   :  { %v2372_v18 = vpack.c.bf16 %v2324_v51, %v2324_v51  ;;  %v2373_v16 = vpack.c.bf16 %v2325_v1, %v2325_v1 }
 0x4f4   :  { %2430 = vrot.lane.b32.xlu0 %v8923_v15, %s6828_s27  ;;  %v2738_v13 = vunpack.c.l.b16 %v2372_v18  ;;  %v2739_v34 = vunpack.c.l.b16 %v2373_v16  ;;  %v2522_v18 = vperm.slane %v2520_v41, 0 }
 0x4f5   :  { %4382 = vmatmul.bf16.gmra.mxu1 %v5901_v57 }
 0x4f6   :  { %v2146_v52 = vpop.permute.xlu2 %2145  ;;  %v2775_v48 = vpack.c.b16 %v2739_v34, %v2738_v13  ;;  %4352 = vmatmul.bf16.gmra.mxu0 %v5685_v50  ;;  %v9022_v44 = vunpack.c.l.bf16 %v2522_v18 }
 0x4f7   :  { %v2205_v49 = vsel %vm2175_vm10, 0, %v2146_v52  ;;  %4447 = vmatmul.bf16.gmra.mxu3 %v6369_v3 }
 0x4f8   :  { %4457 = vmatpush.bf16.msrb.mxu1 %v2775_v48  ;;  %v2271_v40 = vunpack.c.l.bf16 %v2205_v49  ;;  %v2272_v43 = vunpack.c.h.bf16 %v2205_v49 }
 0x4fa   :  { %v2320_v35 = vmul.f32 %v7763_v9, %v2271_v40  ;;  %v2321_v37 = vmul.f32 %v7763_v9, %v2272_v43 }
 0x4fc   :  { %v2368_v1 = vpack.c.bf16 %v2320_v35, %v2320_v35  ;;  %v2369_v47 = vpack.c.bf16 %v2321_v37, %v2321_v37  ;;  %v6403_v37 = vld [vmem:[#allocation2 + $0xc] sm:$0xf] }
 0x4fe   :  { %v2162_v55 = vpop.permute.xlu0 %2161  ;;  %v2413_v56 = vpop.permute.xlu2 %2412  ;;  %4417 = vmatmul.bf16.gmra.mxu2 %v6153_v17  ;;  %v2734_v48 = vunpack.c.l.b16 %v2368_v1  ;;  %v2735_v5 = vunpack.c.l.b16 %v2369_v47 }
 0x4ff   :  { %v2229_v4 = vsel %vm2175_vm10, 0, %v2162_v55  ;;  %v2469_v57 = vsel %vm2446_vm3, %v2413_v56, 0 }
 0x500   :  { %v2287_v23 = vunpack.c.l.bf16 %v2229_v4  ;;  %v2288_v8 = vunpack.c.h.bf16 %v2229_v4  ;;  %v2773_v50 = vpack.c.b16 %v2735_v5, %v2734_v48 }
 0x502   :  { %v2336_v42 = vmul.f32 %v7763_v9, %v2287_v23  ;;  %v2337_v39 = vmul.f32 %v7763_v9, %v2288_v8  ;;  %v2537_v23 = vunpack.c.l.bf16 %v2469_v57  ;;  %v2538_v8 = vunpack.c.h.bf16 %v2469_v57 }
 0x504   :  { %v2148_v22 = vpop.permute.xlu1 %2147  ;;  %v2384_v32 = vpack.c.bf16 %v2336_v42, %v2336_v42  ;;  %v2385_v27 = vpack.c.bf16 %v2337_v39, %v2337_v39  ;;  %v2586_v7 = vmul.f32 %v9022_v44, %v2537_v23 }
 0x505   :  { %v2208_v2 = vsel %vm2175_vm10, 0, %v2148_v22  ;;  %4387 = vmatmul.bf16.gmra.mxu1 %v5937_v46  ;;  %v2587_v22 = vmul.f32 %v9022_v44, %v2538_v8 }
 0x506   :  { %v2273_v36 = vunpack.c.l.bf16 %v2208_v2  ;;  %v2274_v61 = vunpack.c.h.bf16 %v2208_v2  ;;  %v2427_v30 = vpop.permute.xlu2 %2426  ;;  %v2750_v53 = vunpack.c.l.b16 %v2384_v32  ;;  %v2751_v58 = vunpack.c.l.b16 %v2385_v27  ;;  %4357 = vmatmul.bf16.gmra.mxu0 %v5721_v25 }
 0x507   :  { %v2490_v42 = vsel %vm2446_vm3, %v2427_v30, 0  ;;  %v2634_v41 = vpack.c.bf16 %v2586_v7, %v2586_v7 }
 0x508   :  { %v2322_v31 = vmul.f32 %v7763_v9, %v2273_v36  ;;  %v2323_v12 = vmul.f32 %v7763_v9, %v2274_v61  ;;  %v2781_v20 = vpack.c.b16 %v2751_v58, %v2750_v53  ;;  %v5550_v36 = vld [vmem:[#allocation2 + $0x2c] sm:$0xf0]  ;;  %v2551_v61 = vunpack.c.l.bf16 %v2490_v42 }
 0x509   :  { %v2552_v10 = vunpack.c.h.bf16 %v2490_v42  ;;  %v5553_v19 = vor.u32 %v6403_v37, %v5550_v36  ;;  %v2635_v53 = vpack.c.bf16 %v2587_v22, %v2587_v22  ;;  %v2898_v18 = vunpack.c.l.b16 %v2634_v41  ;;  %v6412_v37 = vld [vmem:[#allocation2 + $0x54] sm:$0xf] }
 0x50a   :  { %v2370_v6 = vpack.c.bf16 %v2322_v31, %v2322_v31  ;;  %v2371_v51 = vpack.c.bf16 %v2323_v12, %v2323_v12  ;;  %4588 = vmatpush.bf16.msrb.mxu2 %v2781_v20  ;;  %v2600_v12 = vmul.f32 %v9022_v44, %v2551_v61 }
 0x50b   :  { %v2601_v17 = vmul.f32 %v9022_v44, %v2552_v10  ;;  %4719 = vmatmul.bf16.vlgmr.msrb.gmra.mxu3 %v5553_v19 }
 0x50c   :  { %v2736_v16 = vunpack.c.l.b16 %v2370_v6  ;;  %v2737_v13 = vunpack.c.l.b16 %v2371_v51 }
 0x50d   :  { %v2649_v46 = vpack.c.bf16 %v2601_v17, %v2601_v17  ;;  %v9051_v17 = vld [vmem:[#allocation2 + $0x4] sm:$0xf] }
 0x50e   :  { %v2445_v34 = vpop.permute.xlu2 %2444  ;;  %v2774_v52 = vpack.c.b16 %v2737_v13, %v2736_v16  ;;  %v2899_v16 = vunpack.c.l.b16 %v2635_v53 }
 0x50f   :  { %v2517_v45 = vsel %vm2446_vm3, %v2445_v34, 0  ;;  %v5556_v34 = vld [vmem:[#allocation2 + $0x10] sm:$0xf] }
 0x510   :  { %v2569_v55 = vunpack.c.l.bf16 %v2517_v45  ;;  %v2570_v0 = vunpack.c.h.bf16 %v2517_v45  ;;  %4458 = vmatpush.bf16.msrb.mxu1 %v2774_v52  ;;  %v6408_v52 = vld [vmem:[#allocation2 + $0x30] sm:$0xf0]  ;;  %v2648_v45 = vpack.c.bf16 %v2600_v12, %v2600_v12  ;;  %v2939_v42 = vpack.c.b16 %v2899_v16, %v2898_v18 }
 0x511   :  { %v5557_v11 = vor.u32 %v6408_v52, %v5556_v34 }
 0x512   :  { %v2618_v49 = vmul.f32 %v9022_v44, %v2569_v55  ;;  %v2619_v4 = vmul.f32 %v9022_v44, %v2570_v0 }
 0x514   :  { %v2666_v40 = vpack.c.bf16 %v2618_v49, %v2618_v49  ;;  %v2667_v43 = vpack.c.bf16 %v2619_v4, %v2619_v4  ;;  %4459 = vmatpush.bf16.msrb.mxu1 %v2773_v50 }
 0x516   :  { %v2930_v39 = vunpack.c.l.b16 %v2666_v40  ;;  %v2931_v56 = vunpack.c.l.b16 %v2667_v43  ;;  %v2443_v62 = vpop.permute.xlu2 %2442  ;;  %v5548_v40 = vld [vmem:[#allocation2 + $0x8] sm:$0xf]  ;;  %v6407_v43 = vld [vmem:[#allocation2 + $0x28] sm:$0xf0]  ;;  %4848 = vmatmul.bf16.vlgmr.msrb.gmra.mxu0 %v5557_v11 }
 0x517   :  { %v2514_v32 = vsel %vm2446_vm3, %v2443_v62, 0  ;;  %v5549_v19 = vor.u32 %v6407_v43, %v5548_v40 }
 0x518   :  { %v2955_v27 = vpack.c.b16 %v2931_v56, %v2930_v39  ;;  %v2567_v2 = vunpack.c.l.bf16 %v2514_v32  ;;  %v2568_v35 = vunpack.c.h.bf16 %v2514_v32  ;;  %v9042_v39 = vunpack.c.l.b16 %v2648_v45 }
 0x519   :  { %v9044_v56 = vunpack.c.l.b16 %v2649_v46 }
 0x51a   :  { %v2616_v59 = vmul.f32 %v9022_v44, %v2567_v2  ;;  %v2617_v30 = vmul.f32 %v9022_v44, %v2568_v35  ;;  %5356 = vmatpush.bf16.msra.mxu0 %v2955_v27 }
 0x51c   :  { %v2664_v58 = vpack.c.bf16 %v2616_v59, %v2616_v59  ;;  %v2665_v26 = vpack.c.bf16 %v2617_v30, %v2617_v30  ;;  %v2160_v31 = vpop.permute.xlu1 %2159  ;;  %v5586_v59 = vld [vmem:[#allocation2 + $0x74] sm:$0xf0] }
 0x51d   :  { %v2226_v20 = vsel %vm2175_vm10, 0, %v2160_v31 }
 0x51e   :  { %v2928_v3 = vunpack.c.l.b16 %v2664_v58  ;;  %v2929_v6 = vunpack.c.l.b16 %v2665_v26  ;;  %v2285_v51 = vunpack.c.l.bf16 %v2226_v20  ;;  %v2286_v1 = vunpack.c.h.bf16 %v2226_v20  ;;  %v2441_v47 = vpop.permute.xlu2 %2440  ;;  %v9053_v20 = vld [vmem:[#allocation2 + $0x24] sm:$0xf0] }
 0x51f   :  { %v2511_v13 = vsel %vm2446_vm3, %v2441_v47, 0 }
 0x520   :  { %v2334_v48 = vmul.f32 %v7763_v9, %v2285_v51  ;;  %v2335_v5 = vmul.f32 %v7763_v9, %v2286_v1  ;;  %v2565_v28 = vunpack.c.l.bf16 %v2511_v13  ;;  %v2566_v14 = vunpack.c.h.bf16 %v2511_v13 }
 0x521   :  { %v2954_v29 = vpack.c.b16 %v2929_v6, %v2928_v3  ;;  %v5589_v3 = vor.u32 %v6412_v37, %v5586_v59  ;;  %v2946_v13 = vpack.c.b16 %v9044_v56, %v9042_v39  ;;  %v5592_v39 = vld [vmem:[#allocation2 + $0x58] sm:$0xf]  ;;  %v6417_v56 = vld [vmem:[#allocation2 + $0x78] sm:$0xf0] }
 0x522   :  { %v2614_v57 = vmul.f32 %v9022_v44, %v2565_v28  ;;  %v2615_v55 = vmul.f32 %v9022_v44, %v2566_v14  ;;  %v2382_v0 = vpack.c.bf16 %v2334_v48, %v2334_v48  ;;  %v2383_v25 = vpack.c.bf16 %v2335_v5, %v2335_v5 }
 0x523   :  { %5357 = vmatpush.bf16.msra.mxu0 %v2954_v29  ;;  %v5545_v28 = vor.u32 %v9051_v17, %v9053_v20  ;;  %4724 = vmatmul.bf16.gmra.mxu3 %v5589_v3 }
 0x524   :  { %v2662_v49 = vpack.c.bf16 %v2614_v57, %v2614_v57  ;;  %v2663_v4 = vpack.c.bf16 %v2615_v55, %v2615_v55  ;;  %v2429_v50 = vpop.permute.xlu1 %2428  ;;  %v2748_v23 = vunpack.c.l.b16 %v2382_v0  ;;  %v2749_v8 = vunpack.c.l.b16 %v2383_v25 }
 0x525   :  { %v2493_v62 = vsel %vm2446_vm3, %v2429_v50, 0 }
 0x526   :  { %v2926_v7 = vunpack.c.l.b16 %v2662_v49  ;;  %v2927_v22 = vunpack.c.l.b16 %v2663_v4  ;;  %v2553_v32 = vunpack.c.l.bf16 %v2493_v62  ;;  %v2554_v27 = vunpack.c.h.bf16 %v2493_v62  ;;  %v2144_v2 = vpop.permute.xlu0 %2143  ;;  %v2439_v35 = vpop.permute.xlu2 %2438 }
 0x527   :  { %v2202_v36 = vsel %vm2175_vm10, 0, %v2144_v2  ;;  %v2508_v61 = vsel %vm2446_vm3, %v2439_v35, 0  ;;  %v2780_v10 = vpack.c.b16 %v2749_v8, %v2748_v23  ;;  %v6416_v2 = vld [vmem:[#allocation2 + $0x70] sm:$0xf0] }
 0x528   :  { %v2602_v30 = vmul.f32 %v9022_v44, %v2553_v32  ;;  %v2603_v41 = vmul.f32 %v9022_v44, %v2554_v27  ;;  %v2269_v53 = vunpack.c.l.bf16 %v2202_v36  ;;  %v2270_v58 = vunpack.c.h.bf16 %v2202_v36  ;;  %v5584_v27 = vld [vmem:[#allocation2 + $0x50] sm:$0xf] }
 0x529   :  { %v2563_v26 = vunpack.c.l.bf16 %v2508_v61  ;;  %v2564_v31 = vunpack.c.h.bf16 %v2508_v61  ;;  %4589 = vmatpush.bf16.msrb.mxu2 %v2780_v10  ;;  %v2953_v12 = vpack.c.b16 %v2927_v22, %v2926_v7 }
 0x52a   :  { %v2650_v6 = vpack.c.bf16 %v2602_v30, %v2602_v30  ;;  %v2651_v51 = vpack.c.bf16 %v2603_v41, %v2603_v41  ;;  %v2318_v1 = vmul.f32 %v7763_v9, %v2269_v53  ;;  %v2319_v47 = vmul.f32 %v7763_v9, %v2270_v58 }
 0x52b   :  { %v2612_v18 = vmul.f32 %v9022_v44, %v2563_v26  ;;  %v2613_v16 = vmul.f32 %v9022_v44, %v2564_v31  ;;  %5358 = vmatpush.bf16.msra.mxu0 %v2953_v12  ;;  %v5593_v30 = vor.u32 %v6417_v56, %v5592_v39  ;;  %v5585_v31 = vor.u32 %v6416_v2, %v5584_v27 }
 0x52c   :  { %v2914_v34 = vunpack.c.l.b16 %v2650_v6  ;;  %v2915_v52 = vunpack.c.l.b16 %v2651_v51  ;;  %v2409_v48 = vpop.permute.xlu1 %2408  ;;  %4590 = vmatmul.bf16.vlgmr.msrb.gmra.mxu2 %v5549_v19  ;;  %v2366_v5 = vpack.c.bf16 %v2318_v1, %v2318_v1  ;;  %v2367_v46 = vpack.c.bf16 %v2319_v47, %v2319_v47 }
 0x52d   :  { %5098 = vmatpush.bf16.msra.mxu2 %v2939_v42  ;;  %v2660_v14 = vpack.c.bf16 %v2612_v18, %v2612_v18  ;;  %v2661_v45 = vpack.c.bf16 %v2613_v16, %v2613_v16  ;;  %v2463_v9 = vsel %vm2446_vm3, %v2409_v48, 0  ;;  %4853 = vmatmul.bf16.gmra.mxu0 %v5593_v30  ;;  %v9098_v30 = vpop.f32.mrf.mxu1 }
 0x52e   :  { %v2947_v29 = vpack.c.b16 %v2915_v52, %v2914_v34  ;;  %v2533_v11 = vunpack.c.l.bf16 %v2463_v9  ;;  %v2534_v57 = vunpack.c.h.bf16 %v2463_v9  ;;  %v2411_v55 = vpop.permute.xlu0 %2410  ;;  %v2437_v0 = vpop.permute.xlu2 %2436  ;;  %v2732_v25 = vunpack.c.l.b16 %v2366_v5 }
 0x52f   :  { %v2924_v49 = vunpack.c.l.b16 %v2660_v14  ;;  %v2925_v4 = vunpack.c.l.b16 %v2661_v45  ;;  %v2466_v50 = vsel %vm2446_vm3, %v2411_v55, 0  ;;  %v2505_v23 = vsel %vm2446_vm3, %v2437_v0, 0 }
 0x530   :  { %v2582_v8 = vmul.f32 %v9022_v44, %v2533_v11  ;;  %v2583_v40 = vmul.f32 %v9022_v44, %v2534_v57  ;;  %v2535_v43 = vunpack.c.l.bf16 %v2466_v50  ;;  %v2536_v42 = vunpack.c.h.bf16 %v2466_v50  ;;  %5227 = vmatpush.bf16.msra.mxu3 %v2947_v29 }
 0x531   :  { %v2561_v62 = vunpack.c.l.bf16 %v2505_v23  ;;  %v2562_v7 = vunpack.c.h.bf16 %v2505_v23  ;;  %v2733_v22 = vunpack.c.l.b16 %v2367_v46  ;;  %v2952_v32 = vpack.c.b16 %v2925_v4, %v2924_v49  ;;  %v9083_v0 = vpop.f32.mrf.mxu2 }
 0x532   :  { %v2630_v35 = vpack.c.bf16 %v2582_v8, %v2582_v8  ;;  %v2631_v37 = vpack.c.bf16 %v2583_v40, %v2583_v40  ;;  %v2584_v36 = vmul.f32 %v9022_v44, %v2535_v43  ;;  %v2585_v61 = vmul.f32 %v9022_v44, %v2536_v42  ;;  %v9091_v42 = vpop.f32.mrf.mxu3 }
 0x533   :  { %v2610_v10 = vmul.f32 %v9022_v44, %v2561_v62  ;;  %v2611_v19 = vmul.f32 %v9022_v44, %v2562_v7  ;;  %v2772_v59 = vpack.c.b16 %v2733_v22, %v2732_v25  ;;  %5359 = vmatpush.bf16.msra.mxu0 %v2952_v32 }
 0x534   :  { %v9072_v41 = vunpack.c.l.b16 %v2630_v35  ;;  %v2632_v53 = vpack.c.bf16 %v2584_v36, %v2584_v36  ;;  %v2633_v58 = vpack.c.bf16 %v2585_v61, %v2585_v61  ;;  %v2407_v26 = vpop.permute.xlu1 %2406  ;;  %5228 = vmatpush.bf16.msra.mxu3 %v2946_v13  ;;  %v2895_v12 = vunpack.c.l.b16 %v2631_v37  ;;  %v6421_v35 = vld [vmem:[#allocation2 + $0x9c] sm:$0xf]  ;;  %v5622_v37 = vld [vmem:[#allocation2 + $0xbc] sm:$0xf0]  ;;  %v9095_v36 = vpop.f32.mrf.mxu0 }
 0x535   :  { %v2658_v3 = vpack.c.bf16 %v2610_v10, %v2610_v10  ;;  %v2659_v6 = vpack.c.bf16 %v2611_v19, %v2611_v19  ;;  %4460 = vmatpush.bf16.msrb.mxu1 %v2772_v59  ;;  %v2460_v51 = vsel %vm2446_vm3, %v2407_v26, 0  ;;  %v6411_v59 = vld [vmem:[#allocation2 + $0x4c] sm:$0xf]  ;;  %v5578_v26 = vld [vmem:[#allocation2 + $0x6c] sm:$0xf0] }
 0x536   :  { %v2896_v1 = vunpack.c.l.b16 %v2632_v53  ;;  %v2897_v47 = vunpack.c.l.b16 %v2633_v58  ;;  %v2531_v18 = vunpack.c.l.bf16 %v2460_v51  ;;  %v2532_v16 = vunpack.c.h.bf16 %v2460_v51  ;;  %v2425_v34 = vpop.permute.xlu0 %2424  ;;  %v2435_v52 = vpop.permute.xlu2 %2434 }
 0x537   :  { %v2922_v48 = vunpack.c.l.b16 %v2658_v3  ;;  %v2923_v5 = vunpack.c.l.b16 %v2659_v6  ;;  %v2487_v13 = vsel %vm2446_vm3, %v2425_v34, 0  ;;  %v2502_v14 = vsel %vm2446_vm3, %v2435_v52, 0 }
 0x538   :  { %v2580_v45 = vmul.f32 %v9022_v44, %v2531_v18  ;;  %v2581_v9 = vmul.f32 %v9022_v44, %v2532_v16  ;;  %4461 = vmatmul.bf16.vlgmr.msrb.gmra.mxu1 %v5545_v28  ;;  %v2549_v46 = vunpack.c.l.bf16 %v2487_v13  ;;  %v2559_v29 = vunpack.c.l.bf16 %v2502_v14 }
 0x539   :  { %4969 = vmatpush.bf16.msra.mxu1 %v8792_v24  ;;  %v2550_v24 = vunpack.c.h.bf16 %v2487_v13  ;;  %v2560_v11 = vunpack.c.h.bf16 %v2502_v14  ;;  %v2938_v57 = vpack.c.b16 %v2897_v47, %v2896_v1  ;;  %v2951_v55 = vpack.c.b16 %v2923_v5, %v2922_v48  ;;  %v9105_v5 = vpop.f32.mrf.mxu2 }
 0x53a   :  { %v2628_v25 = vpack.c.bf16 %v2580_v45, %v2580_v45  ;;  %v2629_v49 = vpack.c.bf16 %v2581_v9, %v2581_v9  ;;  %v2598_v4 = vmul.f32 %v9022_v44, %v2549_v46  ;;  %v2608_v23 = vmul.f32 %v9022_v44, %v2559_v29  ;;  %v6425_v29 = vld [vmem:[#allocation2 + $0xb8] sm:$0xf0] }
 0x53b   :  { %v2599_v50 = vmul.f32 %v9022_v44, %v2550_v24  ;;  %v2609_v17 = vmul.f32 %v9022_v44, %v2560_v11  ;;  %5099 = vmatpush.bf16.msra.mxu2 %v2938_v57  ;;  %5360 = vmatpush.bf16.msra.mxu0 %v2951_v55  ;;  %v2937_v43 = vpack.c.b16 %v2895_v12, %v9072_v41  ;;  %v6426_v12 = vld [vmem:[#allocation2 + $0xc0] sm:$0xf0]  ;;  %v5620_v24 = vld [vmem:[#allocation2 + $0x98] sm:$0xf]  ;;  %v9107_v11 = vpop.f32.mrf.mxu3 }
 0x53c   :  { %v2892_v20 = vunpack.c.l.b16 %v2628_v25  ;;  %v2646_v28 = vpack.c.bf16 %v2598_v4, %v2598_v4  ;;  %v2405_v40 = vpop.permute.xlu1 %2404  ;;  %4595 = vmatmul.bf16.gmra.mxu2 %v5585_v31  ;;  %v2893_v39 = vunpack.c.l.b16 %v2629_v49  ;;  %v2656_v56 = vpack.c.bf16 %v2608_v23, %v2608_v23  ;;  %v5628_v31 = vld [vmem:[#allocation2 + $0xa0] sm:$0xf]  ;;  %9764 = vst [vmem:[#allocation14_spill] sm:$0xff] %v9107_v11 }
 0x53d   :  { %4970 = vmatpush.bf16.msra.mxu1 %v8738_v63  ;;  %v2647_v8 = vpack.c.bf16 %v2599_v50, %v2599_v50  ;;  %v2657_v62 = vpack.c.bf16 %v2609_v17, %v2609_v17  ;;  %v2457_v63 = vsel %vm2446_vm3, %v2405_v40, 0  ;;  %v5625_v1 = vor.u32 %v6421_v35, %v5622_v37  ;;  %v9111_v50 = vpop.f32.mrf.mxu0  ;;  %v6430_v37 = vld [vmem:[#allocation2 + $0xe4] sm:$0xf] }
 0x53e   :  { %v2910_v7 = vunpack.c.l.b16 %v2646_v28  ;;  %v2529_v32 = vunpack.c.l.bf16 %v2457_v63  ;;  %v2530_v27 = vunpack.c.h.bf16 %v2457_v63  ;;  %v2423_v2 = vpop.permute.xlu0 %2422  ;;  %v2920_v61 = vunpack.c.l.b16 %v2656_v56  ;;  %v9116_v56 = vpop.f32.mrf.mxu1 }
 0x53f   :  { %v2911_v22 = vunpack.c.l.b16 %v2647_v8  ;;  %v2921_v10 = vunpack.c.l.b16 %v2657_v62  ;;  %v2484_v19 = vsel %vm2446_vm3, %v2423_v2, 0  ;;  %5100 = vmatpush.bf16.msra.mxu2 %v2937_v43  ;;  %v2936_v3 = vpack.c.b16 %v2893_v39, %v2892_v20  ;;  %4729 = vmatmul.bf16.gmra.mxu3 %v5625_v1 }
 0x540   :  { %v2578_v41 = vmul.f32 %v9022_v44, %v2529_v32  ;;  %v2579_v53 = vmul.f32 %v9022_v44, %v2530_v27  ;;  %v2548_v58 = vunpack.c.h.bf16 %v2484_v19  ;;  %v5581_v52 = vor.u32 %v6411_v59, %v5578_v26 }
 0x541   :  { %4971 = vmatpush.bf16.msra.mxu1 %v8823_v21  ;;  %v2547_v21 = vunpack.c.l.bf16 %v2484_v19  ;;  %v2945_v6 = vpack.c.b16 %v2911_v22, %v2910_v7  ;;  %v2950_v51 = vpack.c.b16 %v2921_v10, %v2920_v61  ;;  %v5629_v48 = vor.u32 %v6426_v12, %v5628_v31  ;;  %v5658_v61 = vld [vmem:[#allocation2 + $0x104] sm:$0xf0]  ;;  %v9124_v59 = vpop.f32.mrf.mxu2  ;;  %v6435_v12 = vld [vmem:[#allocation2 + $0x108] sm:$0xf0] }
 0x542   :  { %v2626_v47 = vpack.c.bf16 %v2578_v41, %v2578_v41  ;;  %v2627_v18 = vpack.c.bf16 %v2579_v53, %v2579_v53  ;;  %v2597_v34 = vmul.f32 %v9022_v44, %v2548_v58  ;;  %v5621_v20 = vor.u32 %v6425_v29, %v5620_v24  ;;  %v5664_v31 = vld [vmem:[#allocation2 + $0xe8] sm:$0xf] }
 0x543   :  { %v2596_v16 = vmul.f32 %v9022_v44, %v2547_v21  ;;  %5101 = vmatpush.bf16.msra.mxu2 %v2936_v3  ;;  %5229 = vmatpush.bf16.msra.mxu3 %v2945_v6  ;;  %v9121_v10 = vpop.f32.mrf.mxu3 }
 0x544   :  { %v2890_v13 = vunpack.c.l.b16 %v2626_v47  ;;  %v2891_v14 = vunpack.c.l.b16 %v2627_v18  ;;  %v2645_v9 = vpack.c.bf16 %v2597_v34, %v2597_v34  ;;  %5361 = vmatpush.bf16.msra.mxu0 %v2950_v51  ;;  %v2403_v46 = vpop.permute.xlu1 %2402  ;;  %9765 = vst [vmem:[#allocation15_spill] sm:$0xff] %v9121_v10  ;;  %v5661_v51 = vor.u32 %v6430_v37, %v5658_v61  ;;  %v6420_v34 = vld [vmem:[#allocation2 + $0x94] sm:$0xf]  ;;  %v6498_v10 = vld [vmem:[#allocation2 + $0x300] sm:$0xf0] }
 0x545   :  { %4972 = vmatpush.bf16.msra.mxu1 %v8819_v54  ;;  %v2644_v45 = vpack.c.bf16 %v2596_v16, %v2596_v16  ;;  %v2454_v57 = vsel %vm2446_vm3, %v2403_v46, 0  ;;  %4858 = vmatmul.bf16.gmra.mxu0 %v5629_v48  ;;  %v9127_v26 = vpop.f32.mrf.mxu0  ;;  %v5665_v48 = vor.u32 %v6435_v12, %v5664_v31  ;;  %v6439_v31 = vld [vmem:[#allocation2 + $0x12c] sm:$0xf]  ;;  %v5694_v12 = vld [vmem:[#allocation2 + $0x14c] sm:$0xf0] }
 0x546   :  { %v2909_v55 = vunpack.c.l.b16 %v2645_v9  ;;  %v2527_v25 = vunpack.c.l.bf16 %v2454_v57  ;;  %v2528_v49 = vunpack.c.h.bf16 %v2454_v57  ;;  %v2421_v4 = vpop.permute.xlu0 %2420  ;;  %v2935_v17 = vpack.c.b16 %v2891_v14, %v2890_v13  ;;  %v9135_v24 = vpop.f32.mrf.mxu1 }
 0x547   :  { %v2908_v54 = vunpack.c.l.b16 %v2644_v45  ;;  %v2481_v23 = vsel %vm2446_vm3, %v2421_v4, 0  ;;  %v6434_v4 = vld [vmem:[#allocation2 + $0x100] sm:$0xf0] }
 0x548   :  { %v2576_v28 = vmul.f32 %v9022_v44, %v2527_v25  ;;  %v2577_v8 = vmul.f32 %v9022_v44, %v2528_v49  ;;  %4466 = vmatmul.bf16.gmra.mxu1 %v5581_v52  ;;  %v2545_v40 = vunpack.c.l.bf16 %v2481_v23  ;;  %v2546_v43 = vunpack.c.h.bf16 %v2481_v23  ;;  %5102 = vmatpush.bf16.msra.mxu2 %v2935_v17  ;;  %v5614_v52 = vld [vmem:[#allocation2 + $0xb4] sm:$0xf0]  ;;  %v5656_v49 = vld [vmem:[#allocation2 + $0xe0] sm:$0xf] }
 0x549   :  { %4973 = vmatpush.bf16.msra.mxu1 %v8849_v38  ;;  %v2944_v39 = vpack.c.b16 %v2909_v55, %v2908_v54  ;;  %v5617_v46 = vor.u32 %v6420_v34, %v5614_v52 }
 0x54a   :  { %v2624_v38 = vpack.c.bf16 %v2576_v28, %v2576_v28  ;;  %v2625_v62 = vpack.c.bf16 %v2577_v8, %v2577_v8  ;;  %v2594_v63 = vmul.f32 %v9022_v44, %v2545_v40  ;;  %v2595_v7 = vmul.f32 %v9022_v44, %v2546_v43 }
 0x54b   :  { %5230 = vmatpush.bf16.msra.mxu3 %v2944_v39  ;;  %v9137_v23 = vpop.f32.mrf.mxu3 }
 0x54c   :  { %v2888_v22 = vunpack.c.l.b16 %v2624_v38  ;;  %v2889_v32 = vunpack.c.l.b16 %v2625_v62  ;;  %v2642_v27 = vpack.c.bf16 %v2594_v63, %v2594_v63  ;;  %v2643_v2 = vpack.c.bf16 %v2595_v7, %v2595_v7  ;;  %v2401_v35 = vpop.permute.xlu1 %2400  ;;  %4600 = vmatmul.bf16.gmra.mxu2 %v5621_v20  ;;  %9766 = vst [vmem:[#allocation6_spill] sm:$0xff] %v9137_v23  ;;  %v9143_v63 = vpop.f32.mrf.mxu2 }
 0x54d   :  { %4974 = vmatpush.bf16.msra.mxu1 %v8878_v33  ;;  %v2451_v19 = vsel %vm2446_vm3, %v2401_v35, 0  ;;  %v9140_v43 = vpop.f32.mrf.mxu0  ;;  %v5657_v62 = vor.u32 %v6434_v4, %v5656_v49 }
 0x54e   :  { %v2906_v41 = vunpack.c.l.b16 %v2642_v27  ;;  %v2907_v53 = vunpack.c.l.b16 %v2643_v2  ;;  %v2525_v33 = vunpack.c.l.bf16 %v2451_v19  ;;  %v2526_v21 = vunpack.c.h.bf16 %v2451_v19  ;;  %v2419_v58 = vpop.permute.xlu0 %2418 }
 0x54f   :  { %v2478_v3 = vsel %vm2446_vm3, %v2419_v58, 0  ;;  %v2934_v6 = vpack.c.b16 %v2889_v32, %v2888_v22  ;;  %4734 = vmatmul.bf16.gmra.mxu3 %v5661_v51  ;;  %v9152_v51 = vpop.f32.mrf.mxu1 }
 0x550   :  { %v2574_v1 = vmul.f32 %v9022_v44, %v2525_v33  ;;  %v2575_v47 = vmul.f32 %v9022_v44, %v2526_v21  ;;  %v2543_v18 = vunpack.c.l.bf16 %v2478_v3  ;;  %v2544_v16 = vunpack.c.h.bf16 %v2478_v3 }
 0x551   :  { %4975 = vmatpush.bf16.msra.mxu1 %v8891_v60  ;;  %5103 = vmatpush.bf16.msra.mxu2 %v2934_v6  ;;  %v2943_v60 = vpack.c.b16 %v2907_v53, %v2906_v41 }
 0x552   :  { %v2622_v13 = vpack.c.bf16 %v2574_v1, %v2574_v1  ;;  %v2623_v14 = vpack.c.bf16 %v2575_v47, %v2575_v47  ;;  %v2592_v45 = vmul.f32 %v9022_v44, %v2543_v18  ;;  %v2593_v9 = vmul.f32 %v9022_v44, %v2544_v16 }
 0x553   :  { %5231 = vmatpush.bf16.msra.mxu3 %v2943_v60  ;;  %v9149_v3 = vpop.f32.mrf.mxu3  ;;  %v5700_v60 = vld [vmem:[#allocation2 + $0x130] sm:$0xf] }
 0x554   :  { %v2886_v29 = vunpack.c.l.b16 %v2622_v13  ;;  %v2887_v57 = vunpack.c.l.b16 %v2623_v14  ;;  %v2640_v54 = vpack.c.bf16 %v2592_v45, %v2592_v45  ;;  %v2641_v55 = vpack.c.bf16 %v2593_v9, %v2593_v9  ;;  %v2399_v25 = vpop.permute.xlu1 %2398  ;;  %9767 = vst [vmem:[#allocation9_spill] sm:$0xff] %v9149_v3  ;;  %v9159_v49 = vpop.f32.mrf.mxu2 }
 0x555   :  { %4976 = vmatpush.bf16.msra.mxu1 %v8923_v15  ;;  %v2448_v17 = vsel %vm2446_vm3, %v2399_v25, 0  ;;  %4863 = vmatmul.bf16.gmra.mxu0 %v5665_v48  ;;  %v9154_v52 = vpop.f32.mrf.mxu0  ;;  %v6444_v48 = vld [vmem:[#allocation2 + $0x150] sm:$0xf0]  ;;  %v5697_v45 = vor.u32 %v6439_v31, %v5694_v12 }
 0x556   :  { %v2904_v20 = vunpack.c.l.b16 %v2640_v54  ;;  %v2905_v28 = vunpack.c.l.b16 %v2641_v55  ;;  %v2523_v15 = vunpack.c.l.bf16 %v2448_v17  ;;  %v2524_v8 = vunpack.c.h.bf16 %v2448_v17  ;;  %v2417_v40 = vpop.permute.xlu0 %2416  ;;  %v6429_v54 = vld [vmem:[#allocation2 + $0xdc] sm:$0xf]  ;;  %v5650_v55 = vld [vmem:[#allocation2 + $0xfc] sm:$0xf0] }
 0x557   :  { %v2475_v39 = vsel %vm2446_vm3, %v2417_v40, 0  ;;  %v2933_v38 = vpack.c.b16 %v2887_v57, %v2886_v29  ;;  %v5701_v4 = vor.u32 %v6444_v48, %v5700_v60  ;;  %v5736_v48 = vld [vmem:[#allocation2 + $0x178] sm:$0xf] }
 0x558   :  { %v2572_v7 = vmul.f32 %v9022_v44, %v2523_v15  ;;  %v2573_v22 = vmul.f32 %v9022_v44, %v2524_v8  ;;  %4471 = vmatmul.bf16.gmra.mxu1 %v5617_v46  ;;  %v2541_v32 = vunpack.c.l.bf16 %v2475_v39  ;;  %v2542_v27 = vunpack.c.h.bf16 %v2475_v39 }
 0x559   :  { %5104 = vmatpush.bf16.msra.mxu2 %v2933_v38  ;;  %v2942_v2 = vpack.c.b16 %v2905_v28, %v2904_v20  ;;  %v5653_v8 = vor.u32 %v6429_v54, %v5650_v55 }
 0x55a   :  { %v2620_v35 = vpack.c.bf16 %v2572_v7, %v2572_v7  ;;  %v2621_v37 = vpack.c.bf16 %v2573_v22, %v2573_v22  ;;  %v2590_v61 = vmul.f32 %v9022_v44, %v2541_v32  ;;  %v2591_v19 = vmul.f32 %v9022_v44, %v2542_v27  ;;  %v5692_v7 = vld [vmem:[#allocation2 + $0x128] sm:$0xf]  ;;  %v6443_v22 = vld [vmem:[#allocation2 + $0x148] sm:$0xf0] }
 0x55b   :  { %5232 = vmatpush.bf16.msra.mxu3 %v2942_v2  ;;  %v9163_v32 = vpop.f32.mrf.mxu3 }
 0x55c   :  { %v2884_v41 = vunpack.c.l.b16 %v2620_v35  ;;  %v2885_v53 = vunpack.c.l.b16 %v2621_v37  ;;  %v2638_v33 = vpack.c.bf16 %v2590_v61, %v2590_v61  ;;  %v2639_v21 = vpack.c.bf16 %v2591_v19, %v2591_v19  ;;  %v2433_v58 = vpop.permute.xlu1 %2432  ;;  %4605 = vmatmul.bf16.gmra.mxu2 %v5657_v62  ;;  %9768 = vst [vmem:[#allocation18_spill] sm:$0xff] %v9163_v32 }
 0x55d   :  { %v2499_v6 = vsel %vm2446_vm3, %v2433_v58, 0  ;;  %v9165_v61 = vpop.f32.mrf.mxu0  ;;  %v5693_v58 = vor.u32 %v6443_v22, %v5692_v7 }
 0x55e   :  { %v2902_v1 = vunpack.c.l.b16 %v2638_v33  ;;  %v2903_v47 = vunpack.c.l.b16 %v2639_v21  ;;  %v2557_v18 = vunpack.c.l.bf16 %v2499_v6  ;;  %v2558_v16 = vunpack.c.h.bf16 %v2499_v6  ;;  %v2415_v34 = vpop.permute.xlu0 %2414  ;;  %v9172_v6 = vpop.f32.mrf.mxu2 }
 0x55f   :  { %v2472_v13 = vsel %vm2446_vm3, %v2415_v34, 0  ;;  %v2932_v14 = vpack.c.b16 %v2885_v53, %v2884_v41  ;;  %4739 = vmatmul.bf16.gmra.mxu3 %v5697_v45  ;;  %v9168_v41 = vpop.f32.mrf.mxu1 }
 0x560   :  { %v2606_v9 = vmul.f32 %v9022_v44, %v2557_v18  ;;  %v2607_v46 = vmul.f32 %v9022_v44, %v2558_v16  ;;  %v2539_v29 = vunpack.c.l.bf16 %v2472_v13  ;;  %v2540_v57 = vunpack.c.h.bf16 %v2472_v13  ;;  %v6448_v18 = vld [vmem:[#allocation2 + $0x174] sm:$0xf]  ;;  %v5730_v16 = vld [vmem:[#allocation2 + $0x194] sm:$0xf0]  ;;  %v6453_v13 = vld [vmem:[#allocation2 + $0x198] sm:$0xf0] }
 0x561   :  { %5105 = vmatpush.bf16.msra.mxu2 %v2932_v14  ;;  %v2941_v25 = vpack.c.b16 %v2903_v47, %v2902_v1  ;;  %v5737_v54 = vor.u32 %v6453_v13, %v5736_v48 }
 0x562   :  { %v2654_v17 = vpack.c.bf16 %v2606_v9, %v2606_v9  ;;  %v2655_v20 = vpack.c.bf16 %v2607_v46, %v2607_v46  ;;  %v2588_v28 = vmul.f32 %v9022_v44, %v2539_v29  ;;  %v2589_v15 = vmul.f32 %v9022_v44, %v2540_v57  ;;  %v6438_v29 = vld [vmem:[#allocation2 + $0x124] sm:$0xf] }
 0x563   :  { %5233 = vmatpush.bf16.msra.mxu3 %v2941_v25  ;;  %v5733_v9 = vor.u32 %v6448_v18, %v5730_v16  ;;  %v9176_v46 = vpop.f32.mrf.mxu3  ;;  %v5728_v25 = vld [vmem:[#allocation2 + $0x170] sm:$0xf]  ;;  %v6466_v18 = vld [vmem:[#allocation2 + $0x204] sm:$0xf]  ;;  %v5802_v16 = vld [vmem:[#allocation2 + $0x224] sm:$0xf0] }
 0x564   :  { %v2918_v40 = vunpack.c.l.b16 %v2654_v17  ;;  %v2919_v39 = vunpack.c.l.b16 %v2655_v20  ;;  %v2636_v38 = vpack.c.bf16 %v2588_v28, %v2588_v28  ;;  %v2637_v62 = vpack.c.bf16 %v2589_v15, %v2589_v15  ;;  %9769 = vst [vmem:[#allocation12_spill] sm:$0xff] %v9176_v46 }
 0x565   :  { %4868 = vmatmul.bf16.gmra.mxu0 %v5701_v4  ;;  %v9174_v14 = vpop.f32.mrf.mxu0  ;;  %v6452_v4 = vld [vmem:[#allocation2 + $0x190] sm:$0xf0] }
 0x566   :  { %v2900_v27 = vunpack.c.l.b16 %v2636_v38  ;;  %v2901_v2 = vunpack.c.l.b16 %v2637_v62  ;;  %v2431_v35 = vpop.permute.xlu0 %2430  ;;  %v2949_v37 = vpack.c.b16 %v2919_v39, %v2918_v40  ;;  %v9180_v17 = vpop.f32.mrf.mxu2  ;;  %v5729_v28 = vor.u32 %v6452_v4, %v5728_v25  ;;  %v6457_v40 = vld [vmem:[#allocation2 + $0x1bc] sm:$0xf]  ;;  %v5766_v39 = vld [vmem:[#allocation2 + $0x1dc] sm:$0xf0]  ;;  %v6462_v62 = vld [vmem:[#allocation2 + $0x1e0] sm:$0xf0] }
 0x567   :  { %v2496_v19 = vsel %vm2446_vm3, %v2431_v35, 0  ;;  %v9178_v57 = vpop.f32.mrf.mxu1  ;;  %v5772_v38 = vld [vmem:[#allocation2 + $0x1c0] sm:$0xf]  ;;  %v6447_v35 = vld [vmem:[#allocation2 + $0x16c] sm:$0xf] }
 0x568   :  { %4476 = vmatmul.bf16.gmra.mxu1 %v5653_v8  ;;  %v2555_v53 = vunpack.c.l.bf16 %v2496_v19  ;;  %v2556_v33 = vunpack.c.h.bf16 %v2496_v19  ;;  %5362 = vmatpush.bf16.msra.mxu0 %v2949_v37  ;;  %v2940_v21 = vpack.c.b16 %v2901_v2, %v2900_v27  ;;  %v5769_v27 = vor.u32 %v6457_v40, %v5766_v39  ;;  %v5722_v37 = vld [vmem:[#allocation2 + $0x18c] sm:$0xf0]  ;;  %v5800_v4 = vld [vmem:[#allocation2 + $0x200] sm:$0xf] }
 0x569   :  { %v5773_v19 = vor.u32 %v6462_v62, %v5772_v38 }
 0x56a   :  { %v2604_v31 = vmul.f32 %v9022_v44, %v2555_v53  ;;  %v2605_v12 = vmul.f32 %v9022_v44, %v2556_v33  ;;  %5234 = vmatpush.bf16.msra.mxu3 %v2940_v21  ;;  %v5686_v44 = vld [vmem:[#allocation2 + $0x144] sm:$0xf0]  ;;  %v5725_v53 = vor.u32 %v6447_v35, %v5722_v37  ;;  %v5764_v21 = vld [vmem:[#allocation2 + $0x1b8] sm:$0xf]  ;;  %v6475_v35 = vld [vmem:[#allocation2 + $0x24c] sm:$0xf] }
 0x56b   :  { %v5689_v55 = vor.u32 %v6438_v29, %v5686_v44  ;;  %v9184_v15 = vpop.f32.mrf.mxu3  ;;  %v6456_v29 = vld [vmem:[#allocation2 + $0x1b4] sm:$0xf]  ;;  %v5758_v44 = vld [vmem:[#allocation2 + $0x1d4] sm:$0xf0]  ;;  %v5838_v37 = vld [vmem:[#allocation2 + $0x26c] sm:$0xf0] }
 0x56c   :  { %v2652_v1 = vpack.c.bf16 %v2604_v31, %v2604_v31  ;;  %v2653_v47 = vpack.c.bf16 %v2605_v12, %v2605_v12  ;;  %4610 = vmatmul.bf16.gmra.mxu2 %v5693_v58  ;;  %9770 = vst [vmem:[#allocation20_spill] sm:$0xff] %v9184_v15  ;;  %v6461_v58 = vld [vmem:[#allocation2 + $0x1d8] sm:$0xf0]  ;;  %v5761_v25 = vor.u32 %v6456_v29, %v5758_v44  ;;  %v5836_v29 = vld [vmem:[#allocation2 + $0x248] sm:$0xf] }
 0x56d   :  { %v9182_v20 = vpop.f32.mrf.mxu0  ;;  %v5765_v12 = vor.u32 %v6461_v58, %v5764_v21  ;;  %v5841_v21 = vor.u32 %v6475_v35, %v5838_v37  ;;  %v6479_v44 = vld [vmem:[#allocation2 + $0x268] sm:$0xf0]  ;;  %v6484_v35 = vld [vmem:[#allocation2 + $0x294] sm:$0xf]  ;;  %v5874_v37 = vld [vmem:[#allocation2 + $0x2b4] sm:$0xf0] }
 0x56e   :  { %v2916_v34 = vunpack.c.l.b16 %v2652_v1  ;;  %v2917_v60 = vunpack.c.l.b16 %v2653_v47  ;;  %v9188_v7 = vpop.f32.mrf.mxu2 }
 0x56f   :  { %4744 = vmatmul.bf16.gmra.mxu3 %v5733_v9  ;;  %v9186_v8 = vpop.f32.mrf.mxu1 }
 0x570   :  { %v2948_v45 = vpack.c.b16 %v2917_v60, %v2916_v34  ;;  %v5808_v34 = vld [vmem:[#allocation2 + $0x208] sm:$0xf]  ;;  %v6471_v60 = vld [vmem:[#allocation2 + $0x228] sm:$0xf0] }
 0x572   :  { %5363 = vmatpush.bf16.msra.mxu0 %v2948_v45  ;;  %v5805_v45 = vor.u32 %v6466_v18, %v5802_v16  ;;  %v5794_v18 = vld [vmem:[#allocation2 + $0x21c] sm:$0xf0] }
 0x573   :  { %v9192_v2 = vpop.f32.mrf.mxu3 }
 0x574   :  { %9771 = vst [vmem:[#allocation21_spill] sm:$0xff] %v9192_v2 }
 0x575   :  { %4873 = vmatmul.bf16.gmra.mxu0 %v5737_v54  ;;  %v9190_v22 = vpop.f32.mrf.mxu0  ;;  %v5809_v54 = vor.u32 %v6471_v60, %v5808_v34 }
 0x576   :  { %v9200_v47 = vpop.f32.mrf.mxu2 }
 0x577   :  { %v9194_v33 = vpop.f32.mrf.mxu1 }
 0x578   :  { %4481 = vmatmul.bf16.gmra.mxu1 %v5689_v55 }
 0x57b   :  { %v9198_v1 = vpop.f32.mrf.mxu3 }
 0x57c   :  { %4615 = vmatmul.bf16.gmra.mxu2 %v5729_v28  ;;  %9772 = vst [vmem:[#allocation5_spill] sm:$0xff] %v9198_v1  ;;  %v6470_v28 = vld [vmem:[#allocation2 + $0x220] sm:$0xf0] }
 0x57d   :  { %v9196_v31 = vpop.f32.mrf.mxu0  ;;  %v5801_v39 = vor.u32 %v6470_v28, %v5800_v4 }
 0x57e   :  { %v9208_v55 = vpop.f32.mrf.mxu2 }
 0x57f   :  { %4749 = vmatmul.bf16.gmra.mxu3 %v5769_v27  ;;  %v9202_v48 = vpop.f32.mrf.mxu1 }
 0x583   :  { %v9206_v9 = vpop.f32.mrf.mxu3 }
 0x584   :  { %9773 = vst [vmem:[#allocation22_spill] sm:$0xff] %v9206_v9  ;;  %v5877_v9 = vor.u32 %v6484_v35, %v5874_v37 }
 0x585   :  { %4878 = vmatmul.bf16.gmra.mxu0 %v5773_v19  ;;  %v9204_v13 = vpop.f32.mrf.mxu0  ;;  %v5844_v19 = vld [vmem:[#allocation2 + $0x250] sm:$0xf] }
 0x586   :  { %v9216_v27 = vpop.f32.mrf.mxu2 }
 0x587   :  { %v9214_v62 = vpop.f32.mrf.mxu1 }
 0x588   :  { %4486 = vmatmul.bf16.gmra.mxu1 %v5725_v53  ;;  %v6480_v53 = vld [vmem:[#allocation2 + $0x270] sm:$0xf0] }
 0x589   :  { %v5845_v34 = vor.u32 %v6480_v53, %v5844_v19  ;;  %v6489_v19 = vld [vmem:[#allocation2 + $0x2b8] sm:$0xf0] }
 0x58b   :  { %v9212_v38 = vpop.f32.mrf.mxu3 }
 0x58c   :  { %4620 = vmatmul.bf16.gmra.mxu2 %v5765_v12  ;;  %9774 = vst [vmem:[#allocation16_spill] sm:$0xff] %v9212_v38  ;;  %v6465_v12 = vld [vmem:[#allocation2 + $0x1fc] sm:$0xf]  ;;  %v5880_v38 = vld [vmem:[#allocation2 + $0x298] sm:$0xf] }
 0x58d   :  { %v9210_v40 = vpop.f32.mrf.mxu0 }
 0x58f   :  { %4754 = vmatmul.bf16.gmra.mxu3 %v5805_v45  ;;  %v9218_v60 = vpop.f32.mrf.mxu1  ;;  %v5797_v45 = vor.u32 %v6465_v12, %v5794_v18  ;;  %v6474_v12 = vld [vmem:[#allocation2 + $0x244] sm:$0xf]  ;;  %v5881_v18 = vor.u32 %v6489_v19, %v5880_v38  ;;  %v6493_v19 = vld [vmem:[#allocation2 + $0x2dc] sm:$0xf] }
 0x593   :  { %v4720_v58 = vpop.f32.mrf.mxu3 }
 0x595   :  { %4883 = vmatmul.bf16.gmra.mxu0 %v5809_v54  ;;  %v4849_v16 = vpop.f32.mrf.mxu0  ;;  %v9220_v54 = vpop.f32.mrf.mxu2 }
 0x598   :  { %4491 = vmatmul.bf16.gmra.mxu1 %v5761_v25  ;;  %v5837_v25 = vor.u32 %v6479_v44, %v5836_v29  ;;  %v5872_v29 = vld [vmem:[#allocation2 + $0x290] sm:$0xf]  ;;  %v6488_v44 = vld [vmem:[#allocation2 + $0x2b0] sm:$0xf0] }
 0x599   :  { %v5873_v32 = vor.u32 %v6488_v44, %v5872_v29  ;;  %v6497_v44 = vld [vmem:[#allocation2 + $0x2f8] sm:$0xf0] }
 0x59b   :  { %v4722_v4 = vpop.f32.mrf.mxu3 }
 0x59c   :  { %4625 = vmatmul.bf16.gmra.mxu2 %v5801_v39  ;;  %v9222_v39 = vpop.f32.mrf.mxu1 }
 0x59d   :  { %v4851_v28 = vpop.f32.mrf.mxu0 }
 0x59f   :  { %4759 = vmatmul.bf16.gmra.mxu3 %v5841_v21  ;;  %v5830_v21 = vld [vmem:[#allocation2 + $0x264] sm:$0xf0] }
 0x5a0   :  { %v5833_v2 = vor.u32 %v6474_v12, %v5830_v21  ;;  %v5910_v12 = vld [vmem:[#allocation2 + $0x2fc] sm:$0xf0] }
 0x5a1   :  { %v5916_v21 = vld [vmem:[#allocation2 + $0x2e0] sm:$0xf] }
 0x5a5   :  { %4888 = vmatmul.bf16.gmra.mxu0 %v5845_v34 }
 0x5a6   :  { %v4725_v34 = vpop.f32.mrf.mxu3 }
 0x5a8   :  { %4496 = vmatmul.bf16.gmra.mxu1 %v5797_v45 }
 0x5aa   :  { %v4854_v1 = vpop.f32.mrf.mxu0 }
 0x5ac   :  { %4630 = vmatmul.bf16.gmra.mxu2 %v5837_v25 }
 0x5ae   :  { %v4727_v37 = vpop.f32.mrf.mxu3 }
 0x5af   :  { %v4591_v53 = vpop.f32.mrf.mxu2  ;;  %4764 = vmatmul.bf16.gmra.mxu3 %v5877_v9 }
 0x5b2   :  { %v4856_v23 = vpop.f32.mrf.mxu0 }
 0x5b5   :  { %v4462_v45 = vpop.f32.mrf.mxu1  ;;  %4893 = vmatmul.bf16.gmra.mxu0 %v5881_v18 }
 0x5b6   :  { %v4463_v25 = vadd.f32 %v4462_v45, %v9095_v36  ;;  %v5913_v36 = vor.u32 %v6493_v19, %v5910_v12  ;;  %v6483_v45 = vld [vmem:[#allocation2 + $0x28c] sm:$0xf] }
 0x5b7   :  { %v4593_v15 = vpop.f32.mrf.mxu2 }
 0x5b8   :  { %v4592_v46 = vadd.f32 %v4591_v53, %v4463_v25  ;;  %4501 = vmatmul.bf16.gmra.mxu1 %v5833_v2  ;;  %v5866_v53 = vld [vmem:[#allocation2 + $0x2ac] sm:$0xf0]  ;;  %v5917_v2 = vor.u32 %v6498_v10, %v5916_v21  ;;  %v5952_v21 = vld [vmem:[#allocation2 + $0x328] sm:$0xf] }
 0x5ba   :  { %v4721_v3 = vadd.f32 %v4720_v58, %v4592_v46 }
 0x5bc   :  { %v9225_v35 = vadd.f32 %v4849_v16, %v4721_v3  ;;  %4635 = vmatmul.bf16.gmra.mxu2 %v5873_v32  ;;  %v5869_v3 = vor.u32 %v6483_v45, %v5866_v53  ;;  %v5908_v16 = vld [vmem:[#allocation2 + $0x2d8] sm:$0xf] }
 0x5bd   :  { %v4464_v38 = vpop.f32.mrf.mxu1 }
 0x5be   :  { %9775 = vst [vmem:[#allocation7_spill] sm:$0xff] %v9225_v35  ;;  %v4465_v9 = vadd.f32 %v4464_v38, %v9111_v50 }
 0x5bf   :  { %v4596_v18 = vpop.f32.mrf.mxu2  ;;  %4769 = vmatmul.bf16.gmra.mxu3 %v5913_v36  ;;  %v6507_v36 = vld [vmem:[#allocation2 + $0x348] sm:$0xf0] }
 0x5c0   :  { %v4594_v11 = vadd.f32 %v4593_v15, %v4465_v9  ;;  %v5909_v15 = vor.u32 %v6497_v44, %v5908_v16  ;;  %v5944_v44 = vld [vmem:[#allocation2 + $0x320] sm:$0xf] }
 0x5c2   :  { %v4723_v29 = vadd.f32 %v4722_v4, %v4594_v11  ;;  %v4859_v46 = vpop.f32.mrf.mxu0  ;;  %v4730_v38 = vpop.f32.mrf.mxu3  ;;  %v6502_v4 = vld [vmem:[#allocation2 + $0x324] sm:$0xf] }
 0x5c4   :  { %v9228_v58 = vadd.f32 %v4851_v28, %v4723_v29  ;;  %v5946_v28 = vld [vmem:[#allocation2 + $0x344] sm:$0xf0]  ;;  %v6492_v29 = vld [vmem:[#allocation2 + $0x2d4] sm:$0xf] }
 0x5c5   :  { %v4467_v32 = vpop.f32.mrf.mxu1  ;;  %4898 = vmatmul.bf16.gmra.mxu0 %v5917_v2  ;;  %v5949_v2 = vor.u32 %v6502_v4, %v5946_v28 }
 0x5c6   :  { %v4468_v50 = vadd.f32 %v4467_v32, %v9127_v26 }
 0x5c7   :  { %v4598_v25 = vpop.f32.mrf.mxu2 }
 0x5c8   :  { %v4597_v35 = vadd.f32 %v4596_v18, %v4468_v50  ;;  %4506 = vmatmul.bf16.gmra.mxu1 %v5869_v3  ;;  %v5902_v18 = vld [vmem:[#allocation2 + $0x2f4] sm:$0xf0]  ;;  %v5953_v3 = vor.u32 %v6507_v36, %v5952_v21  ;;  %v6506_v50 = vld [vmem:[#allocation2 + $0x340] sm:$0xf0]  ;;  %v5982_v21 = vld [vmem:[#allocation2 + $0x38c] sm:$0xf0] }
 0x5ca   :  { %v4726_v19 = vadd.f32 %v4725_v34, %v4597_v35  ;;  %v4861_v12 = vpop.f32.mrf.mxu0  ;;  %v4732_v53 = vpop.f32.mrf.mxu3 }
 0x5cc   :  { %v9231_v10 = vadd.f32 %v4854_v1, %v4726_v19  ;;  %4640 = vmatmul.bf16.gmra.mxu2 %v5909_v15  ;;  %v5905_v1 = vor.u32 %v6492_v29, %v5902_v18 }
 0x5cd   :  { %v4469_v11 = vpop.f32.mrf.mxu1 }
 0x5ce   :  { %v4470_v9 = vadd.f32 %v4469_v11, %v9140_v43 }
 0x5cf   :  { %v4601_v45 = vpop.f32.mrf.mxu2  ;;  %4774 = vmatmul.bf16.gmra.mxu3 %v5949_v2  ;;  %v6516_v2 = vld [vmem:[#allocation2 + $0x390] sm:$0xf0] }
 0x5d0   :  { %v4599_v26 = vadd.f32 %v4598_v25, %v4470_v9  ;;  %v5945_v25 = vor.u32 %v6506_v50, %v5944_v44 }
 0x5d2   :  { %v4728_v32 = vadd.f32 %v4727_v37, %v4599_v26  ;;  %v4864_v34 = vpop.f32.mrf.mxu0  ;;  %v4735_v19 = vpop.f32.mrf.mxu3  ;;  %v6511_v37 = vld [vmem:[#allocation2 + $0x36c] sm:$0xf]  ;;  %v5988_v26 = vld [vmem:[#allocation2 + $0x370] sm:$0xf] }
 0x5d4   :  { %v9234_v35 = vadd.f32 %v4856_v23, %v4728_v32  ;;  %v6501_v32 = vld [vmem:[#allocation2 + $0x31c] sm:$0xf] }
 0x5d5   :  { %v4472_v16 = vpop.f32.mrf.mxu1  ;;  %4903 = vmatmul.bf16.gmra.mxu0 %v5953_v3  ;;  %v5985_v3 = vor.u32 %v6511_v37, %v5982_v21 }
 0x5d6   :  { %v4473_v43 = vadd.f32 %v4472_v16, %v9154_v52 }
 0x5d7   :  { %v4603_v15 = vpop.f32.mrf.mxu2 }
 0x5d8   :  { %v4602_v11 = vadd.f32 %v4601_v45, %v4473_v43  ;;  %4511 = vmatmul.bf16.gmra.mxu1 %v5905_v1  ;;  %v5938_v45 = vld [vmem:[#allocation2 + $0x33c] sm:$0xf0]  ;;  %v5989_v1 = vor.u32 %v6516_v2, %v5988_v26  ;;  %v5980_v43 = vld [vmem:[#allocation2 + $0x368] sm:$0xf]  ;;  %v6018_v26 = vld [vmem:[#allocation2 + $0x3d4] sm:$0xf0] }
 0x5da   :  { %v4731_v4 = vadd.f32 %v4730_v38, %v4602_v11  ;;  %v4866_v28 = vpop.f32.mrf.mxu0  ;;  %v4737_v18 = vpop.f32.mrf.mxu3  ;;  %v6515_v11 = vld [vmem:[#allocation2 + $0x388] sm:$0xf0] }
 0x5dc   :  { %v9237_v9 = vadd.f32 %v4859_v46, %v4731_v4  ;;  %4645 = vmatmul.bf16.gmra.mxu2 %v5945_v25  ;;  %v5941_v46 = vor.u32 %v6501_v32, %v5938_v45 }
 0x5dd   :  { %v4474_v23 = vpop.f32.mrf.mxu1 }
 0x5de   :  { %v4475_v36 = vadd.f32 %v4474_v23, %v9165_v61 }
 0x5df   :  { %v4606_v29 = vpop.f32.mrf.mxu2  ;;  %4779 = vmatmul.bf16.gmra.mxu3 %v5985_v3  ;;  %v6525_v3 = vld [vmem:[#allocation2 + $0x3d8] sm:$0xf0] }
 0x5e0   :  { %v4604_v52 = vadd.f32 %v4603_v15, %v4475_v36  ;;  %v5981_v15 = vor.u32 %v6515_v11, %v5980_v43 }
 0x5e2   :  { %v4733_v16 = vadd.f32 %v4732_v53, %v4604_v52  ;;  %v4869_v38 = vpop.f32.mrf.mxu0  ;;  %v4740_v4 = vpop.f32.mrf.mxu3  ;;  %v6520_v53 = vld [vmem:[#allocation2 + $0x3b4] sm:$0xf]  ;;  %v6024_v52 = vld [vmem:[#allocation2 + $0x3b8] sm:$0xf] }
 0x5e4   :  { %v9240_v44 = vadd.f32 %v4861_v12, %v4733_v16  ;;  %v6510_v16 = vld [vmem:[#allocation2 + $0x364] sm:$0xf] }
 0x5e5   :  { %v4477_v50 = vpop.f32.mrf.mxu1  ;;  %4908 = vmatmul.bf16.gmra.mxu0 %v5989_v1  ;;  %v6021_v1 = vor.u32 %v6520_v53, %v6018_v26 }
 0x5e6   :  { %v4478_v61 = vadd.f32 %v4477_v50, %v9174_v14 }
 0x5e7   :  { %v4608_v25 = vpop.f32.mrf.mxu2 }
 0x5e8   :  { %v4607_v23 = vadd.f32 %v4606_v29, %v4478_v61  ;;  %4516 = vmatmul.bf16.gmra.mxu1 %v5941_v46  ;;  %v5974_v29 = vld [vmem:[#allocation2 + $0x384] sm:$0xf0]  ;;  %v6025_v46 = vor.u32 %v6525_v3, %v6024_v52  ;;  %v6016_v61 = vld [vmem:[#allocation2 + $0x3b0] sm:$0xf]  ;;  %v6054_v52 = vld [vmem:[#allocation2 + $0x41c] sm:$0xf0] }
 0x5ea   :  { %v4736_v37 = vadd.f32 %v4735_v19, %v4607_v23  ;;  %v4871_v21 = vpop.f32.mrf.mxu0  ;;  %v4742_v45 = vpop.f32.mrf.mxu3  ;;  %v6524_v23 = vld [vmem:[#allocation2 + $0x3d0] sm:$0xf0] }
 0x5ec   :  { %v9243_v36 = vadd.f32 %v4864_v34, %v4736_v37  ;;  %4650 = vmatmul.bf16.gmra.mxu2 %v5981_v15  ;;  %v5977_v34 = vor.u32 %v6510_v16, %v5974_v29 }
 0x5ed   :  { %v4479_v12 = vpop.f32.mrf.mxu1 }
 0x5ee   :  { %v4480_v2 = vadd.f32 %v4479_v12, %v9182_v20 }
 0x5ef   :  { %v4611_v32 = vpop.f32.mrf.mxu2  ;;  %4784 = vmatmul.bf16.gmra.mxu3 %v6021_v1  ;;  %v6534_v1 = vld [vmem:[#allocation2 + $0x420] sm:$0xf0] }
 0x5f0   :  { %v4609_v14 = vadd.f32 %v4608_v25, %v4480_v2  ;;  %v6017_v25 = vor.u32 %v6524_v23, %v6016_v61 }
 0x5f2   :  { %v4738_v50 = vadd.f32 %v4737_v18, %v4609_v14  ;;  %v4874_v19 = vpop.f32.mrf.mxu0  ;;  %v4745_v37 = vpop.f32.mrf.mxu3  ;;  %v6529_v18 = vld [vmem:[#allocation2 + $0x3fc] sm:$0xf]  ;;  %v6060_v14 = vld [vmem:[#allocation2 + $0x400] sm:$0xf] }
 0x5f4   :  { %v9246_v43 = vadd.f32 %v4866_v28, %v4738_v50  ;;  %v6519_v50 = vld [vmem:[#allocation2 + $0x3ac] sm:$0xf] }
 0x5f5   :  { %v4482_v11 = vpop.f32.mrf.mxu1  ;;  %4913 = vmatmul.bf16.gmra.mxu0 %v6025_v46  ;;  %v6057_v46 = vor.u32 %v6529_v18, %v6054_v52 }
 0x5f6   :  { %v4483_v20 = vadd.f32 %v4482_v11, %v9190_v22 }
 0x5f7   :  { %v4613_v15 = vpop.f32.mrf.mxu2 }
 0x5f8   :  { %v4612_v12 = vadd.f32 %v4611_v32, %v4483_v20  ;;  %4521 = vmatmul.bf16.gmra.mxu1 %v5977_v34  ;;  %v6010_v32 = vld [vmem:[#allocation2 + $0x3cc] sm:$0xf0]  ;;  %v6061_v34 = vor.u32 %v6534_v1, %v6060_v14  ;;  %v6052_v20 = vld [vmem:[#allocation2 + $0x3f8] sm:$0xf]  ;;  %v6090_v14 = vld [vmem:[#allocation2 + $0x464] sm:$0xf0] }
 0x5fa   :  { %v4741_v53 = vadd.f32 %v4740_v4, %v4612_v12  ;;  %v4876_v26 = vpop.f32.mrf.mxu0  ;;  %v4747_v29 = vpop.f32.mrf.mxu3  ;;  %v6533_v12 = vld [vmem:[#allocation2 + $0x418] sm:$0xf0] }
 0x5fc   :  { %v9249_v2 = vadd.f32 %v4869_v38, %v4741_v53  ;;  %4655 = vmatmul.bf16.gmra.mxu2 %v6017_v25  ;;  %v6013_v38 = vor.u32 %v6519_v50, %v6010_v32 }
 0x5fd   :  { %v4484_v28 = vpop.f32.mrf.mxu1 }
 0x5fe   :  { %v4485_v3 = vadd.f32 %v4484_v28, %v9196_v31 }
 0x5ff   :  { %v4616_v16 = vpop.f32.mrf.mxu2  ;;  %4789 = vmatmul.bf16.gmra.mxu3 %v6057_v46  ;;  %v6543_v46 = vld [vmem:[#allocation2 + $0x468] sm:$0xf0] }
 0x600   :  { %v4614_v22 = vadd.f32 %v4613_v15, %v4485_v3  ;;  %v6053_v15 = vor.u32 %v6533_v12, %v6052_v20 }
 0x602   :  { %v4743_v11 = vadd.f32 %v4742_v45, %v4614_v22  ;;  %v4879_v4 = vpop.f32.mrf.mxu0  ;;  %v4750_v53 = vpop.f32.mrf.mxu3  ;;  %v6538_v45 = vld [vmem:[#allocation2 + $0x444] sm:$0xf]  ;;  %v6096_v22 = vld [vmem:[#allocation2 + $0x448] sm:$0xf] }
 0x604   :  { %v9252_v61 = vadd.f32 %v4871_v21, %v4743_v11  ;;  %v6528_v11 = vld [vmem:[#allocation2 + $0x3f4] sm:$0xf] }
 0x605   :  { %v4487_v23 = vpop.f32.mrf.mxu1  ;;  %4918 = vmatmul.bf16.gmra.mxu0 %v6061_v34  ;;  %v6093_v34 = vor.u32 %v6538_v45, %v6090_v14 }
 0x606   :  { %v4488_v31 = vadd.f32 %v4487_v23, %v9204_v13 }
 0x607   :  { %v4618_v25 = vpop.f32.mrf.mxu2 }
 0x608   :  { %v4617_v28 = vadd.f32 %v4616_v16, %v4488_v31  ;;  %4526 = vmatmul.bf16.gmra.mxu1 %v6013_v38  ;;  %v6046_v16 = vld [vmem:[#allocation2 + $0x414] sm:$0xf0]  ;;  %v6097_v38 = vor.u32 %v6543_v46, %v6096_v22  ;;  %v6088_v31 = vld [vmem:[#allocation2 + $0x440] sm:$0xf]  ;;  %v6126_v22 = vld [vmem:[#allocation2 + $0x4ac] sm:$0xf0] }
 0x60a   :  { %v4746_v18 = vadd.f32 %v4745_v37, %v4617_v28  ;;  %v4881_v52 = vpop.f32.mrf.mxu0  ;;  %v4752_v32 = vpop.f32.mrf.mxu3  ;;  %v6542_v28 = vld [vmem:[#allocation2 + $0x460] sm:$0xf0] }
 0x60c   :  { %v9255_v3 = vadd.f32 %v4874_v19, %v4746_v18  ;;  %4660 = vmatmul.bf16.gmra.mxu2 %v6053_v15  ;;  %v6049_v19 = vor.u32 %v6528_v11, %v6046_v16 }
 0x60d   :  { %v4489_v21 = vpop.f32.mrf.mxu1 }
 0x60e   :  { %v4490_v1 = vadd.f32 %v4489_v21, %v9210_v40 }
 0x60f   :  { %v4621_v50 = vpop.f32.mrf.mxu2  ;;  %4794 = vmatmul.bf16.gmra.mxu3 %v6093_v34  ;;  %v6552_v34 = vld [vmem:[#allocation2 + $0x4b0] sm:$0xf0] }
 0x610   :  { %v4619_v13 = vadd.f32 %v4618_v25, %v4490_v1  ;;  %v6089_v25 = vor.u32 %v6542_v28, %v6088_v31 }
 0x612   :  { %v4748_v23 = vadd.f32 %v4747_v29, %v4619_v13  ;;  %v4884_v37 = vpop.f32.mrf.mxu0  ;;  %v4755_v18 = vpop.f32.mrf.mxu3  ;;  %v6547_v29 = vld [vmem:[#allocation2 + $0x48c] sm:$0xf]  ;;  %v6132_v13 = vld [vmem:[#allocation2 + $0x490] sm:$0xf] }
 0x614   :  { %v9258_v20 = vadd.f32 %v4876_v26, %v4748_v23  ;;  %v6537_v23 = vld [vmem:[#allocation2 + $0x43c] sm:$0xf] }
 0x615   :  { %v4492_v12 = vpop.f32.mrf.mxu1  ;;  %4923 = vmatmul.bf16.gmra.mxu0 %v6097_v38  ;;  %v6129_v38 = vor.u32 %v6547_v29, %v6126_v22 }
 0x616   :  { %v4493_v40 = vadd.f32 %v4492_v12, %v9098_v30 }
 0x617   :  { %v4623_v15 = vpop.f32.mrf.mxu2 }
 0x618   :  { %v4622_v21 = vadd.f32 %v4621_v50, %v4493_v40  ;;  %4531 = vmatmul.bf16.gmra.mxu1 %v6049_v19  ;;  %v6082_v50 = vld [vmem:[#allocation2 + $0x45c] sm:$0xf0]  ;;  %v6133_v19 = vor.u32 %v6552_v34, %v6132_v13  ;;  %v6124_v40 = vld [vmem:[#allocation2 + $0x488] sm:$0xf]  ;;  %v6162_v13 = vld [vmem:[#allocation2 + $0x4f4] sm:$0xf0] }
 0x61a   :  { %v4751_v45 = vadd.f32 %v4750_v53, %v4622_v21  ;;  %v4886_v14 = vpop.f32.mrf.mxu0  ;;  %v4757_v16 = vpop.f32.mrf.mxu3  ;;  %v6551_v21 = vld [vmem:[#allocation2 + $0x4a8] sm:$0xf0] }
 0x61c   :  { %v9261_v1 = vadd.f32 %v4879_v4, %v4751_v45  ;;  %4665 = vmatmul.bf16.gmra.mxu2 %v6089_v25  ;;  %v6085_v4 = vor.u32 %v6537_v23, %v6082_v50 }
 0x61d   :  { %v4494_v26 = vpop.f32.mrf.mxu1 }
 0x61e   :  { %v4495_v46 = vadd.f32 %v4494_v26, %v9116_v56 }
 0x61f   :  { %v4626_v11 = vpop.f32.mrf.mxu2  ;;  %4799 = vmatmul.bf16.gmra.mxu3 %v6129_v38  ;;  %v6561_v38 = vld [vmem:[#allocation2 + $0x4f8] sm:$0xf0] }
 0x620   :  { %v4624_v30 = vadd.f32 %v4623_v15, %v4495_v46  ;;  %v6125_v15 = vor.u32 %v6551_v21, %v6124_v40 }
 0x622   :  { %v4753_v12 = vadd.f32 %v4752_v32, %v4624_v30  ;;  %v4889_v53 = vpop.f32.mrf.mxu0  ;;  %v4760_v45 = vpop.f32.mrf.mxu3  ;;  %v6556_v32 = vld [vmem:[#allocation2 + $0x4d4] sm:$0xf]  ;;  %v6168_v30 = vld [vmem:[#allocation2 + $0x4d8] sm:$0xf] }
 0x624   :  { %v9264_v31 = vadd.f32 %v4881_v52, %v4753_v12  ;;  %v6546_v12 = vld [vmem:[#allocation2 + $0x484] sm:$0xf] }
 0x625   :  { %v4497_v28 = vpop.f32.mrf.mxu1  ;;  %4928 = vmatmul.bf16.gmra.mxu0 %v6133_v19  ;;  %v6165_v19 = vor.u32 %v6556_v32, %v6162_v13 }
 0x626   :  { %v4498_v56 = vadd.f32 %v4497_v28, %v9135_v24 }
 0x627   :  { %v4628_v25 = vpop.f32.mrf.mxu2 }
 0x628   :  { %v4627_v26 = vadd.f32 %v4626_v11, %v4498_v56  ;;  %4536 = vmatmul.bf16.gmra.mxu1 %v6085_v4  ;;  %v6118_v11 = vld [vmem:[#allocation2 + $0x4a4] sm:$0xf0]  ;;  %v6169_v4 = vor.u32 %v6561_v38, %v6168_v30  ;;  %v6160_v56 = vld [vmem:[#allocation2 + $0x4d0] sm:$0xf]  ;;  %v6198_v30 = vld [vmem:[#allocation2 + $0x53c] sm:$0xf0] }
 0x62a   :  { %v4756_v29 = vadd.f32 %v4755_v18, %v4627_v26  ;;  %v4891_v22 = vpop.f32.mrf.mxu0  ;;  %v4762_v50 = vpop.f32.mrf.mxu3  ;;  %v6560_v26 = vld [vmem:[#allocation2 + $0x4f0] sm:$0xf0] }
 0x62c   :  { %v9267_v46 = vadd.f32 %v4884_v37, %v4756_v29  ;;  %4670 = vmatmul.bf16.gmra.mxu2 %v6125_v15  ;;  %v6121_v37 = vor.u32 %v6546_v12, %v6118_v11 }
 0x62d   :  { %v4499_v52 = vpop.f32.mrf.mxu1 }
 0x62e   :  { %v4500_v34 = vadd.f32 %v4499_v52, %v9152_v51 }
 0x62f   :  { %v4631_v23 = vpop.f32.mrf.mxu2  ;;  %4804 = vmatmul.bf16.gmra.mxu3 %v6165_v19  ;;  %v6570_v19 = vld [vmem:[#allocation2 + $0x540] sm:$0xf0] }
 0x630   :  { %v4629_v24 = vadd.f32 %v4628_v25, %v4500_v34  ;;  %v6161_v25 = vor.u32 %v6560_v26, %v6160_v56 }
 0x632   :  { %v4758_v28 = vadd.f32 %v4757_v16, %v4629_v24  ;;  %v4894_v18 = vpop.f32.mrf.mxu0  ;;  %v4765_v29 = vpop.f32.mrf.mxu3  ;;  %v6565_v16 = vld [vmem:[#allocation2 + $0x51c] sm:$0xf]  ;;  %v6204_v24 = vld [vmem:[#allocation2 + $0x520] sm:$0xf] }
 0x634   :  { %v9270_v40 = vadd.f32 %v4886_v14, %v4758_v28  ;;  %v6555_v28 = vld [vmem:[#allocation2 + $0x4cc] sm:$0xf] }
 0x635   :  { %v4502_v21 = vpop.f32.mrf.mxu1  ;;  %4933 = vmatmul.bf16.gmra.mxu0 %v6169_v4  ;;  %v6201_v4 = vor.u32 %v6565_v16, %v6198_v30 }
 0x636   :  { %v4503_v51 = vadd.f32 %v4502_v21, %v9168_v41 }
 0x637   :  { %v4633_v15 = vpop.f32.mrf.mxu2 }
 0x638   :  { %v4632_v52 = vadd.f32 %v4631_v23, %v4503_v51  ;;  %4541 = vmatmul.bf16.gmra.mxu1 %v6121_v37  ;;  %v6154_v23 = vld [vmem:[#allocation2 + $0x4ec] sm:$0xf0]  ;;  %v6205_v37 = vor.u32 %v6570_v19, %v6204_v24  ;;  %v6196_v51 = vld [vmem:[#allocation2 + $0x518] sm:$0xf]  ;;  %v6234_v24 = vld [vmem:[#allocation2 + $0x584] sm:$0xf0] }
 0x63a   :  { %v4761_v32 = vadd.f32 %v4760_v45, %v4632_v52  ;;  %v4896_v13 = vpop.f32.mrf.mxu0  ;;  %v4767_v11 = vpop.f32.mrf.mxu3  ;;  %v6569_v52 = vld [vmem:[#allocation2 + $0x538] sm:$0xf0] }
 0x63c   :  { %v9273_v34 = vadd.f32 %v4889_v53, %v4761_v32  ;;  %4675 = vmatmul.bf16.gmra.mxu2 %v6161_v25  ;;  %v6157_v53 = vor.u32 %v6555_v28, %v6154_v23 }
 0x63d   :  { %v4504_v14 = vpop.f32.mrf.mxu1 }
 0x63e   :  { %v4505_v38 = vadd.f32 %v4504_v14, %v9178_v57 }
 0x63f   :  { %v4636_v12 = vpop.f32.mrf.mxu2  ;;  %4809 = vmatmul.bf16.gmra.mxu3 %v6201_v4  ;;  %v6579_v4 = vld [vmem:[#allocation2 + $0x588] sm:$0xf0] }
 0x640   :  { %v4634_v41 = vadd.f32 %v4633_v15, %v4505_v38  ;;  %v6197_v15 = vor.u32 %v6569_v52, %v6196_v51 }
 0x642   :  { %v4763_v21 = vadd.f32 %v4762_v50, %v4634_v41  ;;  %v4899_v45 = vpop.f32.mrf.mxu0  ;;  %v4770_v32 = vpop.f32.mrf.mxu3  ;;  %v6574_v50 = vld [vmem:[#allocation2 + $0x564] sm:$0xf]  ;;  %v6240_v41 = vld [vmem:[#allocation2 + $0x568] sm:$0xf] }
 0x644   :  { %v9276_v56 = vadd.f32 %v4891_v22, %v4763_v21  ;;  %v6564_v21 = vld [vmem:[#allocation2 + $0x514] sm:$0xf] }
 0x645   :  { %v4507_v26 = vpop.f32.mrf.mxu1  ;;  %4938 = vmatmul.bf16.gmra.mxu0 %v6205_v37  ;;  %v6237_v37 = vor.u32 %v6574_v50, %v6234_v24 }
 0x646   :  { %v4508_v57 = vadd.f32 %v4507_v26, %v9186_v8 }
 0x647   :  { %v4638_v25 = vpop.f32.mrf.mxu2 }
 0x648   :  { %v4637_v14 = vadd.f32 %v4636_v12, %v4508_v57  ;;  %4546 = vmatmul.bf16.gmra.mxu1 %v6157_v53  ;;  %v6190_v12 = vld [vmem:[#allocation2 + $0x534] sm:$0xf0]  ;;  %v6241_v53 = vor.u32 %v6579_v4, %v6240_v41  ;;  %v6232_v57 = vld [vmem:[#allocation2 + $0x560] sm:$0xf]  ;;  %v6270_v41 = vld [vmem:[#allocation2 + $0x5cc] sm:$0xf0] }
 0x64a   :  { %v4766_v16 = vadd.f32 %v4765_v29, %v4637_v14  ;;  %v4901_v30 = vpop.f32.mrf.mxu0  ;;  %v4772_v23 = vpop.f32.mrf.mxu3  ;;  %v6578_v14 = vld [vmem:[#allocation2 + $0x580] sm:$0xf0] }
 0x64c   :  { %v9279_v38 = vadd.f32 %v4894_v18, %v4766_v16  ;;  %4680 = vmatmul.bf16.gmra.mxu2 %v6197_v15  ;;  %v6193_v18 = vor.u32 %v6564_v21, %v6190_v12 }
 0x64d   :  { %v4509_v22 = vpop.f32.mrf.mxu1 }
 0x64e   :  { %v4510_v19 = vadd.f32 %v4509_v22, %v9194_v33 }
 0x64f   :  { %v4641_v28 = vpop.f32.mrf.mxu2  ;;  %4814 = vmatmul.bf16.gmra.mxu3 %v6237_v37  ;;  %v6588_v37 = vld [vmem:[#allocation2 + $0x5d0] sm:$0xf0] }
 0x650   :  { %v4639_v8 = vadd.f32 %v4638_v25, %v4510_v19  ;;  %v6233_v25 = vor.u32 %v6578_v14, %v6232_v57 }
 0x652   :  { %v4768_v26 = vadd.f32 %v4767_v11, %v4639_v8  ;;  %v4904_v29 = vpop.f32.mrf.mxu0  ;;  %v4775_v16 = vpop.f32.mrf.mxu3  ;;  %v6583_v11 = vld [vmem:[#allocation2 + $0x5ac] sm:$0xf]  ;;  %v6276_v8 = vld [vmem:[#allocation2 + $0x5b0] sm:$0xf] }
 0x654   :  { %v9282_v51 = vadd.f32 %v4896_v13, %v4768_v26  ;;  %v6573_v26 = vld [vmem:[#allocation2 + $0x55c] sm:$0xf] }
 0x655   :  { %v4512_v52 = vpop.f32.mrf.mxu1  ;;  %4943 = vmatmul.bf16.gmra.mxu0 %v6241_v53  ;;  %v6273_v53 = vor.u32 %v6583_v11, %v6270_v41 }
 0x656   :  { %v4513_v33 = vadd.f32 %v4512_v52, %v9202_v48 }
 0x657   :  { %v4643_v15 = vpop.f32.mrf.mxu2 }
 0x658   :  { %v4642_v22 = vadd.f32 %v4641_v28, %v4513_v33  ;;  %4551 = vmatmul.bf16.gmra.mxu1 %v6193_v18  ;;  %v6226_v28 = vld [vmem:[#allocation2 + $0x57c] sm:$0xf0]  ;;  %v6277_v18 = vor.u32 %v6588_v37, %v6276_v8  ;;  %v6268_v33 = vld [vmem:[#allocation2 + $0x5a8] sm:$0xf]  ;;  %v6306_v8 = vld [vmem:[#allocation2 + $0x614] sm:$0xf0] }
 0x65a   :  { %v4771_v50 = vadd.f32 %v4770_v32, %v4642_v22  ;;  %v4906_v24 = vpop.f32.mrf.mxu0  ;;  %v4777_v12 = vpop.f32.mrf.mxu3  ;;  %v6587_v22 = vld [vmem:[#allocation2 + $0x5c8] sm:$0xf0] }
 0x65c   :  { %v9285_v19 = vadd.f32 %v4899_v45, %v4771_v50  ;;  %4685 = vmatmul.bf16.gmra.mxu2 %v6233_v25  ;;  %v6229_v45 = vor.u32 %v6573_v26, %v6226_v28 }
 0x65d   :  { %v4514_v13 = vpop.f32.mrf.mxu1 }
 0x65e   :  { %v4515_v4 = vadd.f32 %v4514_v13, %v9214_v62 }
 0x65f   :  { %v4646_v21 = vpop.f32.mrf.mxu2  ;;  %4819 = vmatmul.bf16.gmra.mxu3 %v6273_v53  ;;  %v6597_v53 = vld [vmem:[#allocation2 + $0x618] sm:$0xf0] }
 0x660   :  { %v4644_v48 = vadd.f32 %v4643_v15, %v4515_v4  ;;  %v6269_v15 = vor.u32 %v6587_v22, %v6268_v33 }
 0x662   :  { %v4773_v52 = vadd.f32 %v4772_v23, %v4644_v48  ;;  %v4909_v32 = vpop.f32.mrf.mxu0  ;;  %v4780_v50 = vpop.f32.mrf.mxu3  ;;  %v6592_v23 = vld [vmem:[#allocation2 + $0x5f4] sm:$0xf]  ;;  %v6312_v48 = vld [vmem:[#allocation2 + $0x5f8] sm:$0xf] }
 0x664   :  { %v9288_v57 = vadd.f32 %v4901_v30, %v4773_v52  ;;  %v6582_v52 = vld [vmem:[#allocation2 + $0x5a4] sm:$0xf] }
 0x665   :  { %v4517_v14 = vpop.f32.mrf.mxu1  ;;  %4948 = vmatmul.bf16.gmra.mxu0 %v6277_v18  ;;  %v6309_v18 = vor.u32 %v6592_v23, %v6306_v8 }
 0x666   :  { %v4518_v62 = vadd.f32 %v4517_v14, %v9218_v60 }
 0x667   :  { %v4648_v25 = vpop.f32.mrf.mxu2 }
 0x668   :  { %v4647_v13 = vadd.f32 %v4646_v21, %v4518_v62  ;;  %4556 = vmatmul.bf16.gmra.mxu1 %v6229_v45  ;;  %v6262_v21 = vld [vmem:[#allocation2 + $0x5c4] sm:$0xf0]  ;;  %v6313_v45 = vor.u32 %v6597_v53, %v6312_v48  ;;  %v6304_v62 = vld [vmem:[#allocation2 + $0x5f0] sm:$0xf]  ;;  %v6342_v48 = vld [vmem:[#allocation2 + $0x65c] sm:$0xf0] }
 0x66a   :  { %v4776_v11 = vadd.f32 %v4775_v16, %v4647_v13  ;;  %v4911_v41 = vpop.f32.mrf.mxu0  ;;  %v4782_v28 = vpop.f32.mrf.mxu3  ;;  %v6596_v13 = vld [vmem:[#allocation2 + $0x610] sm:$0xf0] }
 0x66c   :  { %v9291_v4 = vadd.f32 %v4904_v29, %v4776_v11  ;;  %4690 = vmatmul.bf16.gmra.mxu2 %v6269_v15  ;;  %v6265_v29 = vor.u32 %v6582_v52, %v6262_v21 }
 0x66d   :  { %v4519_v30 = vpop.f32.mrf.mxu1 }
 0x66e   :  { %v4520_v37 = vadd.f32 %v4519_v30, %v9222_v39 }
 0x66f   :  { %v4651_v26 = vpop.f32.mrf.mxu2  ;;  %4824 = vmatmul.bf16.gmra.mxu3 %v6309_v18  ;;  %v6606_v18 = vld [vmem:[#allocation2 + $0x660] sm:$0xf0] }
 0x670   :  { %v4649_v60 = vadd.f32 %v4648_v25, %v4520_v37  ;;  %v6305_v25 = vor.u32 %v6596_v13, %v6304_v62 }
 0x672   :  { %v4778_v14 = vadd.f32 %v4777_v12, %v4649_v60  ;;  %v4914_v16 = vpop.f32.mrf.mxu0  ;;  %v4785_v11 = vpop.f32.mrf.mxu3  ;;  %v6601_v12 = vld [vmem:[#allocation2 + $0x63c] sm:$0xf]  ;;  %v6348_v60 = vld [vmem:[#allocation2 + $0x640] sm:$0xf] }
 0x674   :  { %v9294_v33 = vadd.f32 %v4906_v24, %v4778_v14  ;;  %v6591_v14 = vld [vmem:[#allocation2 + $0x5ec] sm:$0xf] }
 0x675   :  { %v4522_v22 = vpop.f32.mrf.mxu1  ;;  %4953 = vmatmul.bf16.gmra.mxu0 %v6313_v45  ;;  %v6345_v45 = vor.u32 %v6601_v12, %v6342_v48 }
 0x676   :  { %v4523_v39 = vadd.f32 %v4522_v22, %v9083_v0 }
 0x677   :  { %v4653_v15 = vpop.f32.mrf.mxu2 }
 0x678   :  { %v4652_v30 = vadd.f32 %v4651_v26, %v4523_v39  ;;  %4561 = vmatmul.bf16.gmra.mxu1 %v6265_v29  ;;  %v6298_v26 = vld [vmem:[#allocation2 + $0x60c] sm:$0xf0]  ;;  %v6349_v29 = vor.u32 %v6606_v18, %v6348_v60  ;;  %v6340_v39 = vld [vmem:[#allocation2 + $0x638] sm:$0xf]  ;;  %v6378_v60 = vld [vmem:[#allocation2 + $0x6a4] sm:$0xf0] }
 0x67a   :  { %v4781_v23 = vadd.f32 %v4780_v50, %v4652_v30  ;;  %v4916_v8 = vpop.f32.mrf.mxu0  ;;  %v4787_v21 = vpop.f32.mrf.mxu3  ;;  %v6605_v30 = vld [vmem:[#allocation2 + $0x658] sm:$0xf0] }
 0x67c   :  { %v9297_v37 = vadd.f32 %v4909_v32, %v4781_v23  ;;  %4695 = vmatmul.bf16.gmra.mxu2 %v6305_v25  ;;  %v6301_v32 = vor.u32 %v6591_v14, %v6298_v26 }
 0x67d   :  { %v4524_v24 = vpop.f32.mrf.mxu1 }
 0x67e   :  { %v4525_v53 = vadd.f32 %v4524_v24, %v9105_v5 }
 0x67f   :  { %v4656_v52 = vpop.f32.mrf.mxu2  ;;  %4829 = vmatmul.bf16.gmra.mxu3 %v6345_v45  ;;  %v6615_v45 = vld [vmem:[#allocation2 + $0x6a8] sm:$0xf0] }
 0x680   :  { %v4654_v0 = vadd.f32 %v4653_v15, %v4525_v53  ;;  %v6341_v15 = vor.u32 %v6605_v30, %v6340_v39 }
 0x682   :  { %v4783_v22 = vadd.f32 %v4782_v28, %v4654_v0  ;;  %v4919_v50 = vpop.f32.mrf.mxu0  ;;  %v4790_v23 = vpop.f32.mrf.mxu3  ;;  %v6610_v28 = vld [vmem:[#allocation2 + $0x684] sm:$0xf]  ;;  %v6384_v0 = vld [vmem:[#allocation2 + $0x688] sm:$0xf] }
 0x684   :  { %v9300_v62 = vadd.f32 %v4911_v41, %v4783_v22  ;;  %v6600_v22 = vld [vmem:[#allocation2 + $0x634] sm:$0xf] }
 0x685   :  { %v4527_v13 = vpop.f32.mrf.mxu1  ;;  %4958 = vmatmul.bf16.gmra.mxu0 %v6349_v29  ;;  %v6381_v29 = vor.u32 %v6610_v28, %v6378_v60 }
 0x686   :  { %v4528_v5 = vadd.f32 %v4527_v13, %v9124_v59 }
 0x687   :  { %v4658_v25 = vpop.f32.mrf.mxu2 }
 0x688   :  { %v4657_v24 = vadd.f32 %v4656_v52, %v4528_v5  ;;  %4566 = vmatmul.bf16.gmra.mxu1 %v6301_v32  ;;  %v6334_v52 = vld [vmem:[#allocation2 + $0x654] sm:$0xf0]  ;;  %v6385_v32 = vor.u32 %v6615_v45, %v6384_v0  ;;  %v6376_v5 = vld [vmem:[#allocation2 + $0x680] sm:$0xf] }
 0x689   :  { %v5566_v0 = vld [vmem:[#allocation2 + $0x3c] sm:$0xf0] }
 0x68a   :  { %v4786_v12 = vadd.f32 %v4785_v11, %v4657_v24  ;;  %v4921_v48 = vpop.f32.mrf.mxu0  ;;  %v4792_v26 = vpop.f32.mrf.mxu3  ;;  %v6614_v24 = vld [vmem:[#allocation2 + $0x6a0] sm:$0xf0] }
 0x68c   :  { %v9303_v53 = vadd.f32 %v4914_v16, %v4786_v12  ;;  %4700 = vmatmul.bf16.gmra.mxu2 %v6341_v15  ;;  %v6337_v16 = vor.u32 %v6600_v22, %v6334_v52 }
 0x68d   :  { %v4529_v41 = vpop.f32.mrf.mxu1 }
 0x68e   :  { %v4530_v18 = vadd.f32 %v4529_v41, %v9143_v63 }
 0x68f   :  { %v4661_v14 = vpop.f32.mrf.mxu2  ;;  %4834 = vmatmul.bf16.gmra.mxu3 %v6381_v29  ;;  %v6410_v29 = vld [vmem:[#allocation2 + $0x40] sm:$0xf0] }
 0x690   :  { %v4659_v59 = vadd.f32 %v4658_v25, %v4530_v18  ;;  %v6377_v25 = vor.u32 %v6614_v24, %v6376_v5 }
 0x692   :  { %v4788_v13 = vadd.f32 %v4787_v21, %v4659_v59  ;;  %v4924_v11 = vpop.f32.mrf.mxu0  ;;  %v4795_v12 = vpop.f32.mrf.mxu3  ;;  %v6405_v21 = vld [vmem:[#allocation2 + $0x1c] sm:$0xf]  ;;  %v5572_v59 = vld [vmem:[#allocation2 + $0x20] sm:$0xf] }
 0x694   :  { %v9306_v39 = vadd.f32 %v4916_v8, %v4788_v13  ;;  %v6609_v13 = vld [vmem:[#allocation2 + $0x67c] sm:$0xf] }
 0x695   :  { %v4532_v30 = vpop.f32.mrf.mxu1  ;;  %4963 = vmatmul.bf16.gmra.mxu0 %v6385_v32  ;;  %v5569_v32 = vor.u32 %v6405_v21, %v5566_v0 }
 0x696   :  { %v4533_v63 = vadd.f32 %v4532_v30, %v9159_v49 }
 0x697   :  { %v4663_v15 = vpop.f32.mrf.mxu2 }
 0x698   :  { %v4662_v41 = vadd.f32 %v4661_v14, %v4533_v63  ;;  %4571 = vmatmul.bf16.gmra.mxu1 %v6337_v16  ;;  %v6370_v14 = vld [vmem:[#allocation2 + $0x69c] sm:$0xf0]  ;;  %v5573_v16 = vor.u32 %v6410_v29, %v5572_v59  ;;  %v5564_v63 = vld [vmem:[#allocation2 + $0x18] sm:$0xf]  ;;  %v5602_v59 = vld [vmem:[#allocation2 + $0x84] sm:$0xf0] }
 0x69a   :  { %v4791_v28 = vadd.f32 %v4790_v23, %v4662_v41  ;;  %v4926_v60 = vpop.f32.mrf.mxu0  ;;  %v4797_v52 = vpop.f32.mrf.mxu3  ;;  %v6409_v41 = vld [vmem:[#allocation2 + $0x38] sm:$0xf0] }
 0x69c   :  { %v9309_v18 = vadd.f32 %v4919_v50, %v4791_v28  ;;  %4705 = vmatmul.bf16.gmra.mxu2 %v6377_v25  ;;  %v6373_v50 = vor.u32 %v6609_v13, %v6370_v14 }
 0x69d   :  { %v4534_v8 = vpop.f32.mrf.mxu1 }
 0x69e   :  { %v4535_v45 = vadd.f32 %v4534_v8, %v9172_v6 }
 0x69f   :  { %v4666_v22 = vpop.f32.mrf.mxu2  ;;  %5235 = vmatmul.bf16.vlgmr.msra.gmra.mxu3 %v5569_v32  ;;  %v6419_v32 = vld [vmem:[#allocation2 + $0x88] sm:$0xf0] }
 0x6a0   :  { %v4664_v49 = vadd.f32 %v4663_v15, %v4535_v45  ;;  %v5565_v15 = vor.u32 %v6409_v41, %v5564_v63 }
 0x6a2   :  { %v4793_v30 = vadd.f32 %v4792_v26, %v4664_v49  ;;  %v4929_v23 = vpop.f32.mrf.mxu0  ;;  %v4800_v28 = vpop.f32.mrf.mxu3  ;;  %v6414_v26 = vld [vmem:[#allocation2 + $0x64] sm:$0xf]  ;;  %v5608_v49 = vld [vmem:[#allocation2 + $0x68] sm:$0xf] }
 0x6a4   :  { %v9312_v5 = vadd.f32 %v4921_v48, %v4793_v30  ;;  %v6404_v30 = vld [vmem:[#allocation2 + $0x14] sm:$0xf] }
 0x6a5   :  { %v4537_v24 = vpop.f32.mrf.mxu1  ;;  %5364 = vmatmul.bf16.vlgmr.msra.gmra.mxu0 %v5573_v16  ;;  %v5605_v16 = vor.u32 %v6414_v26, %v5602_v59 }
 0x6a6   :  { %v4538_v6 = vadd.f32 %v4537_v24, %v9180_v17 }
 0x6a7   :  { %v4668_v25 = vpop.f32.mrf.mxu2 }
 0x6a8   :  { %v4667_v8 = vadd.f32 %v4666_v22, %v4538_v6  ;;  %4576 = vmatmul.bf16.gmra.mxu1 %v6373_v50  ;;  %v5558_v22 = vld [vmem:[#allocation2 + $0x34] sm:$0xf0]  ;;  %v5609_v50 = vor.u32 %v6419_v32, %v5608_v49  ;;  %v5600_v6 = vld [vmem:[#allocation2 + $0x60] sm:$0xf]  ;;  %v5638_v49 = vld [vmem:[#allocation2 + $0xcc] sm:$0xf0] }
 0x6aa   :  { %v4796_v21 = vadd.f32 %v4795_v12, %v4667_v8  ;;  %v4931_v0 = vpop.f32.mrf.mxu0  ;;  %v4802_v14 = vpop.f32.mrf.mxu3  ;;  %v6418_v8 = vld [vmem:[#allocation2 + $0x80] sm:$0xf0] }
 0x6ac   :  { %v9315_v45 = vadd.f32 %v4924_v11, %v4796_v21  ;;  %5106 = vmatmul.bf16.vlgmr.msra.gmra.mxu2 %v5565_v15  ;;  %v5561_v11 = vor.u32 %v6404_v30, %v5558_v22 }
 0x6ad   :  { %v4539_v48 = vpop.f32.mrf.mxu1 }
 0x6ae   :  { %v4540_v29 = vadd.f32 %v4539_v48, %v9188_v7 }
 0x6af   :  { %v4671_v13 = vpop.f32.mrf.mxu2  ;;  %5240 = vmatmul.bf16.gmra.mxu3 %v5605_v16  ;;  %v6428_v16 = vld [vmem:[#allocation2 + $0xd0] sm:$0xf0] }
 0x6b0   :  { %v4669_v17 = vadd.f32 %v4668_v25, %v4540_v29  ;;  %v5601_v25 = vor.u32 %v6418_v8, %v5600_v6 }
 0x6b2   :  { %v4798_v24 = vadd.f32 %v4797_v52, %v4669_v17  ;;  %v4934_v12 = vpop.f32.mrf.mxu0  ;;  %v4805_v21 = vpop.f32.mrf.mxu3  ;;  %v6423_v52 = vld [vmem:[#allocation2 + $0xac] sm:$0xf]  ;;  %v5644_v17 = vld [vmem:[#allocation2 + $0xb0] sm:$0xf] }
 0x6b4   :  { %v9318_v63 = vadd.f32 %v4926_v60, %v4798_v24  ;;  %v6413_v24 = vld [vmem:[#allocation2 + $0x5c] sm:$0xf] }
 0x6b5   :  { %v4542_v41 = vpop.f32.mrf.mxu1  ;;  %5369 = vmatmul.bf16.gmra.mxu0 %v5609_v50  ;;  %v5641_v50 = vor.u32 %v6423_v52, %v5638_v49 }
 0x6b6   :  { %v4543_v7 = vadd.f32 %v4542_v41, %v9200_v47 }
 0x6b7   :  { %v4673_v15 = vpop.f32.mrf.mxu2 }
 0x6b8   :  { %v4672_v48 = vadd.f32 %v4671_v13, %v4543_v7  ;;  %4977 = vmatmul.bf16.vlgmr.msra.gmra.mxu1 %v5561_v11  ;;  %v5594_v13 = vld [vmem:[#allocation2 + $0x7c] sm:$0xf0]  ;;  %v5645_v11 = vor.u32 %v6428_v16, %v5644_v17  ;;  %v5636_v7 = vld [vmem:[#allocation2 + $0xa8] sm:$0xf]  ;;  %v5674_v17 = vld [vmem:[#allocation2 + $0x114] sm:$0xf0] }
 0x6ba   :  { %v4801_v26 = vadd.f32 %v4800_v28, %v4672_v48  ;;  %v4936_v59 = vpop.f32.mrf.mxu0  ;;  %v4807_v22 = vpop.f32.mrf.mxu3  ;;  %v6427_v48 = vld [vmem:[#allocation2 + $0xc8] sm:$0xf0] }
 0x6bc   :  { %v9321_v29 = vadd.f32 %v4929_v23, %v4801_v26  ;;  %5111 = vmatmul.bf16.gmra.mxu2 %v5601_v25  ;;  %v5597_v23 = vor.u32 %v6413_v24, %v5594_v13 }
 0x6bd   :  { %v4544_v60 = vpop.f32.mrf.mxu1 }
 0x6be   :  { %v4545_v32 = vadd.f32 %v4544_v60, %v9208_v55 }
 0x6bf   :  { %v4676_v30 = vpop.f32.mrf.mxu2  ;;  %5245 = vmatmul.bf16.gmra.mxu3 %v5641_v50  ;;  %v6437_v50 = vld [vmem:[#allocation2 + $0x118] sm:$0xf0] }
 0x6c0   :  { %v4674_v47 = vadd.f32 %v4673_v15, %v4545_v32  ;;  %v5637_v15 = vor.u32 %v6427_v48, %v5636_v7 }
 0x6c2   :  { %v4803_v41 = vadd.f32 %v4802_v14, %v4674_v47  ;;  %v4939_v28 = vpop.f32.mrf.mxu0  ;;  %v4810_v26 = vpop.f32.mrf.mxu3  ;;  %v6432_v14 = vld [vmem:[#allocation2 + $0xf4] sm:$0xf]  ;;  %v5680_v47 = vld [vmem:[#allocation2 + $0xf8] sm:$0xf] }
 0x6c4   :  { %v9324_v6 = vadd.f32 %v4931_v0, %v4803_v41  ;;  %v6422_v41 = vld [vmem:[#allocation2 + $0xa4] sm:$0xf] }
 0x6c5   :  { %v4547_v8 = vpop.f32.mrf.mxu1  ;;  %5374 = vmatmul.bf16.gmra.mxu0 %v5645_v11  ;;  %v5677_v11 = vor.u32 %v6432_v14, %v5674_v17 }
 0x6c6   :  { %v4548_v55 = vadd.f32 %v4547_v8, %v9216_v27 }
 0x6c7   :  { %v4678_v25 = vpop.f32.mrf.mxu2 }
 0x6c8   :  { %v4677_v60 = vadd.f32 %v4676_v30, %v4548_v55  ;;  %4982 = vmatmul.bf16.gmra.mxu1 %v5597_v23  ;;  %v5630_v30 = vld [vmem:[#allocation2 + $0xc4] sm:$0xf0]  ;;  %v5681_v23 = vor.u32 %v6437_v50, %v5680_v47  ;;  %v5672_v55 = vld [vmem:[#allocation2 + $0xf0] sm:$0xf]  ;;  %v5710_v47 = vld [vmem:[#allocation2 + $0x15c] sm:$0xf0] }
 0x6c9   :  { %v9778_v50 = vld [vmem:[#allocation14_spill] sm:$0xff] }
 0x6ca   :  { %v4806_v52 = vadd.f32 %v4805_v21, %v4677_v60  ;;  %v4941_v49 = vpop.f32.mrf.mxu0  ;;  %v4812_v13 = vpop.f32.mrf.mxu3  ;;  %v6436_v60 = vld [vmem:[#allocation2 + $0x110] sm:$0xf0] }
 0x6cc   :  { %v9327_v32 = vadd.f32 %v4934_v12, %v4806_v52  ;;  %5116 = vmatmul.bf16.gmra.mxu2 %v5637_v15  ;;  %v5633_v12 = vor.u32 %v6422_v41, %v5630_v30  ;;  %v6446_v41 = vld [vmem:[#allocation2 + $0x160] sm:$0xf0] }
 0x6cd   :  { %v4549_v0 = vpop.f32.mrf.mxu1 }
 0x6ce   :  { %v4550_v16 = vadd.f32 %v4549_v0, %v9220_v54 }
 0x6cf   :  { %v4681_v24 = vpop.f32.mrf.mxu2  ;;  %5250 = vmatmul.bf16.gmra.mxu3 %v5677_v11  ;;  %v5716_v11 = vld [vmem:[#allocation2 + $0x140] sm:$0xf] }
 0x6d0   :  { %v4679_v27 = vadd.f32 %v4678_v25, %v4550_v16  ;;  %v5673_v25 = vor.u32 %v6436_v60, %v5672_v55 }
 0x6d2   :  { %v4808_v8 = vadd.f32 %v4807_v22, %v4679_v27  ;;  %v4944_v21 = vpop.f32.mrf.mxu0  ;;  %v4815_v52 = vpop.f32.mrf.mxu3  ;;  %v6441_v22 = vld [vmem:[#allocation2 + $0x13c] sm:$0xf] }
 0x6d4   :  { %v9330_v7 = vadd.f32 %v4936_v59, %v4808_v8  ;;  %v5713_v8 = vor.u32 %v6441_v22, %v5710_v47 }
 0x6d5   :  { %v4552_v48 = vpop.f32.mrf.mxu1  ;;  %5379 = vmatmul.bf16.gmra.mxu0 %v5681_v23 }
 0x6d6   :  { %9776 = vst [vmem:[#allocation19_spill] sm:$0xff] %v9330_v7  ;;  %v4553_v54 = vadd.f32 %v4552_v48, %v9091_v42  ;;  %v6431_v48 = vld [vmem:[#allocation2 + $0xec] sm:$0xf] }
 0x6d7   :  { %v4683_v15 = vpop.f32.mrf.mxu2 }
 0x6d8   :  { %v4682_v0 = vadd.f32 %v4681_v24, %v4553_v54  ;;  %4987 = vmatmul.bf16.gmra.mxu1 %v5633_v12  ;;  %v5666_v24 = vld [vmem:[#allocation2 + $0x10c] sm:$0xf0]  ;;  %v5717_v12 = vor.u32 %v6446_v41, %v5716_v11  ;;  %v5746_v11 = vld [vmem:[#allocation2 + $0x1a4] sm:$0xf0] }
 0x6d9   :  { %v9782_v41 = vld [vmem:[#allocation6_spill] sm:$0xff] }
 0x6da   :  { %v4811_v14 = vadd.f32 %v4810_v26, %v4682_v0  ;;  %v4946_v17 = vpop.f32.mrf.mxu0  ;;  %v4817_v23 = vpop.f32.mrf.mxu3  ;;  %v5708_v0 = vld [vmem:[#allocation2 + $0x138] sm:$0xf] }
 0x6dc   :  { %v9333_v16 = vadd.f32 %v4939_v28, %v4811_v14  ;;  %5121 = vmatmul.bf16.gmra.mxu2 %v5673_v25  ;;  %v5669_v28 = vor.u32 %v6431_v48, %v5666_v24  ;;  %v6445_v25 = vld [vmem:[#allocation2 + $0x158] sm:$0xf0]  ;;  %v9780_v14 = vld [vmem:[#allocation15_spill] sm:$0xff]  ;;  %v6455_v48 = vld [vmem:[#allocation2 + $0x1a8] sm:$0xf0] }
 0x6dd   :  { %v4554_v59 = vpop.f32.mrf.mxu1 }
 0x6de   :  { %9777 = vst [vmem:[#allocation23_spill] sm:$0xff] %v9333_v16  ;;  %v4555_v27 = vadd.f32 %v4554_v59, %v9778_v50 }
 0x6df   :  { %v4686_v30 = vpop.f32.mrf.mxu2  ;;  %5255 = vmatmul.bf16.gmra.mxu3 %v5713_v8  ;;  %v5752_v8 = vld [vmem:[#allocation2 + $0x188] sm:$0xf] }
 0x6e0   :  { %v4684_v42 = vadd.f32 %v4683_v15, %v4555_v27  ;;  %v5709_v15 = vor.u32 %v6445_v25, %v5708_v0 }
 0x6e2   :  { %v4813_v55 = vadd.f32 %v4812_v13, %v4684_v42  ;;  %v4949_v26 = vpop.f32.mrf.mxu0  ;;  %v4820_v16 = vpop.f32.mrf.mxu3  ;;  %v6450_v13 = vld [vmem:[#allocation2 + $0x184] sm:$0xf] }
 0x6e4   :  { %v9336_v60 = vadd.f32 %v4941_v49, %v4813_v55 }
 0x6e5   :  { %v4557_v54 = vpop.f32.mrf.mxu1  ;;  %5384 = vmatmul.bf16.gmra.mxu0 %v5717_v12 }
 0x6e6   :  { %9779 = vst [vmem:[#allocation29_spill] sm:$0xff] %v9336_v60  ;;  %v4558_v59 = vadd.f32 %v4557_v54, %v9780_v14  ;;  %v5749_v54 = vor.u32 %v6450_v13, %v5746_v11  ;;  %v6440_v14 = vld [vmem:[#allocation2 + $0x134] sm:$0xf] }
 0x6e7   :  { %v4688_v50 = vpop.f32.mrf.mxu2 }
 0x6e8   :  { %v4687_v7 = vadd.f32 %v4686_v30, %v4558_v59  ;;  %4992 = vmatmul.bf16.gmra.mxu1 %v5669_v28  ;;  %v5702_v30 = vld [vmem:[#allocation2 + $0x154] sm:$0xf0]  ;;  %v5753_v28 = vor.u32 %v6455_v48, %v5752_v8  ;;  %v5744_v59 = vld [vmem:[#allocation2 + $0x180] sm:$0xf]  ;;  %v5782_v8 = vld [vmem:[#allocation2 + $0x1ec] sm:$0xf0] }
 0x6e9   :  { %v9786_v48 = vld [vmem:[#allocation18_spill] sm:$0xff] }
 0x6ea   :  { %v4816_v22 = vadd.f32 %v4815_v52, %v4687_v7  ;;  %v4951_v47 = vpop.f32.mrf.mxu0  ;;  %v4822_v12 = vpop.f32.mrf.mxu3 }
 0x6ec   :  { %v9339_v27 = vadd.f32 %v4944_v21, %v4816_v22  ;;  %5126 = vmatmul.bf16.gmra.mxu2 %v5709_v15  ;;  %v5705_v21 = vor.u32 %v6440_v14, %v5702_v30  ;;  %v6454_v15 = vld [vmem:[#allocation2 + $0x1a0] sm:$0xf0]  ;;  %v6464_v14 = vld [vmem:[#allocation2 + $0x1f0] sm:$0xf0] }
 0x6ed   :  { %v4559_v49 = vpop.f32.mrf.mxu1  ;;  %v9784_v22 = vld [vmem:[#allocation9_spill] sm:$0xff] }
 0x6ee   :  { %9781 = vst [vmem:[#allocation10_spill] sm:$0xff] %v9339_v27  ;;  %v4560_v42 = vadd.f32 %v4559_v49, %v9782_v41 }
 0x6ef   :  { %v4691_v24 = vpop.f32.mrf.mxu2  ;;  %5260 = vmatmul.bf16.gmra.mxu3 %v5749_v54  ;;  %v5788_v54 = vld [vmem:[#allocation2 + $0x1d0] sm:$0xf] }
 0x6f0   :  { %v4689_v55 = vadd.f32 %v4688_v50, %v4560_v42  ;;  %v5745_v50 = vor.u32 %v6454_v15, %v5744_v59 }
 0x6f2   :  { %v4818_v0 = vadd.f32 %v4817_v23, %v4689_v55  ;;  %v4954_v7 = vpop.f32.mrf.mxu0  ;;  %v4825_v27 = vpop.f32.mrf.mxu3  ;;  %v6459_v23 = vld [vmem:[#allocation2 + $0x1cc] sm:$0xf] }
 0x6f4   :  { %v9342_v52 = vadd.f32 %v4946_v17, %v4818_v0 }
 0x6f5   :  { %v4562_v25 = vpop.f32.mrf.mxu1  ;;  %5389 = vmatmul.bf16.gmra.mxu0 %v5753_v28 }
 0x6f6   :  { %9783 = vst [vmem:[#allocation24_spill] sm:$0xff] %v9342_v52  ;;  %v4563_v49 = vadd.f32 %v4562_v25, %v9784_v22  ;;  %v5785_v25 = vor.u32 %v6459_v23, %v5782_v8  ;;  %v6449_v22 = vld [vmem:[#allocation2 + $0x17c] sm:$0xf] }
 0x6f7   :  { %v4693_v41 = vpop.f32.mrf.mxu2 }
 0x6f8   :  { %v4692_v60 = vadd.f32 %v4691_v24, %v4563_v49  ;;  %4997 = vmatmul.bf16.gmra.mxu1 %v5705_v21  ;;  %v5738_v24 = vld [vmem:[#allocation2 + $0x19c] sm:$0xf0]  ;;  %v5789_v21 = vor.u32 %v6464_v14, %v5788_v54  ;;  %v5780_v49 = vld [vmem:[#allocation2 + $0x1c8] sm:$0xf]  ;;  %v5818_v54 = vld [vmem:[#allocation2 + $0x234] sm:$0xf0] }
 0x6f9   :  { %v9790_v14 = vld [vmem:[#allocation20_spill] sm:$0xff] }
 0x6fa   :  { %v4821_v13 = vadd.f32 %v4820_v16, %v4692_v60  ;;  %v4956_v11 = vpop.f32.mrf.mxu0  ;;  %v4827_v28 = vpop.f32.mrf.mxu3 }
 0x6fc   :  { %v9345_v42 = vadd.f32 %v4949_v26, %v4821_v13  ;;  %5131 = vmatmul.bf16.gmra.mxu2 %v5745_v50  ;;  %v5741_v26 = vor.u32 %v6449_v22, %v5738_v24  ;;  %v6463_v50 = vld [vmem:[#allocation2 + $0x1e8] sm:$0xf0]  ;;  %v9788_v13 = vld [vmem:[#allocation12_spill] sm:$0xff] }
 0x6fd   :  { %v4564_v17 = vpop.f32.mrf.mxu1  ;;  %v6473_v22 = vld [vmem:[#allocation2 + $0x238] sm:$0xf0] }
 0x6fe   :  { %9785 = vst [vmem:[#allocation11_spill] sm:$0xff] %v9345_v42  ;;  %v4565_v55 = vadd.f32 %v4564_v17, %v9786_v48 }
 0x6ff   :  { %v4696_v30 = vpop.f32.mrf.mxu2  ;;  %5265 = vmatmul.bf16.gmra.mxu3 %v5785_v25  ;;  %v5824_v25 = vld [vmem:[#allocation2 + $0x218] sm:$0xf] }
 0x700   :  { %v4694_v0 = vadd.f32 %v4693_v41, %v4565_v55  ;;  %v5781_v41 = vor.u32 %v6463_v50, %v5780_v49 }
 0x702   :  { %v4823_v59 = vadd.f32 %v4822_v12, %v4694_v0  ;;  %v4959_v16 = vpop.f32.mrf.mxu0  ;;  %v4830_v42 = vpop.f32.mrf.mxu3  ;;  %v6468_v12 = vld [vmem:[#allocation2 + $0x214] sm:$0xf] }
 0x704   :  { %v9348_v60 = vadd.f32 %v4951_v47, %v4823_v59 }
 0x705   :  { %v4567_v15 = vpop.f32.mrf.mxu1  ;;  %5394 = vmatmul.bf16.gmra.mxu0 %v5789_v21 }
 0x706   :  { %9787 = vst [vmem:[#allocation8_spill] sm:$0xff] %v9348_v60  ;;  %v4568_v17 = vadd.f32 %v4567_v15, %v9788_v13  ;;  %v5821_v15 = vor.u32 %v6468_v12, %v5818_v54  ;;  %v6458_v13 = vld [vmem:[#allocation2 + $0x1c4] sm:$0xf] }
 0x707   :  { %v4698_v48 = vpop.f32.mrf.mxu2 }
 0x708   :  { %v4697_v52 = vadd.f32 %v4696_v30, %v4568_v17  ;;  %5002 = vmatmul.bf16.gmra.mxu1 %v5741_v26  ;;  %v5774_v30 = vld [vmem:[#allocation2 + $0x1e4] sm:$0xf0]  ;;  %v5825_v26 = vor.u32 %v6473_v22, %v5824_v25  ;;  %v5816_v17 = vld [vmem:[#allocation2 + $0x210] sm:$0xf]  ;;  %v5854_v25 = vld [vmem:[#allocation2 + $0x27c] sm:$0xf0] }
 0x709   :  { %v9794_v22 = vld [vmem:[#allocation5_spill] sm:$0xff] }
 0x70a   :  { %v4826_v23 = vadd.f32 %v4825_v27, %v4697_v52  ;;  %v4961_v8 = vpop.f32.mrf.mxu0  ;;  %v4832_v21 = vpop.f32.mrf.mxu3 }
 0x70c   :  { %v9351_v55 = vadd.f32 %v4954_v7, %v4826_v23  ;;  %5136 = vmatmul.bf16.gmra.mxu2 %v5781_v41  ;;  %v5777_v7 = vor.u32 %v6458_v13, %v5774_v30  ;;  %v6472_v41 = vld [vmem:[#allocation2 + $0x230] sm:$0xf0]  ;;  %v9792_v23 = vld [vmem:[#allocation21_spill] sm:$0xff] }
 0x70d   :  { %v4569_v47 = vpop.f32.mrf.mxu1  ;;  %v6482_v13 = vld [vmem:[#allocation2 + $0x280] sm:$0xf0] }
 0x70e   :  { %9789 = vst [vmem:[#allocation25_spill] sm:$0xff] %v9351_v55  ;;  %v4570_v0 = vadd.f32 %v4569_v47, %v9790_v14 }
 0x70f   :  { %v4701_v24 = vpop.f32.mrf.mxu2  ;;  %5270 = vmatmul.bf16.gmra.mxu3 %v5821_v15  ;;  %v5860_v15 = vld [vmem:[#allocation2 + $0x260] sm:$0xf] }
 0x710   :  { %v4699_v59 = vadd.f32 %v4698_v48, %v4570_v0  ;;  %v5817_v48 = vor.u32 %v6472_v41, %v5816_v17 }
 0x712   :  { %v4828_v49 = vadd.f32 %v4827_v28, %v4699_v59  ;;  %v4964_v27 = vpop.f32.mrf.mxu0  ;;  %v4835_v55 = vpop.f32.mrf.mxu3  ;;  %v6477_v28 = vld [vmem:[#allocation2 + $0x25c] sm:$0xf] }
 0x714   :  { %v9354_v52 = vadd.f32 %v4956_v11, %v4828_v49 }
 0x715   :  { %v4572_v50 = vpop.f32.mrf.mxu1  ;;  %5399 = vmatmul.bf16.gmra.mxu0 %v5825_v26 }
 0x716   :  { %9791 = vst [vmem:[#allocation13_spill] sm:$0xff] %v9354_v52  ;;  %v4573_v47 = vadd.f32 %v4572_v50, %v9792_v23  ;;  %v5857_v50 = vor.u32 %v6477_v28, %v5854_v25  ;;  %v6467_v23 = vld [vmem:[#allocation2 + $0x20c] sm:$0xf] }
 0x717   :  { %v4703_v14 = vpop.f32.mrf.mxu2 }
 0x718   :  { %v4702_v60 = vadd.f32 %v4701_v24, %v4573_v47  ;;  %5007 = vmatmul.bf16.gmra.mxu1 %v5777_v7  ;;  %v5810_v24 = vld [vmem:[#allocation2 + $0x22c] sm:$0xf0]  ;;  %v5861_v7 = vor.u32 %v6482_v13, %v5860_v15  ;;  %v5852_v47 = vld [vmem:[#allocation2 + $0x258] sm:$0xf]  ;;  %v5890_v15 = vld [vmem:[#allocation2 + $0x2c4] sm:$0xf0] }
 0x719   :  { %v9798_v13 = vld [vmem:[#allocation16_spill] sm:$0xff] }
 0x71a   :  { %v4831_v12 = vadd.f32 %v4830_v42, %v4702_v60  ;;  %v4966_v54 = vpop.f32.mrf.mxu0  ;;  %v4837_v26 = vpop.f32.mrf.mxu3 }
 0x71c   :  { %v9357_v0 = vadd.f32 %v4959_v16, %v4831_v12  ;;  %5141 = vmatmul.bf16.gmra.mxu2 %v5817_v48  ;;  %v5813_v16 = vor.u32 %v6467_v23, %v5810_v24  ;;  %v6481_v48 = vld [vmem:[#allocation2 + $0x278] sm:$0xf0]  ;;  %v9796_v12 = vld [vmem:[#allocation22_spill] sm:$0xff] }
 0x71d   :  { %v4574_v11 = vpop.f32.mrf.mxu1  ;;  %v6491_v23 = vld [vmem:[#allocation2 + $0x2c8] sm:$0xf0] }
 0x71e   :  { %9793 = vst [vmem:[#allocation17_spill] sm:$0xff] %v9357_v0  ;;  %v4575_v59 = vadd.f32 %v4574_v11, %v9794_v22 }
 0x71f   :  { %v4706_v30 = vpop.f32.mrf.mxu2  ;;  %5275 = vmatmul.bf16.gmra.mxu3 %v5857_v50  ;;  %v5896_v50 = vld [vmem:[#allocation2 + $0x2a8] sm:$0xf] }
 0x720   :  { %v4704_v49 = vadd.f32 %v4703_v14, %v4575_v59  ;;  %v5853_v14 = vor.u32 %v6481_v48, %v5852_v47 }
 0x722   :  { %v4833_v17 = vadd.f32 %v4832_v21, %v4704_v49  ;;  %v5365_v42 = vpop.f32.mrf.mxu0  ;;  %v5236_v0 = vpop.f32.mrf.mxu3  ;;  %v6486_v21 = vld [vmem:[#allocation2 + $0x2a4] sm:$0xf] }
 0x724   :  { %v9360_v60 = vadd.f32 %v4961_v8, %v4833_v17 }
 0x725   :  { %v4577_v41 = vpop.f32.mrf.mxu1  ;;  %5404 = vmatmul.bf16.gmra.mxu0 %v5861_v7 }
 0x726   :  { %9795 = vst [vmem:[#allocation27_spill] sm:$0xff] %v9360_v60  ;;  %v4578_v11 = vadd.f32 %v4577_v41, %v9796_v12  ;;  %v5893_v41 = vor.u32 %v6486_v21, %v5890_v15  ;;  %v6476_v12 = vld [vmem:[#allocation2 + $0x254] sm:$0xf] }
 0x727   :  { %v4708_v22 = vpop.f32.mrf.mxu2 }
 0x728   :  { %v4707_v52 = vadd.f32 %v4706_v30, %v4578_v11  ;;  %5012 = vmatmul.bf16.gmra.mxu1 %v5813_v16  ;;  %v5846_v30 = vld [vmem:[#allocation2 + $0x274] sm:$0xf0]  ;;  %v5897_v16 = vor.u32 %v6491_v23, %v5896_v50  ;;  %v5888_v11 = vld [vmem:[#allocation2 + $0x2a0] sm:$0xf]  ;;  %v5926_v50 = vld [vmem:[#allocation2 + $0x30c] sm:$0xf0] }
 0x72a   :  { %v4836_v28 = vadd.f32 %v4835_v55, %v4707_v52  ;;  %v5367_v25 = vpop.f32.mrf.mxu0  ;;  %v5238_v7 = vpop.f32.mrf.mxu3 }
 0x72c   :  { %v9363_v59 = vadd.f32 %v4964_v27, %v4836_v28  ;;  %5146 = vmatmul.bf16.gmra.mxu2 %v5853_v14  ;;  %v5849_v27 = vor.u32 %v6476_v12, %v5846_v30  ;;  %v6490_v14 = vld [vmem:[#allocation2 + $0x2c0] sm:$0xf0]  ;;  %v9799_v28 = vld [vmem:[#allocation7_spill] sm:$0xff] }
 0x72d   :  { %v4579_v8 = vpop.f32.mrf.mxu1 }
 0x72e   :  { %9797 = vst [vmem:[#allocation26_spill] sm:$0xff] %v9363_v59  ;;  %v4580_v49 = vadd.f32 %v4579_v8, %v9798_v13 }
 0x72f   :  { %v5107_v24 = vpop.f32.mrf.mxu2  ;;  %5280 = vmatmul.bf16.gmra.mxu3 %v5893_v41  ;;  %v6500_v41 = vld [vmem:[#allocation2 + $0x310] sm:$0xf0] }
 0x730   :  { %v4709_v17 = vadd.f32 %v4708_v22, %v4580_v49  ;;  %v5889_v22 = vor.u32 %v6490_v14, %v5888_v11 }
 0x732   :  { %v4838_v47 = vadd.f32 %v4837_v26, %v4709_v17  ;;  %v5370_v55 = vpop.f32.mrf.mxu0  ;;  %v5241_v59 = vpop.f32.mrf.mxu3  ;;  %v5932_v17 = vld [vmem:[#allocation2 + $0x2f0] sm:$0xf] }
 0x734   :  { %v9366_v52 = vadd.f32 %v4966_v54, %v4838_v47  ;;  %v6495_v54 = vld [vmem:[#allocation2 + $0x2ec] sm:$0xf] }
 0x735   :  { %v4978_v48 = vpop.f32.mrf.mxu1  ;;  %5409 = vmatmul.bf16.gmra.mxu0 %v5897_v16  ;;  %v5929_v16 = vor.u32 %v6495_v54, %v5926_v50  ;;  %v6504_v50 = vld [vmem:[#allocation2 + $0x334] sm:$0xf] }
 0x736   :  { %v4979_v8 = vadd.f32 %v4978_v48, %v9799_v28  ;;  %v5924_v28 = vld [vmem:[#allocation2 + $0x2e8] sm:$0xf] }
 0x737   :  { %v5109_v13 = vpop.f32.mrf.mxu2 }
 0x738   :  { %v5108_v60 = vadd.f32 %v5107_v24, %v4979_v8  ;;  %5017 = vmatmul.bf16.gmra.mxu1 %v5849_v27  ;;  %v6499_v8 = vld [vmem:[#allocation2 + $0x308] sm:$0xf0] }
 0x73a   :  { %v5237_v21 = vadd.f32 %v5236_v0, %v5108_v60  ;;  %v5372_v15 = vpop.f32.mrf.mxu0  ;;  %v5243_v24 = vpop.f32.mrf.mxu3  ;;  %v6485_v0 = vld [vmem:[#allocation2 + $0x29c] sm:$0xf]  ;;  %v5882_v60 = vld [vmem:[#allocation2 + $0x2bc] sm:$0xf0] }
 0x73b   :  { %v5885_v11 = vor.u32 %v6485_v0, %v5882_v60  ;;  %v5918_v60 = vld [vmem:[#allocation2 + $0x304] sm:$0xf0] }
 0x73c   :  { %v5366_v49 = vadd.f32 %v5365_v42, %v5237_v21  ;;  %5151 = vmatmul.bf16.gmra.mxu2 %v5889_v22  ;;  %v5933_v42 = vor.u32 %v6500_v41, %v5932_v17  ;;  %v6509_v41 = vld [vmem:[#allocation2 + $0x358] sm:$0xf0] }
 0x73d   :  { %v4980_v26 = vpop.f32.mrf.mxu1 }
 0x73e   :  { %5485 = vst.msk [vmem:[%s9613_s5] sm:$0xff] %vm85_vm0, %v5366_v49  ;;  %v4981_v23 = vadd.f32 %v4980_v26, %v9228_v58 }
 0x73f   :  { %v5112_v12 = vpop.f32.mrf.mxu2  ;;  %5285 = vmatmul.bf16.gmra.mxu3 %v5929_v16 }
 0x740   :  { %v5110_v30 = vadd.f32 %v5109_v13, %v4981_v23  ;;  %v5962_v23 = vld [vmem:[#allocation2 + $0x354] sm:$0xf0] }
 0x741   :  { %v5965_v0 = vor.u32 %v6504_v50, %v5962_v23  ;;  %v5998_v50 = vld [vmem:[#allocation2 + $0x39c] sm:$0xf0] }
 0x742   :  { %v5239_v47 = vadd.f32 %v5238_v7, %v5110_v30  ;;  %v5375_v27 = vpop.f32.mrf.mxu0  ;;  %v5246_v22 = vpop.f32.mrf.mxu3  ;;  %v5925_v7 = vor.u32 %v6499_v8, %v5924_v28  ;;  %v5960_v28 = vld [vmem:[#allocation2 + $0x330] sm:$0xf]  ;;  %v6508_v8 = vld [vmem:[#allocation2 + $0x350] sm:$0xf0] }
 0x744   :  { %v5368_v48 = vadd.f32 %v5367_v25, %v5239_v47 }
 0x745   :  { %v4983_v14 = vpop.f32.mrf.mxu1  ;;  %5414 = vmatmul.bf16.gmra.mxu0 %v5933_v42 }
 0x746   :  { %5486 = vst.msk [vmem:[%s9613_s5 + $0x8] sm:$0xff] %vm85_vm0, %v5368_v48  ;;  %v4984_v58 = vadd.f32 %v4983_v14, %v9231_v10  ;;  %v5968_v10 = vld [vmem:[#allocation2 + $0x338] sm:$0xf] }
 0x747   :  { %v5114_v13 = vpop.f32.mrf.mxu2 }
 0x748   :  { %v5113_v21 = vadd.f32 %v5112_v12, %v4984_v58  ;;  %5022 = vmatmul.bf16.gmra.mxu1 %v5885_v11 }
 0x74a   :  { %v5242_v49 = vadd.f32 %v5241_v59, %v5113_v21  ;;  %v5377_v25 = vpop.f32.mrf.mxu0  ;;  %v5248_v12 = vpop.f32.mrf.mxu3  ;;  %v6494_v59 = vld [vmem:[#allocation2 + $0x2e4] sm:$0xf] }
 0x74b   :  { %v5921_v11 = vor.u32 %v6494_v59, %v5918_v60 }
 0x74c   :  { %v5371_v26 = vadd.f32 %v5370_v55, %v5242_v49  ;;  %5156 = vmatmul.bf16.gmra.mxu2 %v5925_v7  ;;  %v5969_v55 = vor.u32 %v6509_v41, %v5968_v10 }
 0x74d   :  { %v4985_v54 = vpop.f32.mrf.mxu1 }
 0x74e   :  { %5487 = vst.msk [vmem:[%s9613_s5 + $0x10] sm:$0xff] %vm85_vm0, %v5371_v26  ;;  %v4986_v17 = vadd.f32 %v4985_v54, %v9234_v35  ;;  %v6513_v54 = vld [vmem:[#allocation2 + $0x37c] sm:$0xf] }
 0x74f   :  { %v5117_v30 = vpop.f32.mrf.mxu2  ;;  %5290 = vmatmul.bf16.gmra.mxu3 %v5965_v0  ;;  %v5954_v0 = vld [vmem:[#allocation2 + $0x34c] sm:$0xf0] }
 0x750   :  { %v5115_v16 = vadd.f32 %v5114_v13, %v4986_v17  ;;  %v6518_v17 = vld [vmem:[#allocation2 + $0x3a0] sm:$0xf0] }
 0x752   :  { %v5244_v42 = vadd.f32 %v5243_v24, %v5115_v16  ;;  %v5380_v47 = vpop.f32.mrf.mxu0  ;;  %v5251_v13 = vpop.f32.mrf.mxu3  ;;  %v5961_v24 = vor.u32 %v6508_v8, %v5960_v28  ;;  %v6001_v16 = vor.u32 %v6513_v54, %v5998_v50  ;;  %v6527_v54 = vld [vmem:[#allocation2 + $0x3e8] sm:$0xf0] }
 0x754   :  { %v5373_v48 = vadd.f32 %v5372_v15, %v5244_v42 }
 0x755   :  { %v4988_v14 = vpop.f32.mrf.mxu1  ;;  %5419 = vmatmul.bf16.gmra.mxu0 %v5969_v55 }
 0x756   :  { %5488 = vst.msk [vmem:[%s9613_s5 + $0x18] sm:$0xff] %vm85_vm0, %v5373_v48  ;;  %v4989_v35 = vadd.f32 %v4988_v14, %v9237_v9  ;;  %v6004_v9 = vld [vmem:[#allocation2 + $0x380] sm:$0xf]  ;;  %v6517_v14 = vld [vmem:[#allocation2 + $0x398] sm:$0xf0] }
 0x757   :  { %v5119_v58 = vpop.f32.mrf.mxu2 }
 0x758   :  { %v5118_v21 = vadd.f32 %v5117_v30, %v4989_v35  ;;  %5027 = vmatmul.bf16.gmra.mxu1 %v5921_v11  ;;  %v5996_v11 = vld [vmem:[#allocation2 + $0x378] sm:$0xf] }
 0x75a   :  { %v5247_v7 = vadd.f32 %v5246_v22, %v5118_v21  ;;  %v5382_v15 = vpop.f32.mrf.mxu0  ;;  %v5253_v41 = vpop.f32.mrf.mxu3  ;;  %v6503_v22 = vld [vmem:[#allocation2 + $0x32c] sm:$0xf] }
 0x75b   :  { %v5957_v42 = vor.u32 %v6503_v22, %v5954_v0 }
 0x75c   :  { %v5376_v49 = vadd.f32 %v5375_v27, %v5247_v7  ;;  %5161 = vmatmul.bf16.gmra.mxu2 %v5961_v24  ;;  %v6005_v27 = vor.u32 %v6518_v17, %v6004_v9  ;;  %v6522_v7 = vld [vmem:[#allocation2 + $0x3c4] sm:$0xf] }
 0x75d   :  { %v4990_v26 = vpop.f32.mrf.mxu1 }
 0x75e   :  { %5489 = vst.msk [vmem:[%s9613_s5 + $0x20] sm:$0xff] %vm85_vm0, %v5376_v49  ;;  %v4991_v23 = vadd.f32 %v4990_v26, %v9240_v44  ;;  %v6034_v49 = vld [vmem:[#allocation2 + $0x3e4] sm:$0xf0] }
 0x75f   :  { %v5122_v10 = vpop.f32.mrf.mxu2  ;;  %5295 = vmatmul.bf16.gmra.mxu3 %v6001_v16  ;;  %v6037_v17 = vor.u32 %v6522_v7, %v6034_v49 }
 0x760   :  { %v5120_v30 = vadd.f32 %v5119_v58, %v4991_v23 }
 0x762   :  { %v5249_v59 = vadd.f32 %v5248_v12, %v5120_v30  ;;  %v5385_v60 = vpop.f32.mrf.mxu0  ;;  %v5256_v8 = vpop.f32.mrf.mxu3  ;;  %v5997_v12 = vor.u32 %v6517_v14, %v5996_v11 }
 0x764   :  { %v5378_v55 = vadd.f32 %v5377_v25, %v5249_v59  ;;  %v6032_v59 = vld [vmem:[#allocation2 + $0x3c0] sm:$0xf] }
 0x765   :  { %v4993_v48 = vpop.f32.mrf.mxu1  ;;  %5424 = vmatmul.bf16.gmra.mxu0 %v6005_v27 }
 0x766   :  { %5490 = vst.msk [vmem:[%s9613_s5 + $0x28] sm:$0xff] %vm85_vm0, %v5378_v55  ;;  %v4994_v44 = vadd.f32 %v4993_v48, %v9243_v36  ;;  %v6040_v36 = vld [vmem:[#allocation2 + $0x3c8] sm:$0xf]  ;;  %v6526_v55 = vld [vmem:[#allocation2 + $0x3e0] sm:$0xf0] }
 0x767   :  { %v5124_v28 = vpop.f32.mrf.mxu2 }
 0x768   :  { %v5123_v35 = vadd.f32 %v5122_v10, %v4994_v44  ;;  %5032 = vmatmul.bf16.gmra.mxu1 %v5957_v42  ;;  %v5990_v10 = vld [vmem:[#allocation2 + $0x394] sm:$0xf0] }
 0x76a   :  { %v5252_v58 = vadd.f32 %v5251_v13, %v5123_v35  ;;  %v5387_v25 = vpop.f32.mrf.mxu0  ;;  %v5258_v23 = vpop.f32.mrf.mxu3  ;;  %v6512_v13 = vld [vmem:[#allocation2 + $0x374] sm:$0xf]  ;;  %v6531_v35 = vld [vmem:[#allocation2 + $0x40c] sm:$0xf] }
 0x76b   :  { %v5993_v0 = vor.u32 %v6512_v13, %v5990_v10  ;;  %v6068_v10 = vld [vmem:[#allocation2 + $0x408] sm:$0xf] }
 0x76c   :  { %v5381_v21 = vadd.f32 %v5380_v47, %v5252_v58  ;;  %5166 = vmatmul.bf16.gmra.mxu2 %v5997_v12  ;;  %v6041_v47 = vor.u32 %v6527_v54, %v6040_v36  ;;  %v6070_v12 = vld [vmem:[#allocation2 + $0x42c] sm:$0xf0]  ;;  %v6026_v36 = vld [vmem:[#allocation2 + $0x3dc] sm:$0xf0] }
 0x76d   :  { %v4995_v24 = vpop.f32.mrf.mxu1 }
 0x76e   :  { %5491 = vst.msk [vmem:[%s9613_s5 + $0x30] sm:$0xff] %vm85_vm0, %v5381_v21  ;;  %v4996_v26 = vadd.f32 %v4995_v24, %v9246_v43  ;;  %v6536_v21 = vld [vmem:[#allocation2 + $0x430] sm:$0xf0] }
 0x76f   :  { %v5127_v50 = vpop.f32.mrf.mxu2  ;;  %5300 = vmatmul.bf16.gmra.mxu3 %v6037_v17 }
 0x770   :  { %v5125_v9 = vadd.f32 %v5124_v28, %v4996_v26  ;;  %v6073_v26 = vor.u32 %v6531_v35, %v6070_v12  ;;  %v6062_v12 = vld [vmem:[#allocation2 + $0x424] sm:$0xf0] }
 0x772   :  { %v5254_v30 = vadd.f32 %v5253_v41, %v5125_v9  ;;  %v5390_v16 = vpop.f32.mrf.mxu0  ;;  %v5261_v48 = vpop.f32.mrf.mxu3  ;;  %v6033_v41 = vor.u32 %v6526_v55, %v6032_v59 }
 0x774   :  { %v5383_v22 = vadd.f32 %v5382_v15, %v5254_v30 }
 0x775   :  { %v4998_v27 = vpop.f32.mrf.mxu1  ;;  %5429 = vmatmul.bf16.gmra.mxu0 %v6041_v47  ;;  %v6535_v47 = vld [vmem:[#allocation2 + $0x428] sm:$0xf0] }
 0x776   :  { %5492 = vst.msk [vmem:[%s9613_s5 + $0x38] sm:$0xff] %vm85_vm0, %v5383_v22  ;;  %v4999_v43 = vadd.f32 %v4998_v27, %v9249_v2  ;;  %v6076_v2 = vld [vmem:[#allocation2 + $0x410] sm:$0xf] }
 0x777   :  { %v5129_v42 = vpop.f32.mrf.mxu2 }
 0x778   :  { %v5128_v11 = vadd.f32 %v5127_v50, %v4999_v43  ;;  %5037 = vmatmul.bf16.gmra.mxu1 %v5993_v0  ;;  %v6540_v43 = vld [vmem:[#allocation2 + $0x454] sm:$0xf] }
 0x77a   :  { %v5257_v14 = vadd.f32 %v5256_v8, %v5128_v11  ;;  %v5392_v15 = vpop.f32.mrf.mxu0  ;;  %v5263_v7 = vpop.f32.mrf.mxu3  ;;  %v6521_v8 = vld [vmem:[#allocation2 + $0x3bc] sm:$0xf] }
 0x77b   :  { %v6029_v17 = vor.u32 %v6521_v8, %v6026_v36  ;;  %v6544_v8 = vld [vmem:[#allocation2 + $0x470] sm:$0xf0] }
 0x77c   :  { %v5386_v44 = vadd.f32 %v5385_v60, %v5257_v14  ;;  %5171 = vmatmul.bf16.gmra.mxu2 %v6033_v41  ;;  %v6077_v60 = vor.u32 %v6536_v21, %v6076_v2  ;;  %v6545_v41 = vld [vmem:[#allocation2 + $0x478] sm:$0xf0] }
 0x77d   :  { %v5000_v28 = vpop.f32.mrf.mxu1 }
 0x77e   :  { %5493 = vst.msk [vmem:[%s9613_s5 + $0x40] sm:$0xff] %vm85_vm0, %v5386_v44  ;;  %v5001_v58 = vadd.f32 %v5000_v28, %v9252_v61 }
 0x77f   :  { %v5132_v24 = vpop.f32.mrf.mxu2  ;;  %5305 = vmatmul.bf16.gmra.mxu3 %v6073_v26  ;;  %v6104_v26 = vld [vmem:[#allocation2 + $0x450] sm:$0xf] }
 0x780   :  { %v5130_v49 = vadd.f32 %v5129_v42, %v5001_v58  ;;  %v6106_v42 = vld [vmem:[#allocation2 + $0x474] sm:$0xf0] }
 0x781   :  { %v6109_v35 = vor.u32 %v6540_v43, %v6106_v42 }
 0x782   :  { %v5259_v54 = vadd.f32 %v5258_v23, %v5130_v49  ;;  %v5395_v50 = vpop.f32.mrf.mxu0  ;;  %v5266_v22 = vpop.f32.mrf.mxu3  ;;  %v6069_v23 = vor.u32 %v6535_v47, %v6068_v10  ;;  %v6549_v10 = vld [vmem:[#allocation2 + $0x49c] sm:$0xf]  ;;  %v6142_v47 = vld [vmem:[#allocation2 + $0x4bc] sm:$0xf0] }
 0x784   :  { %v5388_v9 = vadd.f32 %v5387_v25, %v5259_v54 }
 0x785   :  { %v5003_v13 = vpop.f32.mrf.mxu1  ;;  %5434 = vmatmul.bf16.gmra.mxu0 %v6077_v60 }
 0x786   :  { %5494 = vst.msk [vmem:[%s9613_s5 + $0x48] sm:$0xff] %vm85_vm0, %v5388_v9  ;;  %v5004_v61 = vadd.f32 %v5003_v13, %v9255_v3  ;;  %v6112_v3 = vld [vmem:[#allocation2 + $0x458] sm:$0xf] }
 0x787   :  { %v5134_v30 = vpop.f32.mrf.mxu2 }
 0x788   :  { %v5133_v0 = vadd.f32 %v5132_v24, %v5004_v61  ;;  %5042 = vmatmul.bf16.gmra.mxu1 %v6029_v17 }
 0x78a   :  { %v5262_v27 = vadd.f32 %v5261_v48, %v5133_v0  ;;  %v5397_v25 = vpop.f32.mrf.mxu0  ;;  %v5268_v44 = vpop.f32.mrf.mxu3  ;;  %v6530_v48 = vld [vmem:[#allocation2 + $0x404] sm:$0xf] }
 0x78b   :  { %v6065_v24 = vor.u32 %v6530_v48, %v6062_v12 }
 0x78c   :  { %v5391_v59 = vadd.f32 %v5390_v16, %v5262_v27  ;;  %5176 = vmatmul.bf16.gmra.mxu2 %v6069_v23  ;;  %v6113_v16 = vor.u32 %v6545_v41, %v6112_v3 }
 0x78d   :  { %v5005_v55 = vpop.f32.mrf.mxu1 }
 0x78e   :  { %5495 = vst.msk [vmem:[%s9613_s5 + $0x50] sm:$0xff] %vm85_vm0, %v5391_v59  ;;  %v5006_v11 = vadd.f32 %v5005_v55, %v9258_v20  ;;  %v6145_v59 = vor.u32 %v6549_v10, %v6142_v47  ;;  %v6098_v55 = vld [vmem:[#allocation2 + $0x46c] sm:$0xf0] }
 0x78f   :  { %v5137_v14 = vpop.f32.mrf.mxu2  ;;  %5310 = vmatmul.bf16.gmra.mxu3 %v6109_v35 }
 0x790   :  { %v5135_v28 = vadd.f32 %v5134_v30, %v5006_v11  ;;  %v6554_v30 = vld [vmem:[#allocation2 + $0x4c0] sm:$0xf0] }
 0x792   :  { %v5264_v58 = vadd.f32 %v5263_v7, %v5135_v28  ;;  %v5400_v2 = vpop.f32.mrf.mxu0  ;;  %v5271_v60 = vpop.f32.mrf.mxu3  ;;  %v6105_v7 = vor.u32 %v6544_v8, %v6104_v26  ;;  %v6553_v28 = vld [vmem:[#allocation2 + $0x4b8] sm:$0xf0]  ;;  %v6563_v8 = vld [vmem:[#allocation2 + $0x508] sm:$0xf0] }
 0x794   :  { %v5393_v21 = vadd.f32 %v5392_v15, %v5264_v58 }
 0x795   :  { %v5008_v49 = vpop.f32.mrf.mxu1  ;;  %5439 = vmatmul.bf16.gmra.mxu0 %v6113_v16 }
 0x796   :  { %5496 = vst.msk [vmem:[%s9613_s5 + $0x58] sm:$0xff] %vm85_vm0, %v5393_v21  ;;  %v5009_v20 = vadd.f32 %v5008_v49, %v9261_v1  ;;  %v6148_v1 = vld [vmem:[#allocation2 + $0x4a0] sm:$0xf]  ;;  %v6178_v49 = vld [vmem:[#allocation2 + $0x504] sm:$0xf0] }
 0x797   :  { %v5139_v36 = vpop.f32.mrf.mxu2 }
 0x798   :  { %v5138_v54 = vadd.f32 %v5137_v14, %v5009_v20  ;;  %5047 = vmatmul.bf16.gmra.mxu1 %v6065_v24  ;;  %v6140_v14 = vld [vmem:[#allocation2 + $0x498] sm:$0xf]  ;;  %v6558_v24 = vld [vmem:[#allocation2 + $0x4e4] sm:$0xf] }
 0x79a   :  { %v5267_v9 = vadd.f32 %v5266_v22, %v5138_v54  ;;  %v5402_v15 = vpop.f32.mrf.mxu0  ;;  %v5273_v23 = vpop.f32.mrf.mxu3  ;;  %v6539_v22 = vld [vmem:[#allocation2 + $0x44c] sm:$0xf] }
 0x79b   :  { %v6101_v3 = vor.u32 %v6539_v22, %v6098_v55 }
 0x79c   :  { %v5396_v17 = vadd.f32 %v5395_v50, %v5267_v9  ;;  %5181 = vmatmul.bf16.gmra.mxu2 %v6105_v7  ;;  %v6149_v50 = vor.u32 %v6554_v30, %v6148_v1  ;;  %v6181_v7 = vor.u32 %v6558_v24, %v6178_v49  ;;  %v6134_v9 = vld [vmem:[#allocation2 + $0x4b4] sm:$0xf0]  ;;  %v6176_v1 = vld [vmem:[#allocation2 + $0x4e0] sm:$0xf]  ;;  %v6562_v30 = vld [vmem:[#allocation2 + $0x500] sm:$0xf0] }
 0x79d   :  { %v5010_v13 = vpop.f32.mrf.mxu1  ;;  %v6212_v49 = vld [vmem:[#allocation2 + $0x528] sm:$0xf] }
 0x79e   :  { %5497 = vst.msk [vmem:[%s9613_s5 + $0x60] sm:$0xff] %vm85_vm0, %v5396_v17  ;;  %v5011_v61 = vadd.f32 %v5010_v13, %v9264_v31 }
 0x79f   :  { %v5142_v0 = vpop.f32.mrf.mxu2  ;;  %5315 = vmatmul.bf16.gmra.mxu3 %v6145_v59 }
 0x7a0   :  { %v5140_v27 = vadd.f32 %v5139_v36, %v5011_v61 }
 0x7a2   :  { %v5269_v43 = vadd.f32 %v5268_v44, %v5140_v27  ;;  %v5405_v42 = vpop.f32.mrf.mxu0  ;;  %v5276_v48 = vpop.f32.mrf.mxu3  ;;  %v6141_v44 = vor.u32 %v6553_v28, %v6140_v14 }
 0x7a4   :  { %v5398_v11 = vadd.f32 %v5397_v25, %v5269_v43  ;;  %v6567_v43 = vld [vmem:[#allocation2 + $0x52c] sm:$0xf] }
 0x7a5   :  { %v5013_v41 = vpop.f32.mrf.mxu1  ;;  %5444 = vmatmul.bf16.gmra.mxu0 %v6149_v50 }
 0x7a6   :  { %5498 = vst.msk [vmem:[%s9613_s5 + $0x68] sm:$0xff] %vm85_vm0, %v5398_v11  ;;  %v5014_v31 = vadd.f32 %v5013_v41, %v9267_v46  ;;  %v6184_v46 = vld [vmem:[#allocation2 + $0x4e8] sm:$0xf]  ;;  %v6214_v11 = vld [vmem:[#allocation2 + $0x54c] sm:$0xf0] }
 0x7a7   :  { %v5144_v35 = vpop.f32.mrf.mxu2  ;;  %v6572_v41 = vld [vmem:[#allocation2 + $0x550] sm:$0xf0] }
 0x7a8   :  { %v5143_v12 = vadd.f32 %v5142_v0, %v5014_v31  ;;  %5052 = vmatmul.bf16.gmra.mxu1 %v6101_v3 }
 0x7aa   :  { %v5272_v16 = vadd.f32 %v5271_v60, %v5143_v12  ;;  %v5407_v25 = vpop.f32.mrf.mxu0  ;;  %v5278_v36 = vpop.f32.mrf.mxu3  ;;  %v6548_v60 = vld [vmem:[#allocation2 + $0x494] sm:$0xf]  ;;  %v6170_v12 = vld [vmem:[#allocation2 + $0x4fc] sm:$0xf0] }
 0x7ab   :  { %v6137_v47 = vor.u32 %v6548_v60, %v6134_v9  ;;  %v6576_v9 = vld [vmem:[#allocation2 + $0x574] sm:$0xf] }
 0x7ac   :  { %v5401_v58 = vadd.f32 %v5400_v2, %v5272_v16  ;;  %5186 = vmatmul.bf16.gmra.mxu2 %v6141_v44  ;;  %v6185_v2 = vor.u32 %v6563_v8, %v6184_v46 }
 0x7ad   :  { %v5015_v21 = vpop.f32.mrf.mxu1 }
 0x7ae   :  { %5499 = vst.msk [vmem:[%s9613_s5 + $0x70] sm:$0xff] %vm85_vm0, %v5401_v58  ;;  %v5016_v26 = vadd.f32 %v5015_v21, %v9270_v40 }
 0x7af   :  { %v5147_v20 = vpop.f32.mrf.mxu2  ;;  %5320 = vmatmul.bf16.gmra.mxu3 %v6181_v7 }
 0x7b0   :  { %v5145_v54 = vadd.f32 %v5144_v35, %v5016_v26  ;;  %v6217_v35 = vor.u32 %v6567_v43, %v6214_v11  ;;  %v6571_v26 = vld [vmem:[#allocation2 + $0x548] sm:$0xf0]  ;;  %v6580_v43 = vld [vmem:[#allocation2 + $0x590] sm:$0xf0] }
 0x7b2   :  { %v5274_v17 = vadd.f32 %v5273_v23, %v5145_v54  ;;  %v5410_v13 = vpop.f32.mrf.mxu0  ;;  %v5281_v27 = vpop.f32.mrf.mxu3  ;;  %v6177_v23 = vor.u32 %v6562_v30, %v6176_v1 }
 0x7b4   :  { %v5403_v10 = vadd.f32 %v5402_v15, %v5274_v17 }
 0x7b5   :  { %v5018_v61 = vpop.f32.mrf.mxu1  ;;  %5449 = vmatmul.bf16.gmra.mxu0 %v6185_v2  ;;  %v6250_v2 = vld [vmem:[#allocation2 + $0x594] sm:$0xf0] }
 0x7b6   :  { %5500 = vst.msk [vmem:[%s9613_s5 + $0x78] sm:$0xff] %vm85_vm0, %v5403_v10  ;;  %v5019_v40 = vadd.f32 %v5018_v61, %v9273_v34  ;;  %v6220_v34 = vld [vmem:[#allocation2 + $0x530] sm:$0xf]  ;;  %v6581_v10 = vld [vmem:[#allocation2 + $0x598] sm:$0xf0]  ;;  %v6253_v30 = vor.u32 %v6576_v9, %v6250_v2 }
 0x7b7   :  { %v5149_v0 = vpop.f32.mrf.mxu2 }
 0x7b8   :  { %v5148_v59 = vadd.f32 %v5147_v20, %v5019_v40  ;;  %5057 = vmatmul.bf16.gmra.mxu1 %v6137_v47  ;;  %v6566_v40 = vld [vmem:[#allocation2 + $0x524] sm:$0xf] }
 0x7ba   :  { %v5277_v22 = vadd.f32 %v5276_v48, %v5148_v59  ;;  %v5412_v15 = vpop.f32.mrf.mxu0  ;;  %v5283_v28 = vpop.f32.mrf.mxu3  ;;  %v6557_v48 = vld [vmem:[#allocation2 + $0x4dc] sm:$0xf] }
 0x7bb   :  { %v6173_v21 = vor.u32 %v6557_v48, %v6170_v12  ;;  %v6286_v48 = vld [vmem:[#allocation2 + $0x5dc] sm:$0xf0] }
 0x7bc   :  { %v5406_v55 = vadd.f32 %v5405_v42, %v5277_v22  ;;  %5191 = vmatmul.bf16.gmra.mxu2 %v6177_v23  ;;  %v6221_v42 = vor.u32 %v6572_v41, %v6220_v34 }
 0x7bd   :  { %v5020_v50 = vpop.f32.mrf.mxu1 }
 0x7be   :  { %5501 = vst.msk [vmem:[%s9613_s5 + $0x80] sm:$0xff] %vm85_vm0, %v5406_v55  ;;  %v5021_v3 = vadd.f32 %v5020_v50, %v9276_v56  ;;  %v6248_v50 = vld [vmem:[#allocation2 + $0x570] sm:$0xf] }
 0x7bf   :  { %v5152_v14 = vpop.f32.mrf.mxu2  ;;  %5325 = vmatmul.bf16.gmra.mxu3 %v6217_v35  ;;  %v6249_v41 = vor.u32 %v6580_v43, %v6248_v50  ;;  %v6585_v35 = vld [vmem:[#allocation2 + $0x5bc] sm:$0xf] }
 0x7c0   :  { %v5150_v31 = vadd.f32 %v5149_v0, %v5021_v3  ;;  %v6206_v0 = vld [vmem:[#allocation2 + $0x544] sm:$0xf0] }
 0x7c1   :  { %v6209_v22 = vor.u32 %v6566_v40, %v6206_v0  ;;  %v6599_v40 = vld [vmem:[#allocation2 + $0x628] sm:$0xf0] }
 0x7c2   :  { %v5279_v44 = vadd.f32 %v5278_v36, %v5150_v31  ;;  %v5415_v16 = vpop.f32.mrf.mxu0  ;;  %v5286_v8 = vpop.f32.mrf.mxu3  ;;  %v6213_v36 = vor.u32 %v6571_v26, %v6212_v49  ;;  %v6575_v49 = vld [vmem:[#allocation2 + $0x56c] sm:$0xf]  ;;  %v6242_v26 = vld [vmem:[#allocation2 + $0x58c] sm:$0xf0] }
 0x7c4   :  { %v5408_v58 = vadd.f32 %v5407_v25, %v5279_v44 }
 0x7c5   :  { %v5023_v24 = vpop.f32.mrf.mxu1  ;;  %5454 = vmatmul.bf16.gmra.mxu0 %v6221_v42  ;;  %v6590_v42 = vld [vmem:[#allocation2 + $0x5e0] sm:$0xf0] }
 0x7c6   :  { %5502 = vst.msk [vmem:[%s9613_s5 + $0x88] sm:$0xff] %vm85_vm0, %v5408_v58  ;;  %v5024_v56 = vadd.f32 %v5023_v24, %v9279_v38  ;;  %v6256_v38 = vld [vmem:[#allocation2 + $0x578] sm:$0xf]  ;;  %v6289_v24 = vor.u32 %v6585_v35, %v6286_v48 }
 0x7c7   :  { %v5154_v46 = vpop.f32.mrf.mxu2 }
 0x7c8   :  { %v5153_v20 = vadd.f32 %v5152_v14, %v5024_v56  ;;  %5062 = vmatmul.bf16.gmra.mxu1 %v6173_v21 }
 0x7ca   :  { %v5282_v54 = vadd.f32 %v5281_v27, %v5153_v20  ;;  %v5417_v25 = vpop.f32.mrf.mxu0  ;;  %v5288_v61 = vpop.f32.mrf.mxu3  ;;  %v6245_v20 = vor.u32 %v6575_v49, %v6242_v26 }
 0x7cc   :  { %v5411_v7 = vadd.f32 %v5410_v13, %v5282_v54  ;;  %5196 = vmatmul.bf16.gmra.mxu2 %v6213_v36  ;;  %v6257_v13 = vor.u32 %v6581_v10, %v6256_v38  ;;  %v6284_v54 = vld [vmem:[#allocation2 + $0x5b8] sm:$0xf] }
 0x7cd   :  { %v5025_v60 = vpop.f32.mrf.mxu1 }
 0x7ce   :  { %5503 = vst.msk [vmem:[%s9613_s5 + $0x90] sm:$0xff] %vm85_vm0, %v5411_v7  ;;  %v5026_v17 = vadd.f32 %v5025_v60, %v9282_v51  ;;  %v6589_v7 = vld [vmem:[#allocation2 + $0x5d8] sm:$0xf0] }
 0x7cf   :  { %v5157_v47 = vpop.f32.mrf.mxu2  ;;  %5330 = vmatmul.bf16.gmra.mxu3 %v6253_v30 }
 0x7d0   :  { %v5155_v1 = vadd.f32 %v5154_v46, %v5026_v17  ;;  %v6285_v17 = vor.u32 %v6589_v7, %v6284_v54 }
 0x7d2   :  { %v5284_v27 = vadd.f32 %v5283_v28, %v5155_v1  ;;  %v5420_v59 = vpop.f32.mrf.mxu0  ;;  %v5291_v3 = vpop.f32.mrf.mxu3  ;;  %v6322_v1 = vld [vmem:[#allocation2 + $0x624] sm:$0xf0] }
 0x7d4   :  { %v5413_v23 = vadd.f32 %v5412_v15, %v5284_v27 }
 0x7d5   :  { %v5028_v55 = vpop.f32.mrf.mxu1  ;;  %5459 = vmatmul.bf16.gmra.mxu0 %v6257_v13 }
 0x7d6   :  { %5504 = vst.msk [vmem:[%s9613_s5 + $0x98] sm:$0xff] %vm85_vm0, %v5413_v23  ;;  %v5029_v51 = vadd.f32 %v5028_v55, %v9285_v19  ;;  %v6292_v19 = vld [vmem:[#allocation2 + $0x5c0] sm:$0xf]  ;;  %v6278_v55 = vld [vmem:[#allocation2 + $0x5d4] sm:$0xf0] }
 0x7d7   :  { %v5159_v11 = vpop.f32.mrf.mxu2 }
 0x7d8   :  { %v5158_v34 = vadd.f32 %v5157_v47, %v5029_v51  ;;  %5067 = vmatmul.bf16.gmra.mxu1 %v6209_v22  ;;  %v6584_v22 = vld [vmem:[#allocation2 + $0x5b4] sm:$0xf] }
 0x7da   :  { %v5287_v14 = vadd.f32 %v5286_v8, %v5158_v34  ;;  %v5422_v15 = vpop.f32.mrf.mxu0  ;;  %v5293_v58 = vpop.f32.mrf.mxu3  ;;  %v6320_v34 = vld [vmem:[#allocation2 + $0x600] sm:$0xf] }
 0x7dc   :  { %v5416_v28 = vadd.f32 %v5415_v16, %v5287_v14  ;;  %5201 = vmatmul.bf16.gmra.mxu2 %v6249_v41  ;;  %v6293_v16 = vor.u32 %v6590_v42, %v6292_v19  ;;  %v6598_v41 = vld [vmem:[#allocation2 + $0x620] sm:$0xf0]  ;;  %v6603_v42 = vld [vmem:[#allocation2 + $0x64c] sm:$0xf] }
 0x7dd   :  { %v5030_v31 = vpop.f32.mrf.mxu1  ;;  %v6321_v35 = vor.u32 %v6598_v41, %v6320_v34  ;;  %v6392_v41 = vld [vmem:[#allocation2 + $0x690] sm:$0xf] }
 0x7de   :  { %5505 = vst.msk [vmem:[%s9613_s5 + $0xa0] sm:$0xff] %vm85_vm0, %v5416_v28  ;;  %v5031_v12 = vadd.f32 %v5030_v31, %v9288_v57 }
 0x7df   :  { %v5162_v44 = vpop.f32.mrf.mxu2  ;;  %5335 = vmatmul.bf16.gmra.mxu3 %v6289_v24 }
 0x7e0   :  { %v5160_v21 = vadd.f32 %v5159_v11, %v5031_v12  ;;  %v6281_v11 = vor.u32 %v6584_v22, %v6278_v55  ;;  %v6602_v55 = vld [vmem:[#allocation2 + $0x644] sm:$0xf] }
 0x7e2   :  { %v5289_v56 = vadd.f32 %v5288_v61, %v5160_v21  ;;  %v5425_v46 = vpop.f32.mrf.mxu0  ;;  %v5296_v9 = vpop.f32.mrf.mxu3  ;;  %v6594_v61 = vld [vmem:[#allocation2 + $0x604] sm:$0xf]  ;;  %v6608_v21 = vld [vmem:[#allocation2 + $0x670] sm:$0xf0] }
 0x7e3   :  { %v6325_v23 = vor.u32 %v6594_v61, %v6322_v1 }
 0x7e4   :  { %v5418_v8 = vadd.f32 %v5417_v25, %v5289_v56  ;;  %v6593_v56 = vld [vmem:[#allocation2 + $0x5fc] sm:$0xf] }
 0x7e5   :  { %v5033_v36 = vpop.f32.mrf.mxu1  ;;  %5464 = vmatmul.bf16.gmra.mxu0 %v6293_v16 }
 0x7e6   :  { %5506 = vst.msk [vmem:[%s9613_s5 + $0xa8] sm:$0xff] %vm85_vm0, %v5418_v8  ;;  %v5034_v57 = vadd.f32 %v5033_v36, %v9291_v4  ;;  %v6328_v4 = vld [vmem:[#allocation2 + $0x608] sm:$0xf]  ;;  %v6314_v8 = vld [vmem:[#allocation2 + $0x61c] sm:$0xf0] }
 0x7e7   :  { %v5164_v60 = vpop.f32.mrf.mxu2  ;;  %v6317_v7 = vor.u32 %v6593_v56, %v6314_v8 }
 0x7e8   :  { %v5163_v2 = vadd.f32 %v5162_v44, %v5034_v57  ;;  %5072 = vmatmul.bf16.gmra.mxu1 %v6245_v20  ;;  %v6358_v44 = vld [vmem:[#allocation2 + $0x66c] sm:$0xf0] }
 0x7e9   :  { %v6361_v16 = vor.u32 %v6603_v42, %v6358_v44 }
 0x7ea   :  { %v5292_v38 = vadd.f32 %v5291_v3, %v5163_v2  ;;  %v5427_v25 = vpop.f32.mrf.mxu0  ;;  %v5298_v13 = vpop.f32.mrf.mxu3 }
 0x7ec   :  { %v5421_v10 = vadd.f32 %v5420_v59, %v5292_v38  ;;  %5206 = vmatmul.bf16.gmra.mxu2 %v6285_v17  ;;  %v6329_v59 = vor.u32 %v6599_v40, %v6328_v4  ;;  %v6394_v4 = vld [vmem:[#allocation2 + $0x6b4] sm:$0xf0] }
 0x7ed   :  { %v5035_v47 = vpop.f32.mrf.mxu1 }
 0x7ee   :  { %5507 = vst.msk [vmem:[%s9613_s5 + $0xb0] sm:$0xff] %vm85_vm0, %v5421_v10  ;;  %v5036_v30 = vadd.f32 %v5035_v47, %v9294_v33 }
 0x7ef   :  { %v5167_v0 = vpop.f32.mrf.mxu2  ;;  %5340 = vmatmul.bf16.gmra.mxu3 %v6325_v23 }
 0x7f0   :  { %v5165_v27 = vadd.f32 %v5164_v60, %v5036_v30  ;;  %v6356_v60 = vld [vmem:[#allocation2 + $0x648] sm:$0xf]  ;;  %v6612_v30 = vld [vmem:[#allocation2 + $0x694] sm:$0xf] }
 0x7f1   :  { %v6397_v22 = vor.u32 %v6612_v30, %v6394_v4 }
 0x7f2   :  { %v5294_v50 = vadd.f32 %v5293_v58, %v5165_v27  ;;  %v5430_v43 = vpop.f32.mrf.mxu0  ;;  %v5301_v28 = vpop.f32.mrf.mxu3 }
 0x7f4   :  { %v5423_v51 = vadd.f32 %v5422_v15, %v5294_v50 }
 0x7f5   :  { %v5038_v3 = vpop.f32.mrf.mxu1  ;;  %5469 = vmatmul.bf16.gmra.mxu0 %v6329_v59  ;;  %v6350_v59 = vld [vmem:[#allocation2 + $0x664] sm:$0xf0] }
 0x7f6   :  { %5508 = vst.msk [vmem:[%s9613_s5 + $0xb8] sm:$0xff] %vm85_vm0, %v5423_v51  ;;  %v5039_v33 = vadd.f32 %v5038_v3, %v9297_v37  ;;  %v6364_v37 = vld [vmem:[#allocation2 + $0x650] sm:$0xf]  ;;  %v6353_v3 = vor.u32 %v6602_v55, %v6350_v59 }
 0x7f7   :  { %v5169_v14 = vpop.f32.mrf.mxu2 }
 0x7f8   :  { %v5168_v31 = vadd.f32 %v5167_v0, %v5039_v33  ;;  %5077 = vmatmul.bf16.gmra.mxu1 %v6281_v11  ;;  %v6617_v0 = vld [vmem:[#allocation2 + $0x6b8] sm:$0xf0]  ;;  %v6616_v33 = vld [vmem:[#allocation2 + $0x6b0] sm:$0xf0] }
 0x7fa   :  { %v5297_v48 = vadd.f32 %v5296_v9, %v5168_v31  ;;  %v5432_v15 = vpop.f32.mrf.mxu0  ;;  %v5303_v49 = vpop.f32.mrf.mxu3  ;;  %v6607_v9 = vld [vmem:[#allocation2 + $0x668] sm:$0xf0] }
 0x7fb   :  { %v6357_v10 = vor.u32 %v6607_v9, %v6356_v60 }
 0x7fc   :  { %v5426_v12 = vadd.f32 %v5425_v46, %v5297_v48  ;;  %5211 = vmatmul.bf16.gmra.mxu2 %v6321_v35  ;;  %v6365_v46 = vor.u32 %v6608_v21, %v6364_v37  ;;  %v6393_v35 = vor.u32 %v6616_v33, %v6392_v41  ;;  %v6611_v37 = vld [vmem:[#allocation2 + $0x68c] sm:$0xf]  ;;  %v6386_v21 = vld [vmem:[#allocation2 + $0x6ac] sm:$0xf0] }
 0x7fd   :  { %v5040_v19 = vpop.f32.mrf.mxu1 }
 0x7fe   :  { %5509 = vst.msk [vmem:[%s9613_s5 + $0xc0] sm:$0xff] %vm85_vm0, %v5426_v12  ;;  %v5041_v58 = vadd.f32 %v5040_v19, %v9300_v62 }
 0x7ff   :  { %v5172_v24 = vpop.f32.mrf.mxu2  ;;  %5345 = vmatmul.bf16.gmra.mxu3 %v6361_v16  ;;  %v6389_v16 = vor.u32 %v6611_v37, %v6386_v21  ;;  %v9802_v21 = vld [vmem:[#allocation29_spill] sm:$0xff] }
 0x800   :  { %v5170_v26 = vadd.f32 %v5169_v14, %v5041_v58 }
 0x802   :  { %v5299_v20 = vadd.f32 %v5298_v13, %v5170_v26  ;;  %v5435_v36 = vpop.f32.mrf.mxu0  ;;  %v5306_v17 = vpop.f32.mrf.mxu3 }
 0x804   :  { %v5428_v54 = vadd.f32 %v5427_v25, %v5299_v20 }
 0x805   :  { %v5043_v57 = vpop.f32.mrf.mxu1  ;;  %5474 = vmatmul.bf16.gmra.mxu0 %v6365_v46 }
 0x806   :  { %5510 = vst.msk [vmem:[%s9613_s5 + $0xc8] sm:$0xff] %vm85_vm0, %v5428_v54  ;;  %v5044_v62 = vadd.f32 %v5043_v57, %v9303_v53  ;;  %v6400_v53 = vld [vmem:[#allocation2 + $0x698] sm:$0xf] }
 0x807   :  { %v5174_v2 = vpop.f32.mrf.mxu2  ;;  %v6401_v50 = vor.u32 %v6617_v0, %v6400_v53 }
 0x808   :  { %v5173_v38 = vadd.f32 %v5172_v24, %v5044_v62  ;;  %5082 = vmatmul.bf16.gmra.mxu1 %v6317_v7 }
 0x80a   :  { %v5302_v47 = vadd.f32 %v5301_v28, %v5173_v38  ;;  %v5437_v25 = vpop.f32.mrf.mxu0  ;;  %v5308_v27 = vpop.f32.mrf.mxu3 }
 0x80c   :  { %v5431_v61 = vadd.f32 %v5430_v43, %v5302_v47  ;;  %5216 = vmatmul.bf16.gmra.mxu2 %v6357_v10 }
 0x80d   :  { %v5045_v1 = vpop.f32.mrf.mxu1 }
 0x80e   :  { %5511 = vst.msk [vmem:[%s9613_s5 + $0xd0] sm:$0xff] %vm85_vm0, %v5431_v61  ;;  %v5046_v40 = vadd.f32 %v5045_v1, %v9306_v39 }
 0x80f   :  { %v5177_v13 = vpop.f32.mrf.mxu2  ;;  %5350 = vmatmul.bf16.gmra.mxu3 %v6397_v22 }
 0x810   :  { %v5175_v23 = vadd.f32 %v5174_v2, %v5046_v40 }
 0x812   :  { %v5304_v43 = vadd.f32 %v5303_v49, %v5175_v23  ;;  %v5440_v51 = vpop.f32.mrf.mxu0  ;;  %v5311_v28 = vpop.f32.mrf.mxu3 }
 0x814   :  { %v5433_v11 = vadd.f32 %v5432_v15, %v5304_v43 }
 0x815   :  { %v5048_v34 = vpop.f32.mrf.mxu1  ;;  %5479 = vmatmul.bf16.gmra.mxu0 %v6401_v50 }
 0x816   :  { %5512 = vst.msk [vmem:[%s9613_s5 + $0xd8] sm:$0xff] %vm85_vm0, %v5433_v11  ;;  %v5049_v39 = vadd.f32 %v5048_v34, %v9309_v18  ;;  %v9800_v34 = vld [vmem:[#allocation19_spill] sm:$0xff] }
 0x817   :  { %v5179_v14 = vpop.f32.mrf.mxu2 }
 0x818   :  { %v5178_v31 = vadd.f32 %v5177_v13, %v5049_v39  ;;  %5087 = vmatmul.bf16.gmra.mxu1 %v6353_v3 }
 0x81a   :  { %v5307_v48 = vadd.f32 %v5306_v17, %v5178_v31  ;;  %v5442_v15 = vpop.f32.mrf.mxu0  ;;  %v5313_v58 = vpop.f32.mrf.mxu3 }
 0x81c   :  { %v5436_v12 = vadd.f32 %v5435_v36, %v5307_v48  ;;  %5221 = vmatmul.bf16.gmra.mxu2 %v6393_v35  ;;  %v9801_v48 = vld [vmem:[#allocation23_spill] sm:$0xff] }
 0x81d   :  { %v5050_v19 = vpop.f32.mrf.mxu1 }
 0x81e   :  { %5513 = vst.msk [vmem:[%s9613_s5 + $0xe0] sm:$0xff] %vm85_vm0, %v5436_v12  ;;  %v5051_v42 = vadd.f32 %v5050_v19, %v9312_v5 }
 0x81f   :  { %v5182_v44 = vpop.f32.mrf.mxu2 }
 0x820   :  { %v5180_v18 = vadd.f32 %v5179_v14, %v5051_v42 }
 0x822   :  { %v5309_v24 = vadd.f32 %v5308_v27, %v5180_v18  ;;  %v5445_v49 = vpop.f32.mrf.mxu0  ;;  %v5316_v20 = vpop.f32.mrf.mxu3 }
 0x824   :  { %v5438_v26 = vadd.f32 %v5437_v25, %v5309_v24 }
 0x825   :  { %v5053_v56 = vpop.f32.mrf.mxu1 }
 0x826   :  { %5514 = vst.msk [vmem:[%s9613_s5 + $0xe8] sm:$0xff] %vm85_vm0, %v5438_v26  ;;  %v5054_v8 = vadd.f32 %v5053_v56, %v9315_v45 }
 0x827   :  { %v5184_v46 = vpop.f32.mrf.mxu2 }
 0x828   :  { %v5183_v5 = vadd.f32 %v5182_v44, %v5054_v8  ;;  %5092 = vmatmul.bf16.gmra.mxu1 %v6389_v16 }
 0x82a   :  { %v5312_v36 = vadd.f32 %v5311_v28, %v5183_v5  ;;  %v5447_v54 = vpop.f32.mrf.mxu0  ;;  %v5318_v62 = vpop.f32.mrf.mxu3  ;;  %v9803_v5 = vld [vmem:[#allocation10_spill] sm:$0xff] }
 0x82c   :  { %v5441_v7 = vadd.f32 %v5440_v51, %v5312_v36 }
 0x82d   :  { %v5055_v57 = vpop.f32.mrf.mxu1 }
 0x82e   :  { %5515 = vst.msk [vmem:[%s9613_s5 + $0xf0] sm:$0xff] %vm85_vm0, %v5441_v7  ;;  %v5056_v60 = vadd.f32 %v5055_v57, %v9318_v63 }
 0x82f   :  { %v5187_v9 = vpop.f32.mrf.mxu2 }
 0x830   :  { %v5185_v2 = vadd.f32 %v5184_v46, %v5056_v60 }
 0x832   :  { %v5314_v17 = vadd.f32 %v5313_v58, %v5185_v2  ;;  %v5450_v45 = vpop.f32.mrf.mxu0  ;;  %v5321_v61 = vpop.f32.mrf.mxu3 }
 0x834   :  { %v5443_v38 = vadd.f32 %v5442_v15, %v5314_v17  ;;  %v9804_v17 = vld [vmem:[#allocation24_spill] sm:$0xff] }
 0x835   :  { %v5058_v10 = vpop.f32.mrf.mxu1 }
 0x836   :  { %5516 = vst.msk [vmem:[%s9613_s5 + $0xf8] sm:$0xff] %vm85_vm0, %v5443_v38  ;;  %v5059_v47 = vadd.f32 %v5058_v10, %v9321_v29 }
 0x837   :  { %v5189_v25 = vpop.f32.mrf.mxu2 }
 0x838   :  { %v5188_v1 = vadd.f32 %v5187_v9, %v5059_v47 }
 0x83a   :  { %v5317_v30 = vadd.f32 %v5316_v20, %v5188_v1  ;;  %v5452_v4 = vpop.f32.mrf.mxu0  ;;  %v5323_v13 = vpop.f32.mrf.mxu3 }
 0x83c   :  { %v5446_v63 = vadd.f32 %v5445_v49, %v5317_v30  ;;  %v9805_v30 = vld [vmem:[#allocation11_spill] sm:$0xff] }
 0x83d   :  { %v5060_v40 = vpop.f32.mrf.mxu1 }
 0x83e   :  { %5517 = vst.msk [vmem:[%s9613_s5 + $0x100] sm:$0xff] %vm85_vm0, %v5446_v63  ;;  %v5061_v53 = vadd.f32 %v5060_v40, %v9324_v6 }
 0x83f   :  { %v5192_v0 = vpop.f32.mrf.mxu2 }
 0x840   :  { %v5190_v27 = vadd.f32 %v5189_v25, %v5061_v53 }
 0x842   :  { %v5319_v23 = vadd.f32 %v5318_v62, %v5190_v27  ;;  %v5455_v29 = vpop.f32.mrf.mxu0  ;;  %v5326_v43 = vpop.f32.mrf.mxu3 }
 0x844   :  { %v5448_v22 = vadd.f32 %v5447_v54, %v5319_v23  ;;  %v9806_v23 = vld [vmem:[#allocation8_spill] sm:$0xff] }
 0x845   :  { %v5063_v55 = vpop.f32.mrf.mxu1 }
 0x846   :  { %5518 = vst.msk [vmem:[%s9613_s5 + $0x108] sm:$0xff] %vm85_vm0, %v5448_v22  ;;  %v5064_v59 = vadd.f32 %v5063_v55, %v9327_v32 }
 0x847   :  { %v5194_v50 = vpop.f32.mrf.mxu2 }
 0x848   :  { %v5193_v51 = vadd.f32 %v5192_v0, %v5064_v59 }
 0x84a   :  { %v5322_v11 = vadd.f32 %v5321_v61, %v5193_v51  ;;  %v5457_v33 = vpop.f32.mrf.mxu0  ;;  %v5328_v14 = vpop.f32.mrf.mxu3 }
 0x84c   :  { %v5451_v3 = vadd.f32 %v5450_v45, %v5322_v11 }
 0x84d   :  { %v5065_v6 = vpop.f32.mrf.mxu1 }
 0x84e   :  { %5519 = vst.msk [vmem:[%s9613_s5 + $0x110] sm:$0xff] %vm85_vm0, %v5451_v3  ;;  %v5066_v41 = vadd.f32 %v5065_v6, %v9800_v34  ;;  %v9807_v3 = vld [vmem:[#allocation25_spill] sm:$0xff] }
 0x84f   :  { %v5197_v39 = vpop.f32.mrf.mxu2 }
 0x850   :  { %v5195_v28 = vadd.f32 %v5194_v50, %v5066_v41 }
 0x852   :  { %v5324_v31 = vadd.f32 %v5323_v13, %v5195_v28  ;;  %v5331_v19 = vpop.f32.mrf.mxu3  ;;  %v5460_v44 = vpop.f32.mrf.mxu0 }
 0x854   :  { %v5453_v35 = vadd.f32 %v5452_v4, %v5324_v31 }
 0x855   :  { %v5068_v32 = vpop.f32.mrf.mxu1 }
 0x856   :  { %5520 = vst.msk [vmem:[%s9613_s5 + $0x118] sm:$0xff] %vm85_vm0, %v5453_v35  ;;  %v5069_v15 = vadd.f32 %v5068_v32, %v9801_v48  ;;  %v9808_v35 = vld [vmem:[#allocation13_spill] sm:$0xff] }
 0x857   :  { %v5199_v12 = vpop.f32.mrf.mxu2 }
 0x858   :  { %v5198_v42 = vadd.f32 %v5197_v39, %v5069_v15 }
 0x85a   :  { %v5327_v58 = vadd.f32 %v5326_v43, %v5198_v42  ;;  %v5333_v16 = vpop.f32.mrf.mxu3  ;;  %v5462_v8 = vpop.f32.mrf.mxu0 }
 0x85c   :  { %v5456_v18 = vadd.f32 %v5455_v29, %v5327_v58 }
 0x85d   :  { %v5070_v37 = vpop.f32.mrf.mxu1 }
 0x85e   :  { %5521 = vst.msk [vmem:[%s9613_s5 + $0x120] sm:$0xff] %vm85_vm0, %v5456_v18  ;;  %v5071_v24 = vadd.f32 %v5070_v37, %v9802_v21  ;;  %v9809_v18 = vld [vmem:[#allocation17_spill] sm:$0xff] }
 0x85f   :  { %v5202_v49 = vpop.f32.mrf.mxu2 }
 0x860   :  { %v5200_v26 = vadd.f32 %v5199_v12, %v5071_v24 }
 0x862   :  { %v5329_v56 = vadd.f32 %v5328_v14, %v5200_v26  ;;  %v5336_v60 = vpop.f32.mrf.mxu3  ;;  %v5465_v2 = vpop.f32.mrf.mxu0 }
 0x864   :  { %v5458_v46 = vadd.f32 %v5457_v33, %v5329_v56 }
 0x865   :  { %v5073_v20 = vpop.f32.mrf.mxu1 }
 0x866   :  { %5522 = vst.msk [vmem:[%s9613_s5 + $0x128] sm:$0xff] %vm85_vm0, %v5458_v46  ;;  %v5074_v36 = vadd.f32 %v5073_v20, %v9803_v5 }
 0x867   :  { %v5204_v54 = vpop.f32.mrf.mxu2 }
 0x868   :  { %v5203_v7 = vadd.f32 %v5202_v49, %v5074_v36 }
 0x86a   :  { %v5332_v57 = vadd.f32 %v5331_v19, %v5203_v7  ;;  %v5338_v1 = vpop.f32.mrf.mxu3  ;;  %v5467_v40 = vpop.f32.mrf.mxu0 }
 0x86c   :  { %v5461_v9 = vadd.f32 %v5460_v44, %v5332_v57 }
 0x86d   :  { %v5075_v62 = vpop.f32.mrf.mxu1 }
 0x86e   :  { %5523 = vst.msk [vmem:[%s9613_s5 + $0x130] sm:$0xff] %vm85_vm0, %v5461_v9  ;;  %v5076_v45 = vadd.f32 %v5075_v62, %v9804_v17 }
 0x86f   :  { %v5207_v38 = vpop.f32.mrf.mxu2 }
 0x870   :  { %v5205_v10 = vadd.f32 %v5204_v54, %v5076_v45 }
 0x872   :  { %v5334_v47 = vadd.f32 %v5333_v16, %v5205_v10  ;;  %v5341_v55 = vpop.f32.mrf.mxu3  ;;  %v5470_v50 = vpop.f32.mrf.mxu0 }
 0x874   :  { %v5463_v25 = vadd.f32 %v5462_v8, %v5334_v47  ;;  %v9810_v8 = vld [vmem:[#allocation27_spill] sm:$0xff] }
 0x875   :  { %v5078_v61 = vpop.f32.mrf.mxu1 }
 0x876   :  { %5524 = vst.msk [vmem:[%s9613_s5 + $0x138] sm:$0xff] %vm85_vm0, %v5463_v25  ;;  %v5079_v4 = vadd.f32 %v5078_v61, %v9805_v30 }
 0x877   :  { %v5209_v63 = vpop.f32.mrf.mxu2 }
 0x878   :  { %v5208_v53 = vadd.f32 %v5207_v38, %v5079_v4 }
 0x87a   :  { %v5337_v0 = vadd.f32 %v5336_v60, %v5208_v53  ;;  %v5343_v33 = vpop.f32.mrf.mxu3  ;;  %v5472_v14 = vpop.f32.mrf.mxu0  ;;  %v9811_v60 = vld [vmem:[#allocation26_spill] sm:$0xff] }
 0x87c   :  { %v5466_v13 = vadd.f32 %v5465_v2, %v5337_v0 }
 0x87d   :  { %v5080_v27 = vpop.f32.mrf.mxu1 }
 0x87e   :  { %5525 = vst.msk [vmem:[%s9613_s5 + $0x140] sm:$0xff] %vm85_vm0, %v5466_v13  ;;  %v5081_v22 = vadd.f32 %v5080_v27, %v9806_v23 }
 0x87f   :  { %v5212_v29 = vpop.f32.mrf.mxu2 }
 0x880   :  { %v5210_v59 = vadd.f32 %v5209_v63, %v5081_v22 }
 0x882   :  { %v5339_v43 = vadd.f32 %v5338_v1, %v5210_v59  ;;  %v5346_v19 = vpop.f32.mrf.mxu3  ;;  %v5475_v58 = vpop.f32.mrf.mxu0 }
 0x884   :  { %v5468_v51 = vadd.f32 %v5467_v40, %v5339_v43 }
 0x885   :  { %v5083_v11 = vpop.f32.mrf.mxu1 }
 0x886   :  { %5526 = vst.msk [vmem:[%s9613_s5 + $0x148] sm:$0xff] %vm85_vm0, %v5468_v51  ;;  %v5084_v6 = vadd.f32 %v5083_v11, %v9807_v3 }
 0x887   :  { %v5214_v34 = vpop.f32.mrf.mxu2 }
 0x888   :  { %v5213_v41 = vadd.f32 %v5212_v29, %v5084_v6 }
 0x88a   :  { %v5342_v39 = vadd.f32 %v5341_v55, %v5213_v41  ;;  %v5348_v56 = vpop.f32.mrf.mxu3  ;;  %v5477_v20 = vpop.f32.mrf.mxu0 }
 0x88c   :  { %v5471_v28 = vadd.f32 %v5470_v50, %v5342_v39 }
 0x88d   :  { %v5085_v31 = vpop.f32.mrf.mxu1 }
 0x88e   :  { %5527 = vst.msk [vmem:[%s9613_s5 + $0x150] sm:$0xff] %vm85_vm0, %v5471_v28  ;;  %v5086_v32 = vadd.f32 %v5085_v31, %v9808_v35 }
 0x88f   :  { %v5217_v15 = vpop.f32.mrf.mxu2 }
 0x890   :  { %v5215_v48 = vadd.f32 %v5214_v34, %v5086_v32 }
 0x892   :  { %v5344_v12 = vadd.f32 %v5343_v33, %v5215_v48  ;;  %v5351_v62 = vpop.f32.mrf.mxu3  ;;  %v5480_v17 = vpop.f32.mrf.mxu0 }
 0x894   :  { %v5473_v42 = vadd.f32 %v5472_v14, %v5344_v12 }
 0x895   :  { %v5088_v44 = vpop.f32.mrf.mxu1 }
 0x896   :  { %5528 = vst.msk [vmem:[%s9613_s5 + $0x158] sm:$0xff] %vm85_vm0, %v5473_v42  ;;  %v5089_v37 = vadd.f32 %v5088_v44, %v9809_v18 }
 0x897   :  { %v5219_v49 = vpop.f32.mrf.mxu2 }
 0x898   :  { %v5218_v21 = vadd.f32 %v5217_v15, %v5089_v37 }
 0x89a   :  { %v5347_v24 = vadd.f32 %v5346_v19, %v5218_v21  ;;  %v5353_v1 = vpop.f32.mrf.mxu3  ;;  %v5482_v4 = vpop.f32.mrf.mxu0 }
 0x89c   :  { %v5476_v26 = vadd.f32 %v5475_v58, %v5347_v24 }
 0x89d   :  { %v5090_v16 = vpop.f32.mrf.mxu1 }
 0x89e   :  { %5529 = vst.msk [vmem:[%s9613_s5 + $0x160] sm:$0xff] %vm85_vm0, %v5476_v26  ;;  %v5091_v46 = vadd.f32 %v5090_v16, %v9810_v8 }
 0x89f   :  { %v5222_v57 = vpop.f32.mrf.mxu2 }
 0x8a0   :  { %v5220_v5 = vadd.f32 %v5219_v49, %v5091_v46 }
 0x8a2   :  { %v5349_v36 = vadd.f32 %v5348_v56, %v5220_v5 }
 0x8a4   :  { %v5478_v54 = vadd.f32 %v5477_v20, %v5349_v36 }
 0x8a5   :  { %v5093_v7 = vpop.f32.mrf.mxu1 }
 0x8a6   :  { %5530 = vst.msk [vmem:[%s9613_s5 + $0x168] sm:$0xff] %vm85_vm0, %v5478_v54  ;;  %v5094_v9 = vadd.f32 %v5093_v7, %v9811_v60 }
 0x8a7   :  { %v5224_v25 = vpop.f32.mrf.mxu2 }
 0x8a8   :  { %v5223_v2 = vadd.f32 %v5222_v57, %v5094_v9 }
 0x8aa   :  { %v5352_v45 = vadd.f32 %v5351_v62, %v5223_v2 }
 0x8ac   :  { %v5481_v38 = vadd.f32 %v5480_v17, %v5352_v45 }
 0x8ad   :  { %v5095_v10 = vpop.f32.mrf.mxu1 }
 0x8ae   :  { %5531 = vst.msk [vmem:[%s9613_s5 + $0x170] sm:$0xff] %vm85_vm0, %v5481_v38  ;;  %v5096_v47 = vadd.f32 %v5095_v10, %v9366_v52 }
 0x8b0   :  { %v5225_v61 = vadd.f32 %v5224_v25, %v5096_v47 }
 0x8b2   :  { %v5354_v30 = vadd.f32 %v5353_v1, %v5225_v61 }
 0x8b4   :  { %v5483_v63 = vadd.f32 %v5482_v4, %v5354_v30 }
 0x8b6   :  { %5532 = vst.msk [vmem:[%s9613_s5 + $0x178] sm:$0xff] %vm85_vm0, %v5483_v63 }
 0x8b7   :  { %5537 = vsyncpa [#allocation3], 1 }

</bundles_post_ra>
